<compile_context>
chip_gen: v7x
topology: tpu7x:2x2x1
jax: 0.10.0
libtpu: 0.0.40
codegen_flags: <defaults>
</compile_context>

<pallas_src>
import functools
import math

import jax
import jax.numpy as jnp
import numpy as np
from jax.experimental import pallas as pl
from jax.experimental.pallas import tpu as pltpu


# ----------------------------- shared elementwise math ----------------------
# The same formulations are used inside the Pallas kernel and in the pure-JAX
# reference so the two paths differ only by op ordering, never by
# transcendental implementations.

_ERF_P = 0.3275911
_ERF_A1 = 0.254829592
_ERF_A2 = -0.284496736
_ERF_A3 = 1.421413741
_ERF_A4 = -1.453152027
_ERF_A5 = 1.061405429
_INV_SQRT2 = 1.0 / math.sqrt(2.0)


def _erf(x):
    # Abramowitz & Stegun 7.1.26 rational approximation, |err| <= 1.5e-7.
    # Only exp / mul / add / div / compare — all lower cleanly in Mosaic.
    s = jnp.where(x < 0.0, -1.0, 1.0)
    a = jnp.abs(x)
    t = 1.0 / (1.0 + _ERF_P * a)
    poly = ((((_ERF_A5 * t + _ERF_A4) * t + _ERF_A3) * t + _ERF_A2) * t + _ERF_A1) * t
    return s * (1.0 - poly * jnp.exp(-a * a))


def _gelu(x):
    # torch.nn.functional.gelu default (erf form), matched to <= 1.5e-7 abs.
    return 0.5 * x * (1.0 + _erf(x * _INV_SQRT2))


def _sigmoid(x):
    return 1.0 / (1.0 + jnp.exp(-x))


def _log_sigmoid(x):
    # numerically stable log(sigmoid(x)) using only exp/log/abs/min
    return jnp.minimum(x, 0.0) - jnp.log(1.0 + jnp.exp(-jnp.abs(x)))


def _round_up(a, b):
    return (a + b - 1) // b * b


# --------------------------------- kernel -----------------------------------
def capsule_fusion_kernel(xt_ref, wfuse_ref, bfuse_ref, wvote_ref, bvote_ref,
                          beta_use_ref, beta_ign_ref, *rest,
                          iters: int, n_out: int, out_dim: int, in_dim: int,
                          has_mask: bool, matmul_dtype):
    if has_mask:
        mask_ref, a_out_ref, mu_out_ref = rest
    else:
        a_out_ref, mu_out_ref = rest

    eps = 1e-8
    const = -1.0 - 0.5 * math.pi
    L = xt_ref.shape[0]
    nt = xt_ref.shape[2]                 # batch tile, multiple of 128 (lane axis)
    K = n_out * out_dim

    def mm(a, b, eq):
        # optional bf16 MXU operands (f32 accumulation).  Default keeps f32
        # operands so the kernel tracks the f32 reference to ~1e-6.
        if matmul_dtype is not None:
            a = a.astype(matmul_dtype)
            b = b.astype(matmul_dtype)
        return jnp.einsum(eq, a, b, preferred_element_type=jnp.float32)

    # ---- fused pose + score projection: one batched MXU matmul --------------
    # pre[l, e, n] = sum_d Wfuse[l, e, d] * x[n, l, d]   (Wscore is the last row)
    pre = mm(wfuse_ref[...], xt_ref[...], 'led,ldn->len') + bfuse_ref[...]
    mu_in = _gelu(pre[:, :in_dim, :])                          # (L, in_dim, nt)
    a_in = pre[:, in_dim:in_dim + 1, :]                        # (L, 1, nt)

    f = _sigmoid(a_in)[:, :, None, :]                          # (L, 1, 1, nt)
    if has_mask:
        f = f * mask_ref[...]
    fbu = beta_use_ref[...] * f                                # loop-invariant
    sum_f = jnp.sum(f, axis=0)                                 # (1, 1, nt), invariant

    # ---- fused votes: one batched MXU matmul, factored to (n_out, out_dim) --
    V = mm(wvote_ref[...], mu_in, 'lki,lin->lkn') + bvote_ref[...]   # (L, K, nt)
    V = V.reshape(L, n_out, out_dim, nt)                       # layout-preserving

    beta_ign = beta_ign_ref[...]                               # (n_out, 1, 1)

    a_out = mu_out = var_out = diff = None
    for t in range(iters):                                     # iters is static (>= 1)
        # ---- E-step: responsibilities R ----------------------------------
        if t == 0:
            R = jnp.full((1, n_out, 1, 1), 1.0 / n_out, dtype=jnp.float32)
        else:
            inv2var = 1.0 / (2.0 * var_out + eps)              # (n_out, out_dim, nt)
            quad = jnp.sum(diff * diff * inv2var[None], axis=2, keepdims=True)
            logvar = jnp.sum(jnp.log(var_out + eps), axis=1, keepdims=True)
            logits = (_log_sigmoid(a_out) + const - 0.5 * logvar)[None] - quad
            m = jnp.max(logits, axis=1, keepdims=True)         # softmax over n_out
            ex = jnp.exp(logits - m)
            R = ex / jnp.sum(ex, axis=1, keepdims=True)        # (L, n_out, 1, nt)

        # ---- M-step -------------------------------------------------------
        D_use = f * R                                          # (L, n_out, 1, nt)
        sum_du = jnp.sum(D_use, axis=0)                        # (n_out, 1, nt)
        a_out = jnp.sum(fbu * R, axis=0) - beta_ign * (sum_f - sum_du)
        denom = sum_du + eps
        mu_out = jnp.sum(D_use * V, axis=0) / denom            # (n_out, out_dim, nt)
        diff = V - mu_out[None]                                # reused by next E-step
        var_out = jnp.sum(D_use * diff * diff, axis=0) / denom

    # lane-dense stores: the batch tile nt (multiple of 128) is the lane axis.
    a_out_ref[...] = a_out                                     # (n_out, 1, nt)
    mu_out_ref[...] = mu_out                                   # (n_out, out_dim, nt)


# --------------------------------- wrapper ----------------------------------
def capsule_fusion_forward(x, params, mask=None, iters=3, depth_encoding=True,
                           matmul_dtype=None, block_n=256):
    """Pallas-backed forward pass of capsule_fusion.  x: (N, L, D) float32."""
    (l_enc, Wscore, Bscore, Wcap, Bcap, Wvote, Bvote, beta_use, beta_ign) = params
    n_in, n_out, in_dim, out_dim = Wvote.shape
    N, L, D = x.shape
    assert L == n_in, "invalid input"
    if iters < 1:
        raise ValueError("iters must be >= 1")
    K = n_out * out_dim
    f32 = jnp.float32

    x = x.astype(f32)
    if depth_encoding:
        x = x + l_enc.astype(f32)        # same op order as the reference / torch

    # ---- parameter folding / pre-transposition (tiny, once; layout only) ----
    Wfuse = jnp.concatenate(
        [jnp.transpose(Wcap.astype(f32).reshape(L, D, in_dim), (0, 2, 1)),
         jnp.transpose(Wscore.astype(f32).reshape(L, D, 1), (0, 2, 1))],
        axis=1)                                                     # (L, in_dim+1, D)
    Bfuse = jnp.concatenate([Bcap.astype(f32).reshape(L, in_dim),
                             Bscore.astype(f32).reshape(L, 1)],
                            axis=1)[:, :, None]                     # (L, in_dim+1, 1)
    WvoteT = jnp.transpose(Wvote.astype(f32), (0, 1, 3, 2)).reshape(L, K, in_dim)
    BvoteK = Bvote.astype(f32).reshape(L, K)[:, :, None]            # (L, K, 1)
    beta_use_k = beta_use.astype(f32).reshape(L, 1, 1, 1)
    beta_ign_k = beta_ign.astype(f32).reshape(n_out, 1, 1)

    # lane-flipped activations: batch on the minor (lane) axis
    xt = jnp.transpose(x, (1, 2, 0))                                # (L, D, N)
    mask_k = None
    if mask is not None:
        mask_k = jnp.transpose(mask.astype(f32), (1, 0))[:, None, None, :]  # (L,1,1,N)

    # ---- batch tiling: routing is independent per batch row ------------------
    LANE = 128
    block_n = max(LANE, _round_up(int(block_n), LANE))   # enforce lane-dense min tile
    n_lane = _round_up(N, LANE)
    nt = min(block_n, n_lane)
    if nt == n_lane and N > LANE:
        # >= 2 grid steps when there is enough work, so dual-TC chips (v7x)
        # shard the "parallel" batch axis across both TensorCores.
        nt = max(LANE, _round_up(n_lane // 2, LANE))

    def _slab_bytes(tile):
        # rough upper bound on the f32 VMEM live-set across the EM loop
        per_lane = (2 * L * D + L * (in_dim + 1) + 4 * L * K + 6 * L * n_out
                    + 6 * K + 8 * n_out)
        return 4 * tile * per_lane

    VMEM_BUDGET = 10 * 1024 * 1024   # conservative even for v7x's 64 MiB VMEM
    while nt > LANE and _slab_bytes(nt) > VMEM_BUDGET:
        nt -= LANE

    n_pad = _round_up(N, nt)
    if n_pad != N:
        xt = jnp.pad(xt, ((0, 0), (0, 0), (0, n_pad - N)))
        if mask_k is not None:
            mask_k = jnp.pad(mask_k, ((0, 0), (0, 0), (0, 0), (0, n_pad - N)))
    grid_n = n_pad // nt

    def resident(arr):
        # constant index_map: stays VMEM-resident across the batch grid.
        # (pl.Buffered(1) would also drop the double buffer, but the resident
        #  weights total < 100 KB here, so it is not worth the extra knob.)
        nd = arr.ndim
        return pl.BlockSpec(arr.shape, lambda i, _nd=nd: (0,) * _nd)

    in_specs = [pl.BlockSpec((L, D, nt), lambda i: (0, 0, i)),
                resident(Wfuse), resident(Bfuse),
                resident(WvoteT), resident(BvoteK),
                resident(beta_use_k), resident(beta_ign_k)]
    inputs = [xt, Wfuse, Bfuse, WvoteT, BvoteK, beta_use_k, beta_ign_k]
    if mask_k is not None:
        in_specs.append(pl.BlockSpec((L, 1, 1, nt), lambda i: (0, 0, 0, i)))
        inputs.append(mask_k)

    kernel = functools.partial(
        capsule_fusion_kernel, iters=iters, n_out=n_out, out_dim=out_dim,
        in_dim=in_dim, has_mask=mask_k is not None, matmul_dtype=matmul_dtype)

    # NOTE: no hard-coded vmem_limit_bytes — the tile-size guard above keeps the
    # live set around 10 MiB, inside every generation's scoped-VMEM default.
    a_t, mu_t = pl.pallas_call(
        kernel,
        out_shape=(jax.ShapeDtypeStruct((n_out, 1, n_pad), f32),
                   jax.ShapeDtypeStruct((n_out, out_dim, n_pad), f32)),
        grid=(grid_n,),
        in_specs=in_specs,
        out_specs=(pl.BlockSpec((n_out, 1, nt), lambda i: (0, 0, i)),
                   pl.BlockSpec((n_out, out_dim, nt), lambda i: (0, 0, i))),
        compiler_params=pltpu.CompilerParams(
            dimension_semantics=("parallel",)),
    )(*inputs)

    a_out = jnp.transpose(a_t[:, 0, :N], (1, 0))                    # (N, n_out)
    mu_out = jnp.transpose(mu_t[:, :, :N], (2, 0, 1))               # (N, n_out, out_dim)
    return a_out, mu_out


# ----------------------------- pure-JAX reference ---------------------------
def capsule_fusion_ref(x, params, mask=None, iters=3, depth_encoding=True):
    (l_enc, Wscore, Bscore, Wcap, Bcap, Wvote, Bvote, beta_use, beta_ign) = params
    n_in, n_out, in_dim, out_dim = Wvote.shape
    eps = 1e-8
    N, L, D = x.shape
    P = jax.lax.Precision.HIGHEST        # true-f32 matmuls even on TPU
    if depth_encoding:
        x = x + l_enc
    x_t = jnp.transpose(x, (1, 0, 2))
    a_in = jnp.matmul(x_t, Wscore, precision=P) + Bscore
    mu_in = _gelu(jnp.matmul(x_t, Wcap, precision=P) + Bcap)
    f_a_in = _sigmoid(a_in)
    if mask is not None:
        f_a_in = f_a_in * jnp.transpose(mask.reshape(N, L, 1), (1, 0, 2))
    f_a_in = f_a_in.reshape(L, 1, N, 1)
    mu_in = jnp.repeat(mu_in.reshape(L, 1, N, in_dim), n_out, axis=1)
    V = jnp.matmul(mu_in, Wvote, precision=P) + Bvote              # (L, n_out, N, out_dim)
    a_out = mu_out = var_out = None
    for t in range(iters):
        if t == 0:
            R = jnp.full((1, n_out, 1, 1), 1.0 / n_out, jnp.float32)
        else:
            log_p = (-jnp.sum((V - mu_out[None]) ** 2 / (2.0 * var_out[None] + eps), axis=-1)
                     - 1.0 - 0.5 * math.pi
                     - 0.5 * jnp.sum(jnp.log(var_out[None] + eps), axis=-1))
            R = jax.nn.softmax(_log_sigmoid(a_out)[None] + log_p[..., None], axis=1)
        D_use = f_a_in * R
        D_ign = f_a_in - D_use
        a_out = jnp.sum(beta_use * D_use, axis=0) - jnp.sum(beta_ign * D_ign, axis=0)
        denom = jnp.sum(D_use, axis=0) + eps
        mu_out = jnp.sum(D_use * V, axis=0) / denom
        var_out = jnp.sum(D_use * (V - mu_out[None]) ** 2, axis=0) / denom
    a_out = jnp.transpose(a_out.reshape(n_out, N), (1, 0))
    mu_out = jnp.transpose(mu_out, (1, 0, 2))
    return a_out, mu_out


# ----------------------------- deterministic init ---------------------------
def init_params(key, n_in, n_out, D, in_dim, out_dim):
    k1, k2, k3, k4 = jax.random.split(key, 4)

    def xavier(k, shape):
        recep = int(np.prod(shape[2:])) if len(shape) > 2 else 1
        fan_in, fan_out = shape[1] * recep, shape[0] * recep
        bound = math.sqrt(6.0 / (fan_in + fan_out))
        return jax.random.uniform(k, shape, jnp.float32, -bound, bound)

    l_enc = jax.random.normal(k1, (1, n_in, D), jnp.float32)
    Wscore = xavier(k2, (n_in, D, 1))
    Bscore = jnp.zeros((n_in, 1, 1), jnp.float32)
    Wcap = xavier(k3, (n_in, D, in_dim))
    Bcap = jnp.zeros((n_in, 1, in_dim), jnp.float32)
    Wvote = xavier(k4, (n_in, n_out, in_dim, out_dim))
    Bvote = jnp.zeros((n_in, n_out, 1, out_dim), jnp.float32)
    beta_use = jnp.zeros((n_in, 1, 1, 1), jnp.float32)
    beta_ign = jnp.zeros((1, n_out, 1, 1), jnp.float32)
    return (l_enc, Wscore, Bscore, Wcap, Bcap, Wvote, Bvote, beta_use, beta_ign)


if __name__ == "__main__":
    N, n_in, D = 2, 4, 32          # batch, input capsules (L), feature dim
    in_dim, out_dim, n_out = 16, 16, 6
    iters = 3

    key = jax.random.PRNGKey(0)
    kx, kp, kx2, km = jax.random.split(key, 4)
    x = jax.random.normal(kx, (N, n_in, D), jnp.float32)
    params = init_params(kp, n_in, n_out, D, in_dim, out_dim)

    # --- primary path: no mask, single grid step ------------------------------
    a_out, mu_out = capsule_fusion_forward(x, params, mask=None, iters=iters,
                                           depth_encoding=True)
    jax.block_until_ready((a_out, mu_out))
    a_ref, mu_ref = capsule_fusion_ref(x, params, mask=None, iters=iters,
                                       depth_encoding=True)
    assert a_out.shape == (N, n_out)
    assert mu_out.shape == (N, n_out, out_dim)
    assert np.allclose(np.asarray(a_out), np.asarray(a_ref), rtol=1e-2, atol=1e-2)
    assert np.allclose(np.asarray(mu_out), np.asarray(mu_ref), rtol=1e-2, atol=1e-2)

    # --- second path: mask + batch padding + 2 grid steps ----------------------
    N2 = 160
    x2 = jax.random.normal(kx2, (N2, n_in, D), jnp.float32)
    mask2 = (jax.random.uniform(km, (N2, n_in)) > 0.25).astype(jnp.float32)
    a2, mu2 = capsule_fusion_forward(x2, params, mask=mask2, iters=iters,
                                     depth_encoding=True)
    jax.block_until_ready((a2, mu2))
    a2_ref, mu2_ref = capsule_fusion_ref(x2, params, mask=mask2, iters=iters,
                                         depth_encoding=True)
    assert a2.shape == (N2, n_out)
    assert mu2.shape == (N2, n_out, out_dim)
    assert np.allclose(np.asarray(a2), np.asarray(a2_ref), rtol=1e-2, atol=1e-2)
    assert np.allclose(np.asarray(mu2), np.asarray(mu2_ref), rtol=1e-2, atol=1e-2)

    print("KERNEL_OK")
</pallas_src>

<mosaic_0001>
module attributes {stable_mosaic.version = 11 : i64} {
  func.func @capsule_fusion_kernel(%arg0: i32, %arg1: memref<4x32x128xf32, #tpu.memory_space<vmem>>, %arg2: memref<4x17x32xf32, #tpu.memory_space<vmem>>, %arg3: memref<4x17x1xf32, #tpu.memory_space<vmem>>, %arg4: memref<4x96x16xf32, #tpu.memory_space<vmem>>, %arg5: memref<4x96x1xf32, #tpu.memory_space<vmem>>, %arg6: memref<4x1x1x1xf32, #tpu.memory_space<vmem>>, %arg7: memref<6x1x1xf32, #tpu.memory_space<vmem>>, %arg8: memref<6x1x128xf32, #tpu.memory_space<vmem>>, %arg9: memref<6x16x128xf32, #tpu.memory_space<vmem>>) attributes {dimension_semantics = [#tpu.dimension_semantics<parallel>], iteration_bounds = array<i64: 1>, scalar_prefetch = 0 : i64, scratch_operands = 0 : i64, tpu.core_type = #tpu.core_type<tc>, window_params = [{transform_indices = @transform_0, window_bounds = array<i64: 4, 32, 128>}, {pipeline_mode = #tpu.pipeline_mode<synchronous>, transform_indices = @transform_1, window_bounds = array<i64: 4, 17, 32>}, {pipeline_mode = #tpu.pipeline_mode<synchronous>, transform_indices = @transform_2, window_bounds = array<i64: 4, 17, 1>}, {pipeline_mode = #tpu.pipeline_mode<synchronous>, transform_indices = @transform_3, window_bounds = array<i64: 4, 96, 16>}, {pipeline_mode = #tpu.pipeline_mode<synchronous>, transform_indices = @transform_4, window_bounds = array<i64: 4, 96, 1>}, {pipeline_mode = #tpu.pipeline_mode<synchronous>, transform_indices = @transform_5, window_bounds = array<i64: 4, 1, 1, 1>}, {pipeline_mode = #tpu.pipeline_mode<synchronous>, transform_indices = @transform_6, window_bounds = array<i64: 6, 1, 1>}, {transform_indices = @transform_7, window_bounds = array<i64: 6, 1, 128>}, {transform_indices = @transform_8, window_bounds = array<i64: 6, 16, 128>}]} {
    %c0 = arith.constant 0 : index
    %c0_0 = arith.constant 0 : index
    %c0_1 = arith.constant 0 : index
    %0 = vector.load %arg2[%c0, %c0_0, %c0_1] : memref<4x17x32xf32, #tpu.memory_space<vmem>>, vector<4x17x32xf32>
    %c0_2 = arith.constant 0 : index
    %c0_3 = arith.constant 0 : index
    %c0_4 = arith.constant 0 : index
    %1 = vector.load %arg1[%c0_2, %c0_3, %c0_4] : memref<4x32x128xf32, #tpu.memory_space<vmem>>, vector<4x32x128xf32>
    "tpu.trace_start"() <{level = 10 : i32, message = "led,ldn->len"}> : () -> ()
    %cst = arith.constant dense<0.000000e+00> : vector<4x17x128xf32>
    %2 = tpu.matmul %0, %1, %cst {dimension_numbers = #tpu.dot_dimension_numbers<[2], [1], [1], [2], [0, 0, 0, 1, 1, 2], [0], [0]>} : vector<4x17x32xf32>, vector<4x32x128xf32>, vector<4x17x128xf32> -> vector<4x17x128xf32>
    "tpu.trace_stop"() : () -> ()
    %c0_5 = arith.constant 0 : index
    %c0_6 = arith.constant 0 : index
    %c0_7 = arith.constant 0 : index
    %3 = vector.load %arg3[%c0_5, %c0_6, %c0_7] : memref<4x17x1xf32, #tpu.memory_space<vmem>>, vector<4x17x1xf32>
    %4 = vector.broadcast %3 : vector<4x17x1xf32> to vector<4x17x128xf32>
    %5 = arith.addf %2, %4 : vector<4x17x128xf32>
    %6 = vector.extract_strided_slice %5 {offsets = [0, 0, 0], sizes = [4, 16, 128], strides = [1, 1, 1]} : vector<4x17x128xf32> to vector<4x16x128xf32>
    %cst_8 = arith.constant 5.000000e-01 : f32
    %7 = vector.broadcast %cst_8 : f32 to vector<4x16x128xf32>
    %8 = arith.mulf %7, %6 : vector<4x16x128xf32>
    %cst_9 = arith.constant 0.707106769 : f32
    %9 = vector.broadcast %cst_9 : f32 to vector<4x16x128xf32>
    %10 = arith.mulf %6, %9 : vector<4x16x128xf32>
    %cst_10 = arith.constant 0.000000e+00 : f32
    %11 = vector.broadcast %cst_10 : f32 to vector<4x16x128xf32>
    %12 = arith.cmpf olt, %10, %11 : vector<4x16x128xf32>
    %cst_11 = arith.constant -1.000000e+00 : f32
    %cst_12 = arith.constant 1.000000e+00 : f32
    %13 = vector.broadcast %cst_11 : f32 to vector<4x16x128xf32>
    %14 = vector.broadcast %cst_12 : f32 to vector<4x16x128xf32>
    %15 = arith.select %12, %13, %14 : vector<4x16x128xi1>, vector<4x16x128xf32>
    %16 = math.absf %10 : vector<4x16x128xf32>
    %cst_13 = arith.constant 0.327591091 : f32
    %17 = vector.broadcast %cst_13 : f32 to vector<4x16x128xf32>
    %18 = arith.mulf %17, %16 : vector<4x16x128xf32>
    %cst_14 = arith.constant 1.000000e+00 : f32
    %19 = vector.broadcast %cst_14 : f32 to vector<4x16x128xf32>
    %20 = arith.addf %19, %18 : vector<4x16x128xf32>
    %cst_15 = arith.constant 1.000000e+00 : f32
    %21 = vector.broadcast %cst_15 : f32 to vector<4x16x128xf32>
    %22 = arith.divf %21, %20 : vector<4x16x128xf32>
    %cst_16 = arith.constant 1.06140542 : f32
    %23 = vector.broadcast %cst_16 : f32 to vector<4x16x128xf32>
    %24 = arith.mulf %23, %22 : vector<4x16x128xf32>
    %cst_17 = arith.constant -1.45315206 : f32
    %25 = vector.broadcast %cst_17 : f32 to vector<4x16x128xf32>
    %26 = arith.addf %24, %25 : vector<4x16x128xf32>
    %27 = arith.mulf %26, %22 : vector<4x16x128xf32>
    %cst_18 = arith.constant 1.42141378 : f32
    %28 = vector.broadcast %cst_18 : f32 to vector<4x16x128xf32>
    %29 = arith.addf %27, %28 : vector<4x16x128xf32>
    %30 = arith.mulf %29, %22 : vector<4x16x128xf32>
    %cst_19 = arith.constant -0.284496725 : f32
    %31 = vector.broadcast %cst_19 : f32 to vector<4x16x128xf32>
    %32 = arith.addf %30, %31 : vector<4x16x128xf32>
    %33 = arith.mulf %32, %22 : vector<4x16x128xf32>
    %cst_20 = arith.constant 0.254829586 : f32
    %34 = vector.broadcast %cst_20 : f32 to vector<4x16x128xf32>
    %35 = arith.addf %33, %34 : vector<4x16x128xf32>
    %36 = arith.mulf %35, %22 : vector<4x16x128xf32>
    %cst_21 = arith.constant 0.000000e+00 : f32
    %37 = vector.broadcast %cst_21 : f32 to vector<4x16x128xf32>
    %38 = arith.subf %37, %16 : vector<4x16x128xf32>
    %39 = arith.mulf %38, %16 : vector<4x16x128xf32>
    %40 = math.exp %39 : vector<4x16x128xf32>
    %41 = arith.mulf %36, %40 : vector<4x16x128xf32>
    %cst_22 = arith.constant 1.000000e+00 : f32
    %42 = vector.broadcast %cst_22 : f32 to vector<4x16x128xf32>
    %43 = arith.subf %42, %41 : vector<4x16x128xf32>
    %44 = arith.mulf %15, %43 : vector<4x16x128xf32>
    %cst_23 = arith.constant 1.000000e+00 : f32
    %45 = vector.broadcast %cst_23 : f32 to vector<4x16x128xf32>
    %46 = arith.addf %45, %44 : vector<4x16x128xf32>
    %47 = arith.mulf %8, %46 : vector<4x16x128xf32>
    %48 = vector.extract_strided_slice %5 {offsets = [0, 16, 0], sizes = [4, 1, 128], strides = [1, 1, 1]} : vector<4x17x128xf32> to vector<4x1x128xf32>
    %cst_24 = arith.constant 0.000000e+00 : f32
    %49 = vector.broadcast %cst_24 : f32 to vector<4x1x128xf32>
    %50 = arith.subf %49, %48 : vector<4x1x128xf32>
    %51 = math.exp %50 : vector<4x1x128xf32>
    %cst_25 = arith.constant 1.000000e+00 : f32
    %52 = vector.broadcast %cst_25 : f32 to vector<4x1x128xf32>
    %53 = arith.addf %52, %51 : vector<4x1x128xf32>
    %cst_26 = arith.constant 1.000000e+00 : f32
    %54 = vector.broadcast %cst_26 : f32 to vector<4x1x128xf32>
    %55 = arith.divf %54, %53 : vector<4x1x128xf32>
    %56 = vector.shape_cast %55 : vector<4x1x128xf32> to vector<4x1x1x128xf32>
    %c0_27 = arith.constant 0 : index
    %c0_28 = arith.constant 0 : index
    %c0_29 = arith.constant 0 : index
    %c0_30 = arith.constant 0 : index
    %57 = vector.load %arg6[%c0_27, %c0_28, %c0_29, %c0_30] : memref<4x1x1x1xf32, #tpu.memory_space<vmem>>, vector<4x1x1x1xf32>
    %58 = vector.broadcast %57 : vector<4x1x1x1xf32> to vector<4x1x1x128xf32>
    %59 = arith.mulf %58, %56 : vector<4x1x1x128xf32>
    %cst_31 = arith.constant dense<0.000000e+00> : vector<1x1x128xf32>
    %60 = vector.multi_reduction <add>, %56, %cst_31 [0] : vector<4x1x1x128xf32> to vector<1x1x128xf32>
    %c0_32 = arith.constant 0 : index
    %c0_33 = arith.constant 0 : index
    %c0_34 = arith.constant 0 : index
    %61 = vector.load %arg4[%c0_32, %c0_33, %c0_34] : memref<4x96x16xf32, #tpu.memory_space<vmem>>, vector<4x96x16xf32>
    "tpu.trace_start"() <{level = 10 : i32, message = "lki,lin->lkn"}> : () -> ()
    %cst_35 = arith.constant dense<0.000000e+00> : vector<4x96x128xf32>
    %62 = tpu.matmul %61, %47, %cst_35 {dimension_numbers = #tpu.dot_dimension_numbers<[2], [1], [1], [2], [0, 0, 0, 1, 1, 2], [0], [0]>} : vector<4x96x16xf32>, vector<4x16x128xf32>, vector<4x96x128xf32> -> vector<4x96x128xf32>
    "tpu.trace_stop"() : () -> ()
    %c0_36 = arith.constant 0 : index
    %c0_37 = arith.constant 0 : index
    %c0_38 = arith.constant 0 : index
    %63 = vector.load %arg5[%c0_36, %c0_37, %c0_38] : memref<4x96x1xf32, #tpu.memory_space<vmem>>, vector<4x96x1xf32>
    %64 = vector.broadcast %63 : vector<4x96x1xf32> to vector<4x96x128xf32>
    %65 = arith.addf %62, %64 : vector<4x96x128xf32>
    %66 = vector.shape_cast %65 : vector<4x96x128xf32> to vector<4x6x16x128xf32>
    %c0_39 = arith.constant 0 : index
    %c0_40 = arith.constant 0 : index
    %c0_41 = arith.constant 0 : index
    %67 = vector.load %arg7[%c0_39, %c0_40, %c0_41] : memref<6x1x1xf32, #tpu.memory_space<vmem>>, vector<6x1x1xf32>
    %cst_42 = arith.constant 0.166666672 : f32
    %68 = vector.broadcast %cst_42 : f32 to vector<1x6x1x1xf32>
    %69 = vector.broadcast %56 : vector<4x1x1x128xf32> to vector<4x6x1x128xf32>
    %70 = vector.broadcast %68 : vector<1x6x1x1xf32> to vector<4x6x1x128xf32>
    %71 = arith.mulf %69, %70 : vector<4x6x1x128xf32>
    %cst_43 = arith.constant dense<0.000000e+00> : vector<6x1x128xf32>
    %72 = vector.multi_reduction <add>, %71, %cst_43 [0] : vector<4x6x1x128xf32> to vector<6x1x128xf32>
    %73 = vector.broadcast %59 : vector<4x1x1x128xf32> to vector<4x6x1x128xf32>
    %74 = vector.broadcast %68 : vector<1x6x1x1xf32> to vector<4x6x1x128xf32>
    %75 = arith.mulf %73, %74 : vector<4x6x1x128xf32>
    %cst_44 = arith.constant dense<0.000000e+00> : vector<6x1x128xf32>
    %76 = vector.multi_reduction <add>, %75, %cst_44 [0] : vector<4x6x1x128xf32> to vector<6x1x128xf32>
    %77 = vector.broadcast %60 : vector<1x1x128xf32> to vector<6x1x128xf32>
    %78 = arith.subf %77, %72 : vector<6x1x128xf32>
    %79 = vector.broadcast %67 : vector<6x1x1xf32> to vector<6x1x128xf32>
    %80 = arith.mulf %79, %78 : vector<6x1x128xf32>
    %81 = arith.subf %76, %80 : vector<6x1x128xf32>
    %cst_45 = arith.constant 9.99999993E-9 : f32
    %82 = vector.broadcast %cst_45 : f32 to vector<6x1x128xf32>
    %83 = arith.addf %72, %82 : vector<6x1x128xf32>
    %84 = vector.broadcast %71 : vector<4x6x1x128xf32> to vector<4x6x16x128xf32>
    %85 = arith.mulf %84, %66 : vector<4x6x16x128xf32>
    %cst_46 = arith.constant dense<0.000000e+00> : vector<6x16x128xf32>
    %86 = vector.multi_reduction <add>, %85, %cst_46 [0] : vector<4x6x16x128xf32> to vector<6x16x128xf32>
    %87 = vector.broadcast %83 : vector<6x1x128xf32> to vector<6x16x128xf32>
    %88 = arith.divf %86, %87 : vector<6x16x128xf32>
    %89 = vector.shape_cast %88 : vector<6x16x128xf32> to vector<1x6x16x128xf32>
    %90 = vector.broadcast %89 : vector<1x6x16x128xf32> to vector<4x6x16x128xf32>
    %91 = arith.subf %66, %90 : vector<4x6x16x128xf32>
    %92 = vector.broadcast %71 : vector<4x6x1x128xf32> to vector<4x6x16x128xf32>
    %93 = arith.mulf %92, %91 : vector<4x6x16x128xf32>
    %94 = arith.mulf %93, %91 : vector<4x6x16x128xf32>
    %cst_47 = arith.constant dense<0.000000e+00> : vector<6x16x128xf32>
    %95 = vector.multi_reduction <add>, %94, %cst_47 [0] : vector<4x6x16x128xf32> to vector<6x16x128xf32>
    %96 = vector.broadcast %83 : vector<6x1x128xf32> to vector<6x16x128xf32>
    %97 = arith.divf %95, %96 : vector<6x16x128xf32>
    %cst_48 = arith.constant 2.000000e+00 : f32
    %98 = vector.broadcast %cst_48 : f32 to vector<6x16x128xf32>
    %99 = arith.mulf %98, %97 : vector<6x16x128xf32>
    %cst_49 = arith.constant 9.99999993E-9 : f32
    %100 = vector.broadcast %cst_49 : f32 to vector<6x16x128xf32>
    %101 = arith.addf %99, %100 : vector<6x16x128xf32>
    %cst_50 = arith.constant 1.000000e+00 : f32
    %102 = vector.broadcast %cst_50 : f32 to vector<6x16x128xf32>
    %103 = arith.divf %102, %101 : vector<6x16x128xf32>
    %104 = arith.mulf %91, %91 : vector<4x6x16x128xf32>
    %105 = vector.shape_cast %103 : vector<6x16x128xf32> to vector<1x6x16x128xf32>
    %106 = vector.broadcast %105 : vector<1x6x16x128xf32> to vector<4x6x16x128xf32>
    %107 = arith.mulf %104, %106 : vector<4x6x16x128xf32>
    %cst_51 = arith.constant dense<0.000000e+00> : vector<4x6x128xf32>
    %108 = vector.multi_reduction <add>, %107, %cst_51 [2] : vector<4x6x16x128xf32> to vector<4x6x128xf32>
    %109 = vector.shape_cast %108 : vector<4x6x128xf32> to vector<4x6x1x128xf32>
    %cst_52 = arith.constant 9.99999993E-9 : f32
    %110 = vector.broadcast %cst_52 : f32 to vector<6x16x128xf32>
    %111 = arith.addf %97, %110 : vector<6x16x128xf32>
    %112 = math.log %111 : vector<6x16x128xf32>
    %cst_53 = arith.constant dense<0.000000e+00> : vector<6x128xf32>
    %113 = vector.multi_reduction <add>, %112, %cst_53 [1] : vector<6x16x128xf32> to vector<6x128xf32>
    %114 = vector.shape_cast %113 : vector<6x128xf32> to vector<6x1x128xf32>
    %cst_54 = arith.constant 0.000000e+00 : f32
    %115 = vector.broadcast %cst_54 : f32 to vector<6x1x128xf32>
    %116 = arith.minimumf %81, %115 : vector<6x1x128xf32>
    %117 = math.absf %81 : vector<6x1x128xf32>
    %cst_55 = arith.constant 0.000000e+00 : f32
    %118 = vector.broadcast %cst_55 : f32 to vector<6x1x128xf32>
    %119 = arith.subf %118, %117 : vector<6x1x128xf32>
    %120 = math.exp %119 : vector<6x1x128xf32>
    %cst_56 = arith.constant 1.000000e+00 : f32
    %121 = vector.broadcast %cst_56 : f32 to vector<6x1x128xf32>
    %122 = arith.addf %121, %120 : vector<6x1x128xf32>
    %123 = math.log %122 : vector<6x1x128xf32>
    %124 = arith.subf %116, %123 : vector<6x1x128xf32>
    %cst_57 = arith.constant -2.57079625 : f32
    %125 = vector.broadcast %cst_57 : f32 to vector<6x1x128xf32>
    %126 = arith.addf %124, %125 : vector<6x1x128xf32>
    %cst_58 = arith.constant 5.000000e-01 : f32
    %127 = vector.broadcast %cst_58 : f32 to vector<6x1x128xf32>
    %128 = arith.mulf %127, %114 : vector<6x1x128xf32>
    %129 = arith.subf %126, %128 : vector<6x1x128xf32>
    %130 = vector.shape_cast %129 : vector<6x1x128xf32> to vector<1x6x1x128xf32>
    %131 = vector.broadcast %130 : vector<1x6x1x128xf32> to vector<4x6x1x128xf32>
    %132 = arith.subf %131, %109 : vector<4x6x1x128xf32>
    %cst_59 = arith.constant dense<0xFF800000> : vector<4x1x128xf32>
    %133 = vector.multi_reduction <maximumf>, %132, %cst_59 [1] : vector<4x6x1x128xf32> to vector<4x1x128xf32>
    %134 = vector.shape_cast %133 : vector<4x1x128xf32> to vector<4x1x1x128xf32>
    %135 = vector.broadcast %134 : vector<4x1x1x128xf32> to vector<4x6x1x128xf32>
    %136 = arith.subf %132, %135 : vector<4x6x1x128xf32>
    %137 = math.exp %136 : vector<4x6x1x128xf32>
    %cst_60 = arith.constant dense<0.000000e+00> : vector<4x1x128xf32>
    %138 = vector.multi_reduction <add>, %137, %cst_60 [1] : vector<4x6x1x128xf32> to vector<4x1x128xf32>
    %139 = vector.shape_cast %138 : vector<4x1x128xf32> to vector<4x1x1x128xf32>
    %140 = vector.broadcast %139 : vector<4x1x1x128xf32> to vector<4x6x1x128xf32>
    %141 = arith.divf %137, %140 : vector<4x6x1x128xf32>
    %142 = vector.broadcast %56 : vector<4x1x1x128xf32> to vector<4x6x1x128xf32>
    %143 = arith.mulf %142, %141 : vector<4x6x1x128xf32>
    %cst_61 = arith.constant dense<0.000000e+00> : vector<6x1x128xf32>
    %144 = vector.multi_reduction <add>, %143, %cst_61 [0] : vector<4x6x1x128xf32> to vector<6x1x128xf32>
    %145 = vector.broadcast %59 : vector<4x1x1x128xf32> to vector<4x6x1x128xf32>
    %146 = arith.mulf %145, %141 : vector<4x6x1x128xf32>
    %cst_62 = arith.constant dense<0.000000e+00> : vector<6x1x128xf32>
    %147 = vector.multi_reduction <add>, %146, %cst_62 [0] : vector<4x6x1x128xf32> to vector<6x1x128xf32>
    %148 = vector.broadcast %60 : vector<1x1x128xf32> to vector<6x1x128xf32>
    %149 = arith.subf %148, %144 : vector<6x1x128xf32>
    %150 = vector.broadcast %67 : vector<6x1x1xf32> to vector<6x1x128xf32>
    %151 = arith.mulf %150, %149 : vector<6x1x128xf32>
    %152 = arith.subf %147, %151 : vector<6x1x128xf32>
    %cst_63 = arith.constant 9.99999993E-9 : f32
    %153 = vector.broadcast %cst_63 : f32 to vector<6x1x128xf32>
    %154 = arith.addf %144, %153 : vector<6x1x128xf32>
    %155 = vector.broadcast %143 : vector<4x6x1x128xf32> to vector<4x6x16x128xf32>
    %156 = arith.mulf %155, %66 : vector<4x6x16x128xf32>
    %cst_64 = arith.constant dense<0.000000e+00> : vector<6x16x128xf32>
    %157 = vector.multi_reduction <add>, %156, %cst_64 [0] : vector<4x6x16x128xf32> to vector<6x16x128xf32>
    %158 = vector.broadcast %154 : vector<6x1x128xf32> to vector<6x16x128xf32>
    %159 = arith.divf %157, %158 : vector<6x16x128xf32>
    %160 = vector.shape_cast %159 : vector<6x16x128xf32> to vector<1x6x16x128xf32>
    %161 = vector.broadcast %160 : vector<1x6x16x128xf32> to vector<4x6x16x128xf32>
    %162 = arith.subf %66, %161 : vector<4x6x16x128xf32>
    %163 = vector.broadcast %143 : vector<4x6x1x128xf32> to vector<4x6x16x128xf32>
    %164 = arith.mulf %163, %162 : vector<4x6x16x128xf32>
    %165 = arith.mulf %164, %162 : vector<4x6x16x128xf32>
    %cst_65 = arith.constant dense<0.000000e+00> : vector<6x16x128xf32>
    %166 = vector.multi_reduction <add>, %165, %cst_65 [0] : vector<4x6x16x128xf32> to vector<6x16x128xf32>
    %167 = vector.broadcast %154 : vector<6x1x128xf32> to vector<6x16x128xf32>
    %168 = arith.divf %166, %167 : vector<6x16x128xf32>
    %cst_66 = arith.constant 2.000000e+00 : f32
    %169 = vector.broadcast %cst_66 : f32 to vector<6x16x128xf32>
    %170 = arith.mulf %169, %168 : vector<6x16x128xf32>
    %cst_67 = arith.constant 9.99999993E-9 : f32
    %171 = vector.broadcast %cst_67 : f32 to vector<6x16x128xf32>
    %172 = arith.addf %170, %171 : vector<6x16x128xf32>
    %cst_68 = arith.constant 1.000000e+00 : f32
    %173 = vector.broadcast %cst_68 : f32 to vector<6x16x128xf32>
    %174 = arith.divf %173, %172 : vector<6x16x128xf32>
    %175 = arith.mulf %162, %162 : vector<4x6x16x128xf32>
    %176 = vector.shape_cast %174 : vector<6x16x128xf32> to vector<1x6x16x128xf32>
    %177 = vector.broadcast %176 : vector<1x6x16x128xf32> to vector<4x6x16x128xf32>
    %178 = arith.mulf %175, %177 : vector<4x6x16x128xf32>
    %cst_69 = arith.constant dense<0.000000e+00> : vector<4x6x128xf32>
    %179 = vector.multi_reduction <add>, %178, %cst_69 [2] : vector<4x6x16x128xf32> to vector<4x6x128xf32>
    %180 = vector.shape_cast %179 : vector<4x6x128xf32> to vector<4x6x1x128xf32>
    %cst_70 = arith.constant 9.99999993E-9 : f32
    %181 = vector.broadcast %cst_70 : f32 to vector<6x16x128xf32>
    %182 = arith.addf %168, %181 : vector<6x16x128xf32>
    %183 = math.log %182 : vector<6x16x128xf32>
    %cst_71 = arith.constant dense<0.000000e+00> : vector<6x128xf32>
    %184 = vector.multi_reduction <add>, %183, %cst_71 [1] : vector<6x16x128xf32> to vector<6x128xf32>
    %185 = vector.shape_cast %184 : vector<6x128xf32> to vector<6x1x128xf32>
    %cst_72 = arith.constant 0.000000e+00 : f32
    %186 = vector.broadcast %cst_72 : f32 to vector<6x1x128xf32>
    %187 = arith.minimumf %152, %186 : vector<6x1x128xf32>
    %188 = math.absf %152 : vector<6x1x128xf32>
    %cst_73 = arith.constant 0.000000e+00 : f32
    %189 = vector.broadcast %cst_73 : f32 to vector<6x1x128xf32>
    %190 = arith.subf %189, %188 : vector<6x1x128xf32>
    %191 = math.exp %190 : vector<6x1x128xf32>
    %cst_74 = arith.constant 1.000000e+00 : f32
    %192 = vector.broadcast %cst_74 : f32 to vector<6x1x128xf32>
    %193 = arith.addf %192, %191 : vector<6x1x128xf32>
    %194 = math.log %193 : vector<6x1x128xf32>
    %195 = arith.subf %187, %194 : vector<6x1x128xf32>
    %cst_75 = arith.constant -2.57079625 : f32
    %196 = vector.broadcast %cst_75 : f32 to vector<6x1x128xf32>
    %197 = arith.addf %195, %196 : vector<6x1x128xf32>
    %cst_76 = arith.constant 5.000000e-01 : f32
    %198 = vector.broadcast %cst_76 : f32 to vector<6x1x128xf32>
    %199 = arith.mulf %198, %185 : vector<6x1x128xf32>
    %200 = arith.subf %197, %199 : vector<6x1x128xf32>
    %201 = vector.shape_cast %200 : vector<6x1x128xf32> to vector<1x6x1x128xf32>
    %202 = vector.broadcast %201 : vector<1x6x1x128xf32> to vector<4x6x1x128xf32>
    %203 = arith.subf %202, %180 : vector<4x6x1x128xf32>
    %cst_77 = arith.constant dense<0xFF800000> : vector<4x1x128xf32>
    %204 = vector.multi_reduction <maximumf>, %203, %cst_77 [1] : vector<4x6x1x128xf32> to vector<4x1x128xf32>
    %205 = vector.shape_cast %204 : vector<4x1x128xf32> to vector<4x1x1x128xf32>
    %206 = vector.broadcast %205 : vector<4x1x1x128xf32> to vector<4x6x1x128xf32>
    %207 = arith.subf %203, %206 : vector<4x6x1x128xf32>
    %208 = math.exp %207 : vector<4x6x1x128xf32>
    %cst_78 = arith.constant dense<0.000000e+00> : vector<4x1x128xf32>
    %209 = vector.multi_reduction <add>, %208, %cst_78 [1] : vector<4x6x1x128xf32> to vector<4x1x128xf32>
    %210 = vector.shape_cast %209 : vector<4x1x128xf32> to vector<4x1x1x128xf32>
    %211 = vector.broadcast %210 : vector<4x1x1x128xf32> to vector<4x6x1x128xf32>
    %212 = arith.divf %208, %211 : vector<4x6x1x128xf32>
    %213 = vector.broadcast %56 : vector<4x1x1x128xf32> to vector<4x6x1x128xf32>
    %214 = arith.mulf %213, %212 : vector<4x6x1x128xf32>
    %cst_79 = arith.constant dense<0.000000e+00> : vector<6x1x128xf32>
    %215 = vector.multi_reduction <add>, %214, %cst_79 [0] : vector<4x6x1x128xf32> to vector<6x1x128xf32>
    %216 = vector.broadcast %59 : vector<4x1x1x128xf32> to vector<4x6x1x128xf32>
    %217 = arith.mulf %216, %212 : vector<4x6x1x128xf32>
    %cst_80 = arith.constant dense<0.000000e+00> : vector<6x1x128xf32>
    %218 = vector.multi_reduction <add>, %217, %cst_80 [0] : vector<4x6x1x128xf32> to vector<6x1x128xf32>
    %219 = vector.broadcast %60 : vector<1x1x128xf32> to vector<6x1x128xf32>
    %220 = arith.subf %219, %215 : vector<6x1x128xf32>
    %221 = vector.broadcast %67 : vector<6x1x1xf32> to vector<6x1x128xf32>
    %222 = arith.mulf %221, %220 : vector<6x1x128xf32>
    %223 = arith.subf %218, %222 : vector<6x1x128xf32>
    %cst_81 = arith.constant 9.99999993E-9 : f32
    %224 = vector.broadcast %cst_81 : f32 to vector<6x1x128xf32>
    %225 = arith.addf %215, %224 : vector<6x1x128xf32>
    %226 = vector.broadcast %214 : vector<4x6x1x128xf32> to vector<4x6x16x128xf32>
    %227 = arith.mulf %226, %66 : vector<4x6x16x128xf32>
    %cst_82 = arith.constant dense<0.000000e+00> : vector<6x16x128xf32>
    %228 = vector.multi_reduction <add>, %227, %cst_82 [0] : vector<4x6x16x128xf32> to vector<6x16x128xf32>
    %229 = vector.broadcast %225 : vector<6x1x128xf32> to vector<6x16x128xf32>
    %230 = arith.divf %228, %229 : vector<6x16x128xf32>
    %c0_83 = arith.constant 0 : index
    %c0_84 = arith.constant 0 : index
    %c0_85 = arith.constant 0 : index
    %231 = vector.load %arg8[%c0_83, %c0_84, %c0_85] : memref<6x1x128xf32, #tpu.memory_space<vmem>>, vector<6x1x128xf32>
    tpu.vector_store %arg8[%c0_83, %c0_84, %c0_85], %223 {strides = array<i32>} : memref<6x1x128xf32, #tpu.memory_space<vmem>>, vector<6x1x128xf32>,
    %c0_86 = arith.constant 0 : index
    %c0_87 = arith.constant 0 : index
    %c0_88 = arith.constant 0 : index
    %232 = vector.load %arg9[%c0_86, %c0_87, %c0_88] : memref<6x16x128xf32, #tpu.memory_space<vmem>>, vector<6x16x128xf32>
    tpu.vector_store %arg9[%c0_86, %c0_87, %c0_88], %230 {strides = array<i32>} : memref<6x16x128xf32, #tpu.memory_space<vmem>>, vector<6x16x128xf32>,
    return
  }
  func.func @transform_0(%arg0: i32) -> (i32, i32, i32) {
    %c0_i32 = arith.constant 0 : i32
    %c0_i32_0 = arith.constant 0 : i32
    %c0_i32_1 = arith.constant 0 : i32
    return %c0_i32, %c0_i32_0, %arg0 : i32, i32, i32
  }
  func.func @transform_1(%arg0: i32) -> (i32, i32, i32) {
    %c0_i32 = arith.constant 0 : i32
    %c0_i32_0 = arith.constant 0 : i32
    %c0_i32_1 = arith.constant 0 : i32
    %c0_i32_2 = arith.constant 0 : i32
    return %c0_i32, %c0_i32_0, %c0_i32_1 : i32, i32, i32
  }
  func.func @transform_2(%arg0: i32) -> (i32, i32, i32) {
    %c0_i32 = arith.constant 0 : i32
    %c0_i32_0 = arith.constant 0 : i32
    %c0_i32_1 = arith.constant 0 : i32
    %c0_i32_2 = arith.constant 0 : i32
    return %c0_i32, %c0_i32_0, %c0_i32_1 : i32, i32, i32
  }
  func.func @transform_3(%arg0: i32) -> (i32, i32, i32) {
    %c0_i32 = arith.constant 0 : i32
    %c0_i32_0 = arith.constant 0 : i32
    %c0_i32_1 = arith.constant 0 : i32
    %c0_i32_2 = arith.constant 0 : i32
    return %c0_i32, %c0_i32_0, %c0_i32_1 : i32, i32, i32
  }
  func.func @transform_4(%arg0: i32) -> (i32, i32, i32) {
    %c0_i32 = arith.constant 0 : i32
    %c0_i32_0 = arith.constant 0 : i32
    %c0_i32_1 = arith.constant 0 : i32
    %c0_i32_2 = arith.constant 0 : i32
    return %c0_i32, %c0_i32_0, %c0_i32_1 : i32, i32, i32
  }
  func.func @transform_5(%arg0: i32) -> (i32, i32, i32, i32) {
    %c0_i32 = arith.constant 0 : i32
    %c0_i32_0 = arith.constant 0 : i32
    %c0_i32_1 = arith.constant 0 : i32
    %c0_i32_2 = arith.constant 0 : i32
    %c0_i32_3 = arith.constant 0 : i32
    return %c0_i32, %c0_i32_0, %c0_i32_1, %c0_i32_2 : i32, i32, i32, i32
  }
  func.func @transform_6(%arg0: i32) -> (i32, i32, i32) {
    %c0_i32 = arith.constant 0 : i32
    %c0_i32_0 = arith.constant 0 : i32
    %c0_i32_1 = arith.constant 0 : i32
    %c0_i32_2 = arith.constant 0 : i32
    return %c0_i32, %c0_i32_0, %c0_i32_1 : i32, i32, i32
  }
  func.func @transform_7(%arg0: i32) -> (i32, i32, i32) {
    %c0_i32 = arith.constant 0 : i32
    %c0_i32_0 = arith.constant 0 : i32
    %c0_i32_1 = arith.constant 0 : i32
    return %c0_i32, %c0_i32_0, %arg0 : i32, i32, i32
  }
  func.func @transform_8(%arg0: i32) -> (i32, i32, i32) {
    %c0_i32 = arith.constant 0 : i32
    %c0_i32_0 = arith.constant 0 : i32
    %c0_i32_1 = arith.constant 0 : i32
    return %c0_i32, %c0_i32_0, %arg0 : i32, i32, i32
  }
}

</mosaic_0001>

<bundles_post_ra>
// kernel: tpu_custom_call.1
= control target key start
LH: loop header
LB: loop body
LE: loop exit
PB: predicated region body
PF: predicated region fallthrough
CT: control target
= control target key end

     0   :  { %14 = vsyncpa [#allocation3], 0  ;;  %v5242_v3 = vmov 0   ;;  %v5243_v7 = vmov 0.0|0.0   ;;  %vm5244_vm0 = vmmov 0   ;;  %v5245_v18 = vmov 0.0   ;;  %s9366_s0 = inlined_call_operand.vmem [shape: f32[4,32,128], index: 0, kind: input, shape index: {}]   ;;  %s9367_s1 = inlined_call_operand.vmem [shape: f32[4,17,32], index: 1, kind: input, shape index: {}]   ;;  %s9368_s2 = inlined_call_operand.vmem [shape: f32[4,17,1], index: 2, kind: input, shape index: {}]   ;;  %s9369_s3 = inlined_call_operand.vmem [shape: f32[4,96,16], index: 3, kind: input, shape index: {}]   ;;  %s9370_s4 = inlined_call_operand.vmem [shape: f32[4,96,1], index: 4, kind: input, shape index: {}]   ;;  %s9371_s5 = inlined_call_operand.vmem [shape: f32[4,1,1,1], index: 5, kind: input, shape index: {}]   ;;  %s9372_s6 = inlined_call_operand.vmem [shape: f32[6,1,1], index: 6, kind: input, shape index: {}]   ;;  %s9373_s7 = inlined_call_operand.hbm [shape: f32[6,1,128], index: 7, kind: output, shape index: {0}]   ;;  %s9374_s8 = inlined_call_operand.hbm [shape: f32[6,16,128], index: 8, kind: output, shape index: {1}]  }
   0x1   :  { %v61_v0 = vld [vmem:[%s9368_s2 + $0x18] sm:$0xff]  ;;  %v58_v1 = vld [vmem:[%s9368_s2] sm:$0xff]  ;;  %4863 = vset.pattern.permute.xlu1 %v5242_v3  ;;  %4862 = vset.pattern.permute.xlu0 %v5242_v3  ;;  %v43_v4 = vld [vmem:[%s9366_s0 + $0x8] sm:$0xff]  ;;  %vm130_vm1 = vcmask 261120  }
   0x2   :  { %v42_v2 = vld [vmem:[%s9366_s0] sm:$0xff]  ;;  %v47_v6 = vld [vmem:[%s9366_s0 + $0x28] sm:$0xff]  ;;  %4811 = vmatprep.subr.bf16.mxu0 %v5243_v7  ;;  %4817 = vmatprep.subr.bf16.mxu1 %v5243_v7  ;;  %v44_v10 = vld [vmem:[%s9366_s0 + $0x10] sm:$0xff] }
   0x3   :  { %v46_v5 = vld [vmem:[%s9366_s0 + $0x20] sm:$0xff]  ;;  %v4812_v8 = vpack.c.bf16 %v43_v4, %v42_v2  ;;  %87 = vperm.xlu1 %4863, %v61_v0   ;;  %72 = vperm.xlu0 %4862, %v58_v1   ;;  %v45_v11 = vld [vmem:[%s9366_s0 + $0x18] sm:$0xff]  ;;  %v48_v12 = vld [vmem:[%s9366_s0 + $0x30] sm:$0xff] }
   0x4   :  { %v4818_v9 = vpack.c.bf16 %v47_v6, %v46_v5  ;;  %v49_v13 = vld [vmem:[%s9366_s0 + $0x38] sm:$0xff]  ;;  %v62_v14 = vld [vmem:[%s9368_s2 + $0x20] sm:$0xff]  ;;  %v59_v15 = vld [vmem:[%s9368_s2 + $0x8] sm:$0xff]  ;;  %v4815_v16 = vpack.c.bf16 %v45_v11, %v44_v10  ;;  %4663 = vmatprep.mubr.msk.f32.mxu0 %vm5244_vm0, %v5245_v18  ;;  %4680 = vmatprep.mubr.msk.f32.mxu1 %vm5244_vm0, %v5245_v18 }
   0x5   :  { %4813 = vmatpush3.bf16.msra.mxu0 %v4812_v8  ;;  %v4821_v17 = vpack.c.bf16 %v49_v13, %v48_v12  ;;  %v50_v19 = vld [vmem:[%s9366_s0 + $0x40] sm:$0xff]  ;;  %v51_v20 = vld [vmem:[%s9366_s0 + $0x48] sm:$0xff]  ;;  %v65_v23 = vld [vmem:[%s9368_s2 + $0x38] sm:$0xff] }
   0x6   :  { %4819 = vmatpush3.bf16.msra.mxu1 %v4818_v9  ;;  %4814 = vmatprep.subr.bf16.mxu0 %v5243_v7  ;;  %v54_v21 = vld [vmem:[%s9366_s0 + $0x60] sm:$0xff]  ;;  %v55_v22 = vld [vmem:[%s9366_s0 + $0x68] sm:$0xff]  ;;  %v64_v24 = vld [vmem:[%s9368_s2 + $0x30] sm:$0xff]  ;;  %v4824_v27 = vpack.c.bf16 %v51_v20, %v50_v19 }
   0x7   :  { %4820 = vmatprep.subr.bf16.mxu1 %v5243_v7  ;;  %92 = vperm.xlu1 %4863, %v62_v14   ;;  %v30_v25 = vld [vmem:[%s9367_s1] sm:$0xff]  ;;  %v33_v26 = vld [vmem:[%s9367_s1 + $0x18] sm:$0xff]  ;;  %v4830_v28 = vpack.c.bf16 %v55_v22, %v54_v21  ;;  %v68_v29 = vld [vmem:[%s9368_s2 + $0x50] sm:$0xff] }
   0x8   :  { %77 = vperm.xlu0 %4862, %v59_v15   ;;  %v67_v30 = vld [vmem:[%s9368_s2 + $0x48] sm:$0xff]  ;;  %v34_v32 = vld [vmem:[%s9367_s1 + $0x20] sm:$0xff]  ;;  %v52_v33 = vld [vmem:[%s9366_s0 + $0x50] sm:$0xff] }
   0x9   :  { %4816 = vmatpush3.bf16.msra.mxu0 %v4815_v16  ;;  %v31_v31 = vld [vmem:[%s9367_s1 + $0x8] sm:$0xff]  ;;  %v53_v34 = vld [vmem:[%s9366_s0 + $0x58] sm:$0xff]  ;;  %v56_v35 = vld [vmem:[%s9366_s0 + $0x70] sm:$0xff] }
   0xa   :  { %4822 = vmatpush3.bf16.msra.mxu1 %v4821_v17  ;;  %4823 = vmatprep.subr.bf16.mxu0 %v5243_v7  ;;  %v57_v36 = vld [vmem:[%s9366_s0 + $0x78] sm:$0xff]  ;;  %v63_v37 = vld [vmem:[%s9368_s2 + $0x28] sm:$0x1]  ;;  %v60_v38 = vld [vmem:[%s9368_s2 + $0x10] sm:$0x1]  ;;  %v4827_v41 = vpack.c.bf16 %v53_v34, %v52_v33 }
   0xb   :  { %4829 = vmatprep.subr.bf16.mxu1 %v5243_v7  ;;  %107 = vperm.xlu1 %4863, %v65_v23   ;;  %v32_v39 = vld [vmem:[%s9367_s1 + $0x10] sm:$0x1]  ;;  %v35_v40 = vld [vmem:[%s9367_s1 + $0x28] sm:$0x1]  ;;  %v4833_v42 = vpack.c.bf16 %v57_v36, %v56_v35  ;;  %v69_v43 = vld [vmem:[%s9368_s2 + $0x58] sm:$0x1] }
   0xc   :  { %102 = vperm.xlu0 %4862, %v64_v24   ;;  %4664 = vmatmul.mubr.msk.f32.vlgmr.msra.gmra.mrb[0].mxu0 %vm130_vm1, %v30_v25  ;;  %v66_v44 = vld [vmem:[%s9368_s2 + $0x40] sm:$0x1]  ;;  %v36_v45 = vld [vmem:[%s9367_s1 + $0x30] sm:$0xff]  ;;  %v39_v46 = vld [vmem:[%s9367_s1 + $0x48] sm:$0xff] }
   0xd   :  { %4681 = vmatmul.mubr.msk.f32.vlgmr.msra.gmra.mrb[0].mxu1 %vm130_vm1, %v33_v26  ;;  %4666 = vmatprep.mubr.msk.f32.mxu0 %vm5244_vm0, %v5245_v18  ;;  %v828_v47 = vld [vmem:[%s9370_s4 + $0x8] sm:$0xff]  ;;  %v827_v48 = vld [vmem:[%s9370_s4] sm:$0xff]  ;;  %v37_v49 = vld [vmem:[%s9367_s1 + $0x38] sm:$0xff] }
   0xe   :  { %4683 = vmatprep.mubr.msk.f32.mxu1 %vm5244_vm0, %v5245_v18  ;;  %4825 = vmatpush3.bf16.msra.mxu0 %v4824_v27  ;;  %v40_v50 = vld [vmem:[%s9367_s1 + $0x50] sm:$0xff]  ;;  %v830_v51 = vld [vmem:[%s9370_s4 + $0x18] sm:$0xff]  ;;  %v38_v53 = vld [vmem:[%s9367_s1 + $0x40] sm:$0x1] }
   0xf   :  { %4831 = vmatpush3.bf16.msra.mxu1 %v4830_v28  ;;  %122 = vperm.xlu1 %4863, %v68_v29   ;;  %v829_v52 = vld [vmem:[%s9370_s4 + $0x10] sm:$0xff]  ;;  %v41_v54 = vld [vmem:[%s9367_s1 + $0x58] sm:$0x1]  ;;  %v840_v55 = vld [vmem:[%s9370_s4 + $0x68] sm:$0xff] }
  0x10   :  { %117 = vperm.xlu0 %4862, %v67_v30   ;;  %4667 = vmatmul.mubr.msk.f32.gmra.mrb[2].mxu0 %vm130_vm1, %v31_v31  ;;  %v839_v56 = vld [vmem:[%s9370_s4 + $0x60] sm:$0xff] }
  0x11   :  { %4684 = vmatmul.mubr.msk.f32.gmra.mrb[2].mxu1 %vm130_vm1, %v34_v32  ;;  %4669 = vmatprep.mubr.msk.f32.mxu0 %vm5244_vm0, %v5245_v18 }
  0x12   :  { %4686 = vmatprep.mubr.msk.f32.mxu1 %vm5244_vm0, %v5245_v18  ;;  %4826 = vmatprep.subr.bf16.mxu0 %v5243_v7 }
  0x13   :  { %4832 = vmatprep.subr.bf16.mxu1 %v5243_v7  ;;  %97 = vperm.xlu1 %4863, %v63_v37  }
  0x14   :  { %82 = vperm.xlu0 %4862, %v60_v38   ;;  %4670 = vmatmul.mubr.msk.f32.gmra.mrb[4].mxu0 %vm130_vm1, %v32_v39 }
  0x15   :  { %4687 = vmatmul.mubr.msk.f32.gmra.mrb[4].mxu1 %vm130_vm1, %v35_v40  ;;  %4828 = vmatpush3.bf16.msra.mxu0 %v4827_v41 }
  0x16   :  { %4834 = vmatpush3.bf16.msra.mxu1 %v4833_v42  ;;  %4697 = vmatprep.mubr.msk.f32.mxu0 %vm5244_vm0, %v5245_v18 }
  0x17   :  { %4714 = vmatprep.mubr.msk.f32.mxu1 %vm5244_vm0, %v5245_v18  ;;  %127 = vperm.xlu1 %4863, %v69_v43  }
  0x18   :  { %112 = vperm.xlu0 %4862, %v66_v44   ;;  %4698 = vmatmul.mubr.msk.f32.vlgmr.msra.gmra.mrb[6].mxu0 %vm130_vm1, %v36_v45 }
  0x19   :  { %4715 = vmatmul.mubr.msk.f32.vlgmr.msra.gmra.mrb[6].mxu1 %vm130_vm1, %v39_v46  ;;  %4700 = vmatprep.mubr.msk.f32.mxu0 %vm5244_vm0, %v5245_v18 }
  0x1a   :  { %4717 = vmatprep.mubr.msk.f32.mxu1 %vm5244_vm0, %v5245_v18 }
  0x1b   :  { %882 = vperm.xlu1 %4863, %v828_v47  }
  0x1c   :  { %877 = vperm.xlu0 %4862, %v827_v48   ;;  %4701 = vmatmul.mubr.msk.f32.gmra.mrb[8].mxu0 %vm130_vm1, %v37_v49 }
  0x1d   :  { %4718 = vmatmul.mubr.msk.f32.gmra.mrb[8].mxu1 %vm130_vm1, %v40_v50  ;;  %4703 = vmatprep.mubr.msk.f32.mxu0 %vm5244_vm0, %v5245_v18 }
  0x1e   :  { %4720 = vmatprep.mubr.msk.f32.mxu1 %vm5244_vm0, %v5245_v18 }
  0x1f   :  { %892 = vperm.xlu1 %4863, %v830_v51  }
  0x20   :  { %887 = vperm.xlu0 %4862, %v829_v52   ;;  %4704 = vmatmul.mubr.msk.f32.gmra.mrb[10].mxu0 %vm130_vm1, %v38_v53 }
  0x21   :  { %4721 = vmatmul.mubr.msk.f32.gmra.mrb[10].mxu1 %vm130_vm1, %v41_v54 }
  0x22   :  { %15 = vsyncpa [#allocation5], 0  ;;  %v842_v57 = vld [vmem:[%s9370_s4 + $0x78] sm:$0xff]  ;;  %v841_v58 = vld [vmem:[%s9370_s4 + $0x70] sm:$0xff]  ;;  %vm1115_vm2 = vcmask 130048   ;;  %vm771_vm11 = vcmask 1040384  }
  0x23   :  { %942 = vperm.xlu1 %4863, %v840_v55   ;;  %v832_v59 = vld [vmem:[%s9370_s4 + $0x28] sm:$0xff]  ;;  %v831_v60 = vld [vmem:[%s9370_s4 + $0x20] sm:$0xff]  ;;  %v854_v1 = vld [vmem:[%s9370_s4 + $0xd8] sm:$0xff] }
  0x24   :  { %937 = vperm.xlu0 %4862, %v839_v56   ;;  %v844_v61 = vld [vmem:[%s9370_s4 + $0x88] sm:$0xff]  ;;  %v843_v62 = vld [vmem:[%s9370_s4 + $0x80] sm:$0xff]  ;;  %v853_v2 = vld [vmem:[%s9370_s4 + $0xd0] sm:$0xff] }
  0x25   :  { %v852_v63 = vld [vmem:[%s9370_s4 + $0xc8] sm:$0xff]  ;;  %v851_v0 = vld [vmem:[%s9370_s4 + $0xc0] sm:$0xff]  ;;  %v834_v3 = vld [vmem:[%s9370_s4 + $0x38] sm:$0xff] }
  0x26   :  { %v833_v4 = vld [vmem:[%s9370_s4 + $0x30] sm:$0xff]  ;;  %v846_v5 = vld [vmem:[%s9370_s4 + $0x98] sm:$0xff]  ;;  %v856_v7 = vld [vmem:[%s9370_s4 + $0xe8] sm:$0xff] }
  0x27   :  { %952 = vperm.xlu1 %4863, %v842_v57   ;;  %v845_v6 = vld [vmem:[%s9370_s4 + $0x90] sm:$0xff]  ;;  %v855_v8 = vld [vmem:[%s9370_s4 + $0xe0] sm:$0xff]  ;;  %v864_v9 = vld [vmem:[%s9370_s4 + $0x128] sm:$0xff] }
  0x28   :  { %947 = vperm.xlu0 %4862, %v841_v58   ;;  %v863_v10 = vld [vmem:[%s9370_s4 + $0x120] sm:$0xff]  ;;  %v866_v11 = vld [vmem:[%s9370_s4 + $0x138] sm:$0xff]  ;;  %v865_v12 = vld [vmem:[%s9370_s4 + $0x130] sm:$0xff] }
  0x29   :  { %v728_v13 = vld [vmem:[%s9371_s5 + $0x1] sm:$0x1]  ;;  %v727_v14 = vld [vmem:[%s9371_s5] sm:$0x1]  ;;  %v836_v15 = vld [vmem:[%s9370_s4 + $0x48] sm:$0xff] }
  0x2a   :  { %v835_v16 = vld [vmem:[%s9370_s4 + $0x40] sm:$0xff]  ;;  %v848_v17 = vld [vmem:[%s9370_s4 + $0xa8] sm:$0xff]  ;;  %v858_v19 = vld [vmem:[%s9370_s4 + $0xf8] sm:$0xff] }
  0x2b   :  { %902 = vperm.xlu1 %4863, %v832_v59   ;;  %v847_v18 = vld [vmem:[%s9370_s4 + $0xa0] sm:$0xff]  ;;  %v857_v20 = vld [vmem:[%s9370_s4 + $0xf0] sm:$0xff]  ;;  %v868_v21 = vld [vmem:[%s9370_s4 + $0x148] sm:$0xff] }
  0x2c   :  { %897 = vperm.xlu0 %4862, %v831_v60   ;;  %v867_v22 = vld [vmem:[%s9370_s4 + $0x140] sm:$0xff]  ;;  %v837_v23 = vld [vmem:[%s9370_s4 + $0x50] sm:$0xff]  ;;  %v838_v26 = vld [vmem:[%s9370_s4 + $0x58] sm:$0xff] }
  0x2d   :  { %v729_v24 = vld [vmem:[%s9371_s5 + $0x2] sm:$0x1]  ;;  %v849_v25 = vld [vmem:[%s9370_s4 + $0xb0] sm:$0xff]  ;;  %v850_v28 = vld [vmem:[%s9370_s4 + $0xb8] sm:$0xff] }
  0x2e   :  { %v859_v27 = vld [vmem:[%s9370_s4 + $0x100] sm:$0xff]  ;;  %v869_v29 = vld [vmem:[%s9370_s4 + $0x150] sm:$0xff]  ;;  %v860_v30 = vld [vmem:[%s9370_s4 + $0x108] sm:$0xff] }
  0x2f   :  { %962 = vperm.xlu1 %4863, %v844_v61   ;;  %v730_v31 = vld [vmem:[%s9371_s5 + $0x3] sm:$0x1]  ;;  %v870_v32 = vld [vmem:[%s9370_s4 + $0x158] sm:$0xff]  ;;  %v861_v34 = vld [vmem:[%s9370_s4 + $0x110] sm:$0xff] }
  0x30   :  { %957 = vperm.xlu0 %4862, %v843_v62   ;;  %v862_v33 = vld [vmem:[%s9370_s4 + $0x118] sm:$0xff]  ;;  %v872_v35 = vld [vmem:[%s9370_s4 + $0x168] sm:$0xff]  ;;  %v871_v36 = vld [vmem:[%s9370_s4 + $0x160] sm:$0xff] }
  0x31   :  { %v874_v37 = vld [vmem:[%s9370_s4 + $0x178] sm:$0xff]  ;;  %v873_v38 = vld [vmem:[%s9370_s4 + $0x170] sm:$0xff]  ;;  %v1761_v39 = vld [vmem:[%s9372_s6 + $0x1] sm:$0x1] }
  0x32   :  { %v1760_v40 = vld [vmem:[%s9372_s6] sm:$0x1]  ;;  %v1763_v41 = vld [vmem:[%s9372_s6 + $0x3] sm:$0x1]  ;;  %v1762_v42 = vld [vmem:[%s9372_s6 + $0x2] sm:$0x1] }
  0x33   :  { %1002 = vperm.xlu1 %4863, %v852_v63   ;;  %v1765_v43 = vld [vmem:[%s9372_s6 + $0x5] sm:$0x1]  ;;  %v1764_v44 = vld [vmem:[%s9372_s6 + $0x4] sm:$0x1] }
  0x34   :  { %997 = vperm.xlu0 %4862, %v851_v0   ;;  %v779_v45 = vld [vmem:[%s9369_s3] sm:$0xff] }
  0x35   :  { %v791_v46 = vld [vmem:[%s9369_s3 + $0x60] sm:$0xff]  ;;  %4727 = vmatprep.mubr.msk.f32.mxu0 %vm1115_vm2, %v779_v45 }
  0x36   :  { %4749 = vmatprep.mubr.msk.f32.mxu1 %vm1115_vm2, %v791_v46 }
  0x37   :  { %1012 = vperm.xlu1 %4863, %v854_v1  }
  0x38   :  { %1007 = vperm.xlu0 %4862, %v853_v2  }
  0x3b   :  { %912 = vperm.xlu1 %4863, %v834_v3  }
  0x3c   :  { %907 = vperm.xlu0 %4862, %v833_v4  }
  0x3f   :  { %972 = vperm.xlu1 %4863, %v846_v5  }
  0x40   :  { %967 = vperm.xlu0 %4862, %v845_v6  }
  0x43   :  { %1022 = vperm.xlu1 %4863, %v856_v7  }
  0x44   :  { %1017 = vperm.xlu0 %4862, %v855_v8  }
  0x47   :  { %1062 = vperm.xlu1 %4863, %v864_v9  }
  0x48   :  { %1057 = vperm.xlu0 %4862, %v863_v10  }
  0x4b   :  { %1072 = vperm.xlu1 %4863, %v866_v11  }
  0x4c   :  { %1067 = vperm.xlu0 %4862, %v865_v12  }
  0x4f   :  { %742 = vperm.xlu1 %4863, %v728_v13  }
  0x50   :  { %733 = vperm.xlu0 %4862, %v727_v14  }
  0x53   :  { %922 = vperm.xlu1 %4863, %v836_v15  }
  0x54   :  { %917 = vperm.xlu0 %4862, %v835_v16  }
  0x57   :  { %982 = vperm.xlu1 %4863, %v848_v17  }
  0x58   :  { %977 = vperm.xlu0 %4862, %v847_v18  }
  0x5b   :  { %1032 = vperm.xlu1 %4863, %v858_v19  }
  0x5c   :  { %1027 = vperm.xlu0 %4862, %v857_v20  }
  0x5f   :  { %1082 = vperm.xlu1 %4863, %v868_v21  }
  0x60   :  { %1077 = vperm.xlu0 %4862, %v867_v22  }
  0x63   :  { %927 = vperm.xlu1 %4863, %v837_v23  }
  0x64   :  { %751 = vperm.xlu0 %4862, %v729_v24  }
  0x67   :  { %987 = vperm.xlu1 %4863, %v849_v25  }
  0x68   :  { %932 = vperm.xlu0 %4862, %v838_v26  }
  0x6b   :  { %1037 = vperm.xlu1 %4863, %v859_v27  }
  0x6c   :  { %992 = vperm.xlu0 %4862, %v850_v28  }
  0x6f   :  { %1087 = vperm.xlu1 %4863, %v869_v29  }
  0x70   :  { %1042 = vperm.xlu0 %4862, %v860_v30  }
  0x73   :  { %760 = vperm.xlu1 %4863, %v730_v31  }
  0x74   :  { %1092 = vperm.xlu0 %4862, %v870_v32  }
  0x77   :  { %1052 = vperm.xlu1 %4863, %v862_v33  }
  0x78   :  { %1047 = vperm.xlu0 %4862, %v861_v34  }
  0x7b   :  { %1102 = vperm.xlu1 %4863, %v872_v35  }
  0x7c   :  { %1097 = vperm.xlu0 %4862, %v871_v36  }
  0x7f   :  { %1112 = vperm.xlu1 %4863, %v874_v37  }
  0x80   :  { %1107 = vperm.xlu0 %4862, %v873_v38  }
  0x82   :  { %v73_v47 = vpop.permute.xlu0 %72  ;;  %v88_v48 = vpop.permute.xlu1 %87 }
  0x83   :  { %1800 = vperm.xlu1 %4863, %v1761_v39  }
  0x84   :  { %1791 = vperm.xlu0 %4862, %v1760_v40  }
  0x86   :  { %v93_v60 = vpop.permute.xlu1 %92 }
  0x87   :  { %1818 = vperm.xlu1 %4863, %v1763_v41   ;;  %v78_v55 = vpop.permute.xlu0 %77 }
  0x88   :  { %1809 = vperm.xlu0 %4862, %v1762_v42  }
  0x8a   :  { %v108_v33 = vpop.permute.xlu1 %107 }
  0x8b   :  { %1836 = vperm.xlu1 %4863, %v1765_v43   ;;  %v103_v5 = vpop.permute.xlu0 %102 }
  0x8c   :  { %1827 = vperm.xlu0 %4862, %v1764_v44  }
  0x8f   :  { %v118_v23 = vpop.permute.xlu0 %117 }
  0xdf   :  { %v206_v49 = vpop.f32.mrb[0].mxu0 }
  0xe0   :  { %v295_v50 = vpop.f32.mrb[0].mxu1  ;;  %v5644_v51 = vadd.f32 %v206_v49, %v73_v47  ;;  %v4665_v53 = vpop.f32.mrb[1].mxu0 }
  0xe1   :  { %v5646_v52 = vadd.f32 %v295_v50, %v88_v48  ;;  %v4682_v54 = vpop.f32.mrb[1].mxu1 }
  0xe2   :  { %v5649_v56 = vmul.f32 0.70710677, %v5644_v51 }
  0xe3   :  { %v5652_v57 = vmul.f32 0.70710677, %v5646_v52  ;;  %v211_v58 = vpop.f32.mrb[2].mxu0 }
  0xe4   :  { %v300_v59 = vpop.f32.mrb[2].mxu1  ;;  %v5655_v61 = vand.u32 2147483647, %v5649_v56  ;;  %v5660_v63 = vadd.f32 %v211_v58, %v78_v55  ;;  %v4668_v1 = vpop.f32.mrb[3].mxu0  ;;  %vm503_vm3 = vcmp.lt.f32.partialorder %v5649_v56, 0.0 }
  0xe5   :  { %v5658_v62 = vand.u32 2147483647, %v5652_v57  ;;  %v5662_v0 = vadd.f32 %v300_v59, %v93_v60  ;;  %v4685_v2 = vpop.f32.mrb[3].mxu1  ;;  %vm505_vm6 = vcmp.lt.f32.partialorder %v5652_v57, 0.0 }
  0xe6   :  { %v527_v3 = vmul.f32 0.3275911, %v5655_v61  ;;  %v5667_v6 = vmul.f32 0.70710677, %v5660_v63  ;;  %v631_v44 = vsub.f32 0.0, %v5655_v61 }
  0xe7   :  { %v529_v4 = vmul.f32 0.3275911, %v5658_v62  ;;  %v5670_v7 = vmul.f32 0.70710677, %v5662_v0  ;;  %v5672_v10 = vpop.f32.mrb[4].mxu0  ;;  %v633_v50 = vsub.f32 0.0, %v5658_v62 }
  0xe8   :  { %v535_v8 = vadd.f32 1.0, %v527_v3  ;;  %v5674_v11 = vpop.f32.mrb[4].mxu1  ;;  %v520_v12 = vand.u32 2147483647, %v5667_v6  ;;  %v4671_v14 = vpop.f32.mrb[5].mxu0  ;;  %v639_v3 = vmul.f32 %v631_v44, %v5655_v61  ;;  %vm504_vm4 = vcmp.lt.f32.partialorder %v5667_v6, 0.0 }
  0xe9   :  { %v537_v9 = vadd.f32 1.0, %v529_v4  ;;  %v522_v13 = vand.u32 2147483647, %v5670_v7  ;;  %v4688_v16 = vpop.f32.mrb[5].mxu1  ;;  %v641_v14 = vmul.f32 %v633_v50, %v5658_v62  ;;  %v123_v61 = vpop.permute.xlu1 %122  ;;  %vm506_vm5 = vcmp.lt.f32.partialorder %v5670_v7, 0.0 }
  0xea   :  { %4864 = vrcp.f32 %v535_v8  ;;  %v528_v15 = vmul.f32 0.3275911, %v520_v12  ;;  %v632_v34 = vsub.f32 0.0, %v520_v12  ;;  %v490_v57 = vmul.f32 0.5, %v5662_v0 }
  0xeb   :  { %4866 = vrcp.f32 %v537_v9  ;;  %v530_v17 = vmul.f32 0.3275911, %v522_v13  ;;  %v384_v18 = vpop.f32.mrb[6].mxu0  ;;  %v634_v45 = vsub.f32 0.0, %v522_v13 }
  0xec   :  { %v473_v19 = vpop.f32.mrb[6].mxu1  ;;  %v536_v20 = vadd.f32 1.0, %v528_v15  ;;  %v4699_v21 = vpop.f32.mrb[7].mxu0  ;;  %v5678_v25 = vadd.f32 %v384_v18, %v103_v5  ;;  %v640_v53 = vmul.f32 %v632_v34, %v520_v12 }
  0xed   :  { %v4716_v22 = vpop.f32.mrb[7].mxu1  ;;  %v538_v24 = vadd.f32 1.0, %v530_v17  ;;  %v5680_v26 = vadd.f32 %v473_v19, %v118_v23  ;;  %v642_v4 = vmul.f32 %v634_v45, %v522_v13 }
  0xee   :  { %4868 = vrcp.f32 %v536_v20  ;;  %v5683_v29 = vmul.f32 0.70710677, %v5678_v25  ;;  %v649_v15 = vmul.f32 1.442695, %v640_v53  ;;  %v647_v20 = vmul.f32 1.442695, %v639_v3 }
  0xef   :  { %v389_v27 = vpop.f32.mrb[8].mxu0  ;;  %4870 = vrcp.f32 %v538_v24  ;;  %v5686_v31 = vmul.f32 0.70710677, %v5680_v26  ;;  %v653_v22 = vmul.f32 1.442695, %v642_v4 }
  0xf0   :  { %v478_v28 = vpop.f32.mrb[8].mxu1  ;;  %v4702_v30 = vpop.f32.mrb[9].mxu0  ;;  %v5689_v35 = vand.u32 2147483647, %v5683_v29  ;;  %v5698_v39 = vadd.f32 %v389_v27, %v108_v33  ;;  %vm507_vm7 = vcmp.lt.f32.partialorder %v5683_v29, 0.0 }
  0xf1   :  { %v4719_v32 = vpop.f32.mrb[9].mxu1  ;;  %v5696_v38 = vand.u32 2147483647, %v5686_v31  ;;  %v5730_v27 = vadd.f32 %v478_v28, %v123_v61  ;;  %vm509_vm9 = vcmp.lt.f32.partialorder %v5686_v31, 0.0 }
  0xf2   :  { %v531_v46 = vmul.f32 0.3275911, %v5689_v35  ;;  %v5711_v60 = vmul.f32 0.70710677, %v5698_v39  ;;  %v651_v32 = vmul.f32 1.442695, %v641_v14 }
  0xf3   :  { %v5691_v36 = vpop.f32.mrb[10].mxu0  ;;  %v533_v48 = vmul.f32 0.3275911, %v5696_v38  ;;  %v635_v34 = vsub.f32 0.0, %v5689_v35  ;;  %v5737_v28 = vmul.f32 0.70710677, %v5730_v27 }
  0xf4   :  { %v5693_v37 = vpop.eup %4864  ;;  %v5700_v40 = vpop.f32.mrb[10].mxu1  ;;  %v539_v54 = vadd.f32 1.0, %v531_v46  ;;  %v5724_v19 = vand.u32 2147483647, %v5711_v60  ;;  %vm508_vm8 = vcmp.lt.f32.partialorder %v5711_v60, 0.0  ;;  %v780_v60 = vld [vmem:[%s9369_s3 + $0x8] sm:$0xff] }
  0xf5   :  { %v4705_v41 = vpop.f32.mrb[11].mxu0  ;;  %v5702_v42 = vpop.eup %4866  ;;  %v559_v43 = vmul.f32 1.0614054, %v5693_v37  ;;  %v541_v59 = vadd.f32 1.0, %v533_v48  ;;  %v643_v53 = vmul.f32 %v635_v34, %v5689_v35  ;;  %vm510_vm10 = vcmp.lt.f32.partialorder %v5737_v28, 0.0 }
  0xf6   :  { %v561_v47 = vmul.f32 1.0614054, %v5702_v42  ;;  %v4722_v55 = vpop.f32.mrb[11].mxu1  ;;  %4872 = vrcp.f32 %v539_v54  ;;  %v532_v62 = vmul.f32 0.3275911, %v5724_v19 }
  0xf7   :  { %v567_v49 = vadd.f32 -1.4531521, %v559_v43  ;;  %4874 = vrcp.f32 %v541_v59  ;;  %v655_v35 = vmul.f32 1.442695, %v643_v53 }
  0xf8   :  { %v569_v58 = vadd.f32 -1.4531521, %v561_v47  ;;  %v5713_v1 = vpop.eup %4868  ;;  %4876 = vpow2.f32 %v649_v15  ;;  %v540_v44 = vadd.f32 1.0, %v532_v62 }
  0xf9   :  { %v575_v2 = vmul.f32 %v5693_v37, %v567_v49  ;;  %v5717_v5 = vpop.eup %4870  ;;  %v560_v9 = vmul.f32 1.0614054, %v5713_v1  ;;  %4878 = vpow2.f32 %v653_v22 }
  0xfa   :  { %v577_v8 = vmul.f32 %v5702_v42, %v569_v58  ;;  %v562_v16 = vmul.f32 1.0614054, %v5717_v5  ;;  %4880 = vrcp.f32 %v540_v44 }
  0xfb   :  { %v583_v12 = vadd.f32 1.4214138, %v575_v2  ;;  %v568_v18 = vadd.f32 -1.4531521, %v560_v9  ;;  %4882 = vpow2.f32 %v647_v20  ;;  %v5750_v9 = vand.u32 2147483647, %v5737_v28 }
  0xfc   :  { %v585_v17 = vadd.f32 1.4214138, %v577_v8  ;;  %v570_v21 = vadd.f32 -1.4531521, %v562_v16  ;;  %4884 = vpow2.f32 %v651_v32  ;;  %v796_v28 = vld [vmem:[%s9369_s3 + $0x88] sm:$0xff] }
  0xfd   :  { %v591_v13 = vmul.f32 %v5693_v37, %v583_v12  ;;  %v576_v24 = vmul.f32 %v5713_v1, %v568_v18  ;;  %v636_v18 = vsub.f32 0.0, %v5724_v19  ;;  %v534_v61 = vmul.f32 0.3275911, %v5750_v9 }
  0xfe   :  { %v593_v23 = vmul.f32 %v5702_v42, %v585_v17  ;;  %v578_v33 = vmul.f32 %v5717_v5, %v570_v21  ;;  %v637_v21 = vsub.f32 0.0, %v5696_v38  ;;  %4886 = vpow2.f32 %v655_v35 }
  0xff   :  { %v599_v30 = vadd.f32 -0.28449672, %v591_v13  ;;  %v584_v43 = vadd.f32 1.4214138, %v576_v24 }
 0x100   :  { %v601_v41 = vadd.f32 -0.28449672, %v593_v23  ;;  %v586_v45 = vadd.f32 1.4214138, %v578_v33  ;;  %v5739_v48 = vpop.eup %4872 }
 0x101   :  { %v607_v46 = vmul.f32 %v5693_v37, %v599_v30  ;;  %v592_v47 = vmul.f32 %v5713_v1, %v584_v43  ;;  %v5744_v54 = vpop.eup %4874  ;;  %v563_v58 = vmul.f32 1.0614054, %v5739_v48  ;;  %v542_v30 = vadd.f32 1.0, %v534_v61 }
 0x102   :  { %v609_v49 = vmul.f32 %v5702_v42, %v601_v41  ;;  %v594_v50 = vmul.f32 %v5717_v5, %v586_v45  ;;  %v565_v2 = vmul.f32 1.0614054, %v5744_v54  ;;  %v4877_v22 = vpop.eup %4876 }
 0x103   :  { %v600_v55 = vadd.f32 -0.28449672, %v592_v47  ;;  %v615_v3 = vadd.f32 0.2548296, %v607_v46  ;;  %v571_v8 = vadd.f32 -1.4531521, %v563_v58  ;;  %v4879_v32 = vpop.eup %4878  ;;  %v644_v46 = vmul.f32 %v636_v18, %v5724_v19 }
 0x104   :  { %v602_v59 = vadd.f32 -0.28449672, %v594_v50  ;;  %v617_v12 = vadd.f32 0.2548296, %v609_v49  ;;  %v573_v15 = vadd.f32 -1.4531521, %v565_v2  ;;  %v5762_v43 = vpop.eup %4880  ;;  %4888 = vrcp.f32 %v542_v30 }
 0x105   :  { %v608_v4 = vmul.f32 %v5713_v1, %v600_v55  ;;  %v579_v17 = vmul.f32 %v5739_v48, %v571_v8  ;;  %v623_v23 = vmul.f32 %v5693_v37, %v615_v3  ;;  %v4883_v37 = vpop.eup %4882  ;;  %v564_v49 = vmul.f32 1.0614054, %v5762_v43 }
 0x106   :  { %v610_v14 = vmul.f32 %v5717_v5, %v602_v59  ;;  %v581_v20 = vmul.f32 %v5744_v54, %v573_v15  ;;  %v625_v33 = vmul.f32 %v5702_v42, %v617_v12  ;;  %v4885_v50 = vpop.eup %4884  ;;  %v657_v2 = vmul.f32 1.442695, %v644_v46 }
 0x107   :  { %v616_v16 = vadd.f32 0.2548296, %v608_v4  ;;  %v587_v62 = vadd.f32 1.4214138, %v579_v17  ;;  %v663_v42 = vmul.f32 %v4883_v37, %v623_v23  ;;  %v572_v58 = vadd.f32 -1.4531521, %v564_v49 }
 0x108   :  { %v618_v13 = vadd.f32 0.2548296, %v610_v14  ;;  %v589_v41 = vadd.f32 1.4214138, %v581_v20  ;;  %v665_v55 = vmul.f32 %v4885_v50, %v625_v33  ;;  %4890 = vpow2.f32 %v657_v2 }
 0x109   :  { %v624_v24 = vmul.f32 %v5713_v1, %v616_v16  ;;  %v595_v45 = vmul.f32 %v5739_v48, %v587_v62  ;;  %v580_v8 = vmul.f32 %v5762_v43, %v572_v58  ;;  %v671_v12 = vsub.f32 1.0, %v663_v42 }
 0x10a   :  { %v626_v34 = vmul.f32 %v5717_v5, %v618_v13  ;;  %v597_v1 = vmul.f32 %v5744_v54, %v589_v41  ;;  %v645_v5 = vmul.f32 %v637_v21, %v5696_v38  ;;  %v638_v38 = vsub.f32 0.0, %v5750_v9  ;;  %v4887_v13 = vpop.eup %4886 }
 0x10b   :  { %v664_v44 = vmul.f32 %v4877_v22, %v624_v24  ;;  %v603_v53 = vadd.f32 -0.28449672, %v595_v45  ;;  %v673_v15 = vsub.f32 1.0, %v665_v55  ;;  %v5246_v16 = vmov 1.0  }
 0x10c   :  { %v666_v47 = vmul.f32 %v4879_v32, %v626_v34  ;;  %v605_v4 = vadd.f32 -0.28449672, %v597_v1  ;;  %v659_v35 = vmul.f32 1.442695, %v645_v5  ;;  %v512_v6 = vsel %vm504_vm4, -1.0, %v5246_v16 }
 0x10d   :  { %v672_v59 = vsub.f32 1.0, %v664_v44  ;;  %v611_v19 = vmul.f32 %v5739_v48, %v603_v53  ;;  %v588_v17 = vadd.f32 1.4214138, %v580_v8  ;;  %v514_v61 = vsel %vm506_vm5, -1.0, %v5246_v16 }
 0x10e   :  { %v674_v3 = vsub.f32 1.0, %v666_v47  ;;  %v511_v20 = vsel %vm503_vm3, -1.0, %v5246_v16  ;;  %v613_v22 = vmul.f32 %v5744_v54, %v605_v4  ;;  %v5784_v24 = vpop.eup %4888  ;;  %v513_v30 = vsel %vm505_vm6, -1.0, %v5246_v16 }
 0x10f   :  { %v619_v14 = vadd.f32 0.2548296, %v611_v19  ;;  %v680_v18 = vmul.f32 %v672_v59, %v512_v6  ;;  %v596_v23 = vmul.f32 %v5762_v43, %v588_v17  ;;  %v679_v62 = vmul.f32 %v671_v12, %v511_v20 }
 0x110   :  { %v682_v21 = vmul.f32 %v674_v3, %v514_v61  ;;  %4892 = vpow2.f32 %v659_v35  ;;  %v681_v32 = vmul.f32 %v673_v15, %v513_v30  ;;  %v566_v56 = vmul.f32 1.0614054, %v5784_v24 }
 0x111   :  { %v627_v7 = vmul.f32 %v5739_v48, %v619_v14  ;;  %v646_v48 = vmul.f32 %v638_v38, %v5750_v9  ;;  %v604_v34 = vadd.f32 -0.28449672, %v596_v23  ;;  %v488_v41 = vmul.f32 0.5, %v5660_v63 }
 0x112   :  { %v688_v44 = vadd.f32 1.0, %v680_v18  ;;  %v690_v45 = vadd.f32 1.0, %v682_v21  ;;  %v621_v46 = vadd.f32 0.2548296, %v613_v22  ;;  %v574_v47 = vadd.f32 -1.4531521, %v566_v56  ;;  %v4891_v0 = vpop.eup %4890 }
 0x113   :  { %v667_v33 = vmul.f32 %v4887_v13, %v627_v7  ;;  %v612_v37 = vmul.f32 %v5762_v43, %v604_v34  ;;  %v687_v1 = vadd.f32 1.0, %v679_v62  ;;  %v661_v49 = vmul.f32 1.442695, %v646_v48  ;;  %v792_v7 = vld [vmem:[%s9369_s3 + $0x68] sm:$0xff]  ;;  %v781_v13 = vld [vmem:[%s9369_s3 + $0x10] sm:$0xff]  ;;  %v794_v34 = vld [vmem:[%s9369_s3 + $0x78] sm:$0xff] }
 0x114   :  { %v689_v9 = vadd.f32 1.0, %v681_v32  ;;  %v582_v53 = vmul.f32 %v5784_v24, %v574_v47  ;;  %v487_v5 = vmul.f32 0.5, %v5644_v51  ;;  %v489_v63 = vmul.f32 0.5, %v5646_v52  ;;  %v785_v47 = vld [vmem:[%s9369_s3 + $0x30] sm:$0xff] }
 0x115   :  { %v675_v50 = vsub.f32 1.0, %v667_v33  ;;  %v620_v42 = vadd.f32 0.2548296, %v612_v37  ;;  %v696_v55 = vmul.f32 %v688_v44, %v488_v41  ;;  %v698_v58 = vmul.f32 %v690_v45, %v490_v57  ;;  %v795_v44 = vld [vmem:[%s9369_s3 + $0x80] sm:$0xff] }
 0x116   :  { %v629_v59 = vmul.f32 %v5744_v54, %v621_v46  ;;  %v590_v2 = vadd.f32 1.4214138, %v582_v53  ;;  %v695_v3 = vmul.f32 %v687_v1, %v487_v5  ;;  %v515_v29 = vsel %vm507_vm7, -1.0, %v5246_v16  ;;  %v784_v46 = vld [vmem:[%s9369_s3 + $0x28] sm:$0xff]  ;;  %v798_v53 = vld [vmem:[%s9369_s3 + $0x98] sm:$0xff] }
 0x117   :  { %v628_v19 = vmul.f32 %v5762_v43, %v620_v42  ;;  %4894 = vpow2.f32 %v661_v49  ;;  %v697_v4 = vmul.f32 %v689_v9, %v489_v63  ;;  %v683_v8 = vmul.f32 %v675_v50, %v515_v29  ;;  %v797_v49 = vld [vmem:[%s9369_s3 + $0x90] sm:$0xff]  ;;  %v786_v42 = vld [vmem:[%s9369_s3 + $0x38] sm:$0xff]  ;;  %v799_v63 = vld [vmem:[%s9369_s3 + $0xa0] sm:$0xff] }
 0x118   :  { %v598_v51 = vmul.f32 %v5784_v24, %v590_v2  ;;  %v4835_v14 = vpack.c.bf16 %v696_v55, %v695_v3  ;;  %v516_v43 = vsel %vm508_vm8, -1.0, %v5246_v16  ;;  %v491_v61 = vmul.f32 0.5, %v5678_v25  ;;  %v793_v25 = vld [vmem:[%s9369_s3 + $0x70] sm:$0xff]  ;;  %v802_v3 = vld [vmem:[%s9369_s3 + $0xb8] sm:$0xff]  ;;  %v803_v29 = vld [vmem:[%s9369_s3 + $0xc0] sm:$0xff] }
 0x119   :  { %v668_v12 = vmul.f32 %v4891_v0, %v628_v19  ;;  %v4839_v15 = vpack.c.bf16 %v698_v58, %v697_v4  ;;  %v691_v6 = vadd.f32 1.0, %v683_v8  ;;  %v492_v21 = vmul.f32 0.5, %v5698_v39  ;;  %v782_v39 = vld [vmem:[%s9369_s3 + $0x18] sm:$0xff]  ;;  %v788_v58 = vld [vmem:[%s9369_s3 + $0x48] sm:$0xff]  ;;  %v789_v19 = vld [vmem:[%s9369_s3 + $0x50] sm:$0xff] }
 0x11a   :  { %v4893_v52 = vpop.eup %4892  ;;  %v606_v54 = vadd.f32 -0.28449672, %v598_v51  ;;  %4836 = vmatprep.subr.bf16.mxu0 %v4835_v14  ;;  %v517_v33 = vsel %vm509_vm9, -1.0, %v5246_v16  ;;  %v518_v37 = vsel %vm510_vm10, -1.0, %v5246_v16  ;;  %v493_v16 = vmul.f32 0.5, %v5680_v26  ;;  %v787_v26 = vld [vmem:[%s9369_s3 + $0x40] sm:$0xff] }
 0x11b   :  { %v669_v35 = vmul.f32 %v4893_v52, %v629_v59  ;;  %v676_v38 = vsub.f32 1.0, %v668_v12  ;;  %4840 = vmatprep.subr.bf16.mxu1 %v4839_v15  ;;  %4838 = vmatpush3.bf16.msra.mxu0 %v4835_v14  ;;  %v699_v62 = vmul.f32 %v691_v6, %v491_v61  ;;  %v494_v9 = vmul.f32 0.5, %v5730_v27  ;;  %v800_v59 = vld [vmem:[%s9369_s3 + $0xa8] sm:$0xff]  ;;  %v801_v2 = vld [vmem:[%s9369_s3 + $0xb0] sm:$0xff]  ;;  %v790_v0 = vld [vmem:[%s9369_s3 + $0x58] sm:$0xff] }
 0x11c   :  { %v614_v18 = vmul.f32 %v5784_v24, %v606_v54  ;;  %4842 = vmatpush3.bf16.msra.mxu1 %v4839_v15  ;;  %v815_v4 = vld [vmem:[%s9369_s3 + $0x120] sm:$0xff]  ;;  %v804_v8 = vld [vmem:[%s9369_s3 + $0xc8] sm:$0xff]  ;;  %v805_v51 = vld [vmem:[%s9369_s3 + $0xd0] sm:$0xff] }
 0x11d   :  { %v684_v17 = vmul.f32 %v676_v38, %v516_v43  ;;  %v677_v20 = vsub.f32 1.0, %v669_v35  ;;  %v816_v12 = vld [vmem:[%s9369_s3 + $0x128] sm:$0xff]  ;;  %v817_v52 = vld [vmem:[%s9369_s3 + $0x130] sm:$0xff]  ;;  %v806_v14 = vld [vmem:[%s9369_s3 + $0xd8] sm:$0xff] }
 0x11e   :  { %v622_v23 = vadd.f32 0.2548296, %v614_v18  ;;  %4728 = vmatmul.mubr.msk.f32.vlgmr.msra.gmra.mrb[12].mxu0 %vm1115_vm2, %v780_v60  ;;  %v818_v35 = vld [vmem:[%s9369_s3 + $0x138] sm:$0xff]  ;;  %v807_v38 = vld [vmem:[%s9369_s3 + $0xe0] sm:$0xff]  ;;  %v808_v15 = vld [vmem:[%s9369_s3 + $0xe8] sm:$0xff]  ;;  %v98_v60 = vpop.permute.xlu1 %97 }
 0x11f   :  { %v692_v22 = vadd.f32 1.0, %v684_v17  ;;  %4750 = vmatmul.mubr.msk.f32.vlgmr.msra.gmra.mrb[12].mxu1 %vm1115_vm2, %v792_v7  ;;  %4730 = vmatprep.mubr.msk.f32.mxu0 %vm1115_vm2, %v781_v13  ;;  %v685_v56 = vmul.f32 %v677_v20, %v517_v33  ;;  %v819_v54 = vld [vmem:[%s9369_s3 + $0x140] sm:$0xff]  ;;  %v820_v43 = vld [vmem:[%s9369_s3 + $0x148] sm:$0xff]  ;;  %v809_v6 = vld [vmem:[%s9369_s3 + $0xf0] sm:$0xff]  ;;  %v83_v13 = vpop.permute.xlu0 %82 }
 0x120   :  { %v630_v48 = vmul.f32 %v5784_v24, %v622_v23  ;;  %4752 = vmatprep.mubr.msk.f32.mxu1 %vm1115_vm2, %v793_v25  ;;  %v783_v24 = vld [vmem:[%s9369_s3 + $0x20] sm:$0xff]  ;;  %v821_v17 = vld [vmem:[%s9369_s3 + $0x150] sm:$0xff]  ;;  %v810_v18 = vld [vmem:[%s9369_s3 + $0xf8] sm:$0xff] }
 0x121   :  { %v700_v30 = vmul.f32 %v692_v22, %v492_v21  ;;  %v4895_v32 = vpop.eup %4894  ;;  %v693_v1 = vadd.f32 1.0, %v685_v56  ;;  %v822_v61 = vld [vmem:[%s9369_s3 + $0x158] sm:$0xff]  ;;  %v811_v7 = vld [vmem:[%s9369_s3 + $0x100] sm:$0xff]  ;;  %v812_v21 = vld [vmem:[%s9369_s3 + $0x108] sm:$0xff] }
 0x122   :  { %v670_v41 = vmul.f32 %v4895_v32, %v630_v48  ;;  %4731 = vmatmul.mubr.msk.f32.gmra.mrb[14].mxu0 %vm1115_vm2, %v782_v39  ;;  %v823_v20 = vld [vmem:[%s9369_s3 + $0x160] sm:$0xff]  ;;  %v824_v22 = vld [vmem:[%s9369_s3 + $0x168] sm:$0xff]  ;;  %v813_v23 = vld [vmem:[%s9369_s3 + $0x110] sm:$0xff] }
 0x123   :  { %v4843_v31 = vpack.c.bf16 %v700_v30, %v699_v62  ;;  %4753 = vmatmul.mubr.msk.f32.gmra.mrb[14].mxu1 %vm1115_vm2, %v794_v34  ;;  %4733 = vmatprep.mubr.msk.f32.mxu0 %vm1115_vm2, %v783_v24  ;;  %v701_v27 = vmul.f32 %v693_v1, %v493_v16  ;;  %v825_v25 = vld [vmem:[%s9369_s3 + $0x170] sm:$0xff]  ;;  %v128_v62 = vpop.permute.xlu1 %127  ;;  %v113_v30 = vpop.permute.xlu0 %112  ;;  %v814_v48 = vld [vmem:[%s9369_s3 + $0x118] sm:$0xff] }
 0x124   :  { %v678_v45 = vsub.f32 1.0, %v670_v41  ;;  %4755 = vmatprep.mubr.msk.f32.mxu1 %vm1115_vm2, %v795_v44  ;;  %v826_v39 = vld [vmem:[%s9369_s3 + $0x178] sm:$0xff]  ;;  %s5247_s3 = smov [#allocation2]  }
 0x125   :  { %4844 = vmatprep.subr.bf16.mxu0 %v4843_v31  ;;  %s4484_s16 = sshll.u32 %s5247_s3, 4  ;;  %s4485_s16 = int_to_ptr.vmem [resolvable:$true] %s4484_s16 }
 0x126   :  { %v686_v57 = vmul.f32 %v678_v45, %v518_v37  ;;  %4846 = vmatpush3.bf16.msra.mxu0 %v4843_v31  ;;  %s5194_s17 = scalar_lea.vmem %s4485_s16, 96  ;;  %p5199_p1 = scmp.lt.s32.totalorder %s4485_s16, %s4485_s16 }
 0x127   :  { %4734 = vmatmul.mubr.msk.f32.gmra.mrb[16].mxu0 %vm1115_vm2, %v784_v46  ;;  %4756 = vmatmul.mubr.msk.f32.gmra.mrb[16].mxu1 %vm1115_vm2, %v796_v28  ;;  %v6000_v32 = vpop.permute.xlu1 %882  ;;  %v6002_v33 = vpop.permute.xlu0 %877  ;;  %p5195_p0 = scmp.ne.s32.totalorder %s4485_s16, %s5194_s17  ;;  %p5200_p2 = scmp.lt.s32.totalorder %s5194_s17, %s5194_s17 }
 0x128   :  { %v694_v50 = vadd.f32 1.0, %v686_v57  ;;  %4736 = vmatprep.mubr.msk.f32.mxu0 %vm1115_vm2, %v785_v47  ;;  %4758 = vmatprep.mubr.msk.f32.mxu1 %vm1115_vm2, %v797_v49 }
 0x129   :  { %p5201_p3 = por %p5200_p2, %p5199_p1 }
 0x12a   :  { %v702_v5 = vmul.f32 %v694_v50, %v494_v9 }
 0x12b   :  { %4737 = vmatmul.mubr.msk.f32.gmra.mrb[18].mxu0 %vm1115_vm2, %v786_v42  ;;  %4759 = vmatmul.mubr.msk.f32.gmra.mrb[18].mxu1 %vm1115_vm2, %v798_v53  ;;  %v6004_v34 = vpop.permute.xlu1 %892  ;;  %v6006_v24 = vpop.permute.xlu0 %887  ;;  %p5202_p4 = pnand %p5201_p3, %p5195_p0 }
 0x12c   :  { %v4847_v55 = vpack.c.bf16 %v702_v5, %v701_v27  ;;  %4739 = vmatprep.mubr.msk.f32.mxu0 %vm1115_vm2, %v787_v26  ;;  %4761 = vmatprep.mubr.msk.f32.mxu1 %vm1115_vm2, %v799_v63 }
 0x12e   :  { %4848 = vmatprep.subr.bf16.mxu1 %v4847_v55 }
 0x12f   :  { %4850 = vmatpush3.bf16.msra.mxu1 %v4847_v55  ;;  %4740 = vmatmul.mubr.msk.f32.gmra.mrb[20].mxu0 %vm1115_vm2, %v788_v58  ;;  %v6008_v56 = vpop.permute.xlu1 %942  ;;  %v6010_v41 = vpop.permute.xlu0 %937 }
 0x130   :  { %4762 = vmatmul.mubr.msk.f32.gmra.mrb[20].mxu1 %vm1115_vm2, %v800_v59  ;;  %4742 = vmatprep.mubr.msk.f32.mxu0 %vm1115_vm2, %v789_v19 }
 0x131   :  { %4764 = vmatprep.mubr.msk.f32.mxu1 %vm1115_vm2, %v801_v2 }
 0x133   :  { %4743 = vmatmul.mubr.msk.f32.gmra.mrb[22].mxu0 %vm1115_vm2, %v790_v0  ;;  %v6012_v44 = vpop.permute.xlu1 %952  ;;  %v6014_v31 = vpop.permute.xlu0 %947 }
 0x134   :  { %4765 = vmatmul.mubr.msk.f32.gmra.mrb[22].mxu1 %vm1115_vm2, %v802_v3  ;;  %4771 = vmatprep.mubr.msk.f32.mxu0 %vm1115_vm2, %v803_v29 }
 0x135   :  { %4793 = vmatprep.mubr.msk.f32.mxu1 %vm1115_vm2, %v815_v4 }
 0x137   :  { %4772 = vmatmul.mubr.msk.f32.vlgmr.msra.gmra.mrb[24].mxu0 %vm1115_vm2, %v804_v8  ;;  %v6016_v45 = vpop.permute.xlu1 %902  ;;  %v6018_v46 = vpop.permute.xlu0 %897 }
 0x138   :  { %4794 = vmatmul.mubr.msk.f32.vlgmr.msra.gmra.mrb[24].mxu1 %vm1115_vm2, %v816_v12  ;;  %4774 = vmatprep.mubr.msk.f32.mxu0 %vm1115_vm2, %v805_v51  ;;  %v217_v51 = vadd.f32 %v5672_v10, %v83_v13 }
 0x139   :  { %4796 = vmatprep.mubr.msk.f32.mxu1 %vm1115_vm2, %v817_v52  ;;  %v306_v52 = vadd.f32 %v5674_v11, %v98_v60 }
 0x13b   :  { %4775 = vmatmul.mubr.msk.f32.gmra.mrb[26].mxu0 %vm1115_vm2, %v806_v14  ;;  %v6020_v37 = vpop.permute.xlu1 %962  ;;  %v6022_v28 = vpop.permute.xlu0 %957  ;;  %v395_v14 = vadd.f32 %v5691_v36, %v113_v30 }
 0x13c   :  { %4797 = vmatmul.mubr.msk.f32.gmra.mrb[26].mxu1 %vm1115_vm2, %v818_v35  ;;  %4777 = vmatprep.mubr.msk.f32.mxu0 %vm1115_vm2, %v807_v38  ;;  %v703_v35 = vsub.f32 0.0, %v217_v51 }
 0x13d   :  { %4799 = vmatprep.mubr.msk.f32.mxu1 %vm1115_vm2, %v819_v54  ;;  %v704_v54 = vsub.f32 0.0, %v306_v52  ;;  %v736_v52 = vlaneseq }
 0x13f   :  { %4778 = vmatmul.mubr.msk.f32.gmra.mrb[28].mxu0 %vm1115_vm2, %v808_v15  ;;  %v6024_v47 = vpop.permute.xlu1 %1002  ;;  %v6026_v1 = vpop.permute.xlu0 %997 }
 0x140   :  { %4800 = vmatmul.mubr.msk.f32.gmra.mrb[28].mxu1 %vm1115_vm2, %v820_v43  ;;  %4780 = vmatprep.mubr.msk.f32.mxu0 %vm1115_vm2, %v809_v6  ;;  %v705_v43 = vsub.f32 0.0, %v395_v14  ;;  %v707_v6 = vmul.f32 1.442695, %v703_v35 }
 0x141   :  { %4802 = vmatprep.mubr.msk.f32.mxu1 %vm1115_vm2, %v821_v17  ;;  %v709_v17 = vmul.f32 1.442695, %v704_v54 }
 0x142   :  { %4896 = vpow2.f32 %v707_v6 }
 0x143   :  { %4781 = vmatmul.mubr.msk.f32.gmra.mrb[30].mxu0 %vm1115_vm2, %v810_v18  ;;  %v6028_v57 = vpop.permute.xlu1 %1012  ;;  %v6030_v49 = vpop.permute.xlu0 %1007  ;;  %v484_v18 = vadd.f32 %v5700_v40, %v128_v62  ;;  %4898 = vpow2.f32 %v709_v17 }
 0x144   :  { %4803 = vmatmul.mubr.msk.f32.gmra.mrb[30].mxu1 %vm1115_vm2, %v822_v61  ;;  %4783 = vmatprep.mubr.msk.f32.mxu0 %vm1115_vm2, %v811_v7  ;;  %v711_v7 = vmul.f32 1.442695, %v705_v43  ;;  %v737_v43 = vshrl.u32 %v736_v52, 7 }
 0x145   :  { %4805 = vmatprep.mubr.msk.f32.mxu1 %vm1115_vm2, %v823_v20  ;;  %v706_v10 = vsub.f32 0.0, %v484_v18 }
 0x146   :  { %4900 = vpow2.f32 %v711_v7 }
 0x147   :  { %4784 = vmatmul.mubr.msk.f32.gmra.mrb[32].mxu0 %vm1115_vm2, %v812_v21  ;;  %v6032_v16 = vpop.permute.xlu1 %912  ;;  %v6034_v9 = vpop.permute.xlu0 %907  ;;  %v713_v36 = vmul.f32 1.442695, %v706_v10  ;;  %v6104_v10 = vsub.s32 0, %v737_v43 }
 0x148   :  { %4806 = vmatmul.mubr.msk.f32.gmra.mrb[32].mxu1 %vm1115_vm2, %v824_v22  ;;  %4786 = vmatprep.mubr.msk.f32.mxu0 %vm1115_vm2, %v813_v23  ;;  %9722 = vst [vmem:[#allocation8_spill] sm:$0xff] %v6034_v9 }
 0x149   :  { %4808 = vmatprep.mubr.msk.f32.mxu1 %vm1115_vm2, %v825_v25  ;;  %4902 = vpow2.f32 %v713_v36  ;;  %9748 = vst [vmem:[#allocation34_spill] sm:$0xff] %v6104_v10 }
 0x14b   :  { %4787 = vmatmul.mubr.msk.f32.gmra.mrb[34].mxu0 %vm1115_vm2, %v814_v48  ;;  %v6036_v50 = vpop.permute.xlu1 %972  ;;  %v6038_v42 = vpop.permute.xlu0 %967 }
 0x14c   :  { %4809 = vmatmul.mubr.msk.f32.gmra.mrb[34].mxu1 %vm1115_vm2, %v826_v39  ;;  %9723 = vst [vmem:[#allocation9_spill] sm:$0xff] %v6038_v42  ;;  %v4897_v13 = vpop.eup %4896 }
 0x14d   :  { %v4899_v21 = vpop.eup %4898  ;;  %v715_v25 = vadd.f32 1.0, %v4897_v13 }
 0x14e   :  { %v716_v62 = vadd.f32 1.0, %v4899_v21 }
 0x14f   :  { %v6040_v53 = vpop.permute.xlu1 %1022  ;;  %v6042_v26 = vpop.permute.xlu0 %1017  ;;  %4904 = vrcp.f32 %v715_v25 }
 0x150   :  { %9724 = vst [vmem:[#allocation10_spill] sm:$0xff] %v6040_v53  ;;  %9725 = vst [vmem:[#allocation11_spill] sm:$0xff] %v6042_v26  ;;  %v4901_v23 = vpop.eup %4900  ;;  %4906 = vrcp.f32 %v716_v62 }
 0x151   :  { %v717_v30 = vadd.f32 1.0, %v4901_v23 }
 0x153   :  { %v6044_v27 = vpop.permute.xlu1 %1062  ;;  %v6046_v5 = vpop.permute.xlu0 %1057  ;;  %4908 = vrcp.f32 %v717_v30 }
 0x154   :  { %v4903_v51 = vpop.eup %4902 }
 0x155   :  { %v718_v14 = vadd.f32 1.0, %v4903_v51 }
 0x157   :  { %v6048_v63 = vpop.permute.xlu1 %1072  ;;  %v6050_v55 = vpop.permute.xlu0 %1067  ;;  %4910 = vrcp.f32 %v718_v14 }
 0x159   :  { %v6096_v6 = vpop.eup %4904 }
 0x15a   :  { %9744 = vst [vmem:[#allocation30_spill] sm:$0xff] %v6096_v6  ;;  %v6098_v17 = vpop.eup %4906  ;;  %v6109_v13 = vmul.f32 0.16666667, %v6096_v6 }
 0x15b   :  { %v6052_v58 = vpop.permute.xlu1 %742  ;;  %v6054_v59 = vpop.permute.xlu0 %733  ;;  %9745 = vst [vmem:[#allocation31_spill] sm:$0xff] %v6098_v17  ;;  %v6112_v21 = vmul.f32 0.16666667, %v6098_v17 }
 0x15c   :  { %v739_v25 = vrot.slane %v6054_v59, %v6104_v10  ;;  %v748_v62 = vrot.slane %v6052_v58, %v6104_v10  ;;  %v1770_v51 = vsel %vm771_vm11, %v6109_v13, 0.0  ;;  %v772_v58 = vsel %vm771_vm11, %v6096_v6, 0.0 }
 0x15d   :  { %v6102_v7 = vpop.eup %4908  ;;  %v1771_v52 = vsel %vm771_vm11, %v6112_v21, 0.0 }
 0x15e   :  { %9747 = vst [vmem:[#allocation33_spill] sm:$0xff] %v6102_v7  ;;  %v6115_v23 = vmul.f32 0.16666667, %v6102_v7  ;;  %v6133_v59 = vmul.f32 %v6096_v6, %v739_v25  ;;  %v775_v25 = vsel %vm771_vm11, %v6102_v7, 0.0 }
 0x15f   :  { %v6056_v19 = vpop.permute.xlu1 %922  ;;  %v6058_v2 = vpop.permute.xlu0 %917 }
 0x160   :  { %9726 = vst [vmem:[#allocation12_spill] sm:$0xff] %v6056_v19  ;;  %9727 = vst [vmem:[#allocation13_spill] sm:$0xff] %v6058_v2  ;;  %v1777_v6 = vmul.f32 0.16666667, %v6133_v59 }
 0x161   :  { %v6127_v14 = vpop.eup %4910  ;;  %9753 = vst [vmem:[#allocation39_spill] sm:$0xff] %v6133_v59 }
 0x162   :  { %9751 = vst [vmem:[#allocation37_spill] sm:$0xff] %v6127_v14 }
 0x163   :  { %v6060_v0 = vpop.permute.xlu1 %982  ;;  %v6062_v3 = vpop.permute.xlu0 %977 }
 0x164   :  { %9728 = vst [vmem:[#allocation14_spill] sm:$0xff] %v6060_v0  ;;  %9729 = vst [vmem:[#allocation15_spill] sm:$0xff] %v6062_v3 }
 0x167   :  { %v6064_v29 = vpop.permute.xlu1 %1032  ;;  %v6066_v4 = vpop.permute.xlu0 %1027 }
 0x168   :  { %9730 = vst [vmem:[#allocation16_spill] sm:$0xff] %v6064_v29  ;;  %9731 = vst [vmem:[#allocation17_spill] sm:$0xff] %v6066_v4 }
 0x16b   :  { %v6068_v8 = vpop.permute.xlu1 %1082  ;;  %v6070_v12 = vpop.permute.xlu0 %1077 }
 0x16c   :  { %9732 = vst [vmem:[#allocation18_spill] sm:$0xff] %v6068_v8  ;;  %9733 = vst [vmem:[#allocation19_spill] sm:$0xff] %v6070_v12 }
 0x16f   :  { %v6075_v38 = vpop.permute.xlu1 %927  ;;  %v752_v15 = vpop.permute.xlu0 %751 }
 0x170   :  { %9734 = vst [vmem:[#allocation20_spill] sm:$0xff] %v6075_v38  ;;  %v757_v43 = vrot.slane %v752_v15, %v6104_v10 }
 0x172   :  { %v6145_v15 = vmul.f32 %v6102_v7, %v757_v43 }
 0x173   :  { %v6078_v61 = vpop.permute.xlu1 %987  ;;  %v6080_v20 = vpop.permute.xlu0 %932 }
 0x174   :  { %9735 = vst [vmem:[#allocation21_spill] sm:$0xff] %v6078_v61  ;;  %9736 = vst [vmem:[#allocation22_spill] sm:$0xff] %v6080_v20  ;;  %v1779_v43 = vmul.f32 0.16666667, %v6145_v15 }
 0x175   :  { %9755 = vst [vmem:[#allocation41_spill] sm:$0xff] %v6145_v15 }
 0x177   :  { %v6082_v11 = vpop.permute.xlu1 %1037  ;;  %v6084_v60 = vpop.permute.xlu0 %992 }
 0x178   :  { %9737 = vst [vmem:[#allocation23_spill] sm:$0xff] %v6082_v11  ;;  %9738 = vst [vmem:[#allocation24_spill] sm:$0xff] %v6084_v60  ;;  %v1772_v11 = vadd.f32 %v1771_v52, %v1770_v51 }
 0x17b   :  { %v6086_v22 = vpop.permute.xlu1 %1087  ;;  %v6088_v40 = vpop.permute.xlu0 %1042 }
 0x17c   :  { %9739 = vst [vmem:[#allocation25_spill] sm:$0xff] %v6086_v22  ;;  %9740 = vst [vmem:[#allocation26_spill] sm:$0xff] %v6088_v40 }
 0x17f   :  { %v761_v48 = vpop.permute.xlu1 %760  ;;  %v6090_v39 = vpop.permute.xlu0 %1092 }
 0x180   :  { %9741 = vst [vmem:[#allocation27_spill] sm:$0xff] %v6090_v39  ;;  %v766_v51 = vrot.slane %v761_v48, %v6104_v10  ;;  %v1784_v48 = vsel %vm771_vm11, %v1779_v43, 0.0 }
 0x182   :  { %v6159_v39 = vmul.f32 %v6127_v14, %v766_v51 }
 0x183   :  { %v6092_v35 = vpop.permute.xlu1 %1052  ;;  %v6094_v54 = vpop.permute.xlu0 %1047 }
 0x184   :  { %9742 = vst [vmem:[#allocation28_spill] sm:$0xff] %v6092_v35  ;;  %9743 = vst [vmem:[#allocation29_spill] sm:$0xff] %v6094_v54  ;;  %v6136_v35 = vmul.f32 %v6098_v17, %v748_v62 }
 0x185   :  { %9756 = vst [vmem:[#allocation42_spill] sm:$0xff] %v6159_v39 }
 0x186   :  { %9754 = vst [vmem:[#allocation40_spill] sm:$0xff] %v6136_v35 }
 0x187   :  { %v6100_v18 = vpop.permute.xlu1 %1102  ;;  %v6106_v36 = vpop.permute.xlu0 %1097 }
 0x188   :  { %9746 = vst [vmem:[#allocation32_spill] sm:$0xff] %v6100_v18  ;;  %9749 = vst [vmem:[#allocation35_spill] sm:$0xff] %v6106_v36  ;;  %v1773_v36 = vsel %vm771_vm11, %v6115_v23, 0.0 }
 0x189   :  { %v1774_v18 = vadd.f32 %v1773_v36, %v1772_v11  ;;  %v777_v11 = vsel %vm771_vm11, %v6127_v14, 0.0  ;;  %v1781_v36 = vsel %vm771_vm11, %v1777_v6, 0.0 }
 0x18b   :  { %v6121_v30 = vpop.permute.xlu1 %1112  ;;  %v6130_v54 = vpop.permute.xlu0 %1107 }
 0x18c   :  { %9750 = vst [vmem:[#allocation36_spill] sm:$0xff] %v6121_v30  ;;  %9752 = vst [vmem:[#allocation38_spill] sm:$0xff] %v6130_v54  ;;  %v773_v30 = vsel %vm771_vm11, %v6098_v17, 0.0  ;;  %v6150_v54 = vmul.f32 0.16666667, %v6127_v14 }
 0x18d   :  { %v774_v62 = vadd.f32 %v773_v30, %v772_v58  ;;  %v1778_v17 = vmul.f32 0.16666667, %v6136_v35 }
 0x18e   :  { %v1775_v52 = vsel %vm771_vm11, %v6150_v54, 0.0 }
 0x18f   :  { %v1801_v40 = vpop.permute.xlu1 %1800  ;;  %v776_v22 = vadd.f32 %v775_v25, %v774_v62  ;;  %v1792_v4 = vpop.permute.xlu0 %1791  ;;  %v1776_v7 = vadd.f32 %v1775_v52, %v1774_v18  ;;  %v1782_v30 = vsel %vm771_vm11, %v1778_v17, 0.0  ;;  %v1780_v18 = vmul.f32 0.16666667, %v6159_v39 }
 0x190   :  { %v1783_v62 = vadd.f32 %v1782_v30, %v1781_v36  ;;  %v6171_v52 = vrot.slane %v1801_v40, %v6104_v10  ;;  %v6174_v6 = vrot.slane %v1792_v4, %v6104_v10 }
 0x191   :  { %v6165_v58 = vadd.f32 %v777_v11, %v776_v22  ;;  %v1786_v36 = vsel %vm771_vm11, %v1780_v18, 0.0 }
 0x192   :  { %v1785_v51 = vadd.f32 %v1784_v48, %v1783_v62  ;;  %9758 = vst [vmem:[#allocation44_spill] sm:$0xff] %v6171_v52  ;;  %9759 = vst [vmem:[#allocation45_spill] sm:$0xff] %v6174_v6 }
 0x193   :  { %9757 = vst [vmem:[#allocation43_spill] sm:$0xff] %v6165_v58  ;;  %v1819_v25 = vpop.permute.xlu1 %1818  ;;  %v1788_v35 = vsub.f32 %v6165_v58, %v1776_v7  ;;  %v1810_v15 = vpop.permute.xlu0 %1809 }
 0x194   :  { %v6180_v58 = vrot.slane %v1819_v25, %v6104_v10  ;;  %v1787_v62 = vadd.f32 %v1786_v36, %v1785_v51  ;;  %v6186_v59 = vrot.slane %v1810_v15, %v6104_v10 }
 0x195   :  { %v1844_v11 = vmul.f32 %v6171_v52, %v1788_v35  ;;  %v1843_v30 = vmul.f32 %v6174_v6, %v1788_v35 }
 0x196   :  { %9760 = vst [vmem:[#allocation46_spill] sm:$0xff] %v6180_v58  ;;  %v1846_v4 = vmul.f32 %v6180_v58, %v1788_v35  ;;  %9761 = vst [vmem:[#allocation47_spill] sm:$0xff] %v6186_v59  ;;  %v1845_v51 = vmul.f32 %v6186_v59, %v1788_v35 }
 0x197   :  { %v1837_v48 = vpop.permute.xlu1 %1836  ;;  %v1828_v40 = vpop.permute.xlu0 %1827  ;;  %v6192_v18 = vsub.f32 %v1787_v62, %v1844_v11  ;;  %v6196_v25 = vsub.f32 %v1787_v62, %v1843_v30 }
 0x198   :  { %v6200_v36 = vrot.slane %v1837_v48, %v6104_v10  ;;  %v6203_v58 = vrot.slane %v1828_v40, %v6104_v10  ;;  %v6207_v12 = vsub.f32 %v1787_v62, %v1846_v4  ;;  %v6219_v40 = vsub.f32 %v1787_v62, %v1845_v51 }
 0x199   :  { %v2562_v30 = vand.u32 2147483647, %v6192_v18  ;;  %v2561_v48 = vand.u32 2147483647, %v6196_v25  ;;  %v1855_v4 = vadd.f32 1e-08, %v1776_v7 }
 0x19a   :  { %9762 = vst [vmem:[#allocation48_spill] sm:$0xff] %v6200_v36  ;;  %9763 = vst [vmem:[#allocation49_spill] sm:$0xff] %v6203_v58  ;;  %v1848_v26 = vmul.f32 %v6200_v36, %v1788_v35  ;;  %v1847_v59 = vmul.f32 %v6203_v58, %v1788_v35  ;;  %v2564_v20 = vand.u32 2147483647, %v6207_v12  ;;  %v2563_v51 = vand.u32 2147483647, %v6219_v40 }
 0x19b   :  { %v2568_v3 = vsub.f32 0.0, %v2562_v30  ;;  %v2567_v58 = vsub.f32 0.0, %v2561_v48  ;;  %v1959_v7 = vrot.slane %v1855_v4, %v6104_v10 }
 0x19c   :  { %v6224_v36 = vsub.f32 %v1787_v62, %v1848_v26  ;;  %v6230_v2 = vsub.f32 %v1787_v62, %v1847_v59  ;;  %v2570_v19 = vsub.f32 0.0, %v2564_v20  ;;  %v2569_v48 = vsub.f32 0.0, %v2563_v51 }
 0x19d   :  { %v2573_v30 = vmul.f32 1.442695, %v2567_v58  ;;  %v6266_v58 = vrot.slane %v6112_v21, %v6104_v10  ;;  %4912 = vrcp.f32 %v1959_v7  ;;  %v6288_v7 = vrot.slane %v6150_v54, %v6104_v10 }
 0x19e   :  { %v2566_v26 = vand.u32 2147483647, %v6224_v36  ;;  %v2565_v59 = vand.u32 2147483647, %v6230_v2 }
 0x1f1   :  { %v4729_v14 = vpop.f32.mrb[12].mxu0 }
 0x1f2   :  { %v4751_v17 = vpop.f32.mrb[12].mxu1  ;;  %v1218_v22 = vpop.f32.mrb[13].mxu0 }
 0x1f3   :  { %v1379_v43 = vpop.f32.mrb[13].mxu1  ;;  %v6253_v20 = vadd.f32 %v1218_v22, %v6002_v33  ;;  %v2572_v33 = vsub.f32 0.0, %v2566_v26  ;;  %v2577_v22 = vmul.f32 1.442695, %v2569_v48 }
 0x1f4   :  { %v6256_v4 = vadd.f32 %v1379_v43, %v6010_v41  ;;  %v2571_v41 = vsub.f32 0.0, %v2565_v59 }
 0x1f5   :  { %v6182_v39 = vpop.f32.mrb[14].mxu0  ;;  %9772 = vst [vmem:[#allocation58_spill] sm:$0xff] %v6253_v20  ;;  %v2583_v48 = vmul.f32 1.442695, %v2572_v33 }
 0x1f6   :  { %v6188_v29 = vpop.f32.mrb[14].mxu1  ;;  %v6190_v52 = vpop.f32.mrb[15].mxu0  ;;  %9773 = vst [vmem:[#allocation59_spill] sm:$0xff] %v6256_v4  ;;  %v1884_v43 = vmul.f32 %v6266_v58, %v6256_v4 }
 0x1f7   :  { %v6194_v6 = vpop.f32.mrb[15].mxu1 }
 0x1fa   :  { %v6205_v15 = vpop.f32.mrb[16].mxu0  ;;  %v6210_v11 = vpop.f32.mrb[16].mxu1 }
 0x1fb   :  { %v6212_v61 = vpop.f32.mrb[17].mxu0  ;;  %v6216_v38 = vpop.f32.mrb[17].mxu1 }
 0x1fe   :  { %v6221_v60 = vpop.f32.mrb[18].mxu0  ;;  %v6226_v8 = vpop.f32.mrb[18].mxu1 }
 0x1ff   :  { %v6228_v53 = vpop.f32.mrb[19].mxu0  ;;  %v6232_v35 = vpop.f32.mrb[19].mxu1 }
 0x200   :  { %9764 = vst [vmem:[#allocation50_spill] sm:$0xff] %v6228_v53  ;;  %9765 = vst [vmem:[#allocation51_spill] sm:$0xff] %v6232_v35  ;;  %v2575_v53 = vmul.f32 1.442695, %v2568_v3  ;;  %v6247_v35 = vadd.f32 %v4729_v14, %v6000_v32  ;;  %v6262_v3 = vrot.slane %v6109_v13, %v6104_v10  ;;  %v2579_v32 = vmul.f32 1.442695, %v2570_v19 }
 0x202   :  { %v6235_v0 = vpop.f32.mrb[20].mxu0  ;;  %9770 = vst [vmem:[#allocation56_spill] sm:$0xff] %v6247_v35  ;;  %4914 = vpow2.f32 %v2575_v53  ;;  %v1873_v13 = vmul.f32 %v6262_v3, %v6247_v35  ;;  %v1872_v19 = vmul.f32 %v6262_v3, %v6253_v20  ;;  %v6284_v53 = vrot.slane %v6115_v23, %v6104_v10 }
 0x203   :  { %9766 = vst [vmem:[#allocation52_spill] sm:$0xff] %v6235_v0  ;;  %v6239_v42 = vpop.f32.mrb[20].mxu1  ;;  %v6241_v9 = vpop.f32.mrb[21].mxu0  ;;  %v6250_v0 = vadd.f32 %v4751_v17, %v6008_v56  ;;  %4916 = vpow2.f32 %v2573_v30 }
 0x204   :  { %9767 = vst [vmem:[#allocation53_spill] sm:$0xff] %v6239_v42  ;;  %9768 = vst [vmem:[#allocation54_spill] sm:$0xff] %v6241_v9  ;;  %v6244_v62 = vpop.f32.mrb[21].mxu1  ;;  %4918 = vpow2.f32 %v2579_v32 }
 0x205   :  { %9769 = vst [vmem:[#allocation55_spill] sm:$0xff] %v6244_v62  ;;  %9771 = vst [vmem:[#allocation57_spill] sm:$0xff] %v6250_v0  ;;  %v1885_v21 = vmul.f32 %v6266_v58, %v6250_v0  ;;  %4920 = vpow2.f32 %v2577_v22 }
 0x206   :  { %v6258_v9 = vpop.f32.mrb[22].mxu0  ;;  %4922 = vpow2.f32 %v2583_v48  ;;  %v6323_v48 = vadd.f32 %v6188_v29, %v6012_v44 }
 0x207   :  { %9774 = vst [vmem:[#allocation60_spill] sm:$0xff] %v6258_v9  ;;  %v6268_v56 = vpop.f32.mrb[22].mxu1  ;;  %v6270_v14 = vpop.f32.mrb[23].mxu0  ;;  %v1923_v9 = vadd.f32 %v1885_v21, %v1873_v13 }
 0x208   :  { %9775 = vst [vmem:[#allocation61_spill] sm:$0xff] %v6268_v56  ;;  %9776 = vst [vmem:[#allocation62_spill] sm:$0xff] %v6270_v14  ;;  %v6272_v17 = vpop.f32.mrb[23].mxu1 }
 0x209   :  { %9777 = vst [vmem:[#allocation63_spill] sm:$0xff] %v6272_v17  ;;  %v2581_v17 = vmul.f32 1.442695, %v2571_v41  ;;  %9784 = vst [vmem:[#allocation70_spill] sm:$0xff] %v6323_v48 }
 0x20a   :  { %v4773_v51 = vpop.f32.mrb[24].mxu0 }
 0x20b   :  { %v6291_v26 = vadd.f32 %v4773_v51, %v6024_v47  ;;  %v4795_v59 = vpop.f32.mrb[24].mxu1  ;;  %v1540_v30 = vpop.f32.mrb[25].mxu0  ;;  %v1920_v47 = vadd.f32 %v1884_v43, %v1872_v19  ;;  %4924 = vpow2.f32 %v2581_v17 }
 0x20c   :  { %v6294_v14 = vadd.f32 %v4795_v59, %v6044_v27  ;;  %v6297_v56 = vadd.f32 %v1540_v30, %v6026_v1  ;;  %v1701_v23 = vpop.f32.mrb[25].mxu1  ;;  %v6315_v19 = vpop.eup %4912  ;;  %v6319_v30 = vadd.f32 %v6182_v39, %v6004_v34 }
 0x20d   :  { %9778 = vst [vmem:[#allocation64_spill] sm:$0xff] %v6291_v26  ;;  %v1897_v54 = vmul.f32 %v6284_v53, %v6291_v26  ;;  %v6302_v32 = vadd.f32 %v1701_v23, %v6046_v5 }
 0x20e   :  { %9779 = vst [vmem:[#allocation65_spill] sm:$0xff] %v6294_v14  ;;  %9780 = vst [vmem:[#allocation66_spill] sm:$0xff] %v6297_v56  ;;  %v1896_v33 = vmul.f32 %v6284_v53, %v6297_v56  ;;  %v4776_v41 = vpop.f32.mrb[26].mxu0  ;;  %v1909_v27 = vmul.f32 %v6288_v7, %v6294_v14 }
 0x20f   :  { %9781 = vst [vmem:[#allocation67_spill] sm:$0xff] %v6302_v32  ;;  %v1924_v51 = vadd.f32 %v1923_v9, %v1897_v54  ;;  %v4798_v1 = vpop.f32.mrb[26].mxu1  ;;  %v1550_v59 = vpop.f32.mrb[27].mxu0  ;;  %v1908_v13 = vmul.f32 %v6288_v7, %v6302_v32  ;;  %9783 = vst [vmem:[#allocation69_spill] sm:$0xff] %v6319_v30  ;;  %v6336_v34 = vadd.f32 %v4776_v41, %v6028_v57 }
 0x210   :  { %v1921_v22 = vadd.f32 %v1920_v47, %v1896_v33  ;;  %v6311_v21 = vadd.f32 %v1550_v59, %v6030_v49  ;;  %v6313_v5 = vpop.f32.mrb[27].mxu1  ;;  %v4915_v9 = vpop.eup %4914  ;;  %v6352_v57 = vadd.f32 %v6194_v6, %v6014_v31 }
 0x211   :  { %v1925_v43 = vadd.f32 %v1924_v51, %v1909_v27  ;;  %v4917_v49 = vpop.eup %4916  ;;  %9788 = vst [vmem:[#allocation74_spill] sm:$0xff] %v6336_v34  ;;  %v2586_v29 = vadd.f32 1.0, %v4915_v9  ;;  %v1875_v27 = vmul.f32 %v6262_v3, %v6319_v30  ;;  %v1899_v31 = vmul.f32 %v6284_v53, %v6336_v34 }
 0x212   :  { %9782 = vst [vmem:[#allocation68_spill] sm:$0xff] %v6311_v21  ;;  %v1922_v23 = vadd.f32 %v1921_v22, %v1908_v13  ;;  %v6325_v54 = vpop.f32.mrb[28].mxu0  ;;  %v4919_v44 = vpop.eup %4918  ;;  %v2585_v51 = vadd.f32 1.0, %v4917_v49  ;;  %v1887_v22 = vmul.f32 %v6266_v58, %v6323_v48  ;;  %9792 = vst [vmem:[#allocation78_spill] sm:$0xff] %v6352_v57 }
 0x213   :  { %9785 = vst [vmem:[#allocation71_spill] sm:$0xff] %v6325_v54  ;;  %v1962_v47 = vmul.f32 %v6315_v19, %v1925_v43  ;;  %v6328_v33 = vpop.f32.mrb[28].mxu1  ;;  %v6330_v59 = vpop.f32.mrb[29].mxu0  ;;  %4926 = vlog2.f32 %v2586_v29 }
 0x214   :  { %9786 = vst [vmem:[#allocation72_spill] sm:$0xff] %v6328_v33  ;;  %9787 = vst [vmem:[#allocation73_spill] sm:$0xff] %v6330_v59  ;;  %v6333_v17 = vmul.f32 %v6315_v19, %v1922_v23  ;;  %v6338_v39 = vpop.f32.mrb[29].mxu1  ;;  %v4921_v43 = vpop.eup %4920  ;;  %v6348_v23 = vadd.f32 %v6190_v52, %v6006_v24  ;;  %4928 = vlog2.f32 %v2585_v51  ;;  %v1898_v33 = vmul.f32 %v6284_v53, %v6311_v21 }
 0x215   :  { %9789 = vst [vmem:[#allocation75_spill] sm:$0xff] %v6338_v39  ;;  %v6355_v41 = vsub.f32 %v6247_v35, %v1962_v47  ;;  %v6358_v9 = vsub.f32 %v6250_v0, %v1962_v47  ;;  %v4923_v6 = vpop.eup %4922  ;;  %v2587_v0 = vadd.f32 1.0, %v4921_v43  ;;  %v1929_v35 = vadd.f32 %v1887_v22, %v1875_v27 }
 0x216   :  { %v6344_v13 = vpop.f32.mrb[30].mxu0  ;;  %9791 = vst [vmem:[#allocation77_spill] sm:$0xff] %v6348_v23  ;;  %v6366_v39 = vsub.f32 %v6253_v20, %v6333_v17  ;;  %v6370_v24 = vsub.f32 %v6256_v4, %v6333_v17  ;;  %v4925_v20 = vpop.eup %4924  ;;  %v1874_v4 = vmul.f32 %v6262_v3, %v6348_v23  ;;  %v6400_v59 = vsub.f32 %v6291_v26, %v1962_v47 }
 0x217   :  { %9790 = vst [vmem:[#allocation76_spill] sm:$0xff] %v6344_v13  ;;  %v6360_v49 = vpop.f32.mrb[30].mxu1  ;;  %v6362_v10 = vpop.f32.mrb[31].mxu0  ;;  %v2588_v13 = vadd.f32 1.0, %v4919_v44  ;;  %v6377_v44 = vadd.f32 %v4798_v1, %v6048_v63  ;;  %v2034_v29 = vmul.f32 %v6358_v9, %v6266_v58  ;;  %v1930_v22 = vadd.f32 %v1929_v35, %v1899_v31 }
 0x218   :  { %9793 = vst [vmem:[#allocation79_spill] sm:$0xff] %v6360_v49  ;;  %9794 = vst [vmem:[#allocation80_spill] sm:$0xff] %v6362_v10  ;;  %v6374_v52 = vpop.f32.mrb[31].mxu1  ;;  %v1886_v49 = vmul.f32 %v6266_v58, %v6352_v57  ;;  %v2021_v63 = vmul.f32 %v6366_v39, %v6262_v3  ;;  %v2033_v1 = vmul.f32 %v6370_v24, %v6266_v58 }
 0x219   :  { %9795 = vst [vmem:[#allocation81_spill] sm:$0xff] %v6374_v52  ;;  %9796 = vst [vmem:[#allocation82_spill] sm:$0xff] %v6377_v44  ;;  %v2022_v52 = vmul.f32 %v6355_v41, %v6262_v3  ;;  %4930 = vlog2.f32 %v2588_v13  ;;  %v6406_v13 = vsub.f32 %v6297_v56, %v6333_v17  ;;  %v6416_v26 = vadd.f32 %v6313_v5, %v6050_v55 }
 0x21a   :  { %v6379_v10 = vpop.f32.mrb[32].mxu0  ;;  %4932 = vlog2.f32 %v2587_v0  ;;  %v1926_v35 = vadd.f32 %v1886_v49, %v1874_v4  ;;  %v2069_v56 = vmul.f32 %v2021_v63, %v6366_v39  ;;  %v6427_v4 = vsub.f32 %v6294_v14, %v1962_v47 }
 0x21b   :  { %9797 = vst [vmem:[#allocation83_spill] sm:$0xff] %v6379_v10  ;;  %v6389_v51 = vpop.f32.mrb[32].mxu1  ;;  %v6391_v27 = vpop.f32.mrb[33].mxu0  ;;  %v2590_v10 = vadd.f32 1.0, %v4923_v6  ;;  %v2070_v31 = vmul.f32 %v2022_v52, %v6355_v41  ;;  %v2082_v6 = vmul.f32 %v2034_v29, %v6358_v9  ;;  %9802 = vst [vmem:[#allocation88_spill] sm:$0xff] %v6416_v26  ;;  %v2046_v49 = vmul.f32 %v6400_v59, %v6284_v53 }
 0x21c   :  { %9798 = vst [vmem:[#allocation84_spill] sm:$0xff] %v6389_v51  ;;  %9799 = vst [vmem:[#allocation85_spill] sm:$0xff] %v6391_v27  ;;  %v6397_v43 = vpop.f32.mrb[33].mxu1  ;;  %v2589_v51 = vadd.f32 1.0, %v4925_v20  ;;  %v1911_v27 = vmul.f32 %v6288_v7, %v6377_v44  ;;  %v1927_v55 = vadd.f32 %v1926_v35, %v1898_v33  ;;  %v6433_v5 = vsub.f32 %v6302_v32, %v6333_v17 }
 0x21d   :  { %9800 = vst [vmem:[#allocation86_spill] sm:$0xff] %v6397_v43  ;;  %v2081_v43 = vmul.f32 %v2033_v1, %v6370_v24  ;;  %4934 = vlog2.f32 %v2590_v10  ;;  %v2045_v52 = vmul.f32 %v6406_v13, %v6284_v53  ;;  %v4927_v29 = vpop.eup %4926  ;;  %v1910_v10 = vmul.f32 %v6288_v7, %v6416_v26 }
 0x21e   :  { %v6410_v54 = vpop.f32.mrb[34].mxu0  ;;  %v1931_v62 = vadd.f32 %v1930_v22, %v1911_v27  ;;  %4936 = vlog2.f32 %v2589_v51  ;;  %v2120_v27 = vadd.f32 %v2082_v6, %v2070_v31  ;;  %v4929_v63 = vpop.eup %4928  ;;  %v2058_v33 = vmul.f32 %v6427_v4, %v6288_v7 }
 0x21f   :  { %9801 = vst [vmem:[#allocation87_spill] sm:$0xff] %v6410_v54  ;;  %v6418_v0 = vpop.f32.mrb[34].mxu1  ;;  %v6420_v20 = vpop.f32.mrb[35].mxu0  ;;  %v2117_v47 = vadd.f32 %v2081_v43, %v2069_v56  ;;  %v2094_v51 = vmul.f32 %v2046_v49, %v6400_v59  ;;  %v1928_v22 = vadd.f32 %v1927_v55, %v1910_v10  ;;  %v2594_v35 = vmul.f32 0.6931472, %v4927_v29 }
 0x220   :  { %9803 = vst [vmem:[#allocation89_spill] sm:$0xff] %v6418_v0  ;;  %9804 = vst [vmem:[#allocation90_spill] sm:$0xff] %v6420_v20  ;;  %v6424_v42 = vpop.f32.mrb[35].mxu1  ;;  %v1964_v1 = vmul.f32 %v6315_v19, %v1931_v62  ;;  %v2057_v14 = vmul.f32 %v6433_v5, %v6288_v7  ;;  %v2093_v31 = vmul.f32 %v2045_v52, %v6406_v13  ;;  %v2592_v6 = vmul.f32 0.6931472, %v4929_v63 }
 0x221   :  { %9805 = vst [vmem:[#allocation91_spill] sm:$0xff] %v6424_v42  ;;  %v2121_v32 = vadd.f32 %v2120_v27, %v2094_v51  ;;  %v2556_v56 = vmin.f32 %v6192_v18, 0.0  ;;  %v2555_v49 = vmin.f32 %v6196_v25, 0.0  ;;  %v2106_v29 = vmul.f32 %v2058_v33, %v6427_v4 }
 0x222   :  { %v2118_v43 = vadd.f32 %v2117_v47, %v2093_v31  ;;  %v6448_v62 = vsub.f32 %v6319_v30, %v1964_v1  ;;  %v6451_v20 = vsub.f32 %v6323_v48, %v1964_v1  ;;  %v1963_v10 = vmul.f32 %v6315_v19, %v1928_v22 }
 0x223   :  { %v4931_v17 = vpop.eup %4930  ;;  %v2604_v52 = vsub.f32 %v2556_v56, %v2594_v35  ;;  %v2105_v27 = vmul.f32 %v2057_v14, %v6433_v5  ;;  %v2603_v51 = vsub.f32 %v2555_v49, %v2592_v6  ;;  %v2558_v18 = vmin.f32 %v6207_v12, 0.0 }
 0x224   :  { %v4933_v42 = vpop.eup %4932  ;;  %v2598_v55 = vmul.f32 0.6931472, %v4931_v17  ;;  %v2122_v31 = vadd.f32 %v2121_v32, %v2106_v29  ;;  %v2557_v48 = vmin.f32 %v6219_v40, 0.0  ;;  %v2024_v25 = vmul.f32 %v6448_v62, %v6262_v3 }
 0x225   :  { %v2596_v47 = vmul.f32 0.6931472, %v4933_v42  ;;  %v2119_v0 = vadd.f32 %v2118_v43, %v2105_v27  ;;  %v2036_v33 = vmul.f32 %v6451_v20, %v6266_v58  ;;  %v2560_v17 = vmin.f32 %v6224_v36, 0.0 }
 0x226   :  { %v2606_v22 = vsub.f32 %v2558_v18, %v2598_v55  ;;  %v6465_v14 = vsub.f32 %v6348_v23, %v1963_v10  ;;  %v6468_v12 = vsub.f32 %v6352_v57, %v1963_v10  ;;  %v6470_v42 = vadd.f32 -2.5707963, %v2604_v52 }
 0x227   :  { %v4935_v63 = vpop.eup %4934  ;;  %v2559_v40 = vmin.f32 %v6230_v2, 0.0  ;;  %v6474_v35 = vsub.f32 %v6336_v34, %v1964_v1  ;;  %v6476_v6 = vadd.f32 -2.5707963, %v2603_v51  ;;  %v2605_v56 = vsub.f32 %v2557_v48, %v2596_v47  ;;  %v9823_v34 = vld [vmem:[#allocation14_spill] sm:$0xff] }
 0x228   :  { %v4937_v30 = vpop.eup %4936  ;;  %9806 = vst [vmem:[#allocation92_spill] sm:$0xff] %v6470_v42  ;;  %v2602_v32 = vmul.f32 0.6931472, %v4935_v63  ;;  %v2154_v36 = vmul.f32 %v6315_v19, %v2122_v31  ;;  %v6481_v49 = vadd.f32 %v6205_v15, %v6016_v45  ;;  %v2153_v55 = vmul.f32 %v6315_v19, %v2119_v0  ;;  %v9841_v42 = vld [vmem:[#allocation22_spill] sm:$0xff] }
 0x229   :  { %v2600_v43 = vmul.f32 0.6931472, %v4937_v30  ;;  %v2072_v29 = vmul.f32 %v2024_v25, %v6448_v62  ;;  %v2084_v52 = vmul.f32 %v2036_v33, %v6451_v20  ;;  %v6486_v2 = vadd.f32 -2.5707963, %v2606_v22 }
 0x22a   :  { %9807 = vst [vmem:[#allocation93_spill] sm:$0xff] %v6481_v49  ;;  %v6490_v27 = vadd.f32 %v6210_v11, %v6020_v37  ;;  %v2023_v30 = vmul.f32 %v6465_v14, %v6262_v3  ;;  %v2035_v48 = vmul.f32 %v6468_v12, %v6266_v58  ;;  %v2608_v45 = vsub.f32 %v2560_v17, %v2602_v32 }
 0x22b   :  { %9808 = vst [vmem:[#allocation94_spill] sm:$0xff] %v6486_v2  ;;  %v6498_v15 = vadd.f32 %v6212_v61, %v6018_v46  ;;  %v6501_v0 = vsub.f32 %v6377_v44, %v1964_v1  ;;  %v2048_v63 = vmul.f32 %v6474_v35, %v6284_v53  ;;  %v2607_v51 = vsub.f32 %v2559_v40, %v2600_v43 }
 0x22c   :  { %9809 = vst [vmem:[#allocation95_spill] sm:$0xff] %v6490_v27  ;;  %v2166_v37 = vmul.f32 2.0, %v2154_v36  ;;  %v2478_v11 = vadd.f32 1e-08, %v2154_v36  ;;  %v6506_v18 = vsub.f32 %v6311_v21, %v1963_v10  ;;  %v1877_v47 = vmul.f32 %v6262_v3, %v6481_v49  ;;  %v9824_v21 = vld [vmem:[#allocation53_spill] sm:$0xff] }
 0x22d   :  { %9810 = vst [vmem:[#allocation96_spill] sm:$0xff] %v6498_v15  ;;  %v2165_v31 = vmul.f32 2.0, %v2153_v55  ;;  %v2477_v25 = vadd.f32 1e-08, %v2153_v55  ;;  %v2126_v33 = vadd.f32 %v2084_v52, %v2072_v29  ;;  %v1889_v46 = vmul.f32 %v6266_v58, %v6490_v27  ;;  %v9815_v52 = vld [vmem:[#allocation50_spill] sm:$0xff] }
 0x22e   :  { %v6514_v61 = vadd.f32 %v6216_v38, %v6022_v28  ;;  %v2071_v1 = vmul.f32 %v2023_v30, %v6465_v14  ;;  %v2083_v22 = vmul.f32 %v2035_v48, %v6468_v12  ;;  %v1876_v17 = vmul.f32 %v6262_v3, %v6498_v15  ;;  %v9817_v48 = vld [vmem:[#allocation9_spill] sm:$0xff] }
 0x22f   :  { %v6522_v32 = vadd.f32 %v6221_v60, %v6032_v16  ;;  %v2060_v40 = vmul.f32 %v6501_v0, %v6288_v7  ;;  %v2096_v43 = vmul.f32 %v2048_v63, %v6474_v35  ;;  %v2178_v36 = vadd.f32 1e-08, %v2166_v37  ;;  %v9814_v60 = vld [vmem:[#allocation8_spill] sm:$0xff]  ;;  %v9818_v63 = vld [vmem:[#allocation51_spill] sm:$0xff] }
 0x230   :  { %9811 = vst [vmem:[#allocation97_spill] sm:$0xff] %v6514_v61  ;;  %4938 = vlog2.f32 %v2478_v11  ;;  %v6528_v28 = vsub.f32 %v6416_v26, %v1963_v10  ;;  %v2047_v38 = vmul.f32 %v6506_v18, %v6284_v53  ;;  %v6534_v55 = vadd.f32 %v6226_v8, %v6036_v50  ;;  %v9820_v10 = vld [vmem:[#allocation12_spill] sm:$0xff]  ;;  %v9826_v8 = vld [vmem:[#allocation13_spill] sm:$0xff] }
 0x231   :  { %9812 = vst [vmem:[#allocation98_spill] sm:$0xff] %v6522_v32  ;;  %v2177_v29 = vadd.f32 1e-08, %v2165_v31  ;;  %4940 = vlog2.f32 %v2477_v25  ;;  %v2127_v16 = vadd.f32 %v2126_v33, %v2096_v43  ;;  %v6538_v30 = vadd.f32 %v9815_v52, %v9814_v60  ;;  %v9821_v11 = vld [vmem:[#allocation52_spill] sm:$0xff]  ;;  %v9827_v31 = vld [vmem:[#allocation54_spill] sm:$0xff]  ;;  %v9829_v33 = vld [vmem:[#allocation15_spill] sm:$0xff] }
 0x232   :  { %9813 = vst [vmem:[#allocation99_spill] sm:$0xff] %v6534_v55  ;;  %v6542_v37 = vadd.f32 %v9818_v63, %v9817_v48  ;;  %v6546_v44 = vadd.f32 %v9821_v11, %v9820_v10  ;;  %v2123_v26 = vadd.f32 %v2083_v22, %v2071_v1  ;;  %v6550_v50 = vadd.f32 %v9824_v21, %v9823_v34  ;;  %v9830_v43 = vld [vmem:[#allocation55_spill] sm:$0xff]  ;;  %v9832_v22 = vld [vmem:[#allocation10_spill] sm:$0xff] }
 0x233   :  { %9816 = vst [vmem:[#allocation8_spill] sm:$0xff] %v6538_v30  ;;  %v6554_v25 = vadd.f32 %v9827_v31, %v9826_v8  ;;  %v6558_v60 = vadd.f32 %v9830_v43, %v9829_v33  ;;  %v2108_v52 = vmul.f32 %v2060_v40, %v6501_v0  ;;  %4942 = vrcp.f32 %v2178_v36  ;;  %v9833_v63 = vld [vmem:[#allocation71_spill] sm:$0xff] }
 0x234   :  { %9819 = vst [vmem:[#allocation50_spill] sm:$0xff] %v6542_v37  ;;  %9822 = vst [vmem:[#allocation9_spill] sm:$0xff] %v6546_v44  ;;  %v2059_v48 = vmul.f32 %v6528_v28, %v6288_v7  ;;  %v2095_v1 = vmul.f32 %v2047_v38, %v6506_v18  ;;  %v6566_v21 = vadd.f32 %v9833_v63, %v9832_v22  ;;  %4944 = vrcp.f32 %v2177_v29 }
 0x235   :  { %9825 = vst [vmem:[#allocation51_spill] sm:$0xff] %v6550_v50  ;;  %9828 = vst [vmem:[#allocation12_spill] sm:$0xff] %v6554_v25  ;;  %v1888_v34 = vmul.f32 %v6266_v58, %v6514_v61  ;;  %v1879_v10 = vmul.f32 %v6262_v3, %v6522_v32  ;;  %v2128_v11 = vadd.f32 %v2127_v16, %v2108_v52  ;;  %v6578_v31 = vadd.f32 -2.5707963, %v2605_v56 }
 0x236   :  { %9831 = vst [vmem:[#allocation52_spill] sm:$0xff] %v6558_v60  ;;  %9834 = vst [vmem:[#allocation14_spill] sm:$0xff] %v6566_v21  ;;  %v1891_v40 = vmul.f32 %v6266_v58, %v6534_v55  ;;  %v1878_v36 = vmul.f32 %v6262_v3, %v6538_v30  ;;  %v1890_v38 = vmul.f32 %v6266_v58, %v6542_v37  ;;  %v6580_v33 = vadd.f32 -2.5707963, %v2608_v45 }
 0x237   :  { %v2124_v8 = vadd.f32 %v2123_v26, %v2095_v1  ;;  %9835 = vst [vmem:[#allocation53_spill] sm:$0xff] %v6578_v31  ;;  %v1881_v43 = vmul.f32 %v6262_v3, %v6546_v44  ;;  %v1893_v29 = vmul.f32 %v6266_v58, %v6550_v50  ;;  %v1880_v16 = vmul.f32 %v6262_v3, %v6554_v25  ;;  %v9838_v31 = vld [vmem:[#allocation18_spill] sm:$0xff]  ;;  %v9839_v25 = vld [vmem:[#allocation72_spill] sm:$0xff] }
 0x238   :  { %9836 = vst [vmem:[#allocation13_spill] sm:$0xff] %v6580_v33  ;;  %v1892_v52 = vmul.f32 %v6266_v58, %v6558_v60  ;;  %v2107_v22 = vmul.f32 %v2059_v48, %v6528_v28  ;;  %v1901_v26 = vmul.f32 %v6284_v53, %v6566_v21  ;;  %v6593_v56 = vadd.f32 -2.5707963, %v2607_v51  ;;  %v9842_v51 = vld [vmem:[#allocation60_spill] sm:$0xff] }
 0x239   :  { %v1935_v45 = vadd.f32 %v1889_v46, %v1877_v47  ;;  %v1932_v1 = vadd.f32 %v1888_v34, %v1876_v17  ;;  %v2156_v63 = vmul.f32 %v6315_v19, %v2128_v11  ;;  %v6596_v23 = vadd.f32 %v1891_v40, %v1879_v10  ;;  %v9844_v47 = vld [vmem:[#allocation24_spill] sm:$0xff]  ;;  %v9845_v46 = vld [vmem:[#allocation61_spill] sm:$0xff]  ;;  %v9848_v10 = vld [vmem:[#allocation62_spill] sm:$0xff] }
 0x23a   :  { %9837 = vst [vmem:[#allocation54_spill] sm:$0xff] %v6593_v56  ;;  %v4939_v57 = vpop.eup %4938  ;;  %v6598_v33 = vadd.f32 %v1890_v38, %v1878_v36  ;;  %v2125_v2 = vadd.f32 %v2124_v8, %v2107_v22  ;;  %v6602_v60 = vadd.f32 %v9839_v25, %v9838_v31  ;;  %v6604_v54 = vadd.f32 %v1893_v29, %v1881_v43  ;;  %v9847_v34 = vld [vmem:[#allocation20_spill] sm:$0xff]  ;;  %v9851_v36 = vld [vmem:[#allocation21_spill] sm:$0xff]  ;;  %v9852_v25 = vld [vmem:[#allocation63_spill] sm:$0xff] }
 0x23b   :  { %v4941_v48 = vpop.eup %4940  ;;  %v6608_v56 = vadd.f32 %v9842_v51, %v9841_v42  ;;  %v6612_v17 = vadd.f32 %v9845_v46, %v9844_v47  ;;  %v6616_v11 = vadd.f32 %v9848_v10, %v9847_v34  ;;  %v6618_v40 = vadd.f32 %v1892_v52, %v1880_v16  ;;  %v9854_v31 = vld [vmem:[#allocation11_spill] sm:$0xff]  ;;  %v9855_v43 = vld [vmem:[#allocation73_spill] sm:$0xff] }
 0x23c   :  { %9840 = vst [vmem:[#allocation15_spill] sm:$0xff] %v6602_v60  ;;  %v6622_v38 = vadd.f32 %v9852_v25, %v9851_v36  ;;  %v1936_v8 = vadd.f32 %v1935_v45, %v1901_v26  ;;  %v6626_v29 = vadd.f32 %v9855_v43, %v9854_v31  ;;  %v2214_v42 = vmul.f32 %v6355_v41, %v6355_v41  ;;  %v9857_v36 = vld [vmem:[#allocation19_spill] sm:$0xff] }
 0x23d   :  { %9843 = vst [vmem:[#allocation55_spill] sm:$0xff] %v6608_v56  ;;  %9846 = vst [vmem:[#allocation10_spill] sm:$0xff] %v6612_v17  ;;  %v2226_v22 = vmul.f32 %v6358_v9, %v6358_v9  ;;  %v2238_v51 = vmul.f32 %v6400_v59, %v6400_v59  ;;  %v2168_v16 = vmul.f32 2.0, %v2156_v63  ;;  %v4943_v52 = vpop.eup %4942  ;;  %v2492_v47 = vmul.f32 0.6931472, %v4939_v57  ;;  %v9858_v25 = vld [vmem:[#allocation75_spill] sm:$0xff] }
 0x23e   :  { %9849 = vst [vmem:[#allocation71_spill] sm:$0xff] %v6616_v11  ;;  %9850 = vst [vmem:[#allocation18_spill] sm:$0xff] %v6618_v40  ;;  %v2490_v46 = vmul.f32 0.6931472, %v4941_v48  ;;  %v2155_v34 = vmul.f32 %v6315_v19, %v2125_v2  ;;  %v1913_v26 = vmul.f32 %v6288_v7, %v6602_v60  ;;  %v4945_v45 = vpop.eup %4944  ;;  %v2250_v10 = vmul.f32 %v6427_v4, %v6427_v4 }
 0x23f   :  { %9853 = vst [vmem:[#allocation72_spill] sm:$0xff] %v6622_v38  ;;  %9856 = vst [vmem:[#allocation22_spill] sm:$0xff] %v6626_v29  ;;  %v2213_v41 = vmul.f32 %v6366_v39, %v6366_v39  ;;  %v2225_v9 = vmul.f32 %v6370_v24, %v6370_v24  ;;  %v2237_v59 = vmul.f32 %v6406_v13, %v6406_v13  ;;  %v2180_v39 = vadd.f32 1e-08, %v2168_v16 }
 0x240   :  { %v2249_v57 = vmul.f32 %v6433_v5, %v6433_v5  ;;  %v1937_v2 = vadd.f32 %v1936_v8, %v1913_v26  ;;  %v1900_v48 = vmul.f32 %v6284_v53, %v6626_v29  ;;  %v6651_v31 = vadd.f32 %v9858_v25, %v9857_v36 }
 0x241   :  { %v2262_v4 = vmul.f32 %v4943_v52, %v2214_v42  ;;  %v2274_v43 = vmul.f32 %v4943_v52, %v2226_v22  ;;  %v2480_v40 = vadd.f32 1e-08, %v2156_v63  ;;  %v2261_v50 = vmul.f32 %v4945_v45, %v2213_v41 }
 0x242   :  { %9859 = vst [vmem:[#allocation60_spill] sm:$0xff] %v6651_v31  ;;  %v2273_v24 = vmul.f32 %v4945_v45, %v2225_v9  ;;  %v2513_v44 = vadd.f32 %v2492_v47, %v2490_v46  ;;  %v2167_v37 = vmul.f32 2.0, %v2155_v34  ;;  %v2286_v13 = vmul.f32 %v4943_v52, %v2238_v51 }
 0x243   :  { %v2298_v30 = vmul.f32 %v4943_v52, %v2250_v10  ;;  %v2285_v55 = vmul.f32 %v4945_v45, %v2237_v59  ;;  %v2297_v5 = vmul.f32 %v4945_v45, %v2249_v57  ;;  %v1883_v8 = vmul.f32 %v6262_v3, %v6608_v56 }
 0x244   :  { %v1895_v26 = vmul.f32 %v6266_v58, %v6612_v17  ;;  %v2479_v36 = vadd.f32 1e-08, %v2155_v34  ;;  %v1966_v42 = vmul.f32 %v6315_v19, %v1937_v2  ;;  %v1882_v63 = vmul.f32 %v6262_v3, %v6616_v11 }
 0x245   :  { %v1894_v22 = vmul.f32 %v6266_v58, %v6622_v38  ;;  %4946 = vlog2.f32 %v2480_v40  ;;  %v1933_v51 = vadd.f32 %v1932_v1, %v1900_v48  ;;  %v2309_v16 = vadd.f32 %v2262_v4, %v2261_v50 }
 0x246   :  { %v2351_v52 = vadd.f32 %v2274_v43, %v2273_v24  ;;  %v2514_v47 = vrot.slane %v2513_v44, 4  ;;  %v2179_v46 = vadd.f32 1e-08, %v2167_v37  ;;  %v2393_v45 = vadd.f32 %v2286_v13, %v2285_v55  ;;  %v9862_v37 = vld [vmem:[#allocation16_spill] sm:$0xff] }
 0x247   :  { %v2435_v10 = vadd.f32 %v2298_v30, %v2297_v5  ;;  %4948 = vrcp.f32 %v2180_v39  ;;  %v1912_v34 = vmul.f32 %v6288_v7, %v6651_v31  ;;  %v6664_v41 = vadd.f32 %v1895_v26, %v1883_v8  ;;  %v9863_v55 = vld [vmem:[#allocation76_spill] sm:$0xff] }
 0x248   :  { %4950 = vlog2.f32 %v2479_v36  ;;  %v1978_v9 = vsub.f32 %v6481_v49, %v1966_v42  ;;  %v1990_v59 = vsub.f32 %v6490_v27, %v1966_v42  ;;  %v6668_v57 = vadd.f32 %v1894_v22, %v1882_v63 }
 0x249   :  { %9860 = vst [vmem:[#allocation24_spill] sm:$0xff] %v6664_v41  ;;  %v2216_v50 = vmul.f32 %v6448_v62, %v6448_v62  ;;  %v1934_v1 = vadd.f32 %v1933_v51, %v1912_v34  ;;  %v6674_v30 = vadd.f32 %v9863_v55, %v9862_v37  ;;  %v2310_v40 = vrot.slane %v2309_v16, 4  ;;  %v9868_v55 = vld [vmem:[#allocation17_spill] sm:$0xff] }
 0x24a   :  { %9861 = vst [vmem:[#allocation61_spill] sm:$0xff] %v6668_v57  ;;  %v2352_v2 = vrot.slane %v2351_v52, 4  ;;  %v2515_v48 = vadd.f32 %v2514_v47, %v2513_v44  ;;  %4952 = vrcp.f32 %v2179_v46  ;;  %v2394_v25 = vrot.slane %v2393_v45, 4 }
 0x24b   :  { %9864 = vst [vmem:[#allocation20_spill] sm:$0xff] %v6674_v30  ;;  %v2436_v4 = vrot.slane %v2435_v10, 4  ;;  %v6677_v43 = vsub.f32 %v6566_v21, %v1966_v42  ;;  %v6680_v39 = vsub.f32 %v6602_v60, %v1966_v42  ;;  %v2228_v62 = vmul.f32 %v6451_v20, %v6451_v20 }
 0x24c   :  { %v2240_v24 = vmul.f32 %v6474_v35, %v6474_v35  ;;  %v2026_v13 = vmul.f32 %v1978_v9, %v6262_v3  ;;  %v2038_v5 = vmul.f32 %v1990_v59, %v6266_v58  ;;  %v2252_v44 = vmul.f32 %v6501_v0, %v6501_v0 }
 0x24d   :  { %v2215_v8 = vmul.f32 %v6465_v14, %v6465_v14  ;;  %v2227_v26 = vmul.f32 %v6468_v12, %v6468_v12  ;;  %v1965_v36 = vmul.f32 %v6315_v19, %v1934_v1  ;;  %v2311_v42 = vadd.f32 %v2310_v40, %v2309_v16  ;;  %v9866_v1 = vld [vmem:[#allocation79_spill] sm:$0xff]  ;;  %v9869_v40 = vld [vmem:[#allocation80_spill] sm:$0xff] }
 0x24e   :  { %v2353_v20 = vadd.f32 %v2352_v2, %v2351_v52  ;;  %v2516_v63 = vrot.slane %v2515_v48, 2  ;;  %v2239_v35 = vmul.f32 %v6506_v18, %v6506_v18  ;;  %v2395_v51 = vadd.f32 %v2394_v25, %v2393_v45 }
 0x24f   :  { %v4947_v22 = vpop.eup %4946  ;;  %v2437_v47 = vadd.f32 %v2436_v4, %v2435_v10  ;;  %v2050_v0 = vmul.f32 %v6677_v43, %v6284_v53  ;;  %v2062_v14 = vmul.f32 %v6680_v39, %v6288_v7  ;;  %v2251_v12 = vmul.f32 %v6528_v28, %v6528_v28  ;;  %v9865_v10 = vld [vmem:[#allocation27_spill] sm:$0xff] }
 0x250   :  { %v2074_v46 = vmul.f32 %v2026_v13, %v1978_v9  ;;  %v2086_v34 = vmul.f32 %v2038_v5, %v1990_v59  ;;  %v1903_v16 = vmul.f32 %v6284_v53, %v6674_v30  ;;  %v6706_v18 = vsub.f32 %v6498_v15, %v1965_v36 }
 0x251   :  { %v4949_v52 = vpop.eup %4948  ;;  %v6709_v45 = vsub.f32 %v6514_v61, %v1965_v36  ;;  %v6713_v37 = vadd.f32 %v9866_v1, %v9865_v10  ;;  %v6717_v2 = vadd.f32 %v9869_v40, %v9868_v55  ;;  %v2312_v25 = vrot.slane %v2311_v42, 2 }
 0x252   :  { %v4951_v28 = vpop.eup %4950  ;;  %v2354_v4 = vrot.slane %v2353_v20, 2  ;;  %v2517_v13 = vadd.f32 %v2516_v63, %v2515_v48  ;;  %v6719_v5 = vmul.f32 %v1978_v9, %v1978_v9  ;;  %v2396_v60 = vrot.slane %v2395_v51, 2 }
 0x253   :  { %9867 = vst [vmem:[#allocation62_spill] sm:$0xff] %v6713_v37  ;;  %9870 = vst [vmem:[#allocation21_spill] sm:$0xff] %v6717_v2  ;;  %v2438_v21 = vrot.slane %v2437_v47, 2  ;;  %v2098_v27 = vmul.f32 %v2050_v0, %v6677_v43  ;;  %v2110_v61 = vmul.f32 %v2062_v14, %v6680_v39  ;;  %v2264_v15 = vmul.f32 %v4949_v52, %v2216_v50 }
 0x254   :  { %v4953_v49 = vpop.eup %4952  ;;  %v2496_v10 = vmul.f32 0.6931472, %v4947_v22  ;;  %v2132_v1 = vadd.f32 %v2086_v34, %v2074_v46  ;;  %v6723_v38 = vmul.f32 %v1990_v59, %v1990_v59  ;;  %v2276_v55 = vmul.f32 %v4949_v52, %v2228_v62 }
 0x255   :  { %v2494_v40 = vmul.f32 0.6931472, %v4951_v28  ;;  %v2025_v11 = vmul.f32 %v6706_v18, %v6262_v3  ;;  %v2037_v9 = vmul.f32 %v6709_v45, %v6266_v58  ;;  %v2313_v48 = vadd.f32 %v2312_v25, %v2311_v42 }
 0x256   :  { %9871 = vst [vmem:[#allocation63_spill] sm:$0xff] %v6723_v38  ;;  %v2355_v63 = vadd.f32 %v2354_v4, %v2353_v20  ;;  %v2518_v57 = vrot.slane %v2517_v13, 1  ;;  %v2288_v0 = vmul.f32 %v4949_v52, %v2240_v24  ;;  %v2397_v17 = vadd.f32 %v2396_v60, %v2395_v51 }
 0x257   :  { %v2439_v14 = vadd.f32 %v2438_v21, %v2437_v47  ;;  %v2263_v56 = vmul.f32 %v4953_v49, %v2215_v8  ;;  %v6730_v50 = vsub.f32 %v6626_v29, %v1965_v36  ;;  %v2300_v59 = vmul.f32 %v4949_v52, %v2252_v44 }
 0x258   :  { %v2275_v22 = vmul.f32 %v4953_v49, %v2227_v26  ;;  %v2287_v62 = vmul.f32 %v4953_v49, %v2239_v35  ;;  %v2133_v46 = vadd.f32 %v2132_v1, %v2098_v27  ;;  %v2299_v34 = vmul.f32 %v4953_v49, %v2251_v12  ;;  %v9873_v12 = vld [vmem:[#allocation81_spill] sm:$0xff]  ;;  %v9875_v1 = vld [vmem:[#allocation26_spill] sm:$0xff] }
 0x259   :  { %v2520_v28 = vadd.f32 %v2496_v10, %v2494_v40  ;;  %v2073_v41 = vmul.f32 %v2025_v11, %v6706_v18  ;;  %v2085_v38 = vmul.f32 %v2037_v9, %v6709_v45  ;;  %v2314_v42 = vrot.slane %v2313_v48, 1 }
 0x25a   :  { %v2356_v20 = vrot.slane %v2355_v63, 1  ;;  %v2519_v25 = vadd.f32 %v2518_v57, %v2517_v13  ;;  %v6736_v60 = vmul.f32 %v6677_v43, %v6677_v43  ;;  %v2398_v21 = vrot.slane %v2397_v17, 1 }
 0x25b   :  { %v2316_v24 = vadd.f32 %v2264_v15, %v2263_v56  ;;  %v6739_v44 = vsub.f32 %v6651_v31, %v1965_v36  ;;  %v2049_v49 = vmul.f32 %v6730_v50, %v6284_v53  ;;  %v2440_v27 = vrot.slane %v2439_v14, 1  ;;  %v9872_v36 = vld [vmem:[#allocation25_spill] sm:$0xff] }
 0x25c   :  { %v2358_v8 = vadd.f32 %v2276_v55, %v2275_v22  ;;  %v2400_v11 = vadd.f32 %v2288_v0, %v2287_v62  ;;  %v1902_v26 = vmul.f32 %v6284_v53, %v6717_v2  ;;  %v2442_v35 = vadd.f32 %v2300_v59, %v2299_v34 }
 0x25d   :  { %v2521_v57 = vrot.slane %v2520_v28, 4  ;;  %v2134_v51 = vadd.f32 %v2133_v46, %v2110_v61  ;;  %v2129_v47 = vadd.f32 %v2085_v38, %v2073_v41  ;;  %v2615_v43 = vmul.f32 0.5, %v2519_v25  ;;  %v9876_v61 = vld [vmem:[#allocation83_spill] sm:$0xff] }
 0x25e   :  { %v6747_v15 = vmul.f32 %v6680_v39, %v6680_v39  ;;  %v1942_v56 = vadd.f32 %v6596_v23, %v1903_v16  ;;  %v6752_v52 = vadd.f32 %v9873_v12, %v9872_v36  ;;  %v2317_v4 = vrot.slane %v2316_v24, 4 }
 0x25f   :  { %v2061_v13 = vmul.f32 %v6739_v44, %v6288_v7  ;;  %v2097_v10 = vmul.f32 %v2049_v49, %v6730_v50  ;;  %v6759_v38 = vadd.f32 %v9876_v61, %v9875_v1  ;;  %v2359_v41 = vrot.slane %v2358_v8, 4 }
 0x260   :  { %9874 = vst [vmem:[#allocation11_spill] sm:$0xff] %v6752_v52  ;;  %v2401_v55 = vrot.slane %v2400_v11, 4  ;;  %v1915_v39 = vmul.f32 %v6288_v7, %v6713_v37  ;;  %v1939_v23 = vadd.f32 %v6598_v33, %v1902_v26  ;;  %v2315_v16 = vadd.f32 %v2314_v42, %v2313_v48 }
 0x261   :  { %9877 = vst [vmem:[#allocation73_spill] sm:$0xff] %v6759_v38  ;;  %v2443_v40 = vrot.slane %v2442_v35, 4  ;;  %v2522_v9 = vadd.f32 %v2521_v57, %v2520_v28  ;;  %v2130_v0 = vadd.f32 %v2129_v47, %v2097_v10  ;;  %v2621_v59 = vsub.f32 %v6476_v6, %v2615_v43  ;;  %v9878_v47 = vld [vmem:[#allocation32_spill] sm:$0xff] }
 0x262   :  { %v2158_v22 = vmul.f32 %v6315_v19, %v2134_v51  ;;  %v1943_v62 = vadd.f32 %v1942_v56, %v1915_v39  ;;  %v1914_v46 = vmul.f32 %v6288_v7, %v6752_v52  ;;  %v2357_v34 = vadd.f32 %v2356_v20, %v2355_v63  ;;  %v9879_v51 = vld [vmem:[#allocation84_spill] sm:$0xff] }
 0x263   :  { %v2318_v25 = vadd.f32 %v2317_v4, %v2316_v24  ;;  %v2109_v49 = vmul.f32 %v2061_v13, %v6739_v44  ;;  %v1905_v36 = vmul.f32 %v6284_v53, %v6759_v38  ;;  %v2399_v33 = vadd.f32 %v2398_v21, %v2397_v17 }
 0x264   :  { %v2360_v48 = vadd.f32 %v2359_v41, %v2358_v8  ;;  %v2402_v42 = vadd.f32 %v2401_v55, %v2400_v11  ;;  %v1940_v28 = vadd.f32 %v1939_v23, %v1914_v46  ;;  %v2444_v26 = vadd.f32 %v2443_v40, %v2442_v35  ;;  %v9885_v55 = vld [vmem:[#allocation99_spill] sm:$0xff]  ;;  %v9888_v46 = vld [vmem:[#allocation50_spill] sm:$0xff] }
 0x265   :  { %v2523_v57 = vrot.slane %v2522_v9, 2  ;;  %v2131_v6 = vadd.f32 %v2130_v0, %v2109_v49  ;;  %v6773_v43 = vadd.f32 %v9879_v51, %v9878_v47  ;;  %v2441_v56 = vadd.f32 %v2440_v27, %v2439_v14  ;;  %v9890_v47 = vld [vmem:[#allocation85_spill] sm:$0xff] }
 0x266   :  { %v6775_v12 = vsub.f32 %v2621_v59, %v2315_v16  ;;  %v2170_v63 = vmul.f32 2.0, %v2158_v22  ;;  %v1968_v20 = vmul.f32 %v6315_v19, %v1943_v62  ;;  %v6778_v24 = vsub.f32 %v2621_v59, %v2357_v34 }
 0x267   :  { %9880 = vst [vmem:[#allocation19_spill] sm:$0xff] %v6773_v43  ;;  %v2319_v4 = vrot.slane %v2318_v25, 2  ;;  %v2482_v17 = vadd.f32 1e-08, %v2158_v22  ;;  %v1948_v21 = vadd.f32 %v6604_v54, %v1905_v36  ;;  %v6781_v8 = vsub.f32 %v2621_v59, %v2399_v33  ;;  %v9887_v22 = vld [vmem:[#allocation8_spill] sm:$0xff] }
 0x268   :  { %9881 = vst [vmem:[#allocation75_spill] sm:$0xff] %v6775_v12  ;;  %9882 = vst [vmem:[#allocation16_spill] sm:$0xff] %v6778_v24  ;;  %v2361_v11 = vrot.slane %v2360_v48, 2  ;;  %v2403_v35 = vrot.slane %v2402_v42, 2  ;;  %v1967_v13 = vmul.f32 %v6315_v19, %v1940_v28  ;;  %v2445_v10 = vrot.slane %v2444_v26, 2 }
 0x269   :  { %9883 = vst [vmem:[#allocation76_spill] sm:$0xff] %v6781_v8  ;;  %v2524_v1 = vadd.f32 %v2523_v57, %v2522_v9  ;;  %v2157_v14 = vmul.f32 %v6315_v19, %v2131_v6  ;;  %v1917_v27 = vmul.f32 %v6288_v7, %v6773_v43  ;;  %v6787_v61 = vsub.f32 %v2621_v59, %v2441_v56  ;;  %v9889_v6 = vld [vmem:[#allocation23_spill] sm:$0xff] }
 0x26a   :  { %v6791_v41 = vsel %vm771_vm11, %v6775_v12, -inf  ;;  %v6794_v54 = vsub.f32 %v6522_v32, %v1968_v20  ;;  %v6797_v39 = vsub.f32 %v9885_v55, %v1968_v20  ;;  %v6801_v23 = vsel %vm771_vm11, %v6778_v24, -inf }
 0x26b   :  { %9884 = vst [vmem:[#allocation27_spill] sm:$0xff] %v6787_v61  ;;  %v2320_v16 = vadd.f32 %v2319_v4, %v2318_v25  ;;  %v2182_v40 = vadd.f32 1e-08, %v2170_v63  ;;  %v1949_v9 = vadd.f32 %v1948_v21, %v1917_v27  ;;  %v6805_v0 = vsel %vm771_vm11, %v6781_v8, -inf }
 0x26c   :  { %9886 = vst [vmem:[#allocation79_spill] sm:$0xff] %v6805_v0  ;;  %v2362_v59 = vadd.f32 %v2361_v11, %v2360_v48  ;;  %v6808_v62 = vsub.f32 %v9887_v22, %v1967_v13  ;;  %v6811_v34 = vsub.f32 %v9888_v46, %v1967_v13  ;;  %v2404_v49 = vadd.f32 %v2403_v35, %v2402_v42 }
 0x26d   :  { %v2446_v36 = vadd.f32 %v2445_v10, %v2444_v26  ;;  %v2525_v33 = vrot.slane %v2524_v1, 1  ;;  %v2169_v28 = vmul.f32 2.0, %v2157_v14  ;;  %4954 = vlog2.f32 %v2482_v17 }
 0x26e   :  { %v2028_v25 = vmul.f32 %v6794_v54, %v6262_v3  ;;  %v2040_v57 = vmul.f32 %v6797_v39, %v6266_v58  ;;  %v6819_v48 = vadd.f32 %v9890_v47, %v9889_v6  ;;  %v2321_v51 = vrot.slane %v2320_v16, 1  ;;  %v9892_v47 = vld [vmem:[#allocation9_spill] sm:$0xff] }
 0x26f   :  { %4956 = vrcp.f32 %v2182_v40  ;;  %v2481_v56 = vadd.f32 1e-08, %v2157_v14  ;;  %v1970_v63 = vmul.f32 %v6315_v19, %v1949_v9  ;;  %v2363_v42 = vrot.slane %v2362_v59, 1 }
 0x270   :  { %9891 = vst [vmem:[#allocation17_spill] sm:$0xff] %v6819_v48  ;;  %v6823_v26 = vsub.f32 %v6674_v30, %v1968_v20  ;;  %v2027_v4 = vmul.f32 %v6808_v62, %v6262_v3  ;;  %v2039_v17 = vmul.f32 %v6811_v34, %v6266_v58  ;;  %v2405_v21 = vrot.slane %v2404_v49, 1  ;;  %v9893_v30 = vld [vmem:[#allocation51_spill] sm:$0xff] }
 0x271   :  { %v2447_v11 = vrot.slane %v2446_v36, 1  ;;  %v2526_v35 = vadd.f32 %v2525_v33, %v2524_v1  ;;  %v2181_v10 = vadd.f32 1e-08, %v2169_v28  ;;  %v2076_v27 = vmul.f32 %v2028_v25, %v6794_v54 }
 0x272   :  { %v2088_v14 = vmul.f32 %v2040_v57, %v6797_v39  ;;  %v6832_v40 = vsub.f32 %v6717_v2, %v1967_v13  ;;  %v1904_v9 = vmul.f32 %v6284_v53, %v6819_v48  ;;  %4958 = vlog2.f32 %v2481_v56  ;;  %v9894_v57 = vld [vmem:[#allocation35_spill] sm:$0xff]  ;;  %v9895_v2 = vld [vmem:[#allocation86_spill] sm:$0xff] }
 0x273   :  { %v6837_v6 = vsub.f32 %v6713_v37, %v1968_v20  ;;  %v6840_v31 = vsub.f32 %v9892_v47, %v1970_v63  ;;  %v6843_v1 = vsub.f32 %v9893_v30, %v1970_v63  ;;  %v2052_v33 = vmul.f32 %v6823_v26, %v6284_v53  ;;  %v9897_v47 = vld [vmem:[#allocation18_spill] sm:$0xff] }
 0x274   :  { %v2075_v28 = vmul.f32 %v2027_v4, %v6808_v62  ;;  %v2087_v25 = vmul.f32 %v2039_v17, %v6811_v34  ;;  %v6851_v29 = vadd.f32 %v9895_v2, %v9894_v57  ;;  %v2322_v56 = vadd.f32 %v2321_v51, %v2320_v16 }
 0x275   :  { %v2364_v20 = vadd.f32 %v2363_v42, %v2362_v59  ;;  %v2616_v37 = vmul.f32 0.5, %v2526_v35  ;;  %4960 = vrcp.f32 %v2181_v10  ;;  %v2138_v55 = vadd.f32 %v2088_v14, %v2076_v27  ;;  %v9898_v10 = vld [vmem:[#allocation92_spill] sm:$0xff] }
 0x276   :  { %9896 = vst [vmem:[#allocation80_spill] sm:$0xff] %v6851_v29  ;;  %v6854_v46 = vsub.f32 %v6752_v52, %v1967_v13  ;;  %v2051_v30 = vmul.f32 %v6832_v40, %v6284_v53  ;;  %v1945_v32 = vadd.f32 %v9897_v47, %v1904_v9  ;;  %v2406_v4 = vadd.f32 %v2405_v21, %v2404_v49 }
 0x277   :  { %v2448_v22 = vadd.f32 %v2447_v11, %v2446_v36  ;;  %v2030_v17 = vmul.f32 %v6840_v31, %v6262_v3  ;;  %v2042_v2 = vmul.f32 %v6843_v1, %v6266_v58  ;;  %v4955_v16 = vpop.eup %4954  ;;  %v2064_v59 = vmul.f32 %v6837_v6, %v6288_v7 }
 0x278   :  { %v2100_v13 = vmul.f32 %v2052_v33, %v6823_v26  ;;  %v2135_v51 = vadd.f32 %v2087_v25, %v2075_v28  ;;  %v1916_v42 = vmul.f32 %v6288_v7, %v6851_v29  ;;  %v2622_v49 = vsub.f32 %v9898_v10, %v2616_v37  ;;  %v9899_v10 = vld [vmem:[#allocation63_spill] sm:$0xff] }
 0x279   :  { %v4957_v35 = vpop.eup %4956  ;;  %v2217_v36 = vmul.f32 %v6706_v18, %v6706_v18  ;;  %v2229_v21 = vmul.f32 %v6709_v45, %v6709_v45  ;;  %v6874_v11 = vsub.f32 %v6759_v38, %v1970_v63  ;;  %v2063_v14 = vmul.f32 %v6854_v46, %v6288_v7 }
 0x27a   :  { %v2139_v27 = vadd.f32 %v2138_v55, %v2100_v13  ;;  %v2099_v9 = vmul.f32 %v2051_v30, %v6832_v40  ;;  %v1946_v47 = vadd.f32 %v1945_v32, %v1916_v42  ;;  %v2241_v33 = vmul.f32 %v6730_v50, %v6730_v50  ;;  %v9902_v42 = vld [vmem:[#allocation87_spill] sm:$0xff] }
 0x27b   :  { %v2253_v37 = vmul.f32 %v6739_v44, %v6739_v44  ;;  %v2078_v18 = vmul.f32 %v2030_v17, %v6840_v31  ;;  %v2090_v45 = vmul.f32 %v2042_v2, %v6843_v1  ;;  %v2266_v28 = vmul.f32 %v4957_v35, %v6719_v5 }
 0x27c   :  { %v2500_v25 = vmul.f32 0.6931472, %v4955_v16  ;;  %v2112_v55 = vmul.f32 %v2064_v59, %v6837_v6  ;;  %v2136_v57 = vadd.f32 %v2135_v51, %v2099_v9  ;;  %v4959_v13 = vpop.eup %4958  ;;  %v2278_v30 = vmul.f32 %v4957_v35, %v9899_v10  ;;  %v9901_v16 = vld [vmem:[#allocation28_spill] sm:$0xff] }
 0x27d   :  { %v6889_v32 = vsub.f32 %v6773_v43, %v1970_v63  ;;  %v2054_v50 = vmul.f32 %v6874_v11, %v6284_v53  ;;  %v1969_v44 = vmul.f32 %v6315_v19, %v1946_v47  ;;  %v6894_v17 = vsub.f32 %v2622_v49, %v2322_v56 }
 0x27e   :  { %v2140_v2 = vadd.f32 %v2139_v27, %v2112_v55  ;;  %v2111_v5 = vmul.f32 %v2063_v14, %v6854_v46  ;;  %v6899_v59 = vadd.f32 %v9902_v42, %v9901_v16  ;;  %v6901_v9 = vsub.f32 %v2622_v49, %v2364_v20  ;;  %v9907_v16 = vld [vmem:[#allocation12_spill] sm:$0xff] }
 0x27f   :  { %9900 = vst [vmem:[#allocation25_spill] sm:$0xff] %v6894_v17  ;;  %v4961_v51 = vpop.eup %4960  ;;  %v2290_v63 = vmul.f32 %v4957_v35, %v6736_v60  ;;  %v2302_v10 = vmul.f32 %v4957_v35, %v6747_v15  ;;  %v2144_v43 = vadd.f32 %v2090_v45, %v2078_v18  ;;  %v6905_v52 = vsub.f32 %v2622_v49, %v2406_v4  ;;  %v9908_v20 = vld [vmem:[#allocation52_spill] sm:$0xff] }
 0x280   :  { %9903 = vst [vmem:[#allocation81_spill] sm:$0xff] %v6899_v59  ;;  %9904 = vst [vmem:[#allocation26_spill] sm:$0xff] %v6901_v9  ;;  %v6907_v47 = vsub.f32 %v2622_v49, %v2448_v22  ;;  %v2498_v56 = vmul.f32 0.6931472, %v4959_v13  ;;  %v2137_v27 = vadd.f32 %v2136_v57, %v2111_v5  ;;  %v2066_v14 = vmul.f32 %v6889_v32, %v6288_v7  ;;  %v9909_v5 = vld [vmem:[#allocation36_spill] sm:$0xff] }
 0x281   :  { %9905 = vst [vmem:[#allocation83_spill] sm:$0xff] %v6905_v52  ;;  %v2102_v55 = vmul.f32 %v2054_v50, %v6874_v11  ;;  %v6913_v42 = vsub.f32 %v9907_v16, %v1969_v44  ;;  %v6916_v38 = vsub.f32 %v9908_v20, %v1969_v44  ;;  %v6920_v60 = vsel %vm771_vm11, %v6894_v17, -inf }
 0x282   :  { %9906 = vst [vmem:[#allocation32_spill] sm:$0xff] %v6907_v47  ;;  %v2265_v15 = vmul.f32 %v4961_v51, %v2217_v36  ;;  %v2160_v22 = vmul.f32 %v6315_v19, %v2140_v2  ;;  %v1907_v4 = vmul.f32 %v6284_v53, %v6899_v59  ;;  %v6927_v35 = vsel %vm771_vm11, %v6901_v9, -inf  ;;  %v9910_v36 = vld [vmem:[#allocation89_spill] sm:$0xff] }
 0x283   :  { %v2277_v49 = vmul.f32 %v4961_v51, %v2229_v21  ;;  %v2145_v18 = vadd.f32 %v2144_v43, %v2102_v55  ;;  %v6930_v45 = vsub.f32 %v6819_v48, %v1969_v44  ;;  %v2289_v57 = vmul.f32 %v4961_v51, %v2241_v33 }
 0x284   :  { %v2527_v13 = vadd.f32 %v2500_v25, %v2498_v56  ;;  %v2159_v50 = vmul.f32 %v6315_v19, %v2137_v27  ;;  %v6935_v20 = vadd.f32 %v9910_v36, %v9909_v5  ;;  %v2114_v2 = vmul.f32 %v2066_v14, %v6889_v32  ;;  %v9912_v56 = vld [vmem:[#allocation24_spill] sm:$0xff] }
 0x285   :  { %v6939_v16 = vsub.f32 %v6851_v29, %v1969_v44  ;;  %v2029_v21 = vmul.f32 %v6913_v42, %v6262_v3  ;;  %v2041_v43 = vmul.f32 %v6916_v38, %v6266_v58  ;;  %v2301_v55 = vmul.f32 %v4961_v51, %v2253_v37 }
 0x286   :  { %9911 = vst [vmem:[#allocation84_spill] sm:$0xff] %v6935_v20  ;;  %v2323_v33 = vadd.f32 %v2266_v28, %v2265_v15  ;;  %v2172_v25 = vmul.f32 2.0, %v2160_v22  ;;  %v1954_v27 = vadd.f32 %v9912_v56, %v1907_v4  ;;  %v2365_v48 = vadd.f32 %v2278_v30, %v2277_v49 }
 0x287   :  { %v2146_v8 = vadd.f32 %v2145_v18, %v2114_v2  ;;  %v2053_v5 = vmul.f32 %v6930_v45, %v6284_v53  ;;  %v2077_v14 = vmul.f32 %v2029_v21, %v6913_v42  ;;  %v2407_v44 = vadd.f32 %v2290_v63, %v2289_v57 }
 0x288   :  { %v2528_v36 = vrot.slane %v2527_v13, 4  ;;  %v2484_v29 = vadd.f32 1e-08, %v2160_v22  ;;  %v1919_v9 = vmul.f32 %v6288_v7, %v6935_v20  ;;  %v2171_v24 = vmul.f32 2.0, %v2159_v50 }
 0x289   :  { %v2483_v61 = vadd.f32 1e-08, %v2159_v50  ;;  %v2065_v37 = vmul.f32 %v6939_v16, %v6288_v7  ;;  %v2089_v28 = vmul.f32 %v2041_v43, %v6916_v38  ;;  %v6956_v30 = vsel %vm771_vm11, %v6905_v52, -inf }
 0x28a   :  { %v2324_v51 = vrot.slane %v2323_v33, 4  ;;  %v2449_v15 = vadd.f32 %v2302_v10, %v2301_v55  ;;  %v1955_v4 = vadd.f32 %v1954_v27, %v1919_v9  ;;  %v2366_v63 = vrot.slane %v2365_v48, 4 }
 0x28b   :  { %v2162_v22 = vmul.f32 %v6315_v19, %v2146_v8  ;;  %v2101_v49 = vmul.f32 %v2053_v5, %v6930_v45  ;;  %v2141_v18 = vadd.f32 %v2089_v28, %v2077_v14  ;;  %v2408_v57 = vrot.slane %v2407_v44, 4  ;;  %v9914_v5 = vld [vmem:[#allocation90_spill] sm:$0xff] }
 0x28c   :  { %v2529_v50 = vadd.f32 %v2528_v36, %v2527_v13  ;;  %v2184_v2 = vadd.f32 1e-08, %v2172_v25  ;;  %4962 = vlog2.f32 %v2484_v29  ;;  %v2183_v21 = vadd.f32 1e-08, %v2171_v24 }
 0x28d   :  { %4964 = vlog2.f32 %v2483_v61  ;;  %v2113_v43 = vmul.f32 %v2065_v37, %v6939_v16  ;;  %v2142_v56 = vadd.f32 %v2141_v18, %v2101_v49  ;;  %v2450_v10 = vrot.slane %v2449_v15, 4  ;;  %v9913_v61 = vld [vmem:[#allocation29_spill] sm:$0xff]  ;;  %v9916_v37 = vld [vmem:[#allocation55_spill] sm:$0xff] }
 0x28e   :  { %v6965_v9 = vmul.f32 %v6794_v54, %v6794_v54  ;;  %v1972_v8 = vmul.f32 %v6315_v19, %v1955_v4  ;;  %v2325_v55 = vadd.f32 %v2324_v51, %v2323_v33  ;;  %v2367_v27 = vadd.f32 %v2366_v63, %v2365_v48 }
 0x28f   :  { %v2486_v13 = vadd.f32 1e-08, %v2162_v22  ;;  %v2143_v25 = vadd.f32 %v2142_v56, %v2113_v43  ;;  %v2530_v29 = vrot.slane %v2529_v50, 2  ;;  %4966 = vrcp.f32 %v2184_v2  ;;  %v9919_v2 = vld [vmem:[#allocation91_spill] sm:$0xff] }
 0x290   :  { %v6970_v24 = vmul.f32 %v6797_v39, %v6797_v39  ;;  %v6974_v14 = vadd.f32 %v9914_v5, %v9913_v61  ;;  %v2409_v36 = vadd.f32 %v2408_v57, %v2407_v44  ;;  %v6978_v54 = vmul.f32 %v6823_v26, %v6823_v26  ;;  %v9917_v39 = vld [vmem:[#allocation10_spill] sm:$0xff] }
 0x291   :  { %v6982_v48 = vmul.f32 %v6837_v6, %v6837_v6  ;;  %4968 = vrcp.f32 %v2183_v21  ;;  %v2161_v33 = vmul.f32 %v6315_v19, %v2143_v25  ;;  %v6986_v28 = vsub.f32 %v9916_v37, %v1972_v8  ;;  %v9918_v57 = vld [vmem:[#allocation38_spill] sm:$0xff] }
 0x292   :  { %9915 = vst [vmem:[#allocation23_spill] sm:$0xff] %v6974_v14  ;;  %v6989_v51 = vsub.f32 %v9917_v39, %v1972_v8  ;;  %v6992_v4 = vsub.f32 %v6899_v59, %v1972_v8  ;;  %v2326_v44 = vrot.slane %v2325_v55, 2  ;;  %v2368_v63 = vrot.slane %v2367_v27, 2  ;;  %v9921_v39 = vld [vmem:[#allocation61_spill] sm:$0xff] }
 0x293   :  { %v2451_v26 = vadd.f32 %v2450_v10, %v2449_v15  ;;  %4970 = vlog2.f32 %v2486_v13  ;;  %v2531_v49 = vadd.f32 %v2530_v29, %v2529_v50  ;;  %v2174_v18 = vmul.f32 2.0, %v2162_v22 }
 0x294   :  { %v1906_v6 = vmul.f32 %v6284_v53, %v6974_v14  ;;  %v6998_v21 = vadd.f32 %v9919_v2, %v9918_v57  ;;  %v2173_v43 = vmul.f32 2.0, %v2161_v33  ;;  %v2485_v56 = vadd.f32 1e-08, %v2161_v33 }
 0x295   :  { %v7001_v25 = vsub.f32 %v6935_v20, %v1972_v8  ;;  %v2032_v61 = vmul.f32 %v6986_v28, %v6262_v3  ;;  %v2410_v15 = vrot.slane %v2409_v36, 2  ;;  %v2219_v22 = vmul.f32 %v6808_v62, %v6808_v62 }
 0x296   :  { %9920 = vst [vmem:[#allocation85_spill] sm:$0xff] %v6998_v21  ;;  %v4963_v5 = vpop.eup %4962  ;;  %v2044_v50 = vmul.f32 %v6989_v51, %v6266_v58  ;;  %v2056_v10 = vmul.f32 %v6992_v4, %v6284_v53  ;;  %v2327_v29 = vadd.f32 %v2326_v44, %v2325_v55  ;;  %v2452_v33 = vrot.slane %v2451_v26, 2 }
 0x297   :  { %v4965_v13 = vpop.eup %4964  ;;  %4972 = vlog2.f32 %v2485_v56  ;;  %v2080_v8 = vmul.f32 %v2032_v61, %v6986_v28  ;;  %v7012_v57 = vadd.f32 %v2368_v63, %v2367_v27  ;;  %v2186_v2 = vadd.f32 1e-08, %v2174_v18 }
 0x298   :  { %v2068_v52 = vmul.f32 %v7001_v25, %v6288_v7  ;;  %v2092_v62 = vmul.f32 %v2044_v50, %v6989_v51  ;;  %v2532_v20 = vrot.slane %v2531_v49, 1  ;;  %v2185_v59 = vadd.f32 1e-08, %v2173_v43 }
 0x299   :  { %v1951_v37 = vadd.f32 %v9921_v39, %v1906_v6  ;;  %v1918_v17 = vmul.f32 %v6288_v7, %v6998_v21  ;;  %v4967_v55 = vpop.eup %4966  ;;  %v2504_v44 = vmul.f32 0.6931472, %v4963_v5  ;;  %v2502_v56 = vmul.f32 0.6931472, %v4965_v13 }
 0x29a   :  { %v2104_v61 = vmul.f32 %v2056_v10, %v6992_v4  ;;  %v2150_v27 = vadd.f32 %v2092_v62, %v2080_v8  ;;  %v2231_v18 = vmul.f32 %v6811_v34, %v6811_v34  ;;  %v2243_v50 = vmul.f32 %v6832_v40, %v6832_v40 }
 0x29b   :  { %v4969_v63 = vpop.eup %4968  ;;  %v2255_v43 = vmul.f32 %v6854_v46, %v6854_v46  ;;  %v1952_v39 = vadd.f32 %v1951_v37, %v1918_v17  ;;  %v7027_v6 = vadd.f32 %v2410_v15, %v2409_v36  ;;  %4974 = vrcp.f32 %v2186_v2  ;;  %v9922_v46 = vld [vmem:[#allocation71_spill] sm:$0xff]  ;;  %v9923_v36 = vld [vmem:[#allocation72_spill] sm:$0xff] }
 0x29c   :  { %v2116_v5 = vmul.f32 %v2068_v52, %v7001_v25  ;;  %v2151_v13 = vadd.f32 %v2150_v27, %v2104_v61  ;;  %v2328_v10 = vrot.slane %v2327_v29, 1  ;;  %v7030_v8 = vadd.f32 %v2452_v33, %v2451_v26 }
 0x29d   :  { %v4971_v12 = vpop.eup %4970  ;;  %4976 = vrcp.f32 %v2185_v59  ;;  %v1971_v34 = vmul.f32 %v6315_v19, %v1952_v39  ;;  %v2533_v40 = vadd.f32 %v2532_v20, %v2531_v49  ;;  %v2534_v47 = vadd.f32 %v2504_v44, %v2502_v56 }
 0x29e   :  { %v2152_v0 = vadd.f32 %v2151_v13, %v2116_v5  ;;  %v2268_v59 = vmul.f32 %v4967_v55, %v6965_v9  ;;  %v2280_v15 = vmul.f32 %v4967_v55, %v6970_v24  ;;  %v2267_v33 = vmul.f32 %v4969_v63, %v2219_v22 }
 0x29f   :  { %v7035_v17 = vsub.f32 %v9922_v46, %v1971_v34  ;;  %v7038_v37 = vsub.f32 %v9923_v36, %v1971_v34  ;;  %v7041_v52 = vsub.f32 %v6974_v14, %v1971_v34  ;;  %v7044_v26 = vsub.f32 %v6998_v21, %v1971_v34 }
 0x2a0   :  { %v2508_v20 = vmul.f32 0.6931472, %v4971_v12  ;;  %v2164_v2 = vmul.f32 %v6315_v19, %v2152_v0  ;;  %v2292_v27 = vmul.f32 %v4967_v55, %v6978_v54  ;;  %v2279_v39 = vmul.f32 %v4969_v63, %v2231_v18 }
 0x2a1   :  { %v4973_v49 = vpop.eup %4972  ;;  %v2031_v44 = vmul.f32 %v7035_v17, %v6262_v3  ;;  %v2043_v56 = vmul.f32 %v7038_v37, %v6266_v58  ;;  %v2055_v61 = vmul.f32 %v7041_v52, %v6284_v53  ;;  %v2535_v9 = vrot.slane %v2534_v47, 4 }
 0x2a2   :  { %v2506_v5 = vmul.f32 0.6931472, %v4973_v49  ;;  %v2291_v24 = vmul.f32 %v4969_v63, %v2243_v50  ;;  %v2067_v12 = vmul.f32 %v7044_v26, %v6288_v7  ;;  %v2329_v3 = vadd.f32 %v2328_v10, %v2327_v29 }
 0x2a3   :  { %v2079_v0 = vmul.f32 %v2031_v44, %v7035_v17  ;;  %v2091_v22 = vmul.f32 %v2043_v56, %v7038_v37  ;;  %v2412_v13 = vrot.slane %v7027_v6, 1  ;;  %v2617_v58 = vmul.f32 0.5, %v2533_v40 }
 0x2a4   :  { %v2330_v34 = vadd.f32 %v2268_v59, %v2267_v33  ;;  %v2541_v62 = vadd.f32 %v2508_v20, %v2506_v5  ;;  %v2176_v53 = vmul.f32 2.0, %v2164_v2  ;;  %v2103_v54 = vmul.f32 %v2055_v61, %v7041_v52 }
 0x2a5   :  { %v2147_v18 = vadd.f32 %v2091_v22, %v2079_v0  ;;  %v7062_v21 = vpop.eup %4974  ;;  %v2304_v50 = vmul.f32 %v4967_v55, %v6982_v48  ;;  %v2372_v49 = vadd.f32 %v2280_v15, %v2279_v39  ;;  %v2536_v7 = vadd.f32 %v2535_v9, %v2534_v47  ;;  %v9924_v0 = vld [vmem:[#allocation53_spill] sm:$0xff] }
 0x2a6   :  { %v2222_v44 = vmul.f32 %v6840_v31, %v6840_v31  ;;  %v2303_v29 = vmul.f32 %v4969_v63, %v2255_v43  ;;  %v2414_v10 = vadd.f32 %v2292_v27, %v2291_v24  ;;  %v2115_v40 = vmul.f32 %v2067_v12, %v7044_v26 }
 0x2a7   :  { %v7067_v56 = vpop.eup %4976  ;;  %v2148_v59 = vadd.f32 %v2147_v18, %v2103_v54  ;;  %v2331_v33 = vrot.slane %v2330_v34, 4  ;;  %v2221_v20 = vmul.f32 %v6913_v42, %v6913_v42  ;;  %v2542_v61 = vrot.slane %v2541_v62, 4 }
 0x2a8   :  { %v2488_v5 = vadd.f32 1e-08, %v2164_v2  ;;  %v7073_v48 = vsub.f32 %v9924_v0, %v2617_v58  ;;  %v2234_v47 = vmul.f32 %v6843_v1, %v6843_v1  ;;  %v2188_v31 = vadd.f32 1e-08, %v2176_v53 }
 0x2a9   :  { %v2149_v55 = vadd.f32 %v2148_v59, %v2115_v40  ;;  %v2373_v15 = vrot.slane %v2372_v49, 4  ;;  %v2537_v63 = vrot.slane %v2536_v7, 2  ;;  %v2270_v43 = vmul.f32 %v7062_v21, %v2222_v44 }
 0x2aa   :  { %v2269_v27 = vmul.f32 %v7067_v56, %v2221_v20  ;;  %v2415_v39 = vrot.slane %v2414_v10, 4  ;;  %v2456_v9 = vadd.f32 %v2304_v50, %v2303_v29  ;;  %v2233_v42 = vmul.f32 %v6916_v38, %v6916_v38 }
 0x2ab   :  { %v2163_v2 = vmul.f32 %v6315_v19, %v2149_v55  ;;  %v2332_v24 = vadd.f32 %v2331_v33, %v2330_v34  ;;  %v2282_v12 = vmul.f32 %v7062_v21, %v2234_v47  ;;  %v2543_v22 = vadd.f32 %v2542_v61, %v2541_v62 }
 0x2ac   :  { %4978 = vlog2.f32 %v2488_v5  ;;  %v2281_v1 = vmul.f32 %v7067_v56, %v2233_v42  ;;  %v9925_v54 = vrot.slane %v7012_v57, 1  ;;  %v2374_v50 = vadd.f32 %v2373_v15, %v2372_v49 }
 0x2ad   :  { %4980 = vrcp.f32 %v2188_v31  ;;  %v2175_v58 = vmul.f32 2.0, %v2163_v2  ;;  %v2487_v53 = vadd.f32 1e-08, %v2163_v2  ;;  %v2538_v44 = vadd.f32 %v2537_v63, %v2536_v7 }
 0x2ae   :  { %v2371_v18 = vadd.f32 %v9925_v54, %v7012_v57  ;;  %v2337_v29 = vadd.f32 %v2270_v43, %v2269_v27  ;;  %v7088_v38 = vsub.f32 %v7073_v48, %v2329_v3  ;;  %v2246_v19 = vmul.f32 %v6874_v11, %v6874_v11 }
 0x2af   :  { %v2187_v62 = vadd.f32 1e-08, %v2175_v58  ;;  %4982 = vlog2.f32 %v2487_v53  ;;  %v7095_v40 = vadd.f32 %v2415_v39, %v2414_v10  ;;  %v2457_v59 = vrot.slane %v2456_v9, 4 }
 0x2b0   :  { %v7093_v34 = vsub.f32 %v7073_v48, %v2371_v18  ;;  %v2544_v33 = vrot.slane %v2543_v22, 2  ;;  %v2333_v20 = vrot.slane %v2332_v24, 2  ;;  %v2245_v57 = vmul.f32 %v6930_v45, %v6930_v45 }
 0x2b1   :  { %v2379_v49 = vadd.f32 %v2282_v12, %v2281_v1  ;;  %4984 = vrcp.f32 %v2187_v62  ;;  %v2664_v3 = vmax.f32 %v6801_v23, %v6927_v35  ;;  %v2375_v7 = vrot.slane %v2374_v50, 2 }
 0x2b2   :  { %v2539_v11 = vrot.slane %v2538_v44, 1  ;;  %v2338_v61 = vrot.slane %v2337_v29, 4  ;;  %v7102_v5 = vadd.f32 %v2412_v13, %v7027_v6  ;;  %v2454_v10 = vrot.slane %v7030_v8, 1 }
 0x2b3   :  { %v2294_v0 = vmul.f32 %v7062_v21, %v2246_v19  ;;  %v2293_v47 = vmul.f32 %v7067_v56, %v2245_v57  ;;  %v7109_v45 = vsel %vm771_vm11, %v7088_v38, -inf  ;;  %v7113_v31 = vsel %vm771_vm11, %v7093_v34, -inf }
 0x2b4   :  { %v2258_v55 = vmul.f32 %v6889_v32, %v6889_v32  ;;  %v2545_v15 = vadd.f32 %v2544_v33, %v2543_v22  ;;  %v7117_v6 = vadd.f32 %v2333_v20, %v2332_v24  ;;  %v2417_v13 = vrot.slane %v7095_v40, 2 }
 0x2b5   :  { %v7120_v63 = vadd.f32 %v2457_v59, %v2456_v9  ;;  %v2380_v43 = vrot.slane %v2379_v49, 4  ;;  %v7122_v39 = vadd.f32 %v2375_v7, %v2374_v50  ;;  %v2540_v42 = vadd.f32 %v2539_v11, %v2538_v44 }
 0x2b6   :  { %v4979_v27 = vpop.eup %4978  ;;  %v2257_v2 = vmul.f32 %v6939_v16, %v6939_v16  ;;  %v2339_v12 = vadd.f32 %v2338_v61, %v2337_v29  ;;  %v2306_v58 = vmul.f32 %v7062_v21, %v2258_v55  ;;  %v2421_v32 = vadd.f32 %v2294_v0, %v2293_v47 }
 0x2b7   :  { %v4981_v1 = vpop.eup %4980  ;;  %v2224_v24 = vmul.f32 %v6986_v28, %v6986_v28  ;;  %v2236_v9 = vmul.f32 %v6989_v51, %v6989_v51  ;;  %v2546_v22 = vrot.slane %v2545_v15, 1  ;;  %v2248_v53 = vmul.f32 %v6992_v4, %v6992_v4 }
 0x2b8   :  { %v2260_v54 = vmul.f32 %v7001_v25, %v7001_v25  ;;  %v2223_v16 = vmul.f32 %v7035_v17, %v7035_v17  ;;  %v2381_v50 = vadd.f32 %v2380_v43, %v2379_v49  ;;  %v2512_v21 = vmul.f32 0.6931472, %v4979_v27 }
 0x2b9   :  { %v4983_v18 = vpop.eup %4982  ;;  %v2235_v44 = vmul.f32 %v7038_v37, %v7038_v37  ;;  %v2247_v28 = vmul.f32 %v7041_v52, %v7041_v52  ;;  %v2340_v51 = vrot.slane %v2339_v12, 2  ;;  %v2272_v29 = vmul.f32 %v4981_v1, %v2224_v24 }
 0x2ba   :  { %v2284_v19 = vmul.f32 %v4981_v1, %v2236_v9  ;;  %v2296_v62 = vmul.f32 %v4981_v1, %v2248_v53  ;;  %v2305_v59 = vmul.f32 %v7067_v56, %v2257_v2  ;;  %v2422_v25 = vrot.slane %v2421_v32, 4 }
 0x2bb   :  { %v4985_v4 = vpop.eup %4984  ;;  %v2259_v17 = vmul.f32 %v7044_v26, %v7044_v26  ;;  %v2510_v33 = vmul.f32 0.6931472, %v4983_v18  ;;  %v2547_v20 = vadd.f32 %v2546_v22, %v2545_v15  ;;  %v2382_v37 = vrot.slane %v2381_v50, 2 }
 0x2bc   :  { %v2271_v57 = vmul.f32 %v4985_v4, %v2223_v16  ;;  %v2283_v49 = vmul.f32 %v4985_v4, %v2235_v44  ;;  %v2295_v7 = vmul.f32 %v4985_v4, %v2247_v28  ;;  %v2308_v11 = vmul.f32 %v4981_v1, %v2260_v54  ;;  %v9926_v28 = vld [vmem:[#allocation94_spill] sm:$0xff] }
 0x2bd   :  { %v2307_v61 = vmul.f32 %v4985_v4, %v2259_v17  ;;  %v2548_v52 = vadd.f32 %v2512_v21, %v2510_v33  ;;  %v2341_v0 = vadd.f32 %v2340_v51, %v2339_v12  ;;  %v2618_v27 = vmul.f32 0.5, %v2540_v42 }
 0x2be   :  { %v2344_v47 = vadd.f32 %v2272_v29, %v2271_v57  ;;  %v2386_v55 = vadd.f32 %v2284_v19, %v2283_v49  ;;  %v2428_v43 = vadd.f32 %v2296_v62, %v2295_v7  ;;  %v2423_v24 = vadd.f32 %v2422_v25, %v2421_v32  ;;  %v9927_v19 = vld [vmem:[#allocation54_spill] sm:$0xff] }
 0x2bf   :  { %v2463_v56 = vadd.f32 %v2306_v58, %v2305_v59  ;;  %v2549_v2 = vrot.slane %v2548_v52, 4  ;;  %v2619_v9 = vmul.f32 0.5, %v2547_v20  ;;  %v2335_v15 = vrot.slane %v7117_v6, 1 }
 0x2c0   :  { %v2345_v53 = vrot.slane %v2344_v47, 4  ;;  %v2387_v26 = vrot.slane %v2386_v55, 4  ;;  %v2429_v18 = vrot.slane %v2428_v43, 4  ;;  %v2377_v22 = vrot.slane %v7122_v39, 1 }
 0x2c1   :  { %v2470_v16 = vadd.f32 %v2308_v11, %v2307_v61  ;;  %v2550_v1 = vadd.f32 %v2549_v2, %v2548_v52  ;;  %v2342_v54 = vrot.slane %v2341_v0, 1  ;;  %v2383_v21 = vadd.f32 %v2382_v37, %v2381_v50 }
 0x2c2   :  { %v2346_v12 = vadd.f32 %v2345_v53, %v2344_v47  ;;  %v2388_v44 = vadd.f32 %v2387_v26, %v2386_v55  ;;  %v7147_v51 = vsub.f32 %v9926_v28, %v2618_v27  ;;  %v2464_v42 = vrot.slane %v2463_v56, 4 }
 0x2c3   :  { %v2430_v58 = vadd.f32 %v2429_v18, %v2428_v43  ;;  %v2551_v32 = vrot.slane %v2550_v1, 2  ;;  %v2424_v29 = vrot.slane %v2423_v24, 2  ;;  %v7150_v62 = vsub.f32 %v9927_v19, %v2619_v9 }
 0x2c4   :  { %v2347_v4 = vrot.slane %v2346_v12, 2  ;;  %v2389_v59 = vrot.slane %v2388_v44, 2  ;;  %v2336_v25 = vadd.f32 %v2335_v15, %v7117_v6  ;;  %v2418_v50 = vadd.f32 %v2417_v13, %v7095_v40 }
 0x2c5   :  { %v2471_v17 = vrot.slane %v2470_v16, 4  ;;  %v2552_v33 = vadd.f32 %v2551_v32, %v2550_v1  ;;  %v2343_v20 = vadd.f32 %v2342_v54, %v2341_v0  ;;  %v2384_v57 = vrot.slane %v2383_v21, 1 }
 0x2c6   :  { %v2348_v49 = vadd.f32 %v2347_v4, %v2346_v12  ;;  %v2390_v7 = vadd.f32 %v2389_v59, %v2388_v44  ;;  %v7157_v37 = vsub.f32 %v7147_v51, %v2336_v25  ;;  %v2465_v11 = vadd.f32 %v2464_v42, %v2463_v56  ;;  %v9929_v12 = vld [vmem:[#allocation13_spill] sm:$0xff] }
 0x2c7   :  { %v2431_v61 = vrot.slane %v2430_v58, 2  ;;  %v2553_v52 = vrot.slane %v2552_v33, 1  ;;  %v2378_v47 = vadd.f32 %v2377_v22, %v7122_v39  ;;  %v2459_v6 = vrot.slane %v7120_v63, 2 }
 0x2c8   :  { %v2425_v55 = vadd.f32 %v2424_v29, %v2423_v24  ;;  %v7162_v43 = vsub.f32 %v7150_v62, %v2343_v20  ;;  %v2349_v40 = vrot.slane %v2348_v49, 1  ;;  %v2391_v13 = vrot.slane %v2390_v7, 1 }
 0x2c9   :  { %v2472_v0 = vadd.f32 %v2471_v17, %v2470_v16  ;;  %v2554_v27 = vadd.f32 %v2553_v52, %v2552_v33  ;;  %v9928_v2 = vmax.f32 %v6791_v41, %v6920_v60  ;;  %v2419_v56 = vrot.slane %v2418_v50, 1 }
 0x2ca   :  { %v7169_v53 = vsub.f32 %v7147_v51, %v2378_v47  ;;  %v2385_v39 = vadd.f32 %v2384_v57, %v2383_v21  ;;  %v2656_v24 = vsel %vm771_vm11, %v7157_v37, -inf  ;;  %v2466_v26 = vrot.slane %v2465_v11, 2  ;;  %v9931_v47 = vld [vmem:[#allocation32_spill] sm:$0xff] }
 0x2cb   :  { %v2655_v9 = vmax.f32 %v9928_v2, %v7109_v45  ;;  %v2432_v18 = vadd.f32 %v2431_v61, %v2430_v58  ;;  %v2620_v15 = vmul.f32 0.5, %v2554_v27  ;;  %v2460_v22 = vadd.f32 %v2459_v6, %v7120_v63  ;;  %v9930_v61 = vld [vmem:[#allocation79_spill] sm:$0xff] }
 0x2cc   :  { %v2426_v16 = vrot.slane %v2425_v55, 1  ;;  %v7175_v1 = vsub.f32 %v7150_v62, %v2385_v39  ;;  %v2658_v41 = vsel %vm771_vm11, %v7162_v43, -inf  ;;  %v2350_v60 = vadd.f32 %v2349_v40, %v2348_v49 }
 0x2cd   :  { %v2392_v45 = vadd.f32 %v2391_v13, %v2390_v7  ;;  %v2473_v54 = vrot.slane %v2472_v0, 2  ;;  %v2626_v21 = vsub.f32 %v9929_v12, %v2620_v15  ;;  %v7182_v44 = vsub.f32 %v7073_v48, %v7102_v5 }
 0x2ce   :  { %v2420_v28 = vadd.f32 %v2419_v56, %v2418_v50  ;;  %v2657_v42 = vmax.f32 %v2655_v9, %v2656_v24  ;;  %v2667_v63 = vsel %vm771_vm11, %v7169_v53, -inf  ;;  %v2467_v58 = vadd.f32 %v2466_v26, %v2465_v11  ;;  %v9932_v9 = vld [vmem:[#allocation75_spill] sm:$0xff]  ;;  %v9933_v56 = vld [vmem:[#allocation25_spill] sm:$0xff] }
 0x2cf   :  { %v2433_v32 = vrot.slane %v2432_v18, 1  ;;  %v7186_v29 = vsub.f32 %v2626_v21, %v2350_v60  ;;  %v7188_v19 = vsub.f32 %v2626_v21, %v2392_v45  ;;  %v2666_v4 = vmax.f32 %v2664_v3, %v7113_v31  ;;  %v9934_v24 = vld [vmem:[#allocation27_spill] sm:$0xff] }
 0x2d0   :  { %v2461_v59 = vrot.slane %v2460_v22, 1  ;;  %v7195_v5 = vsub.f32 %v7147_v51, %v2420_v28  ;;  %v2659_v25 = vmax.f32 %v2657_v42, %v2658_v41  ;;  %v2427_v50 = vadd.f32 %v2426_v16, %v2425_v55  ;;  %v9935_v28 = vld [vmem:[#allocation16_spill] sm:$0xff] }
 0x2d1   :  { %v2669_v17 = vsel %vm771_vm11, %v7175_v1, -inf  ;;  %v2474_v33 = vadd.f32 %v2473_v54, %v2472_v0  ;;  %v2660_v20 = vsel %vm771_vm11, %v7186_v29, -inf  ;;  %v2455_v57 = vadd.f32 %v2454_v10, %v7030_v8 }
 0x2d2   :  { %v2676_v23 = vsel %vm771_vm11, %v7182_v44, -inf  ;;  %v2668_v35 = vmax.f32 %v2666_v4, %v2667_v63  ;;  %v7206_v3 = vmax.f32 %v2659_v25, %v2660_v20  ;;  %v2468_v31 = vrot.slane %v2467_v58, 1 }
 0x2d3   :  { %v7209_v49 = vsub.f32 %v7150_v62, %v2427_v50  ;;  %v2434_v7 = vadd.f32 %v2433_v32, %v2432_v18  ;;  %v2671_v11 = vsel %vm771_vm11, %v7188_v19, -inf  ;;  %v2675_v52 = vmax.f32 %v9930_v61, %v6956_v30 }
 0x2d4   :  { %v2685_v8 = vsel %vm771_vm11, %v9931_v47, -inf  ;;  %v7218_v10 = vsub.f32 %v7073_v48, %v2455_v57  ;;  %v2670_v6 = vmax.f32 %v2668_v35, %v2669_v17  ;;  %v2462_v55 = vadd.f32 %v2461_v59, %v2460_v22 }
 0x2d5   :  { %v2678_v40 = vsel %vm771_vm11, %v7195_v5, -inf  ;;  %v2475_v13 = vrot.slane %v2474_v33, 1  ;;  %v7222_v0 = vsub.f32 %v2626_v21, %v2434_v7  ;;  %v2677_v27 = vmax.f32 %v2675_v52, %v2676_v23 }
 0x2d6   :  { %v7224_v2 = vmax.f32 %v2670_v6, %v2671_v11  ;;  %v2695_v30 = vsub.f32 %v9932_v9, %v7206_v3  ;;  %v2696_v39 = vsub.f32 %v9933_v56, %v7206_v3  ;;  %v2684_v48 = vsel %vm771_vm11, %v9934_v24, -inf  ;;  %v9937_v11 = vld [vmem:[#allocation76_spill] sm:$0xff] }
 0x2d7   :  { %v7233_v26 = vsub.f32 %v7147_v51, %v2462_v55  ;;  %v2469_v18 = vadd.f32 %v2468_v31, %v2467_v58  ;;  %v2680_v15 = vsel %vm771_vm11, %v7209_v49, -inf  ;;  %v2686_v22 = vmax.f32 %v2684_v48, %v2685_v8 }
 0x2d8   :  { %v2687_v16 = vsel %vm771_vm11, %v7218_v10, -inf  ;;  %v2679_v41 = vmax.f32 %v2677_v27, %v2678_v40  ;;  %v2476_v45 = vadd.f32 %v2475_v13, %v2474_v33  ;;  %v2682_v54 = vsel %vm771_vm11, %v7222_v0, -inf }
 0x2d9   :  { %v7240_v60 = vsub.f32 %v7150_v62, %v2469_v18  ;;  %v2697_v51 = vsub.f32 %v7088_v38, %v7206_v3  ;;  %v2701_v42 = vsub.f32 %v9935_v28, %v7224_v2  ;;  %v2719_v63 = vmul.f32 1.442695, %v2695_v30  ;;  %v9936_v62 = vld [vmem:[#allocation26_spill] sm:$0xff] }
 0x2da   :  { %v2681_v12 = vmax.f32 %v2679_v41, %v2680_v15  ;;  %v2721_v58 = vmul.f32 1.442695, %v2696_v39  ;;  %v2689_v32 = vsel %vm771_vm11, %v7233_v26, -inf  ;;  %v7250_v4 = vsub.f32 %v2626_v21, %v2476_v45 }
 0x2db   :  { %v2702_v59 = vsub.f32 %v9936_v62, %v7224_v2  ;;  %v2688_v25 = vmax.f32 %v2686_v22, %v2687_v16  ;;  %v2703_v38 = vsub.f32 %v7093_v34, %v7224_v2  ;;  %4986 = vpow2.f32 %v2719_v63 }
 0x2dc   :  { %v7254_v50 = vmax.f32 %v2681_v12, %v2682_v54  ;;  %v2691_v17 = vsel %vm771_vm11, %v7240_v60, -inf  ;;  %v2698_v33 = vsub.f32 %v7157_v37, %v7206_v3  ;;  %4988 = vpow2.f32 %v2721_v58  ;;  %v9938_v37 = vld [vmem:[#allocation83_spill] sm:$0xff] }
 0x2dd   :  { %v2723_v20 = vmul.f32 1.442695, %v2697_v51  ;;  %v2690_v21 = vmax.f32 %v2688_v25, %v2689_v32  ;;  %v2699_v57 = vsub.f32 %v7162_v43, %v7206_v3  ;;  %v2731_v23 = vmul.f32 1.442695, %v2701_v42 }
 0x2de   :  { %v2693_v35 = vsel %vm771_vm11, %v7250_v4, -inf  ;;  %v2704_v34 = vsub.f32 %v7169_v53, %v7224_v2  ;;  %v2733_v31 = vmul.f32 1.442695, %v2702_v59  ;;  %v2707_v61 = vsub.f32 %v9937_v11, %v7254_v50 }
 0x2df   :  { %v2692_v7 = vmax.f32 %v2690_v21, %v2691_v17  ;;  %v2735_v52 = vmul.f32 1.442695, %v2703_v38  ;;  %v2708_v8 = vsub.f32 %v9938_v37, %v7254_v50  ;;  %4990 = vpow2.f32 %v2723_v20 }
 0x2e0   :  { %v2725_v6 = vmul.f32 1.442695, %v2698_v33  ;;  %v2700_v43 = vsub.f32 %v7186_v29, %v7206_v3  ;;  %v2727_v40 = vmul.f32 1.442695, %v2699_v57  ;;  %4992 = vpow2.f32 %v2731_v23 }
 0x2e1   :  { %v7272_v55 = vmax.f32 %v2692_v7, %v2693_v35  ;;  %v2705_v53 = vsub.f32 %v7175_v1, %v7224_v2  ;;  %4994 = vpow2.f32 %v2733_v31  ;;  %v2737_v13 = vmul.f32 1.442695, %v2704_v34 }
 0x2e2   :  { %v2706_v27 = vsub.f32 %v7188_v19, %v7224_v2  ;;  %4996 = vpow2.f32 %v2735_v52  ;;  %v2743_v9 = vmul.f32 1.442695, %v2707_v61  ;;  %v2709_v30 = vsub.f32 %v7182_v44, %v7254_v50 }
 0x2e3   :  { %4998 = vpow2.f32 %v2725_v6  ;;  %v2745_v56 = vmul.f32 1.442695, %v2708_v8  ;;  %v2713_v29 = vsub.f32 %v9934_v24, %v7272_v55  ;;  %v2729_v3 = vmul.f32 1.442695, %v2700_v43 }
 0x2e4   :  { %5000 = vpow2.f32 %v2727_v40  ;;  %v2714_v48 = vsub.f32 %v9931_v47, %v7272_v55  ;;  %v2739_v19 = vmul.f32 1.442695, %v2705_v53  ;;  %v2710_v2 = vsub.f32 %v7195_v5, %v7254_v50 }
 0x2e5   :  { %v7282_v39 = vpop.eup %4986  ;;  %5002 = vpow2.f32 %v2737_v13  ;;  %v2715_v44 = vsub.f32 %v7218_v10, %v7272_v55  ;;  %v2741_v18 = vmul.f32 1.442695, %v2706_v27  ;;  %v2747_v15 = vmul.f32 1.442695, %v2709_v30 }
 0x2e6   :  { %v7286_v1 = vpop.eup %4988  ;;  %5004 = vpow2.f32 %v2743_v9  ;;  %v2767_v24 = vsel %vm771_vm11, %v7282_v39, 0.0  ;;  %v2755_v47 = vmul.f32 1.442695, %v2713_v29  ;;  %v2711_v5 = vsub.f32 %v7209_v49, %v7254_v50 }
 0x2e7   :  { %5006 = vpow2.f32 %v2745_v56  ;;  %v2768_v22 = vsel %vm771_vm11, %v7286_v1, 0.0  ;;  %v2757_v41 = vmul.f32 1.442695, %v2714_v48  ;;  %v2749_v45 = vmul.f32 1.442695, %v2710_v2 }
 0x2e8   :  { %5008 = vpow2.f32 %v2729_v3  ;;  %v2769_v54 = vadd.f32 %v2768_v22, %v2767_v24  ;;  %v2716_v12 = vsub.f32 %v7233_v26, %v7272_v55  ;;  %v2759_v28 = vmul.f32 1.442695, %v2715_v44 }
 0x2e9   :  { %v7298_v16 = vpop.eup %4990  ;;  %5010 = vpow2.f32 %v2739_v19  ;;  %v2712_v49 = vsub.f32 %v7222_v0, %v7254_v50  ;;  %v2751_v62 = vmul.f32 1.442695, %v2711_v5  ;;  %v2717_v50 = vsub.f32 %v7240_v60, %v7272_v55 }
 0x2ea   :  { %v7302_v10 = vpop.eup %4992  ;;  %5012 = vpow2.f32 %v2741_v18  ;;  %v2770_v26 = vsel %vm771_vm11, %v7298_v16, 0.0  ;;  %v2761_v33 = vmul.f32 1.442695, %v2716_v12  ;;  %v2718_v52 = vsub.f32 %v7250_v4, %v7272_v55 }
 0x2eb   :  { %v7304_v51 = vpop.eup %4994  ;;  %5014 = vpow2.f32 %v2747_v15  ;;  %v2778_v42 = vsel %vm771_vm11, %v7302_v10, 0.0  ;;  %v2771_v38 = vadd.f32 %v2770_v26, %v2769_v54  ;;  %v2753_v23 = vmul.f32 1.442695, %v2712_v49 }
 0x2ec   :  { %v7310_v63 = vpop.eup %4996  ;;  %5016 = vpow2.f32 %v2755_v47  ;;  %v2779_v58 = vsel %vm771_vm11, %v7304_v51, 0.0  ;;  %v2763_v37 = vmul.f32 1.442695, %v2717_v50  ;;  %v2765_v4 = vmul.f32 1.442695, %v2718_v52 }
 0x2ed   :  { %v7316_v32 = vpop.eup %4998  ;;  %5018 = vpow2.f32 %v2757_v41  ;;  %v2780_v59 = vadd.f32 %v2779_v58, %v2778_v42  ;;  %v2781_v17 = vsel %vm771_vm11, %v7310_v63, 0.0 }
 0x2ee   :  { %v7320_v25 = vpop.eup %5000  ;;  %5020 = vpow2.f32 %v2749_v45  ;;  %v2772_v35 = vsel %vm771_vm11, %v7316_v32, 0.0 }
 0x2ef   :  { %v7324_v0 = vpop.eup %5002  ;;  %5022 = vpow2.f32 %v2759_v28  ;;  %v2782_v20 = vadd.f32 %v2781_v17, %v2780_v59  ;;  %v2773_v31 = vadd.f32 %v2772_v35, %v2771_v38  ;;  %v2774_v40 = vsel %vm771_vm11, %v7320_v25, 0.0 }
 0x2f0   :  { %v7328_v21 = vpop.eup %5004  ;;  %5024 = vpow2.f32 %v2751_v62  ;;  %v2783_v7 = vsel %vm771_vm11, %v7324_v0, 0.0 }
 0x2f1   :  { %v7330_v57 = vpop.eup %5006  ;;  %v2789_v60 = vsel %vm771_vm11, %v7328_v21, 0.0  ;;  %5026 = vpow2.f32 %v2761_v33  ;;  %v2784_v8 = vadd.f32 %v2783_v7, %v2782_v20  ;;  %v2775_v27 = vadd.f32 %v2774_v40, %v2773_v31 }
 0x2f2   :  { %v7334_v34 = vpop.eup %5008  ;;  %v2790_v11 = vsel %vm771_vm11, %v7330_v57, 0.0  ;;  %5028 = vpow2.f32 %v2753_v23 }
 0x2f3   :  { %v7342_v61 = vpop.eup %5010  ;;  %v2791_v53 = vadd.f32 %v2790_v11, %v2789_v60  ;;  %5030 = vpow2.f32 %v2763_v37  ;;  %v2776_v2 = vsel %vm771_vm11, %v7334_v34, 0.0 }
 0x2f4   :  { %v5013_v6 = vpop.eup %5012  ;;  %v2785_v9 = vsel %vm771_vm11, %v7342_v61, 0.0  ;;  %v2777_v15 = vadd.f32 %v2776_v2, %v2775_v27  ;;  %5032 = vpow2.f32 %v2765_v4 }
 0x2f5   :  { %v7346_v43 = vpop.eup %5014  ;;  %v2786_v55 = vadd.f32 %v2785_v9, %v2784_v8  ;;  %v2787_v24 = vsel %vm771_vm11, %v5013_v6, 0.0 }
 0x2f6   :  { %v7350_v13 = vpop.eup %5016  ;;  %v2792_v3 = vsel %vm771_vm11, %v7346_v43, 0.0  ;;  %5034 = vrcp.f32 %v2777_v15 }
 0x2f7   :  { %v7354_v30 = vpop.eup %5018  ;;  %v2800_v56 = vsel %vm771_vm11, %v7350_v13, 0.0  ;;  %v2793_v44 = vadd.f32 %v2792_v3, %v2791_v53  ;;  %v2788_v47 = vadd.f32 %v2787_v24, %v2786_v55 }
 0x2f8   :  { %v7358_v29 = vpop.eup %5020  ;;  %v2801_v48 = vsel %vm771_vm11, %v7354_v30, 0.0 }
 0x2f9   :  { %v7364_v19 = vpop.eup %5022  ;;  %v2802_v18 = vadd.f32 %v2801_v48, %v2800_v56  ;;  %v2794_v5 = vsel %vm771_vm11, %v7358_v29, 0.0  ;;  %5036 = vrcp.f32 %v2788_v47 }
 0x2fa   :  { %v7369_v22 = vpop.eup %5024  ;;  %v2803_v41 = vsel %vm771_vm11, %v7364_v19, 0.0  ;;  %v2795_v54 = vadd.f32 %v2794_v5, %v2793_v44 }
 0x2fb   :  { %v7375_v45 = vpop.eup %5026  ;;  %v2804_v12 = vadd.f32 %v2803_v41, %v2802_v18  ;;  %v2796_v42 = vsel %vm771_vm11, %v7369_v22, 0.0 }
 0x2fc   :  { %v7377_v28 = vpop.eup %5028  ;;  %v2805_v49 = vsel %vm771_vm11, %v7375_v45, 0.0  ;;  %v2797_v62 = vadd.f32 %v2796_v42, %v2795_v54  ;;  %v9941_v42 = vld [vmem:[#allocation39_spill] sm:$0xff] }
 0x2fd   :  { %v7383_v58 = vpop.eup %5030  ;;  %v2806_v26 = vadd.f32 %v2805_v49, %v2804_v12  ;;  %v2798_v59 = vsel %vm771_vm11, %v7377_v28, 0.0 }
 0x2fe   :  { %v2807_v38 = vsel %vm771_vm11, %v7383_v58, 0.0  ;;  %v7389_v17 = vpop.eup %5032  ;;  %v2799_v50 = vadd.f32 %v2798_v59, %v2797_v62 }
 0x2ff   :  { %v2808_v33 = vadd.f32 %v2807_v38, %v2806_v26  ;;  %v2809_v23 = vsel %vm771_vm11, %v7389_v17, 0.0 }
 0x300   :  { %v5035_v20 = vpop.eup %5034  ;;  %5038 = vrcp.f32 %v2799_v50 }
 0x301   :  { %v2810_v31 = vadd.f32 %v2809_v23, %v2808_v33  ;;  %v2812_v7 = vmul.f32 %v5035_v20, %v7282_v39  ;;  %v2813_v60 = vmul.f32 %v5035_v20, %v7286_v1  ;;  %v2814_v11 = vmul.f32 %v5035_v20, %v7298_v16  ;;  %v9939_v16 = vld [vmem:[#allocation30_spill] sm:$0xff] }
 0x302   :  { %v7397_v52 = vmul.f32 %v5035_v20, %v7316_v32  ;;  %v7412_v39 = vmul.f32 %v5035_v20, %v7320_v25  ;;  %v7415_v1 = vmul.f32 %v5035_v20, %v7334_v34  ;;  %v9940_v34 = vld [vmem:[#allocation31_spill] sm:$0xff] }
 0x303   :  { %v5037_v35 = vpop.eup %5036  ;;  %5040 = vrcp.f32 %v2810_v31  ;;  %v7418_v32 = vmul.f32 %v9939_v16, %v2812_v7  ;;  %v7490_v49 = vmul.f32 %v2812_v7, %v9941_v42 }
 0x304   :  { %v7400_v37 = vmul.f32 %v5037_v35, %v7302_v10  ;;  %v7403_v8 = vmul.f32 %v5037_v35, %v7304_v51  ;;  %v7406_v40 = vmul.f32 %v5037_v35, %v7310_v63  ;;  %v7409_v53 = vmul.f32 %v5037_v35, %v7324_v0 }
 0x305   :  { %v7421_v10 = vmul.f32 %v9939_v16, %v2813_v60  ;;  %v7424_v51 = vmul.f32 %v5037_v35, %v7342_v61  ;;  %v7426_v63 = vmul.f32 %v5037_v35, %v5013_v6  ;;  %v7429_v0 = vmul.f32 %v9939_v16, %v2814_v11 }
 0x306   :  { %v7433_v25 = vmul.f32 %v9939_v16, %v7397_v52  ;;  %v7437_v27 = vmul.f32 %v9940_v34, %v7400_v37  ;;  %v7441_v9 = vmul.f32 %v9940_v34, %v7403_v8  ;;  %v7445_v61 = vmul.f32 %v9940_v34, %v7406_v40 }
 0x307   :  { %v7449_v6 = vmul.f32 %v9940_v34, %v7409_v53  ;;  %v7453_v55 = vmul.f32 %v9939_v16, %v7412_v39  ;;  %v7457_v56 = vmul.f32 %v9939_v16, %v7415_v1  ;;  %v2863_v3 = vsel %vm771_vm11, %v7418_v32, 0.0 }
 0x308   :  { %v2870_v48 = vsel %vm771_vm11, %v7421_v10, 0.0  ;;  %v7465_v2 = vmul.f32 %v9940_v34, %v7424_v51  ;;  %v7469_v44 = vmul.f32 %v9940_v34, %v7426_v63  ;;  %v2877_v18 = vsel %vm771_vm11, %v7429_v0, 0.0  ;;  %v9946_v34 = vld [vmem:[#allocation37_spill] sm:$0xff] }
 0x309   :  { %v2884_v15 = vsel %vm771_vm11, %v7433_v25, 0.0  ;;  %v2864_v24 = vsel %vm771_vm11, %v7437_v27, 0.0  ;;  %v2871_v47 = vsel %vm771_vm11, %v7441_v9, 0.0  ;;  %v2878_v5 = vsel %vm771_vm11, %v7445_v61, 0.0 }
 0x30a   :  { %v5039_v4 = vpop.eup %5038  ;;  %v2885_v41 = vsel %vm771_vm11, %v7449_v6, 0.0  ;;  %v2891_v38 = vsel %vm771_vm11, %v7453_v55, 0.0  ;;  %v2865_v50 = vadd.f32 %v2864_v24, %v2863_v3  ;;  %v2872_v33 = vadd.f32 %v2871_v47, %v2870_v48  ;;  %v9942_v3 = vld [vmem:[#allocation33_spill] sm:$0xff] }
 0x30b   :  { %v7484_v54 = vmul.f32 %v5039_v4, %v7328_v21  ;;  %v7487_v12 = vmul.f32 %v5039_v4, %v7330_v57  ;;  %v7493_v26 = vmul.f32 %v5039_v4, %v7346_v43  ;;  %v7496_v59 = vmul.f32 %v5039_v4, %v7358_v29 }
 0x30c   :  { %v2898_v21 = vsel %vm771_vm11, %v7457_v56, 0.0  ;;  %v2879_v57 = vadd.f32 %v2878_v5, %v2877_v18  ;;  %v2886_v20 = vadd.f32 %v2885_v41, %v2884_v15  ;;  %v7503_v23 = vmul.f32 %v5039_v4, %v7369_v22 }
 0x30d   :  { %v5041_v62 = vpop.eup %5040  ;;  %v7506_v35 = vmul.f32 %v5039_v4, %v7377_v28  ;;  %v2892_v43 = vsel %vm771_vm11, %v7465_v2, 0.0  ;;  %v2899_v29 = vsel %vm771_vm11, %v7469_v44, 0.0  ;;  %v7516_v48 = vmul.f32 %v9942_v3, %v7484_v54 }
 0x30e   :  { %v2833_v31 = vmul.f32 %v5041_v62, %v7350_v13  ;;  %v2834_v7 = vmul.f32 %v5041_v62, %v7354_v30  ;;  %v7520_v22 = vmul.f32 %v9942_v3, %v7487_v12  ;;  %v2835_v28 = vmul.f32 %v5041_v62, %v7364_v19 }
 0x30f   :  { %v2836_v4 = vmul.f32 %v5041_v62, %v7375_v45  ;;  %v7526_v18 = vmul.f32 %v9942_v3, %v7493_v26  ;;  %v7530_v13 = vmul.f32 %v9942_v3, %v7496_v59  ;;  %v2893_v30 = vadd.f32 %v2892_v43, %v2891_v38 }
 0x310   :  { %9943 = vst [vmem:[#allocation35_spill] sm:$0xff] %v7520_v22  ;;  %v2900_v15 = vadd.f32 %v2899_v29, %v2898_v21  ;;  %v2906_v24 = vmul.f32 %v2813_v60, %v9941_v42  ;;  %v2907_v47 = vmul.f32 %v2814_v11, %v9941_v42  ;;  %v2837_v5 = vmul.f32 %v5041_v62, %v7383_v58 }
 0x311   :  { %9944 = vst [vmem:[#allocation86_spill] sm:$0xff] %v7526_v18  ;;  %9945 = vst [vmem:[#allocation18_spill] sm:$0xff] %v7530_v13  ;;  %v7536_v19 = vmul.f32 %v5041_v62, %v7389_v17  ;;  %v7540_v45 = vmul.f32 %v9942_v3, %v7503_v23  ;;  %v7544_v41 = vmul.f32 %v9942_v3, %v7506_v35  ;;  %v2866_v58 = vsel %vm771_vm11, %v7516_v48, 0.0 }
 0x312   :  { %v7547_v38 = vmul.f32 %v9946_v34, %v2833_v31  ;;  %v7550_v60 = vmul.f32 %v9946_v34, %v2834_v7  ;;  %v2873_v17 = vsel %vm771_vm11, %v7520_v22, 0.0  ;;  %v7557_v11 = vmul.f32 %v9946_v34, %v2835_v28 }
 0x313   :  { %v7560_v62 = vmul.f32 %v9946_v34, %v2836_v4  ;;  %v2880_v21 = vsel %vm771_vm11, %v7526_v18, 0.0  ;;  %v2887_v43 = vsel %vm771_vm11, %v7530_v13, 0.0  ;;  %v2867_v29 = vadd.f32 %v2866_v58, %v2865_v50 }
 0x314   :  { %9947 = vst [vmem:[#allocation92_spill] sm:$0xff] %v7547_v38  ;;  %9948 = vst [vmem:[#allocation63_spill] sm:$0xff] %v7550_v60  ;;  %v2874_v3 = vadd.f32 %v2873_v17, %v2872_v33  ;;  %v2881_v16 = vadd.f32 %v2880_v21, %v2879_v57  ;;  %v2888_v14 = vadd.f32 %v2887_v43, %v2886_v20  ;;  %v2868_v13 = vsel %vm771_vm11, %v7547_v38, 0.0 }
 0x315   :  { %9949 = vst [vmem:[#allocation28_spill] sm:$0xff] %v7557_v11  ;;  %9950 = vst [vmem:[#allocation87_spill] sm:$0xff] %v7560_v62  ;;  %v7567_v36 = vmul.f32 %v9946_v34, %v2837_v5  ;;  %v7571_v46 = vmul.f32 %v9946_v34, %v7536_v19  ;;  %v2908_v22 = vmul.f32 %v7397_v52, %v9941_v42  ;;  %v2875_v50 = vsel %vm771_vm11, %v7550_v60, 0.0 }
 0x316   :  { %v2909_v18 = vmul.f32 %v7412_v39, %v9941_v42  ;;  %v2894_v33 = vsel %vm771_vm11, %v7540_v45, 0.0  ;;  %v2901_v57 = vsel %vm771_vm11, %v7544_v41, 0.0  ;;  %v2882_v20 = vsel %vm771_vm11, %v7557_v11, 0.0 }
 0x317   :  { %v2889_v52 = vsel %vm771_vm11, %v7560_v62, 0.0  ;;  %v2895_v58 = vadd.f32 %v2894_v33, %v2893_v30  ;;  %v2902_v39 = vadd.f32 %v2901_v57, %v2900_v15  ;;  %v7589_v17 = vadd.f32 %v2868_v13, %v2867_v29  ;;  %v9951_v62 = vld [vmem:[#allocation40_spill] sm:$0xff] }
 0x318   :  { %v7591_v21 = vadd.f32 %v2875_v50, %v2874_v3  ;;  %v7593_v43 = vadd.f32 %v2882_v20, %v2881_v16  ;;  %v7595_v34 = vadd.f32 %v2889_v52, %v2888_v14  ;;  %v2896_v60 = vsel %vm771_vm11, %v7567_v36, 0.0 }
 0x319   :  { %v2903_v38 = vsel %vm771_vm11, %v7571_v46, 0.0  ;;  %v2910_v11 = vmul.f32 %v7415_v1, %v9941_v42  ;;  %v2911_v30 = vmul.f32 %v7400_v37, %v9951_v62  ;;  %v2912_v3 = vmul.f32 %v7403_v8, %v9951_v62  ;;  %v9952_v37 = vld [vmem:[#allocation41_spill] sm:$0xff] }
 0x31a   :  { %v2913_v16 = vmul.f32 %v7406_v40, %v9951_v62  ;;  %v2914_v14 = vmul.f32 %v7409_v53, %v9951_v62  ;;  %v2915_v13 = vmul.f32 %v7424_v51, %v9951_v62  ;;  %v7613_v15 = vadd.f32 %v2896_v60, %v2895_v58  ;;  %v9953_v60 = vld [vmem:[#allocation42_spill] sm:$0xff]  ;;  %v10012_v42 = vld [vmem:[#allocation57_spill] sm:$0xff] }
 0x31b   :  { %v7615_v29 = vadd.f32 %v2903_v38, %v2902_v39  ;;  %v2916_v1 = vmul.f32 %v7426_v63, %v9951_v62  ;;  %v2917_v50 = vmul.f32 %v7484_v54, %v9952_v37  ;;  %v2918_v8 = vmul.f32 %v7487_v12, %v9952_v37 }
 0x31c   :  { %v2919_v40 = vmul.f32 %v7493_v26, %v9952_v37  ;;  %v2920_v53 = vmul.f32 %v7496_v59, %v9952_v37  ;;  %v2921_v51 = vmul.f32 %v7503_v23, %v9952_v37  ;;  %v2922_v38 = vmul.f32 %v7506_v35, %v9952_v37  ;;  %v9959_v37 = vld [vmem:[#allocation49_spill] sm:$0xff] }
 0x31d   :  { %v2923_v63 = vmul.f32 %v2833_v31, %v9953_v60  ;;  %v2924_v33 = vmul.f32 %v2834_v7, %v9953_v60  ;;  %v2925_v54 = vmul.f32 %v2835_v28, %v9953_v60  ;;  %v2926_v12 = vmul.f32 %v2836_v4, %v9953_v60 }
 0x31e   :  { %v2927_v57 = vmul.f32 %v2837_v5, %v9953_v60  ;;  %v2929_v26 = vsel %vm771_vm11, %v7490_v49, 0.0  ;;  %v2930_v59 = vsel %vm771_vm11, %v2911_v30, 0.0  ;;  %v2936_v23 = vsel %vm771_vm11, %v2906_v24, 0.0 }
 0x31f   :  { %v2937_v20 = vsel %vm771_vm11, %v2912_v3, 0.0  ;;  %v2943_v35 = vsel %vm771_vm11, %v2907_v47, 0.0  ;;  %v2944_v31 = vsel %vm771_vm11, %v2913_v16, 0.0  ;;  %v2950_v7 = vsel %vm771_vm11, %v2908_v22, 0.0 }
 0x320   :  { %v2951_v28 = vsel %vm771_vm11, %v2914_v14, 0.0  ;;  %v2957_v4 = vsel %vm771_vm11, %v2909_v18, 0.0  ;;  %v2958_v5 = vsel %vm771_vm11, %v2915_v13, 0.0  ;;  %v2928_v49 = vmul.f32 %v7536_v19, %v9953_v60 }
 0x321   :  { %v2931_v52 = vadd.f32 %v2930_v59, %v2929_v26  ;;  %v2964_v24 = vsel %vm771_vm11, %v2910_v11, 0.0  ;;  %v2965_v58 = vsel %vm771_vm11, %v2916_v1, 0.0  ;;  %v2932_v47 = vsel %vm771_vm11, %v2917_v50, 0.0  ;;  %v9954_v26 = vld [vmem:[#allocation43_spill] sm:$0xff] }
 0x322   :  { %v2934_v39 = vsel %vm771_vm11, %v2923_v63, 0.0  ;;  %v2938_v30 = vadd.f32 %v2937_v20, %v2936_v23  ;;  %v2939_v22 = vsel %vm771_vm11, %v2918_v8, 0.0  ;;  %v2941_v3 = vsel %vm771_vm11, %v2924_v33, 0.0 }
 0x323   :  { %v2945_v18 = vadd.f32 %v2944_v31, %v2943_v35  ;;  %v2952_v16 = vadd.f32 %v2951_v28, %v2950_v7  ;;  %v2959_v14 = vadd.f32 %v2958_v5, %v2957_v4  ;;  %v2946_v13 = vsel %vm771_vm11, %v2919_v40, 0.0 }
 0x324   :  { %v2966_v19 = vadd.f32 %v2965_v58, %v2964_v24  ;;  %v2971_v11 = vsub.f32 %v9954_v26, %v7589_v17  ;;  %v2972_v1 = vsub.f32 %v9954_v26, %v7591_v21  ;;  %v2933_v50 = vadd.f32 %v2932_v47, %v2931_v52  ;;  %v9955_v52 = vld [vmem:[#allocation45_spill] sm:$0xff]  ;;  %v9956_v58 = vld [vmem:[#allocation44_spill] sm:$0xff] }
 0x325   :  { %v2973_v63 = vsub.f32 %v9954_v26, %v7593_v43  ;;  %v2974_v8 = vsub.f32 %v9954_v26, %v7595_v34  ;;  %v2975_v33 = vsub.f32 %v9954_v26, %v7613_v15  ;;  %v2940_v59 = vadd.f32 %v2939_v22, %v2938_v30 }
 0x326   :  { %v2953_v40 = vsel %vm771_vm11, %v2920_v53, 0.0  ;;  %v2960_v23 = vsel %vm771_vm11, %v2921_v51, 0.0  ;;  %v2976_v20 = vsub.f32 %v9954_v26, %v7615_v29  ;;  %v2947_v35 = vadd.f32 %v2946_v13, %v2945_v18  ;;  %v9957_v53 = vld [vmem:[#allocation47_spill] sm:$0xff]  ;;  %v9958_v51 = vld [vmem:[#allocation46_spill] sm:$0xff] }
 0x327   :  { %v2954_v31 = vadd.f32 %v2953_v40, %v2952_v16  ;;  %v2961_v7 = vadd.f32 %v2960_v23, %v2959_v14  ;;  %v2967_v28 = vsel %vm771_vm11, %v2922_v38, 0.0  ;;  %v2948_v4 = vsel %vm771_vm11, %v2925_v54, 0.0  ;;  %v9960_v38 = vld [vmem:[#allocation48_spill] sm:$0xff] }
 0x328   :  { %v2968_v5 = vadd.f32 %v2967_v28, %v2966_v19  ;;  %v2977_v24 = vmul.f32 %v2971_v11, %v9955_v52  ;;  %v2978_v47 = vmul.f32 %v2972_v1, %v9956_v58  ;;  %v2955_v30 = vsel %vm771_vm11, %v2926_v12, 0.0  ;;  %v9991_v28 = vld [vmem:[#allocation63_spill] sm:$0xff] }
 0x329   :  { %v2979_v22 = vmul.f32 %v2973_v63, %v9957_v53  ;;  %v2980_v60 = vmul.f32 %v2974_v8, %v9958_v51  ;;  %v2981_v26 = vmul.f32 %v2975_v33, %v9959_v37  ;;  %v2935_v18 = vadd.f32 %v2934_v39, %v2933_v50  ;;  %v10009_v51 = vld [vmem:[#allocation71_spill] sm:$0xff] }
 0x32a   :  { %v2942_v16 = vadd.f32 %v2941_v3, %v2940_v59  ;;  %v2962_v14 = vsel %vm771_vm11, %v2927_v57, 0.0  ;;  %v2982_v13 = vmul.f32 %v2976_v20, %v9960_v38  ;;  %v2949_v54 = vadd.f32 %v2948_v4, %v2947_v35  ;;  %v9983_v20 = vld [vmem:[#allocation86_spill] sm:$0xff]  ;;  %v10010_v38 = vld [vmem:[#allocation55_spill] sm:$0xff] }
 0x32b   :  { %v2956_v19 = vadd.f32 %v2955_v30, %v2954_v31  ;;  %v2963_v40 = vadd.f32 %v2962_v14, %v2961_v7  ;;  %v2969_v11 = vsel %vm771_vm11, %v2928_v49, 0.0  ;;  %v7681_v23 = vsub.f32 %v2935_v18, %v2977_v24  ;;  %v9985_v35 = vld [vmem:[#allocation18_spill] sm:$0xff]  ;;  %v9989_v31 = vld [vmem:[#allocation92_spill] sm:$0xff]  ;;  %v10011_v52 = vld [vmem:[#allocation59_spill] sm:$0xff] }
 0x32c   :  { %v2970_v1 = vadd.f32 %v2969_v11, %v2968_v5  ;;  %v7683_v12 = vsub.f32 %v2942_v16, %v2978_v47  ;;  %v7686_v63 = vadd.f32 1e-08, %v7589_v17  ;;  %v7688_v8 = vsub.f32 %v2949_v54, %v2979_v22  ;;  %v9993_v5 = vld [vmem:[#allocation28_spill] sm:$0xff]  ;;  %v9995_v47 = vld [vmem:[#allocation87_spill] sm:$0xff]  ;;  %v9999_v22 = vld [vmem:[#allocation58_spill] sm:$0xff] }
 0x32d   :  { %9961 = vst [vmem:[#allocation36_spill] sm:$0xff] %v7681_v23  ;;  %v7690_v39 = vsub.f32 %v2956_v19, %v2980_v60  ;;  %v7692_v57 = vsub.f32 %v2963_v40, %v2981_v26  ;;  %v7695_v3 = vadd.f32 1e-08, %v7591_v21  ;;  %v7700_v49 = vadd.f32 1e-08, %v7593_v43  ;;  %v9967_v60 = vld [vmem:[#allocation34_spill] sm:$0xff] }
 0x32e   :  { %9962 = vst [vmem:[#allocation89_spill] sm:$0xff] %v7683_v12  ;;  %9963 = vst [vmem:[#allocation24_spill] sm:$0xff] %v7688_v8  ;;  %v7697_v50 = vsub.f32 %v2970_v1, %v2982_v13  ;;  %v7703_v33 = vadd.f32 1e-08, %v7595_v34  ;;  %v7706_v17 = vadd.f32 1e-08, %v7613_v15  ;;  %v7713_v26 = vrot.slane %v7418_v32, %v9967_v60 }
 0x32f   :  { %9964 = vst [vmem:[#allocation29_spill] sm:$0xff] %v7690_v39  ;;  %9965 = vst [vmem:[#allocation90_spill] sm:$0xff] %v7692_v57  ;;  %v7709_v59 = vadd.f32 1e-08, %v7615_v29  ;;  %v7717_v21 = vrot.slane %v7421_v10, %v9967_v60  ;;  %v7721_v43 = vrot.slane %v7429_v0, %v9967_v60  ;;  %v7725_v34 = vrot.slane %v7433_v25, %v9967_v60  ;;  %v9981_v29 = vld [vmem:[#allocation35_spill] sm:$0xff]  ;;  %v10000_v16 = vld [vmem:[#allocation56_spill] sm:$0xff] }
 0x330   :  { %9966 = vst [vmem:[#allocation38_spill] sm:$0xff] %v7697_v50  ;;  %9968 = vst [vmem:[#allocation91_spill] sm:$0xff] %v7713_v26  ;;  %v7729_v15 = vrot.slane %v7453_v55, %v9967_v60  ;;  %v7733_v32 = vrot.slane %v7457_v56, %v9967_v60  ;;  %v7737_v10 = vrot.slane %v7437_v27, %v9967_v60  ;;  %v10001_v13 = vld [vmem:[#allocation77_spill] sm:$0xff]  ;;  %v10003_v11 = vld [vmem:[#allocation96_spill] sm:$0xff] }
 0x331   :  { %9969 = vst [vmem:[#allocation61_spill] sm:$0xff] %v7717_v21  ;;  %9970 = vst [vmem:[#allocation53_spill] sm:$0xff] %v7721_v43  ;;  %v7741_v0 = vrot.slane %v7441_v9, %v9967_v60  ;;  %v7745_v25 = vrot.slane %v7445_v61, %v9967_v60  ;;  %v7749_v55 = vrot.slane %v7449_v6, %v9967_v60  ;;  %v10002_v19 = vld [vmem:[#allocation69_spill] sm:$0xff]  ;;  %v10037_v39 = vld [vmem:[#allocation88_spill] sm:$0xff] }
 0x332   :  { %9971 = vst [vmem:[#allocation94_spill] sm:$0xff] %v7725_v34  ;;  %9972 = vst [vmem:[#allocation54_spill] sm:$0xff] %v7729_v15  ;;  %v7753_v56 = vrot.slane %v7465_v2, %v9967_v60  ;;  %v7757_v27 = vrot.slane %v7469_v44, %v9967_v60  ;;  %v7761_v9 = vrot.slane %v7516_v48, %v9967_v60  ;;  %v10004_v1 = vld [vmem:[#allocation93_spill] sm:$0xff]  ;;  %v10039_v8 = vld [vmem:[#allocation60_spill] sm:$0xff] }
 0x333   :  { %9973 = vst [vmem:[#allocation13_spill] sm:$0xff] %v7733_v32  ;;  %9974 = vst [vmem:[#allocation79_spill] sm:$0xff] %v7737_v10  ;;  %v7765_v61 = vrot.slane %v9981_v29, %v9967_v60  ;;  %v7769_v6 = vrot.slane %v9983_v20, %v9967_v60  ;;  %v7773_v2 = vrot.slane %v9985_v35, %v9967_v60  ;;  %v10006_v35 = vld [vmem:[#allocation98_spill] sm:$0xff]  ;;  %v10031_v50 = vld [vmem:[#allocation17_spill] sm:$0xff] }
 0x334   :  { %9975 = vst [vmem:[#allocation32_spill] sm:$0xff] %v7741_v0  ;;  %9976 = vst [vmem:[#allocation75_spill] sm:$0xff] %v7745_v25  ;;  %v7777_v44 = vrot.slane %v7540_v45, %v9967_v60  ;;  %v7781_v48 = vrot.slane %v7544_v41, %v9967_v60  ;;  %v7785_v7 = vrot.slane %v9989_v31, %v9967_v60  ;;  %v10034_v57 = vld [vmem:[#allocation81_spill] sm:$0xff]  ;;  %v10041_v12 = vld [vmem:[#allocation11_spill] sm:$0xff] }
 0x335   :  { %9977 = vst [vmem:[#allocation25_spill] sm:$0xff] %v7749_v55  ;;  %9978 = vst [vmem:[#allocation27_spill] sm:$0xff] %v7753_v56  ;;  %v7789_v4 = vrot.slane %v9991_v28, %v9967_v60  ;;  %v7793_v24 = vrot.slane %v9993_v5, %v9967_v60  ;;  %v7797_v45 = vrot.slane %v9995_v47, %v9967_v60  ;;  %v10007_v28 = vld [vmem:[#allocation12_spill] sm:$0xff]  ;;  %v10008_v47 = vld [vmem:[#allocation9_spill] sm:$0xff] }
 0x336   :  { %9979 = vst [vmem:[#allocation16_spill] sm:$0xff] %v7757_v27  ;;  %9980 = vst [vmem:[#allocation26_spill] sm:$0xff] %v7761_v9  ;;  %v7801_v41 = vrot.slane %v7567_v36, %v9967_v60  ;;  %v7805_v30 = vrot.slane %v7571_v46, %v9967_v60  ;;  %v3091_v18 = vmul.f32 %v7713_v26, %v9999_v22  ;;  %v10005_v46 = vld [vmem:[#allocation8_spill] sm:$0xff]  ;;  %v10029_v22 = vld [vmem:[#allocation21_spill] sm:$0xff] }
 0x337   :  { %9982 = vst [vmem:[#allocation76_spill] sm:$0xff] %v7765_v61  ;;  %9984 = vst [vmem:[#allocation83_spill] sm:$0xff] %v7769_v6  ;;  %v3092_v14 = vmul.f32 %v7713_v26, %v10000_v16  ;;  %v3093_v54 = vmul.f32 %v7717_v21, %v10001_v13  ;;  %v3094_v40 = vmul.f32 %v7717_v21, %v10002_v19  ;;  %v10014_v26 = vld [vmem:[#allocation70_spill] sm:$0xff]  ;;  %v10025_v13 = vld [vmem:[#allocation68_spill] sm:$0xff] }
 0x338   :  { %9986 = vst [vmem:[#allocation35_spill] sm:$0xff] %v7773_v2  ;;  %9987 = vst [vmem:[#allocation86_spill] sm:$0xff] %v7777_v44  ;;  %v3095_v36 = vmul.f32 %v7721_v43, %v10003_v11  ;;  %v3096_v29 = vmul.f32 %v7721_v43, %v10004_v1  ;;  %v3097_v20 = vmul.f32 %v7725_v34, %v10005_v46  ;;  %v10018_v46 = vld [vmem:[#allocation99_spill] sm:$0xff]  ;;  %v10019_v1 = vld [vmem:[#allocation52_spill] sm:$0xff] }
 0x339   :  { %9988 = vst [vmem:[#allocation18_spill] sm:$0xff] %v7781_v48  ;;  %9990 = vst [vmem:[#allocation92_spill] sm:$0xff] %v7785_v7  ;;  %v3098_v31 = vmul.f32 %v7725_v34, %v10006_v35  ;;  %v3099_v5 = vmul.f32 %v7729_v15, %v10007_v28  ;;  %v3100_v37 = vmul.f32 %v7729_v15, %v10008_v47  ;;  %v10013_v34 = vld [vmem:[#allocation78_spill] sm:$0xff]  ;;  %v10015_v15 = vld [vmem:[#allocation97_spill] sm:$0xff] }
 0x33a   :  { %9992 = vst [vmem:[#allocation63_spill] sm:$0xff] %v7789_v4  ;;  %9994 = vst [vmem:[#allocation28_spill] sm:$0xff] %v7793_v24  ;;  %v3101_v53 = vmul.f32 %v7733_v32, %v10009_v51  ;;  %v7831_v58 = vmul.f32 %v7733_v32, %v10010_v38  ;;  %v3103_v62 = vmul.f32 %v7737_v10, %v10011_v52  ;;  %v10016_v51 = vld [vmem:[#allocation95_spill] sm:$0xff]  ;;  %v10017_v32 = vld [vmem:[#allocation50_spill] sm:$0xff] }
 0x33b   :  { %9996 = vst [vmem:[#allocation87_spill] sm:$0xff] %v7797_v45  ;;  %9997 = vst [vmem:[#allocation100_spill] sm:$0xff] %v7801_v41  ;;  %v3104_v43 = vmul.f32 %v7737_v10, %v10012_v42  ;;  %v3105_v21 = vmul.f32 %v7741_v0, %v10013_v34  ;;  %v3106_v28 = vmul.f32 %v7741_v0, %v10014_v26  ;;  %v10020_v42 = vld [vmem:[#allocation51_spill] sm:$0xff]  ;;  %v10021_v11 = vld [vmem:[#allocation72_spill] sm:$0xff] }
 0x33c   :  { %9998 = vst [vmem:[#allocation101_spill] sm:$0xff] %v7805_v30  ;;  %v3107_v47 = vmul.f32 %v7745_v25, %v10015_v15  ;;  %v3108_v35 = vmul.f32 %v7745_v25, %v10016_v51  ;;  %v3109_v38 = vmul.f32 %v7749_v55, %v10017_v32  ;;  %v3110_v52 = vmul.f32 %v7749_v55, %v10018_v46  ;;  %v10022_v26 = vld [vmem:[#allocation10_spill] sm:$0xff]  ;;  %v10024_v51 = vld [vmem:[#allocation64_spill] sm:$0xff] }
 0x33d   :  { %v3111_v10 = vmul.f32 %v7753_v56, %v10019_v1  ;;  %v3112_v34 = vmul.f32 %v7753_v56, %v10020_v42  ;;  %v3113_v0 = vmul.f32 %v7757_v27, %v10021_v11  ;;  %v3114_v15 = vmul.f32 %v7757_v27, %v10022_v26  ;;  %v10023_v19 = vld [vmem:[#allocation66_spill] sm:$0xff]  ;;  %v10030_v26 = vld [vmem:[#allocation20_spill] sm:$0xff] }
 0x33e   :  { %v3115_v25 = vmul.f32 %v7761_v9, %v10023_v19  ;;  %v3116_v32 = vmul.f32 %v7761_v9, %v10024_v51  ;;  %v3117_v55 = vmul.f32 %v7765_v61, %v10025_v13  ;;  %v10026_v46 = vld [vmem:[#allocation74_spill] sm:$0xff]  ;;  %v3121_v27 = vmul.f32 %v7773_v2, %v10029_v22  ;;  %v10032_v51 = vld [vmem:[#allocation73_spill] sm:$0xff] }
 0x33f   :  { %v3118_v1 = vmul.f32 %v7765_v61, %v10026_v46  ;;  %v10027_v16 = vld [vmem:[#allocation22_spill] sm:$0xff]  ;;  %v3122_v19 = vmul.f32 %v7773_v2, %v10030_v26  ;;  %v3123_v9 = vmul.f32 %v7777_v44, %v10031_v50  ;;  %v3124_v13 = vmul.f32 %v7777_v44, %v10032_v51  ;;  %v10033_v46 = vld [vmem:[#allocation23_spill] sm:$0xff]  ;;  %v10036_v26 = vld [vmem:[#allocation65_spill] sm:$0xff] }
 0x340   :  { %v3119_v56 = vmul.f32 %v7769_v6, %v10027_v16  ;;  %v10028_v42 = vld [vmem:[#allocation14_spill] sm:$0xff]  ;;  %v3178_v61 = vrot.slane %v7686_v63, %v9967_v60  ;;  %v3125_v16 = vmul.f32 %v7781_v48, %v10033_v46  ;;  %v3182_v2 = vrot.slane %v7695_v3, %v9967_v60 }
 0x341   :  { %v3120_v11 = vmul.f32 %v7769_v6, %v10028_v42  ;;  %v3126_v6 = vmul.f32 %v7781_v48, %v10034_v57  ;;  %v10035_v42 = vld [vmem:[#allocation67_spill] sm:$0xff]  ;;  %v3128_v50 = vmul.f32 %v7785_v7, %v10036_v26  ;;  %v3129_v44 = vmul.f32 %v7789_v4, %v10037_v39  ;;  %v10038_v51 = vld [vmem:[#allocation82_spill] sm:$0xff] }
 0x342   :  { %v3127_v22 = vmul.f32 %v7785_v7, %v10035_v42  ;;  %v3130_v63 = vmul.f32 %v7789_v4, %v10038_v51  ;;  %v3186_v46 = vrot.slane %v7700_v49, %v9967_v60  ;;  %v3131_v48 = vmul.f32 %v7793_v24, %v10039_v8  ;;  %v10040_v57 = vld [vmem:[#allocation15_spill] sm:$0xff] }
 0x343   :  { %v3132_v42 = vmul.f32 %v7793_v24, %v10040_v57  ;;  %v3133_v3 = vmul.f32 %v7797_v45, %v10041_v12  ;;  %v3190_v7 = vrot.slane %v7703_v33, %v9967_v60  ;;  %v3139_v26 = vadd.f32 %v3103_v62, %v3091_v18  ;;  %v10042_v62 = vld [vmem:[#allocation62_spill] sm:$0xff] }
 0x344   :  { %v3142_v39 = vadd.f32 %v3104_v43, %v3092_v14  ;;  %v3194_v4 = vrot.slane %v7706_v17, %v9967_v60  ;;  %5042 = vrcp.f32 %v3178_v61  ;;  %v3145_v51 = vadd.f32 %v3105_v21, %v3093_v54  ;;  %v10043_v54 = vld [vmem:[#allocation80_spill] sm:$0xff] }
 0x345   :  { %v3148_v49 = vadd.f32 %v3106_v28, %v3094_v40  ;;  %v3198_v8 = vrot.slane %v7709_v59, %v9967_v60  ;;  %5044 = vrcp.f32 %v3182_v2  ;;  %v3151_v23 = vadd.f32 %v3107_v47, %v3095_v36  ;;  %v10045_v40 = vld [vmem:[#allocation19_spill] sm:$0xff] }
 0x346   :  { %v3154_v24 = vadd.f32 %v3108_v35, %v3096_v29  ;;  %v3157_v57 = vadd.f32 %v3109_v38, %v3097_v20  ;;  %5046 = vrcp.f32 %v3186_v46  ;;  %v3160_v12 = vadd.f32 %v3110_v52, %v3098_v31  ;;  %v10044_v52 = vld [vmem:[#allocation100_spill] sm:$0xff]  ;;  %v10085_v29 = vld [vmem:[#allocation71_spill] sm:$0xff] }
 0x347   :  { %v3163_v30 = vadd.f32 %v3111_v10, %v3099_v5  ;;  %v3166_v41 = vadd.f32 %v3112_v34, %v3100_v37  ;;  %5048 = vrcp.f32 %v3190_v7  ;;  %v3134_v33 = vmul.f32 %v7797_v45, %v10042_v62  ;;  %v10087_v36 = vld [vmem:[#allocation55_spill] sm:$0xff] }
 0x348   :  { %v3140_v43 = vadd.f32 %v3139_v26, %v3115_v25  ;;  %v3169_v17 = vadd.f32 %v3113_v0, %v3101_v53  ;;  %5050 = vrcp.f32 %v3194_v4  ;;  %v3143_v21 = vadd.f32 %v3142_v39, %v3116_v32  ;;  %v10046_v53 = vld [vmem:[#allocation85_spill] sm:$0xff] }
 0x349   :  { %v3146_v61 = vadd.f32 %v3145_v51, %v3117_v55  ;;  %v3149_v18 = vadd.f32 %v3148_v49, %v3118_v1  ;;  %5052 = vrcp.f32 %v3198_v8  ;;  %v3152_v59 = vadd.f32 %v3151_v23, %v3119_v56  ;;  %v10047_v0 = vld [vmem:[#allocation101_spill] sm:$0xff]  ;;  %v10048_v51 = vld [vmem:[#allocation84_spill] sm:$0xff] }
 0x34a   :  { %v3155_v2 = vadd.f32 %v3154_v24, %v3120_v11  ;;  %v3158_v14 = vadd.f32 %v3157_v57, %v3121_v27  ;;  %v3172_v38 = vadd.f32 %v3114_v15, %v7831_v58  ;;  %v3135_v10 = vmul.f32 %v10044_v52, %v10043_v54  ;;  %v10054_v11 = vld [vmem:[#allocation24_spill] sm:$0xff] }
 0x34b   :  { %v3161_v37 = vadd.f32 %v3160_v12, %v3122_v19  ;;  %v3164_v34 = vadd.f32 %v3163_v30, %v3123_v9  ;;  %v3167_v7 = vadd.f32 %v3166_v41, %v3124_v13  ;;  %v3136_v26 = vmul.f32 %v10044_v52, %v10045_v40  ;;  %v10051_v30 = vld [vmem:[#allocation36_spill] sm:$0xff] }
 0x34c   :  { %v3137_v39 = vmul.f32 %v10047_v0, %v10046_v53  ;;  %v3138_v8 = vmul.f32 %v10047_v0, %v10048_v51  ;;  %v3170_v23 = vadd.f32 %v3169_v17, %v3125_v16  ;;  %v3141_v32 = vadd.f32 %v3140_v43, %v3127_v22 }
 0x34d   :  { %v3144_v57 = vadd.f32 %v3143_v21, %v3128_v50  ;;  %v3147_v25 = vadd.f32 %v3146_v61, %v3129_v44  ;;  %v3150_v58 = vadd.f32 %v3149_v18, %v3130_v63  ;;  %v3153_v55 = vadd.f32 %v3152_v59, %v3131_v48  ;;  %v10053_v44 = vld [vmem:[#allocation89_spill] sm:$0xff]  ;;  %v10089_v50 = vld [vmem:[#allocation59_spill] sm:$0xff] }
 0x34e   :  { %v7918_v15 = vpop.eup %5042  ;;  %v3156_v12 = vadd.f32 %v3155_v2, %v3132_v42  ;;  %v3159_v56 = vadd.f32 %v3158_v14, %v3133_v3  ;;  %v3173_v27 = vadd.f32 %v3172_v38, %v3126_v6  ;;  %v3162_v4 = vadd.f32 %v3161_v37, %v3134_v33  ;;  %v10056_v42 = vld [vmem:[#allocation29_spill] sm:$0xff] }
 0x34f   :  { %10049 = vst [vmem:[#allocation102_spill] sm:$0xff] %v7918_v15  ;;  %v7920_v9 = vpop.eup %5044  ;;  %v3165_v24 = vadd.f32 %v3164_v34, %v3135_v10  ;;  %v3168_v41 = vadd.f32 %v3167_v7, %v3136_v26  ;;  %v3805_v13 = vand.u32 2147483647, %v10051_v30  ;;  %v3171_v16 = vadd.f32 %v3170_v23, %v3137_v39  ;;  %v10063_v39 = vld [vmem:[#allocation58_spill] sm:$0xff]  ;;  %v10065_v23 = vld [vmem:[#allocation56_spill] sm:$0xff]  ;;  %v10091_v63 = vld [vmem:[#allocation57_spill] sm:$0xff] }
 0x350   :  { %10050 = vst [vmem:[#allocation103_spill] sm:$0xff] %v7920_v9  ;;  %v7923_v19 = vpop.eup %5046  ;;  %v3806_v35 = vand.u32 2147483647, %v10053_v44  ;;  %v3174_v28 = vadd.f32 %v3173_v27, %v3138_v8  ;;  %v3807_v5 = vand.u32 2147483647, %v10054_v11  ;;  %v3200_v49 = vmul.f32 %v7918_v15, %v3141_v32  ;;  %v10073_v27 = vld [vmem:[#allocation96_spill] sm:$0xff] }
 0x351   :  { %10052 = vst [vmem:[#allocation104_spill] sm:$0xff] %v7923_v19  ;;  %v7928_v48 = vpop.eup %5048  ;;  %v3808_v47 = vand.u32 2147483647, %v10056_v42  ;;  %v3201_v33 = vmul.f32 %v7918_v15, %v3144_v57  ;;  %v3811_v17 = vsub.f32 0.0, %v3805_v13  ;;  %v3203_v21 = vmul.f32 %v7920_v9, %v3147_v25  ;;  %v10077_v13 = vld [vmem:[#allocation8_spill] sm:$0xff] }
 0x352   :  { %10055 = vst [vmem:[#allocation105_spill] sm:$0xff] %v7928_v48  ;;  %v7934_v31 = vpop.eup %5050  ;;  %v3204_v61 = vmul.f32 %v7920_v9, %v3150_v58  ;;  %v3206_v18 = vmul.f32 %v7923_v19, %v3153_v55  ;;  %v3207_v59 = vmul.f32 %v7923_v19, %v3156_v12  ;;  %v3209_v2 = vmul.f32 %v7928_v48, %v3159_v56  ;;  %v10069_v58 = vld [vmem:[#allocation77_spill] sm:$0xff] }
 0x353   :  { %10059 = vst [vmem:[#allocation106_spill] sm:$0xff] %v7934_v31  ;;  %v7939_v3 = vpop.eup %5052  ;;  %v3210_v14 = vmul.f32 %v7928_v48, %v3162_v4  ;;  %v3212_v38 = vmul.f32 %v7934_v31, %v3165_v24  ;;  %v3213_v10 = vmul.f32 %v7934_v31, %v3168_v41  ;;  %v7954_v7 = vsub.f32 0.0, %v3806_v35  ;;  %v10071_v12 = vld [vmem:[#allocation69_spill] sm:$0xff]  ;;  %v10079_v35 = vld [vmem:[#allocation98_spill] sm:$0xff] }
 0x354   :  { %10060 = vst [vmem:[#allocation107_spill] sm:$0xff] %v7939_v3  ;;  %v3215_v37 = vmul.f32 %v7939_v3, %v3171_v16  ;;  %v3216_v34 = vmul.f32 %v7939_v3, %v3174_v28  ;;  %v7956_v26 = vsub.f32 0.0, %v3807_v5  ;;  %v7959_v8 = vsub.f32 %v10063_v39, %v3200_v49  ;;  %v10075_v24 = vld [vmem:[#allocation93_spill] sm:$0xff]  ;;  %v10081_v5 = vld [vmem:[#allocation12_spill] sm:$0xff]  ;;  %v10101_v39 = vld [vmem:[#allocation50_spill] sm:$0xff] }
 0x355   :  { %10061 = vst [vmem:[#allocation108_spill] sm:$0xff] %v7954_v7  ;;  %v7962_v32 = vsub.f32 %v10065_v23, %v3201_v33  ;;  %v7964_v57 = vsub.f32 0.0, %v3808_v47  ;;  %v7966_v25 = vmul.f32 1.442695, %v3811_v17  ;;  %v7969_v55 = vsub.f32 %v10069_v58, %v3203_v21  ;;  %v10083_v17 = vld [vmem:[#allocation9_spill] sm:$0xff]  ;;  %v10099_v58 = vld [vmem:[#allocation95_spill] sm:$0xff] }
 0x356   :  { %10062 = vst [vmem:[#allocation109_spill] sm:$0xff] %v7956_v26  ;;  %10064 = vst [vmem:[#allocation110_spill] sm:$0xff] %v7959_v8  ;;  %v7972_v56 = vsub.f32 %v10071_v12, %v3204_v61  ;;  %v7975_v4 = vsub.f32 %v10073_v27, %v3206_v18  ;;  %v7978_v41 = vsub.f32 %v10075_v24, %v3207_v59 }
 0x357   :  { %10066 = vst [vmem:[#allocation111_spill] sm:$0xff] %v7962_v32  ;;  %10067 = vst [vmem:[#allocation112_spill] sm:$0xff] %v7964_v57  ;;  %v7981_v16 = vsub.f32 %v10077_v13, %v3209_v2  ;;  %v7984_v28 = vsub.f32 %v10079_v35, %v3210_v14  ;;  %v7987_v47 = vsub.f32 %v10081_v5, %v3212_v38  ;;  %v10093_v35 = vld [vmem:[#allocation78_spill] sm:$0xff] }
 0x358   :  { %10068 = vst [vmem:[#allocation113_spill] sm:$0xff] %v7966_v25  ;;  %10070 = vst [vmem:[#allocation114_spill] sm:$0xff] %v7969_v55  ;;  %v7990_v20 = vsub.f32 %v10083_v17, %v3213_v10  ;;  %v7993_v6 = vsub.f32 %v10085_v29, %v3215_v37  ;;  %v7996_v22 = vsub.f32 %v10087_v36, %v3216_v34  ;;  %v10095_v5 = vld [vmem:[#allocation70_spill] sm:$0xff]  ;;  %v10097_v17 = vld [vmem:[#allocation97_spill] sm:$0xff] }
 0x359   :  { %10072 = vst [vmem:[#allocation115_spill] sm:$0xff] %v7972_v56  ;;  %10074 = vst [vmem:[#allocation116_spill] sm:$0xff] %v7975_v4  ;;  %v7999_v43 = vsub.f32 %v10089_v50, %v3200_v49  ;;  %v8002_v13 = vsub.f32 %v10091_v63, %v3201_v33  ;;  %v8005_v24 = vsub.f32 %v10093_v35, %v3203_v21  ;;  %v10103_v50 = vld [vmem:[#allocation99_spill] sm:$0xff]  ;;  %v10105_v63 = vld [vmem:[#allocation52_spill] sm:$0xff] }
 0x35a   :  { %10076 = vst [vmem:[#allocation117_spill] sm:$0xff] %v7978_v41  ;;  %10078 = vst [vmem:[#allocation118_spill] sm:$0xff] %v7981_v16  ;;  %v8008_v27 = vsub.f32 %v10095_v5, %v3204_v61  ;;  %v8011_v12 = vsub.f32 %v10097_v17, %v3206_v18  ;;  %v8014_v23 = vsub.f32 %v10099_v58, %v3207_v59  ;;  %v10107_v35 = vld [vmem:[#allocation51_spill] sm:$0xff]  ;;  %v10109_v5 = vld [vmem:[#allocation72_spill] sm:$0xff] }
 0x35b   :  { %10080 = vst [vmem:[#allocation119_spill] sm:$0xff] %v7984_v28  ;;  %10082 = vst [vmem:[#allocation120_spill] sm:$0xff] %v7987_v47  ;;  %v8017_v36 = vsub.f32 %v10101_v39, %v3209_v2  ;;  %v8020_v29 = vsub.f32 %v10103_v50, %v3210_v14  ;;  %v8023_v60 = vsub.f32 %v10105_v63, %v3212_v38  ;;  %v10111_v17 = vld [vmem:[#allocation10_spill] sm:$0xff]  ;;  %v10115_v39 = vld [vmem:[#allocation64_spill] sm:$0xff] }
 0x35c   :  { %10084 = vst [vmem:[#allocation121_spill] sm:$0xff] %v7990_v20  ;;  %10086 = vst [vmem:[#allocation122_spill] sm:$0xff] %v7993_v6  ;;  %v8026_v42 = vsub.f32 %v10107_v35, %v3213_v10  ;;  %v8029_v11 = vsub.f32 %v10109_v5, %v3215_v37  ;;  %v8032_v44 = vsub.f32 %v10111_v17, %v3216_v34  ;;  %v10113_v58 = vld [vmem:[#allocation66_spill] sm:$0xff]  ;;  %v10117_v50 = vld [vmem:[#allocation68_spill] sm:$0xff] }
 0x35d   :  { %10088 = vst [vmem:[#allocation123_spill] sm:$0xff] %v7996_v22  ;;  %10090 = vst [vmem:[#allocation124_spill] sm:$0xff] %v7999_v43  ;;  %v8035_v30 = vsub.f32 %v10113_v58, %v3200_v49  ;;  %v8038_v57 = vsub.f32 %v10115_v39, %v3201_v33  ;;  %v8041_v46 = vsub.f32 %v10117_v50, %v3203_v21  ;;  %v10119_v63 = vld [vmem:[#allocation74_spill] sm:$0xff]  ;;  %v10125_v17 = vld [vmem:[#allocation21_spill] sm:$0xff] }
 0x35e   :  { %10092 = vst [vmem:[#allocation125_spill] sm:$0xff] %v8002_v13  ;;  %10094 = vst [vmem:[#allocation126_spill] sm:$0xff] %v8005_v24  ;;  %v8044_v3 = vsub.f32 %v10119_v63, %v3204_v61  ;;  %v10121_v35 = vld [vmem:[#allocation22_spill] sm:$0xff]  ;;  %v8053_v25 = vsub.f32 %v10125_v17, %v3209_v2  ;;  %v10127_v58 = vld [vmem:[#allocation20_spill] sm:$0xff] }
 0x35f   :  { %10096 = vst [vmem:[#allocation127_spill] sm:$0xff] %v8008_v27  ;;  %10098 = vst [vmem:[#allocation128_spill] sm:$0xff] %v8011_v12  ;;  %v8047_v31 = vsub.f32 %v10121_v35, %v3206_v18  ;;  %v10123_v5 = vld [vmem:[#allocation14_spill] sm:$0xff]  ;;  %v8056_v48 = vsub.f32 %v10127_v58, %v3210_v14  ;;  %v10129_v39 = vld [vmem:[#allocation17_spill] sm:$0xff] }
 0x360   :  { %10100 = vst [vmem:[#allocation129_spill] sm:$0xff] %v8014_v23  ;;  %10102 = vst [vmem:[#allocation130_spill] sm:$0xff] %v8017_v36  ;;  %v8050_v26 = vsub.f32 %v10123_v5, %v3207_v59  ;;  %v8059_v7 = vsub.f32 %v10129_v39, %v3212_v38  ;;  %v10131_v50 = vld [vmem:[#allocation73_spill] sm:$0xff]  ;;  %v10133_v63 = vld [vmem:[#allocation23_spill] sm:$0xff] }
 0x361   :  { %10104 = vst [vmem:[#allocation131_spill] sm:$0xff] %v8020_v29  ;;  %10106 = vst [vmem:[#allocation132_spill] sm:$0xff] %v8023_v60  ;;  %v8062_v1 = vsub.f32 %v10131_v50, %v3213_v10  ;;  %v8065_v19 = vsub.f32 %v10133_v63, %v3215_v37  ;;  %v10135_v35 = vld [vmem:[#allocation81_spill] sm:$0xff]  ;;  %v10137_v5 = vld [vmem:[#allocation67_spill] sm:$0xff] }
 0x362   :  { %10108 = vst [vmem:[#allocation133_spill] sm:$0xff] %v8026_v42  ;;  %10110 = vst [vmem:[#allocation134_spill] sm:$0xff] %v8029_v11  ;;  %v8068_v9 = vsub.f32 %v10135_v35, %v3216_v34  ;;  %v8071_v15 = vsub.f32 %v10137_v5, %v3200_v49  ;;  %v10139_v17 = vld [vmem:[#allocation65_spill] sm:$0xff]  ;;  %v10141_v58 = vld [vmem:[#allocation88_spill] sm:$0xff]  ;;  %v8092_v49 = vsub.f32 %v10042_v62, %v3210_v14 }
 0x363   :  { %10112 = vst [vmem:[#allocation135_spill] sm:$0xff] %v8032_v44  ;;  %10114 = vst [vmem:[#allocation136_spill] sm:$0xff] %v8035_v30  ;;  %v8074_v0 = vsub.f32 %v10139_v17, %v3201_v33  ;;  %v8077_v52 = vsub.f32 %v10141_v58, %v3203_v21  ;;  %v10143_v39 = vld [vmem:[#allocation82_spill] sm:$0xff]  ;;  %v10144_v50 = vld [vmem:[#allocation60_spill] sm:$0xff]  ;;  %v8095_v33 = vsub.f32 %v10043_v54, %v3212_v38 }
 0x364   :  { %10116 = vst [vmem:[#allocation137_spill] sm:$0xff] %v8038_v57  ;;  %10118 = vst [vmem:[#allocation138_spill] sm:$0xff] %v8041_v46  ;;  %v8080_v45 = vsub.f32 %v10143_v39, %v3204_v61  ;;  %v10146_v63 = vld [vmem:[#allocation15_spill] sm:$0xff]  ;;  %v8098_v21 = vsub.f32 %v10045_v40, %v3213_v10  ;;  %v8101_v61 = vsub.f32 %v10046_v53, %v3215_v37  ;;  %v10156_v14 = vld [vmem:[#allocation61_spill] sm:$0xff] }
 0x365   :  { %10120 = vst [vmem:[#allocation139_spill] sm:$0xff] %v8044_v3  ;;  %10122 = vst [vmem:[#allocation140_spill] sm:$0xff] %v8047_v31  ;;  %v10148_v35 = vld [vmem:[#allocation11_spill] sm:$0xff]  ;;  %v3267_v62 = vmul.f32 %v7969_v55, %v10156_v14  ;;  %v3268_v38 = vmul.f32 %v7972_v56, %v10156_v14  ;;  %v10157_v10 = vld [vmem:[#allocation53_spill] sm:$0xff] }
 0x366   :  { %10124 = vst [vmem:[#allocation141_spill] sm:$0xff] %v8050_v26  ;;  %10126 = vst [vmem:[#allocation142_spill] sm:$0xff] %v8053_v25  ;;  %v3269_v40 = vmul.f32 %v7975_v4, %v10157_v10  ;;  %v3270_v37 = vmul.f32 %v7978_v41, %v10157_v10  ;;  %v10160_v58 = vld [vmem:[#allocation13_spill] sm:$0xff]  ;;  %v10161_v5 = vld [vmem:[#allocation79_spill] sm:$0xff] }
 0x367   :  { %10128 = vst [vmem:[#allocation143_spill] sm:$0xff] %v8056_v48  ;;  %10130 = vst [vmem:[#allocation144_spill] sm:$0xff] %v8059_v7  ;;  %v3275_v14 = vmul.f32 %v7993_v6, %v10160_v58  ;;  %v3276_v17 = vmul.f32 %v7996_v22, %v10160_v58  ;;  %v3277_v10 = vmul.f32 %v7999_v43, %v10161_v5  ;;  %v10162_v53 = vld [vmem:[#allocation32_spill] sm:$0xff]  ;;  %v10165_v43 = vld [vmem:[#allocation27_spill] sm:$0xff] }
 0x368   :  { %10132 = vst [vmem:[#allocation145_spill] sm:$0xff] %v8062_v1  ;;  %10134 = vst [vmem:[#allocation146_spill] sm:$0xff] %v8065_v19  ;;  %v8083_v1 = vsub.f32 %v10144_v50, %v3206_v18  ;;  %v8086_v19 = vsub.f32 %v10146_v63, %v3207_v59  ;;  %v8104_v18 = vsub.f32 %v10048_v51, %v3216_v34  ;;  %v10155_v59 = vld [vmem:[#allocation91_spill] sm:$0xff]  ;;  %v10158_v34 = vld [vmem:[#allocation94_spill] sm:$0xff] }
 0x369   :  { %10136 = vst [vmem:[#allocation147_spill] sm:$0xff] %v8068_v9  ;;  %10138 = vst [vmem:[#allocation148_spill] sm:$0xff] %v8071_v15  ;;  %v8089_v9 = vsub.f32 %v10148_v35, %v3209_v2  ;;  %v3265_v63 = vmul.f32 %v7959_v8, %v10155_v59  ;;  %v3266_v2 = vmul.f32 %v7962_v32, %v10155_v59  ;;  %v10159_v50 = vld [vmem:[#allocation54_spill] sm:$0xff]  ;;  %v10176_v4 = vld [vmem:[#allocation92_spill] sm:$0xff] }
 0x36a   :  { %10140 = vst [vmem:[#allocation149_spill] sm:$0xff] %v8074_v0  ;;  %10142 = vst [vmem:[#allocation150_spill] sm:$0xff] %v8077_v52  ;;  %v3271_v54 = vmul.f32 %v7981_v16, %v10158_v34  ;;  %v3272_v35 = vmul.f32 %v7984_v28, %v10158_v34  ;;  %v3273_v59 = vmul.f32 %v7987_v47, %v10159_v50  ;;  %v10163_v28 = vld [vmem:[#allocation75_spill] sm:$0xff]  ;;  %v10173_v16 = vld [vmem:[#allocation18_spill] sm:$0xff] }
 0x36b   :  { %10145 = vst [vmem:[#allocation151_spill] sm:$0xff] %v8083_v1  ;;  %10147 = vst [vmem:[#allocation152_spill] sm:$0xff] %v8086_v19  ;;  %v3274_v39 = vmul.f32 %v7990_v20, %v10159_v50  ;;  %v3278_v51 = vmul.f32 %v8002_v13, %v10161_v5  ;;  %v3279_v34 = vmul.f32 %v8005_v24, %v10162_v53  ;;  %v10164_v20 = vld [vmem:[#allocation25_spill] sm:$0xff]  ;;  %v10166_v13 = vld [vmem:[#allocation16_spill] sm:$0xff] }
 0x36c   :  { %10149 = vst [vmem:[#allocation153_spill] sm:$0xff] %v8089_v9  ;;  %10150 = vst [vmem:[#allocation154_spill] sm:$0xff] %v8092_v49  ;;  %v3280_v47 = vmul.f32 %v8008_v27, %v10162_v53  ;;  %v3281_v50 = vmul.f32 %v8011_v12, %v10163_v28  ;;  %v3282_v6 = vmul.f32 %v8014_v23, %v10163_v28  ;;  %v10167_v27 = vld [vmem:[#allocation26_spill] sm:$0xff]  ;;  %v10168_v23 = vld [vmem:[#allocation76_spill] sm:$0xff] }
 0x36d   :  { %10151 = vst [vmem:[#allocation155_spill] sm:$0xff] %v8095_v33  ;;  %10152 = vst [vmem:[#allocation156_spill] sm:$0xff] %v8098_v21  ;;  %v3283_v58 = vmul.f32 %v8017_v36, %v10164_v20  ;;  %v3284_v22 = vmul.f32 %v8020_v29, %v10164_v20  ;;  %v3285_v5 = vmul.f32 %v8023_v60, %v10165_v43  ;;  %v10169_v29 = vld [vmem:[#allocation83_spill] sm:$0xff] }
 0x36e   :  { %10153 = vst [vmem:[#allocation157_spill] sm:$0xff] %v8101_v61  ;;  %10154 = vst [vmem:[#allocation158_spill] sm:$0xff] %v8104_v18  ;;  %v3286_v24 = vmul.f32 %v8026_v42, %v10165_v43  ;;  %v3287_v53 = vmul.f32 %v8029_v11, %v10166_v13  ;;  %v3288_v12 = vmul.f32 %v8032_v44, %v10166_v13  ;;  %v10170_v42 = vld [vmem:[#allocation35_spill] sm:$0xff]  ;;  %v10171_v44 = vld [vmem:[#allocation86_spill] sm:$0xff] }
 0x36f   :  { %v3289_v28 = vmul.f32 %v8035_v30, %v10167_v27  ;;  %v3290_v36 = vmul.f32 %v8038_v57, %v10167_v27  ;;  %v3291_v20 = vmul.f32 %v8041_v46, %v10168_v23  ;;  %v3292_v60 = vmul.f32 %v8044_v3, %v10168_v23  ;;  %v10172_v46 = vld [vmem:[#allocation145_spill] sm:$0xff]  ;;  %v10174_v23 = vld [vmem:[#allocation146_spill] sm:$0xff] }
 0x370   :  { %v3293_v43 = vmul.f32 %v8047_v31, %v10169_v29  ;;  %v3294_v11 = vmul.f32 %v8050_v26, %v10169_v29  ;;  %v3295_v13 = vmul.f32 %v8053_v25, %v10170_v42  ;;  %v3296_v30 = vmul.f32 %v8056_v48, %v10170_v42  ;;  %v10175_v31 = vld [vmem:[#allocation147_spill] sm:$0xff]  ;;  %v10178_v48 = vld [vmem:[#allocation28_spill] sm:$0xff] }
 0x371   :  { %v3297_v27 = vmul.f32 %v8059_v7, %v10171_v44  ;;  %v3298_v57 = vmul.f32 %v10172_v46, %v10171_v44  ;;  %v3299_v3 = vmul.f32 %v10174_v23, %v10173_v16  ;;  %v3300_v41 = vmul.f32 %v10175_v31, %v10173_v16  ;;  %v10177_v26 = vld [vmem:[#allocation63_spill] sm:$0xff] }
 0x372   :  { %v3301_v29 = vmul.f32 %v8071_v15, %v10176_v4  ;;  %v3302_v25 = vmul.f32 %v8074_v0, %v10176_v4  ;;  %v3303_v42 = vmul.f32 %v8077_v52, %v10177_v26  ;;  %v3304_v7 = vmul.f32 %v8080_v45, %v10177_v26  ;;  %v10181_v16 = vld [vmem:[#allocation87_spill] sm:$0xff]  ;;  %v10184_v52 = vld [vmem:[#allocation100_spill] sm:$0xff] }
 0x373   :  { %v8188_v44 = vmul.f32 %v8083_v1, %v10178_v48  ;;  %v8192_v23 = vmul.f32 %v8086_v19, %v10178_v48  ;;  %v8196_v15 = vmul.f32 %v8089_v9, %v10181_v16  ;;  %v8200_v4 = vmul.f32 %v8092_v49, %v10181_v16  ;;  %v10194_v19 = vld [vmem:[#allocation120_spill] sm:$0xff] }
 0x374   :  { %v8204_v0 = vmul.f32 %v8095_v33, %v10184_v52  ;;  %v8208_v26 = vmul.f32 %v8098_v21, %v10184_v52  ;;  %v3314_v16 = vmul.f32 %v3266_v2, %v7962_v32  ;;  %v10190_v33 = vld [vmem:[#allocation116_spill] sm:$0xff]  ;;  %v10191_v52 = vld [vmem:[#allocation117_spill] sm:$0xff]  ;;  %v10192_v21 = vld [vmem:[#allocation118_spill] sm:$0xff]  ;;  %v3321_v1 = vmul.f32 %v3273_v59, %v10194_v19 }
 0x375   :  { %10179 = vst [vmem:[#allocation91_spill] sm:$0xff] %v8188_v44  ;;  %10180 = vst [vmem:[#allocation61_spill] sm:$0xff] %v8192_v23  ;;  %v10187_v44 = vld [vmem:[#allocation101_spill] sm:$0xff]  ;;  %v3317_v49 = vmul.f32 %v3269_v40, %v10190_v33  ;;  %v3319_v23 = vmul.f32 %v3271_v54, %v10192_v21  ;;  %v10198_v32 = vld [vmem:[#allocation123_spill] sm:$0xff] }
 0x376   :  { %10182 = vst [vmem:[#allocation53_spill] sm:$0xff] %v8196_v15  ;;  %10183 = vst [vmem:[#allocation94_spill] sm:$0xff] %v8200_v4  ;;  %v8212_v48 = vmul.f32 %v8101_v61, %v10187_v44  ;;  %v8216_v9 = vmul.f32 %v8104_v18, %v10187_v44  ;;  %v3313_v15 = vmul.f32 %v3265_v63, %v7959_v8  ;;  %v10193_v61 = vld [vmem:[#allocation119_spill] sm:$0xff]  ;;  %v10195_v44 = vld [vmem:[#allocation124_spill] sm:$0xff] }
 0x377   :  { %10185 = vst [vmem:[#allocation54_spill] sm:$0xff] %v8204_v0  ;;  %10186 = vst [vmem:[#allocation13_spill] sm:$0xff] %v8208_v26  ;;  %v3315_v4 = vmul.f32 %v3267_v62, %v7969_v55  ;;  %v3316_v0 = vmul.f32 %v3268_v38, %v7972_v56  ;;  %v3318_v26 = vmul.f32 %v3270_v37, %v10191_v52  ;;  %v10196_v18 = vld [vmem:[#allocation121_spill] sm:$0xff]  ;;  %v10197_v8 = vld [vmem:[#allocation122_spill] sm:$0xff] }
 0x378   :  { %10188 = vst [vmem:[#allocation79_spill] sm:$0xff] %v8212_v48  ;;  %10189 = vst [vmem:[#allocation32_spill] sm:$0xff] %v8216_v9  ;;  %v3320_v48 = vmul.f32 %v3272_v35, %v10193_v61  ;;  %v3325_v9 = vmul.f32 %v3277_v10, %v10195_v44  ;;  %v3322_v63 = vmul.f32 %v3274_v39, %v10196_v18  ;;  %v10199_v55 = vld [vmem:[#allocation125_spill] sm:$0xff]  ;;  %v10200_v56 = vld [vmem:[#allocation126_spill] sm:$0xff] }
 0x379   :  { %v3323_v2 = vmul.f32 %v3275_v14, %v10197_v8  ;;  %v3324_v62 = vmul.f32 %v3276_v17, %v10198_v32  ;;  %v3326_v38 = vmul.f32 %v3278_v51, %v10199_v55  ;;  %v3327_v40 = vmul.f32 %v3279_v34, %v10200_v56  ;;  %v10201_v33 = vld [vmem:[#allocation127_spill] sm:$0xff]  ;;  %v10202_v52 = vld [vmem:[#allocation128_spill] sm:$0xff]  ;;  %v10203_v21 = vld [vmem:[#allocation129_spill] sm:$0xff] }
 0x37a   :  { %v3328_v37 = vmul.f32 %v3280_v47, %v10201_v33  ;;  %v3329_v54 = vmul.f32 %v3281_v50, %v10202_v52  ;;  %v3330_v35 = vmul.f32 %v3282_v6, %v10203_v21  ;;  %v10204_v61 = vld [vmem:[#allocation130_spill] sm:$0xff]  ;;  %v10205_v19 = vld [vmem:[#allocation131_spill] sm:$0xff]  ;;  %v10206_v44 = vld [vmem:[#allocation132_spill] sm:$0xff]  ;;  %v3361_v56 = vadd.f32 %v3325_v9, %v3313_v15 }
 0x37b   :  { %v3331_v59 = vmul.f32 %v3283_v58, %v10204_v61  ;;  %v3332_v10 = vmul.f32 %v3284_v22, %v10205_v19  ;;  %v3333_v39 = vmul.f32 %v3285_v5, %v10206_v44  ;;  %v10207_v18 = vld [vmem:[#allocation133_spill] sm:$0xff]  ;;  %v10208_v8 = vld [vmem:[#allocation134_spill] sm:$0xff]  ;;  %v10209_v32 = vld [vmem:[#allocation135_spill] sm:$0xff]  ;;  %v3364_v58 = vadd.f32 %v3326_v38, %v3314_v16 }
 0x37c   :  { %v3334_v14 = vmul.f32 %v3286_v24, %v10207_v18  ;;  %v3335_v17 = vmul.f32 %v3287_v53, %v10208_v8  ;;  %v3336_v51 = vmul.f32 %v3288_v12, %v10209_v32  ;;  %v10210_v55 = vld [vmem:[#allocation136_spill] sm:$0xff]  ;;  %v10211_v47 = vld [vmem:[#allocation137_spill] sm:$0xff]  ;;  %v10212_v50 = vld [vmem:[#allocation138_spill] sm:$0xff]  ;;  %v3367_v18 = vadd.f32 %v3327_v40, %v3315_v4 }
 0x37d   :  { %v3337_v34 = vmul.f32 %v3289_v28, %v10210_v55  ;;  %v3338_v33 = vmul.f32 %v3290_v36, %v10211_v47  ;;  %v3339_v52 = vmul.f32 %v3291_v20, %v10212_v50  ;;  %v10213_v6 = vld [vmem:[#allocation139_spill] sm:$0xff]  ;;  %v10214_v61 = vld [vmem:[#allocation140_spill] sm:$0xff]  ;;  %v10215_v19 = vld [vmem:[#allocation141_spill] sm:$0xff]  ;;  %v3346_v15 = vmul.f32 %v3298_v57, %v10172_v46 }
 0x37e   :  { %v3340_v21 = vmul.f32 %v3292_v60, %v10213_v6  ;;  %v3341_v22 = vmul.f32 %v3293_v43, %v10214_v61  ;;  %v3342_v5 = vmul.f32 %v3294_v11, %v10215_v19  ;;  %v10216_v44 = vld [vmem:[#allocation142_spill] sm:$0xff]  ;;  %v10217_v53 = vld [vmem:[#allocation143_spill] sm:$0xff]  ;;  %v10218_v12 = vld [vmem:[#allocation144_spill] sm:$0xff]  ;;  %v3370_v9 = vadd.f32 %v3328_v37, %v3316_v0 }
 0x37f   :  { %v3343_v24 = vmul.f32 %v3295_v13, %v10216_v44  ;;  %v3344_v8 = vmul.f32 %v3296_v30, %v10217_v53  ;;  %v3345_v32 = vmul.f32 %v3297_v27, %v10218_v12  ;;  %v10219_v36 = vld [vmem:[#allocation146_spill] sm:$0xff]  ;;  %v3348_v20 = vmul.f32 %v3300_v41, %v10175_v31  ;;  %v10220_v38 = vld [vmem:[#allocation148_spill] sm:$0xff]  ;;  %v10221_v61 = vld [vmem:[#allocation149_spill] sm:$0xff] }
 0x380   :  { %v3347_v28 = vmul.f32 %v3299_v3, %v10219_v36  ;;  %v3362_v60 = vadd.f32 %v3361_v56, %v3337_v34  ;;  %v3373_v16 = vadd.f32 %v3329_v54, %v3317_v49  ;;  %v3349_v43 = vmul.f32 %v3301_v29, %v10220_v38  ;;  %v10222_v4 = vld [vmem:[#allocation150_spill] sm:$0xff]  ;;  %v10223_v54 = vld [vmem:[#allocation151_spill] sm:$0xff] }
 0x381   :  { %v3350_v11 = vmul.f32 %v3302_v25, %v10221_v61  ;;  %v3365_v19 = vadd.f32 %v3364_v58, %v3338_v33  ;;  %v3376_v13 = vadd.f32 %v3330_v35, %v3318_v26  ;;  %v3351_v40 = vmul.f32 %v3303_v42, %v10222_v4  ;;  %v10224_v29 = vld [vmem:[#allocation91_spill] sm:$0xff]  ;;  %v10225_v25 = vld [vmem:[#allocation152_spill] sm:$0xff]  ;;  %v10226_v33 = vld [vmem:[#allocation61_spill] sm:$0xff] }
 0x382   :  { %v3352_v30 = vmul.f32 %v3304_v7, %v8080_v45  ;;  %v3368_v27 = vadd.f32 %v3367_v18, %v3339_v52  ;;  %v3379_v12 = vadd.f32 %v3331_v59, %v3319_v23  ;;  %v3371_v57 = vadd.f32 %v3370_v9, %v3340_v21  ;;  %v10227_v58 = vld [vmem:[#allocation153_spill] sm:$0xff]  ;;  %v10229_v23 = vld [vmem:[#allocation154_spill] sm:$0xff]  ;;  %v10235_v9 = vld [vmem:[#allocation156_spill] sm:$0xff] }
 0x383   :  { %v3382_v0 = vadd.f32 %v3332_v10, %v3320_v48  ;;  %v3385_v37 = vadd.f32 %v3333_v39, %v3321_v1  ;;  %v3388_v3 = vadd.f32 %v3334_v14, %v3322_v63  ;;  %v3363_v36 = vadd.f32 %v3362_v60, %v3349_v43  ;;  %v10228_v7 = vld [vmem:[#allocation53_spill] sm:$0xff]  ;;  %v10230_v21 = vld [vmem:[#allocation94_spill] sm:$0xff] }
 0x384   :  { %v3374_v41 = vadd.f32 %v3373_v16, %v3341_v22  ;;  %v3391_v56 = vadd.f32 %v3335_v17, %v3323_v2  ;;  %v3394_v49 = vadd.f32 %v3336_v51, %v3324_v62  ;;  %v3353_v34 = vmul.f32 %v10224_v29, %v10223_v54  ;;  %v10231_v17 = vld [vmem:[#allocation102_spill] sm:$0xff]  ;;  %v10236_v60 = vld [vmem:[#allocation13_spill] sm:$0xff] }
 0x385   :  { %v3354_v26 = vmul.f32 %v10226_v33, %v10225_v25  ;;  %v3366_v35 = vadd.f32 %v3365_v19, %v3350_v11  ;;  %v3377_v42 = vadd.f32 %v3376_v13, %v3342_v5  ;;  %v3355_v18 = vmul.f32 %v10228_v7, %v10227_v58  ;;  %v10233_v19 = vld [vmem:[#allocation155_spill] sm:$0xff]  ;;  %v10234_v22 = vld [vmem:[#allocation54_spill] sm:$0xff]  ;;  %v10251_v7 = vld [vmem:[#allocation105_spill] sm:$0xff] }
 0x386   :  { %v3356_v48 = vmul.f32 %v10230_v21, %v10229_v23  ;;  %v3369_v1 = vadd.f32 %v3368_v27, %v3351_v40  ;;  %v3380_v52 = vadd.f32 %v3379_v12, %v3343_v24  ;;  %v3372_v63 = vadd.f32 %v3371_v57, %v3352_v30  ;;  %v10238_v24 = vld [vmem:[#allocation157_spill] sm:$0xff]  ;;  %v10240_v12 = vld [vmem:[#allocation158_spill] sm:$0xff]  ;;  %v10242_v13 = vld [vmem:[#allocation103_spill] sm:$0xff] }
 0x387   :  { %v3383_v59 = vadd.f32 %v3382_v0, %v3344_v8  ;;  %v3386_v2 = vadd.f32 %v3385_v37, %v3345_v32  ;;  %v3389_v62 = vadd.f32 %v3388_v3, %v3346_v15  ;;  %v3375_v10 = vadd.f32 %v3374_v41, %v3353_v34  ;;  %v10239_v8 = vld [vmem:[#allocation79_spill] sm:$0xff]  ;;  %v10241_v15 = vld [vmem:[#allocation32_spill] sm:$0xff]  ;;  %v10248_v34 = vld [vmem:[#allocation90_spill] sm:$0xff] }
 0x388   :  { %v3392_v39 = vadd.f32 %v3391_v56, %v3347_v28  ;;  %v3395_v14 = vadd.f32 %v3394_v49, %v3348_v20  ;;  %v8267_v51 = vmul.f32 %v10231_v17, %v3363_v36  ;;  %v3357_v5 = vmul.f32 %v10234_v22, %v10233_v19  ;;  %v10245_v3 = vld [vmem:[#allocation104_spill] sm:$0xff] }
 0x389   :  { %v3358_v16 = vmul.f32 %v10236_v60, %v10235_v9  ;;  %v3378_v43 = vadd.f32 %v3377_v42, %v3354_v26  ;;  %v8274_v11 = vmul.f32 %v10231_v17, %v3366_v35  ;;  %v3359_v32 = vmul.f32 %v10239_v8, %v10238_v24  ;;  %v10250_v35 = vld [vmem:[#allocation108_spill] sm:$0xff] }
 0x38a   :  { %10232 = vst [vmem:[#allocation75_spill] sm:$0xff] %v8267_v51  ;;  %v3360_v28 = vmul.f32 %v10241_v15, %v10240_v12  ;;  %v3381_v20 = vadd.f32 %v3380_v52, %v3355_v18  ;;  %v8281_v36 = vmul.f32 %v10242_v13, %v3369_v1  ;;  %v3384_v40 = vadd.f32 %v3383_v59, %v3356_v48  ;;  %v10253_v48 = vld [vmem:[#allocation113_spill] sm:$0xff]  ;;  %v10256_v59 = vld [vmem:[#allocation106_spill] sm:$0xff] }
 0x38b   :  { %10237 = vst [vmem:[#allocation25_spill] sm:$0xff] %v8274_v11  ;;  %v3387_v30 = vadd.f32 %v3386_v2, %v3357_v5  ;;  %v3390_v27 = vadd.f32 %v3389_v62, %v3358_v16  ;;  %v8284_v57 = vmul.f32 %v10242_v13, %v3372_v63  ;;  %v3393_v0 = vadd.f32 %v3392_v39, %v3359_v32  ;;  %v10254_v1 = vld [vmem:[#allocation109_spill] sm:$0xff]  ;;  %v10259_v39 = vld [vmem:[#allocation107_spill] sm:$0xff] }
 0x38c   :  { %10243 = vst [vmem:[#allocation27_spill] sm:$0xff] %v8281_v36  ;;  %v3396_v37 = vadd.f32 %v3395_v14, %v3360_v28  ;;  %v8287_v41 = vmul.f32 %v10245_v3, %v3375_v10  ;;  %v3409_v56 = vmul.f32 2.0, %v8267_v51  ;;  %v8291_v49 = vmul.f32 %v10245_v3, %v3378_v43  ;;  %v10262_v43 = vld [vmem:[#allocation38_spill] sm:$0xff] }
 0x38d   :  { %10244 = vst [vmem:[#allocation16_spill] sm:$0xff] %v8284_v57  ;;  %v3410_v29 = vmul.f32 2.0, %v8274_v11  ;;  %v10249_v33 = vand.u32 2147483647, %v10248_v34  ;;  %v3819_v42 = vmul.f32 1.442695, %v10250_v35  ;;  %v8298_v18 = vmul.f32 %v10251_v7, %v3381_v20 }
 0x38e   :  { %10246 = vst [vmem:[#allocation26_spill] sm:$0xff] %v8287_v41  ;;  %10247 = vst [vmem:[#allocation76_spill] sm:$0xff] %v8291_v49  ;;  %v3411_v21 = vmul.f32 2.0, %v8281_v36  ;;  %5054 = vpow2.f32 %v10253_v48  ;;  %v3821_v52 = vmul.f32 1.442695, %v10254_v1  ;;  %v8304_v63 = vmul.f32 %v10251_v7, %v3384_v40  ;;  %v10264_v20 = vld [vmem:[#allocation112_spill] sm:$0xff] }
 0x38f   :  { %v3815_v26 = vsub.f32 0.0, %v10249_v33  ;;  %10252 = vst [vmem:[#allocation83_spill] sm:$0xff] %v8298_v18  ;;  %v8307_v2 = vmul.f32 %v10256_v59, %v3387_v30  ;;  %v8310_v62 = vmul.f32 %v10256_v59, %v3390_v27  ;;  %v3412_v10 = vmul.f32 2.0, %v8284_v57  ;;  %v10268_v7 = vld [vmem:[#allocation110_spill] sm:$0xff]  ;;  %v10269_v48 = vld [vmem:[#allocation111_spill] sm:$0xff]  ;;  %v10291_v34 = vld [vmem:[#allocation128_spill] sm:$0xff] }
 0x390   :  { %10255 = vst [vmem:[#allocation35_spill] sm:$0xff] %v8304_v63  ;;  %v8314_v14 = vmul.f32 %v10259_v39, %v3393_v0  ;;  %v8317_v17 = vmul.f32 %v10259_v39, %v3396_v37  ;;  %v3413_v22 = vmul.f32 2.0, %v8287_v41  ;;  %v3421_v5 = vadd.f32 1e-08, %v3409_v56 }
 0x391   :  { %10257 = vst [vmem:[#allocation86_spill] sm:$0xff] %v8307_v2  ;;  %10258 = vst [vmem:[#allocation145_spill] sm:$0xff] %v8310_v62  ;;  %v3414_v60 = vmul.f32 2.0, %v8291_v49  ;;  %v3422_v16 = vadd.f32 1e-08, %v3410_v29  ;;  %5056 = vpow2.f32 %v3819_v42  ;;  %v3415_v15 = vmul.f32 2.0, %v8298_v18 }
 0x392   :  { %10260 = vst [vmem:[#allocation18_spill] sm:$0xff] %v8314_v14  ;;  %10261 = vst [vmem:[#allocation147_spill] sm:$0xff] %v8317_v17  ;;  %v10263_v8 = vand.u32 2147483647, %v10262_v43  ;;  %v3423_v28 = vadd.f32 1e-08, %v3411_v21  ;;  %5058 = vpow2.f32 %v3821_v52  ;;  %v8338_v21 = vmul.f32 %v10268_v7, %v10268_v7 }
 0x393   :  { %v8325_v13 = vmul.f32 1.442695, %v10264_v20  ;;  %v3416_v40 = vmul.f32 2.0, %v8304_v63  ;;  %v3417_v30 = vmul.f32 2.0, %v8307_v2  ;;  %v3418_v27 = vmul.f32 2.0, %v8310_v62  ;;  %v10290_v43 = vld [vmem:[#allocation127_spill] sm:$0xff] }
 0x394   :  { %v3816_v32 = vsub.f32 0.0, %v10263_v8  ;;  %v3424_v0 = vadd.f32 1e-08, %v3412_v10  ;;  %v3419_v37 = vmul.f32 2.0, %v8314_v14  ;;  %v3420_v3 = vmul.f32 2.0, %v8317_v17  ;;  %v10299_v14 = vld [vmem:[#allocation134_spill] sm:$0xff] }
 0x395   :  { %10265 = vst [vmem:[#allocation92_spill] sm:$0xff] %v8325_v13  ;;  %v3425_v56 = vadd.f32 1e-08, %v3413_v22  ;;  %5060 = vrcp.f32 %v3421_v5  ;;  %v3426_v29 = vadd.f32 1e-08, %v3414_v60  ;;  %v8342_v1 = vmul.f32 %v10269_v48, %v10269_v48  ;;  %v10271_v5 = vld [vmem:[#allocation114_spill] sm:$0xff] }
 0x396   :  { %5062 = vrcp.f32 %v3422_v16  ;;  %v8332_v33 = vmul.f32 1.442695, %v3815_v26  ;;  %v8334_v35 = vmul.f32 1.442695, %v3816_v32  ;;  %v3427_v42 = vadd.f32 1e-08, %v3415_v15 }
 0x397   :  { %5064 = vrcp.f32 %v3423_v28  ;;  %v3428_v52 = vadd.f32 1e-08, %v3416_v40  ;;  %v3429_v59 = vadd.f32 1e-08, %v3417_v30  ;;  %v3430_v10 = vadd.f32 1e-08, %v3418_v27 }
 0x398   :  { %10266 = vst [vmem:[#allocation63_spill] sm:$0xff] %v8332_v33  ;;  %10267 = vst [vmem:[#allocation28_spill] sm:$0xff] %v8334_v35  ;;  %5066 = vrcp.f32 %v3424_v0  ;;  %v8344_v39 = vpop.eup %5054  ;;  %v3431_v26 = vadd.f32 1e-08, %v3419_v37  ;;  %v3432_v22 = vadd.f32 1e-08, %v3420_v3  ;;  %v8348_v60 = vmul.f32 %v10271_v5, %v10271_v5 }
 0x399   :  { %10270 = vst [vmem:[#allocation87_spill] sm:$0xff] %v8344_v39  ;;  %5068 = vrcp.f32 %v3425_v56  ;;  %v10272_v16 = vld [vmem:[#allocation115_spill] sm:$0xff]  ;;  %v10273_v32 = vld [vmem:[#allocation116_spill] sm:$0xff]  ;;  %v10274_v28 = vld [vmem:[#allocation117_spill] sm:$0xff]  ;;  %v3495_v13 = vmul.f32 %v10222_v4, %v10222_v4  ;;  %v3499_v36 = vmul.f32 %v10227_v58, %v10227_v58  ;;  %v3501_v4 = vmul.f32 %v10233_v19, %v10233_v19 }
 0x39a   :  { %5070 = vrcp.f32 %v3426_v29  ;;  %v8352_v8 = vmul.f32 %v10272_v16, %v10272_v16  ;;  %v8356_v15 = vmul.f32 %v10273_v32, %v10273_v32  ;;  %v8360_v20 = vmul.f32 %v10274_v28, %v10274_v28  ;;  %v10275_v40 = vld [vmem:[#allocation118_spill] sm:$0xff]  ;;  %v10276_v27 = vld [vmem:[#allocation119_spill] sm:$0xff]  ;;  %v10277_v37 = vld [vmem:[#allocation120_spill] sm:$0xff] }
 0x39b   :  { %5072 = vrcp.f32 %v3427_v42  ;;  %v8364_v30 = vmul.f32 %v10275_v40, %v10275_v40  ;;  %v8368_v0 = vmul.f32 %v10276_v27, %v10276_v27  ;;  %v8372_v3 = vmul.f32 %v10277_v37, %v10277_v37  ;;  %v8374_v56 = vpop.eup %5056  ;;  %v10280_v29 = vld [vmem:[#allocation121_spill] sm:$0xff]  ;;  %v10282_v42 = vld [vmem:[#allocation122_spill] sm:$0xff]  ;;  %v10284_v5 = vld [vmem:[#allocation123_spill] sm:$0xff] }
 0x39c   :  { %10279 = vst [vmem:[#allocation101_spill] sm:$0xff] %v8374_v56  ;;  %5074 = vrcp.f32 %v3428_v52  ;;  %v8378_v7 = vmul.f32 %v10280_v29, %v10280_v29  ;;  %v8382_v48 = vmul.f32 %v10282_v42, %v10282_v42  ;;  %v8386_v16 = vmul.f32 %v10284_v5, %v10284_v5  ;;  %v8388_v32 = vpop.eup %5058  ;;  %v10287_v28 = vld [vmem:[#allocation124_spill] sm:$0xff]  ;;  %v10288_v27 = vld [vmem:[#allocation125_spill] sm:$0xff]  ;;  %v10289_v37 = vld [vmem:[#allocation126_spill] sm:$0xff] }
 0x39d   :  { %10278 = vst [vmem:[#allocation100_spill] sm:$0xff] %v8372_v3  ;;  %10286 = vst [vmem:[#allocation139_spill] sm:$0xff] %v8388_v32  ;;  %5076 = vrcp.f32 %v3429_v59  ;;  %v3469_v40 = vmul.f32 %v10287_v28, %v10287_v28  ;;  %v3470_v52 = vmul.f32 %v10288_v27, %v10288_v27  ;;  %v3471_v29 = vmul.f32 %v10289_v37, %v10289_v37  ;;  %v10292_v35 = vld [vmem:[#allocation129_spill] sm:$0xff]  ;;  %v10294_v28 = vld [vmem:[#allocation130_spill] sm:$0xff] }
 0x39e   :  { %10281 = vst [vmem:[#allocation136_spill] sm:$0xff] %v8378_v7  ;;  %10283 = vst [vmem:[#allocation137_spill] sm:$0xff] %v8382_v48  ;;  %5078 = vrcp.f32 %v3430_v10  ;;  %v3472_v42 = vmul.f32 %v10290_v43, %v10290_v43  ;;  %v3473_v5 = vmul.f32 %v10291_v34, %v10291_v34  ;;  %v3474_v32 = vmul.f32 %v10292_v35, %v10292_v35  ;;  %v10295_v27 = vld [vmem:[#allocation131_spill] sm:$0xff]  ;;  %v10296_v37 = vld [vmem:[#allocation132_spill] sm:$0xff] }
 0x39f   :  { %10285 = vst [vmem:[#allocation138_spill] sm:$0xff] %v8386_v16  ;;  %v8402_v59 = vpop.eup %5060  ;;  %5080 = vrcp.f32 %v3431_v26  ;;  %v3475_v56 = vmul.f32 %v10294_v28, %v10294_v28  ;;  %v3476_v39 = vmul.f32 %v10295_v27, %v10295_v27  ;;  %v3477_v10 = vmul.f32 %v10296_v37, %v10296_v37  ;;  %v10298_v43 = vld [vmem:[#allocation133_spill] sm:$0xff]  ;;  %v10300_v62 = vld [vmem:[#allocation135_spill] sm:$0xff]  ;;  %v10307_v33 = vld [vmem:[#allocation146_spill] sm:$0xff] }
 0x3a0   :  { %10293 = vst [vmem:[#allocation142_spill] sm:$0xff] %v8402_v59  ;;  %v8410_v17 = vpop.eup %5062  ;;  %5082 = vrcp.f32 %v3432_v22  ;;  %v3478_v34 = vmul.f32 %v10298_v43, %v10298_v43  ;;  %v3479_v35 = vmul.f32 %v10299_v14, %v10299_v14  ;;  %v3480_v26 = vmul.f32 %v10300_v62, %v10300_v62  ;;  %v10303_v14 = vld [vmem:[#allocation140_spill] sm:$0xff]  ;;  %v10304_v62 = vld [vmem:[#allocation141_spill] sm:$0xff] }
 0x3a1   :  { %10297 = vst [vmem:[#allocation143_spill] sm:$0xff] %v8410_v17  ;;  %v8418_v2 = vpop.eup %5064  ;;  %v3481_v28 = vmul.f32 %v10210_v55, %v10210_v55  ;;  %v3482_v27 = vmul.f32 %v10211_v47, %v10211_v47  ;;  %v3483_v22 = vmul.f32 %v10212_v50, %v10212_v50  ;;  %v3484_v37 = vmul.f32 %v10213_v6, %v10213_v6  ;;  %v10306_v50 = vld [vmem:[#allocation144_spill] sm:$0xff] }
 0x3a2   :  { %10301 = vst [vmem:[#allocation148_spill] sm:$0xff] %v8418_v2  ;;  %v8428_v43 = vpop.eup %5066  ;;  %v3485_v63 = vmul.f32 %v10303_v14, %v10303_v14  ;;  %v3486_v18 = vmul.f32 %v10304_v62, %v10304_v62  ;;  %v3487_v55 = vmul.f32 %v10216_v44, %v10216_v44  ;;  %v3488_v47 = vmul.f32 %v10217_v53, %v10217_v53 }
 0x3a3   :  { %10302 = vst [vmem:[#allocation149_spill] sm:$0xff] %v8428_v43  ;;  %v8438_v49 = vpop.eup %5068  ;;  %v3489_v41 = vmul.f32 %v10306_v50, %v10306_v50  ;;  %v3490_v6 = vmul.f32 %v10172_v46, %v10172_v46  ;;  %v3491_v14 = vmul.f32 %v10307_v33, %v10307_v33  ;;  %v3492_v62 = vmul.f32 %v10175_v31, %v10175_v31 }
 0x3a4   :  { %10305 = vst [vmem:[#allocation150_spill] sm:$0xff] %v8438_v49  ;;  %v5071_v57 = vpop.eup %5070  ;;  %v3493_v44 = vmul.f32 %v10220_v38, %v10220_v38  ;;  %v3494_v53 = vmul.f32 %v10221_v61, %v10221_v61  ;;  %v3496_v50 = vmul.f32 %v8080_v45, %v8080_v45  ;;  %v3497_v33 = vmul.f32 %v10223_v54, %v10223_v54 }
 0x3a5   :  { %v5073_v46 = vpop.eup %5072  ;;  %v3498_v31 = vmul.f32 %v10225_v25, %v10225_v25  ;;  %v3500_v38 = vmul.f32 %v10229_v23, %v10229_v23  ;;  %v3502_v45 = vmul.f32 %v10235_v9, %v10235_v9  ;;  %v3503_v11 = vmul.f32 %v10238_v24, %v10238_v24 }
 0x3a6   :  { %v5075_v61 = vpop.eup %5074  ;;  %v3504_v54 = vmul.f32 %v10240_v12, %v10240_v12  ;;  %v3505_v58 = vmul.f32 %v8402_v59, %v8338_v21  ;;  %v3506_v23 = vmul.f32 %v8410_v17, %v8342_v1  ;;  %v3507_v51 = vmul.f32 %v8418_v2, %v8348_v60 }
 0x3a7   :  { %v5077_v25 = vpop.eup %5076  ;;  %v3508_v19 = vmul.f32 %v8428_v43, %v8352_v8  ;;  %v3509_v24 = vmul.f32 %v8438_v49, %v8356_v15  ;;  %v3510_v16 = vmul.f32 %v5071_v57, %v8360_v20  ;;  %v3511_v12 = vmul.f32 %v5073_v46, %v8364_v30  ;;  %v10308_v15 = vld [vmem:[#allocation100_spill] sm:$0xff] }
 0x3a8   :  { %v5079_v9 = vpop.eup %5078  ;;  %v3517_v48 = vmul.f32 %v8402_v59, %v3469_v40  ;;  %v3512_v7 = vmul.f32 %v5075_v61, %v8368_v0  ;;  %v3518_v1 = vmul.f32 %v8410_v17, %v3470_v52  ;;  %v3519_v60 = vmul.f32 %v8418_v2, %v3471_v29  ;;  %v10310_v0 = vld [vmem:[#allocation136_spill] sm:$0xff] }
 0x3a9   :  { %v5081_v21 = vpop.eup %5080  ;;  %v3520_v3 = vmul.f32 %v8428_v43, %v3472_v42  ;;  %v3513_v49 = vmul.f32 %v5077_v25, %v10308_v15  ;;  %v3522_v40 = vmul.f32 %v5071_v57, %v3474_v32  ;;  %v3523_v59 = vmul.f32 %v5073_v46, %v3475_v56  ;;  %v10311_v42 = vld [vmem:[#allocation137_spill] sm:$0xff]  ;;  %v10313_v32 = vld [vmem:[#allocation143_spill] sm:$0xff] }
 0x3aa   :  { %v5083_v8 = vpop.eup %5082  ;;  %v3514_v17 = vmul.f32 %v5079_v9, %v10310_v0  ;;  %v3524_v52 = vmul.f32 %v5075_v61, %v3476_v39  ;;  %v3525_v2 = vmul.f32 %v5077_v25, %v3477_v10  ;;  %v3526_v29 = vmul.f32 %v5079_v9, %v3478_v34  ;;  %v10314_v0 = vld [vmem:[#allocation138_spill] sm:$0xff]  ;;  %v10315_v34 = vld [vmem:[#allocation148_spill] sm:$0xff] }
 0x3ab   :  { %v10309_v20 = vld [vmem:[#allocation150_spill] sm:$0xff]  ;;  %v3515_v43 = vmul.f32 %v5081_v21, %v10311_v42  ;;  %v3527_v15 = vmul.f32 %v5081_v21, %v3479_v35  ;;  %v3530_v56 = vmul.f32 %v10313_v32, %v3482_v27  ;;  %v3516_v39 = vmul.f32 %v5083_v8, %v10314_v0  ;;  %v10316_v35 = vld [vmem:[#allocation149_spill] sm:$0xff] }
 0x3ac   :  { %v3521_v30 = vmul.f32 %v10309_v20, %v3473_v5  ;;  %v10312_v5 = vld [vmem:[#allocation142_spill] sm:$0xff]  ;;  %v3528_v10 = vmul.f32 %v5083_v8, %v3480_v26  ;;  %v3531_v42 = vmul.f32 %v10315_v34, %v3483_v22  ;;  %v3534_v32 = vmul.f32 %v5071_v57, %v3486_v18  ;;  %v10323_v18 = vld [vmem:[#allocation143_spill] sm:$0xff] }
 0x3ad   :  { %v3529_v20 = vmul.f32 %v10312_v5, %v3481_v28  ;;  %v3532_v5 = vmul.f32 %v10316_v35, %v3484_v37  ;;  %v10317_v28 = vld [vmem:[#allocation150_spill] sm:$0xff]  ;;  %v3535_v0 = vmul.f32 %v5073_v46, %v3487_v55  ;;  %v3536_v26 = vmul.f32 %v5075_v61, %v3488_v47  ;;  %v10324_v47 = vld [vmem:[#allocation148_spill] sm:$0xff] }
 0x3ae   :  { %v3533_v27 = vmul.f32 %v10317_v28, %v3485_v63  ;;  %v8499_v22 = vmul.f32 %v5077_v25, %v3489_v41  ;;  %v8501_v34 = vmul.f32 %v5079_v9, %v3490_v6  ;;  %v8503_v35 = vmul.f32 %v5081_v21, %v3491_v14  ;;  %v10322_v28 = vld [vmem:[#allocation142_spill] sm:$0xff] }
 0x3af   :  { %v8505_v37 = vmul.f32 %v5083_v8, %v3492_v62  ;;  %v8508_v63 = vmul.f32 %v10322_v28, %v3493_v44  ;;  %v8511_v55 = vmul.f32 %v10323_v18, %v3494_v53  ;;  %v8514_v41 = vmul.f32 %v10324_v47, %v3495_v13 }
 0x3b0   :  { %10318 = vst [vmem:[#allocation151_spill] sm:$0xff] %v8499_v22  ;;  %10319 = vst [vmem:[#allocation91_spill] sm:$0xff] %v8501_v34  ;;  %v10325_v22 = vld [vmem:[#allocation149_spill] sm:$0xff]  ;;  %v10327_v34 = vld [vmem:[#allocation150_spill] sm:$0xff]  ;;  %v8524_v62 = vmul.f32 %v5073_v46, %v3499_v36  ;;  %v8528_v44 = vmul.f32 %v5077_v25, %v3501_v4  ;;  %v8530_v28 = vmul.f32 %v5079_v9, %v3502_v45 }
 0x3b1   :  { %10320 = vst [vmem:[#allocation152_spill] sm:$0xff] %v8503_v35  ;;  %10321 = vst [vmem:[#allocation61_spill] sm:$0xff] %v8505_v37  ;;  %v8517_v6 = vmul.f32 %v10325_v22, %v3496_v50  ;;  %v8520_v14 = vmul.f32 %v10327_v34, %v3497_v33  ;;  %v8522_v35 = vmul.f32 %v5071_v57, %v3498_v31 }
 0x3b2   :  { %v8526_v37 = vmul.f32 %v5075_v61, %v3500_v38  ;;  %v8532_v53 = vmul.f32 %v5081_v21, %v3503_v11  ;;  %v3553_v13 = vadd.f32 %v3506_v23, %v3505_v58  ;;  %v3560_v18 = vadd.f32 %v3508_v19, %v3507_v51 }
 0x3b3   :  { %10326 = vst [vmem:[#allocation153_spill] sm:$0xff] %v8517_v6  ;;  %v3567_v47 = vadd.f32 %v3510_v16, %v3509_v24  ;;  %v3574_v50 = vadd.f32 %v3512_v7, %v3511_v12  ;;  %v3581_v22 = vadd.f32 %v3514_v17, %v3513_v49  ;;  %v8534_v6 = vmul.f32 %v5083_v8, %v3504_v54 }
 0x3b4   :  { %v3588_v33 = vadd.f32 %v3516_v39, %v3515_v43  ;;  %v3595_v57 = vadd.f32 %v3518_v1, %v3517_v48  ;;  %v3602_v31 = vadd.f32 %v3520_v3, %v3519_v60  ;;  %v3609_v36 = vadd.f32 %v3522_v40, %v3521_v30 }
 0x3b5   :  { %v3616_v46 = vadd.f32 %v3524_v52, %v3523_v59  ;;  %v3623_v38 = vadd.f32 %v3526_v29, %v3525_v2  ;;  %v3630_v61 = vadd.f32 %v3528_v10, %v3527_v15  ;;  %v3554_v4 = vrot.slane %v3553_v13, 4 }
 0x3b6   :  { %v3637_v25 = vadd.f32 %v3530_v56, %v3529_v20  ;;  %v3644_v45 = vadd.f32 %v3532_v5, %v3531_v42  ;;  %v3651_v9 = vadd.f32 %v3534_v32, %v3533_v27  ;;  %v3561_v11 = vrot.slane %v3560_v18, 4 }
 0x3b7   :  { %v3568_v21 = vrot.slane %v3567_v47, 4  ;;  %v3575_v58 = vrot.slane %v3574_v50, 4  ;;  %v3582_v51 = vrot.slane %v3581_v22, 4  ;;  %v3589_v16 = vrot.slane %v3588_v33, 4 }
 0x3b8   :  { %v3596_v7 = vrot.slane %v3595_v57, 4  ;;  %v3603_v49 = vrot.slane %v3602_v31, 4  ;;  %v3658_v17 = vadd.f32 %v3536_v26, %v3535_v0  ;;  %v3610_v54 = vrot.slane %v3609_v36, 4 }
 0x3b9   :  { %v3617_v43 = vrot.slane %v3616_v46, 4  ;;  %v3624_v48 = vrot.slane %v3623_v38, 4  ;;  %v3631_v3 = vrot.slane %v3630_v61, 4  ;;  %v3555_v23 = vadd.f32 %v3554_v4, %v3553_v13 }
 0x3ba   :  { %v3638_v59 = vrot.slane %v3637_v25, 4  ;;  %v3645_v2 = vrot.slane %v3644_v45, 4  ;;  %v3652_v19 = vrot.slane %v3651_v9, 4  ;;  %v3562_v24 = vadd.f32 %v3561_v11, %v3560_v18 }
 0x3bb   :  { %v3569_v12 = vadd.f32 %v3568_v21, %v3567_v47  ;;  %v3576_v1 = vadd.f32 %v3575_v58, %v3574_v50  ;;  %v3583_v60 = vadd.f32 %v3582_v51, %v3581_v22  ;;  %v3590_v8 = vadd.f32 %v3589_v16, %v3588_v33 }
 0x3bc   :  { %v3597_v20 = vadd.f32 %v3596_v7, %v3595_v57  ;;  %v3604_v30 = vadd.f32 %v3603_v49, %v3602_v31  ;;  %v3659_v40 = vrot.slane %v3658_v17, 4  ;;  %v3611_v52 = vadd.f32 %v3610_v54, %v3609_v36 }
 0x3bd   :  { %v3618_v29 = vadd.f32 %v3617_v43, %v3616_v46  ;;  %v3625_v15 = vadd.f32 %v3624_v48, %v3623_v38  ;;  %v3632_v5 = vadd.f32 %v3631_v3, %v3630_v61  ;;  %v3556_v32 = vrot.slane %v3555_v23, 2 }
 0x3be   :  { %v3639_v56 = vadd.f32 %v3638_v59, %v3637_v25  ;;  %v3646_v39 = vadd.f32 %v3645_v2, %v3644_v45  ;;  %v3653_v10 = vadd.f32 %v3652_v19, %v3651_v9  ;;  %v3563_v34 = vrot.slane %v3562_v24, 2 }
 0x3bf   :  { %v3570_v42 = vrot.slane %v3569_v12, 2  ;;  %v3577_v27 = vrot.slane %v3576_v1, 2  ;;  %v3584_v0 = vrot.slane %v3583_v60, 2  ;;  %v3591_v26 = vrot.slane %v3590_v8, 2 }
 0x3c0   :  { %v3598_v13 = vrot.slane %v3597_v20, 2  ;;  %v3605_v18 = vrot.slane %v3604_v30, 2  ;;  %v3660_v47 = vadd.f32 %v3659_v40, %v3658_v17  ;;  %v3612_v50 = vrot.slane %v3611_v52, 2 }
 0x3c1   :  { %v3619_v22 = vrot.slane %v3618_v29, 2  ;;  %v3626_v33 = vrot.slane %v3625_v15, 2  ;;  %v3633_v57 = vrot.slane %v3632_v5, 2  ;;  %v3557_v31 = vadd.f32 %v3556_v32, %v3555_v23 }
 0x3c2   :  { %v3640_v36 = vrot.slane %v3639_v56, 2  ;;  %v3647_v46 = vrot.slane %v3646_v39, 2  ;;  %v3654_v38 = vrot.slane %v3653_v10, 2  ;;  %v3564_v61 = vadd.f32 %v3563_v34, %v3562_v24 }
 0x3c3   :  { %v3571_v4 = vadd.f32 %v3570_v42, %v3569_v12  ;;  %v3578_v25 = vadd.f32 %v3577_v27, %v3576_v1  ;;  %v3585_v45 = vadd.f32 %v3584_v0, %v3583_v60  ;;  %v3592_v9 = vadd.f32 %v3591_v26, %v3590_v8 }
 0x3c4   :  { %v3599_v11 = vadd.f32 %v3598_v13, %v3597_v20  ;;  %v3606_v21 = vadd.f32 %v3605_v18, %v3604_v30  ;;  %v3661_v58 = vrot.slane %v3660_v47, 2  ;;  %v3613_v51 = vadd.f32 %v3612_v50, %v3611_v52 }
 0x3c5   :  { %v3620_v16 = vadd.f32 %v3619_v22, %v3618_v29  ;;  %v3627_v7 = vadd.f32 %v3626_v33, %v3625_v15  ;;  %v3634_v49 = vadd.f32 %v3633_v57, %v3632_v5  ;;  %v3558_v17 = vrot.slane %v3557_v31, 1  ;;  %v10328_v33 = vld [vmem:[#allocation151_spill] sm:$0xff] }
 0x3c6   :  { %v3641_v54 = vadd.f32 %v3640_v36, %v3639_v56  ;;  %v3648_v43 = vadd.f32 %v3647_v46, %v3646_v39  ;;  %v3655_v48 = vadd.f32 %v3654_v38, %v3653_v10  ;;  %v3565_v3 = vrot.slane %v3564_v61, 1  ;;  %v10329_v57 = vld [vmem:[#allocation91_spill] sm:$0xff]  ;;  %v10331_v38 = vld [vmem:[#allocation25_spill] sm:$0xff] }
 0x3c7   :  { %v3572_v23 = vrot.slane %v3571_v4, 1  ;;  %v3579_v59 = vrot.slane %v3578_v25, 1  ;;  %v3586_v2 = vrot.slane %v3585_v45, 1  ;;  %v3593_v19 = vrot.slane %v3592_v9, 1  ;;  %v10330_v36 = vld [vmem:[#allocation75_spill] sm:$0xff] }
 0x3c8   :  { %v3600_v24 = vrot.slane %v3599_v11, 1  ;;  %v3607_v12 = vrot.slane %v3606_v21, 1  ;;  %v3662_v1 = vadd.f32 %v3661_v58, %v3660_v47  ;;  %v3614_v60 = vrot.slane %v3613_v51, 1 }
 0x3c9   :  { %v3621_v8 = vrot.slane %v3620_v16, 1  ;;  %v3628_v20 = vrot.slane %v3627_v7, 1  ;;  %v3635_v30 = vrot.slane %v3634_v49, 1  ;;  %v8536_v40 = vadd.f32 %v3558_v17, %v3557_v31 }
 0x3ca   :  { %v3642_v52 = vrot.slane %v3641_v54, 1  ;;  %v3649_v29 = vrot.slane %v3648_v43, 1  ;;  %v3656_v15 = vrot.slane %v3655_v48, 1  ;;  %v8538_v5 = vadd.f32 %v3565_v3, %v3564_v61 }
 0x3cb   :  { %v8540_v32 = vadd.f32 %v3572_v23, %v3571_v4  ;;  %v8542_v56 = vadd.f32 %v3579_v59, %v3578_v25  ;;  %v8544_v39 = vadd.f32 %v3586_v2, %v3585_v45  ;;  %v8546_v10 = vadd.f32 %v3593_v19, %v3592_v9  ;;  %v10332_v4 = vld [vmem:[#allocation27_spill] sm:$0xff]  ;;  %v10333_v45 = vld [vmem:[#allocation92_spill] sm:$0xff] }
 0x3cc   :  { %v8548_v34 = vadd.f32 %v3600_v24, %v3599_v11  ;;  %v8550_v42 = vadd.f32 %v3607_v12, %v3606_v21  ;;  %v3663_v27 = vrot.slane %v3662_v1, 1  ;;  %v8552_v0 = vadd.f32 %v3614_v60, %v3613_v51  ;;  %v10334_v9 = vld [vmem:[#allocation152_spill] sm:$0xff]  ;;  %v10335_v11 = vld [vmem:[#allocation61_spill] sm:$0xff]  ;;  %v10342_v24 = vld [vmem:[#allocation35_spill] sm:$0xff] }
 0x3cd   :  { %v8554_v26 = vadd.f32 %v3621_v8, %v3620_v16  ;;  %v8556_v13 = vadd.f32 %v3628_v20, %v3627_v7  ;;  %v8558_v18 = vadd.f32 %v3635_v30, %v3634_v49  ;;  %v8560_v47 = vadd.f32 %v3642_v52, %v3641_v54  ;;  %v10336_v51 = vld [vmem:[#allocation16_spill] sm:$0xff]  ;;  %v10337_v7 = vld [vmem:[#allocation63_spill] sm:$0xff]  ;;  %v10338_v49 = vld [vmem:[#allocation153_spill] sm:$0xff] }
 0x3ce   :  { %v8562_v50 = vadd.f32 %v3649_v29, %v3648_v43  ;;  %v8564_v22 = vadd.f32 %v3656_v15, %v3655_v48  ;;  %v3665_v31 = vadd.f32 %v10329_v57, %v10328_v33  ;;  %v3721_v46 = vadd.f32 1e-08, %v10330_v36  ;;  %v10339_v43 = vld [vmem:[#allocation26_spill] sm:$0xff]  ;;  %v10344_v20 = vld [vmem:[#allocation145_spill] sm:$0xff]  ;;  %v10346_v57 = vld [vmem:[#allocation147_spill] sm:$0xff] }
 0x3cf   :  { %v3722_v61 = vadd.f32 1e-08, %v10331_v38  ;;  %v3723_v25 = vadd.f32 1e-08, %v10332_v4  ;;  %5084 = vpow2.f32 %v10333_v45  ;;  %v3672_v21 = vadd.f32 %v10335_v11, %v10334_v9 }
 0x3d0   :  { %v3679_v58 = vadd.f32 %v8511_v55, %v8508_v63  ;;  %v3724_v16 = vadd.f32 1e-08, %v10336_v51  ;;  %5086 = vpow2.f32 %v10337_v7  ;;  %v3686_v17 = vadd.f32 %v10338_v49, %v8514_v41  ;;  %v10340_v63 = vld [vmem:[#allocation76_spill] sm:$0xff]  ;;  %v10341_v41 = vld [vmem:[#allocation83_spill] sm:$0xff] }
 0x3d1   :  { %v3693_v54 = vadd.f32 %v8522_v35, %v8520_v14  ;;  %v3725_v48 = vadd.f32 1e-08, %v10339_v43  ;;  %5088 = vlog2.f32 %v3721_v46  ;;  %v3700_v3 = vadd.f32 %v8526_v37, %v8524_v62  ;;  %v10343_v62 = vld [vmem:[#allocation86_spill] sm:$0xff] }
 0x3d2   :  { %v3707_v23 = vadd.f32 %v8530_v28, %v8528_v44  ;;  %v3726_v55 = vadd.f32 1e-08, %v10340_v63  ;;  %5090 = vlog2.f32 %v3722_v61  ;;  %v3666_v59 = vrot.slane %v3665_v31, 4 }
 0x3d3   :  { %v3714_v2 = vadd.f32 %v8534_v6, %v8532_v53  ;;  %v3727_v19 = vadd.f32 1e-08, %v10341_v41  ;;  %5092 = vlog2.f32 %v3723_v25  ;;  %v3673_v35 = vrot.slane %v3672_v21, 4  ;;  %v10345_v53 = vld [vmem:[#allocation18_spill] sm:$0xff] }
 0x3d4   :  { %v3680_v14 = vrot.slane %v3679_v58, 4  ;;  %v3728_v12 = vadd.f32 1e-08, %v10342_v24  ;;  %5094 = vlog2.f32 %v3724_v16  ;;  %v3687_v60 = vrot.slane %v3686_v17, 4 }
 0x3d5   :  { %v3694_v37 = vrot.slane %v3693_v54, 4  ;;  %v3729_v8 = vadd.f32 1e-08, %v10343_v62  ;;  %5096 = vlog2.f32 %v3725_v48  ;;  %v3701_v44 = vrot.slane %v3700_v3, 4 }
 0x3d6   :  { %v3708_v28 = vrot.slane %v3707_v23, 4  ;;  %v3730_v30 = vadd.f32 1e-08, %v10344_v20  ;;  %5098 = vlog2.f32 %v3726_v55  ;;  %v3667_v52 = vadd.f32 %v3666_v59, %v3665_v31  ;;  %v10347_v31 = vld [vmem:[#allocation87_spill] sm:$0xff] }
 0x3d7   :  { %v3715_v6 = vrot.slane %v3714_v2, 4  ;;  %v3731_v29 = vadd.f32 1e-08, %v10345_v53  ;;  %5100 = vlog2.f32 %v3727_v19  ;;  %v8595_v15 = vadd.f32 %v3663_v27, %v3662_v1 }
 0x3d8   :  { %v3674_v33 = vadd.f32 %v3673_v35, %v3672_v21  ;;  %v3732_v36 = vadd.f32 1e-08, %v10346_v57  ;;  %5102 = vlog2.f32 %v3728_v12  ;;  %v3681_v38 = vadd.f32 %v3680_v14, %v3679_v58  ;;  %v10348_v21 = vld [vmem:[#allocation101_spill] sm:$0xff] }
 0x3d9   :  { %v5085_v46 = vpop.eup %5084  ;;  %v3688_v61 = vadd.f32 %v3687_v60, %v3686_v17  ;;  %v8598_v4 = vadd.f32 %v3694_v37, %v3693_v54  ;;  %5104 = vlog2.f32 %v3729_v8  ;;  %v3702_v45 = vadd.f32 %v3701_v44, %v3700_v3  ;;  %v10349_v17 = vld [vmem:[#allocation139_spill] sm:$0xff] }
 0x3da   :  { %v5087_v25 = vpop.eup %5086  ;;  %v8600_v9 = vadd.f32 %v3708_v28, %v3707_v23  ;;  %5106 = vlog2.f32 %v3730_v30  ;;  %v3829_v11 = vadd.f32 1.0, %v10347_v31  ;;  %v3668_v1 = vrot.slane %v3667_v52, 2  ;;  %v10350_v23 = vld [vmem:[#allocation28_spill] sm:$0xff] }
 0x3db   :  { %v5089_v51 = vpop.eup %5088  ;;  %v8603_v27 = vadd.f32 %v3715_v6, %v3714_v2  ;;  %5108 = vlog2.f32 %v3731_v29  ;;  %v3830_v16 = vadd.f32 1.0, %v10348_v21  ;;  %v3675_v58 = vrot.slane %v3674_v33, 2 }
 0x3dc   :  { %v5091_v7 = vpop.eup %5090  ;;  %v3734_v49 = vmul.f32 0.6931472, %v5089_v51  ;;  %5110 = vlog2.f32 %v3732_v36  ;;  %v3831_v54 = vadd.f32 1.0, %v10349_v17  ;;  %v3682_v48 = vrot.slane %v3681_v38, 2 }
 0x3dd   :  { %v5093_v43 = vpop.eup %5092  ;;  %v3736_v3 = vmul.f32 0.6931472, %v5091_v7  ;;  %5112 = vpow2.f32 %v10350_v23  ;;  %v3832_v63 = vadd.f32 1.0, %v5085_v46  ;;  %v3689_v59 = vrot.slane %v3688_v61, 2 }
 0x3de   :  { %v5095_v55 = vpop.eup %5094  ;;  %v3738_v41 = vmul.f32 0.6931472, %v5093_v43  ;;  %v3833_v2 = vadd.f32 1.0, %v5087_v25  ;;  %5114 = vlog2.f32 %v3829_v11  ;;  %v3696_v35 = vrot.slane %v8598_v4, 2 }
 0x3df   :  { %v5097_v19 = vpop.eup %5096  ;;  %v3740_v14 = vmul.f32 0.6931472, %v5095_v55  ;;  %v3757_v24 = vadd.f32 %v3736_v3, %v3734_v49  ;;  %5116 = vlog2.f32 %v3830_v16  ;;  %v3703_v60 = vrot.slane %v3702_v45, 2 }
 0x3e0   :  { %v5099_v12 = vpop.eup %5098  ;;  %v3710_v37 = vrot.slane %v8600_v9, 2  ;;  %v3742_v62 = vmul.f32 0.6931472, %v5097_v19  ;;  %5118 = vlog2.f32 %v3831_v54  ;;  %v8610_v6 = vadd.f32 %v3668_v1, %v3667_v52 }
 0x3e1   :  { %v5101_v8 = vpop.eup %5100  ;;  %v3744_v44 = vmul.f32 0.6931472, %v5099_v12  ;;  %v3758_v28 = vrot.slane %v3757_v24, 4  ;;  %v3764_v20 = vadd.f32 %v3740_v14, %v3738_v41  ;;  %5120 = vlog2.f32 %v3832_v63 }
 0x3e2   :  { %v5103_v30 = vpop.eup %5102  ;;  %v3717_v53 = vrot.slane %v8603_v27, 2  ;;  %v3746_v29 = vmul.f32 0.6931472, %v5101_v8  ;;  %5122 = vlog2.f32 %v3833_v2  ;;  %v8613_v51 = vadd.f32 %v3675_v58, %v3674_v33 }
 0x3e3   :  { %v5105_v57 = vpop.eup %5104  ;;  %v3748_v36 = vmul.f32 0.6931472, %v5103_v30  ;;  %v3759_v46 = vadd.f32 %v3758_v28, %v3757_v24  ;;  %v3765_v25 = vrot.slane %v3764_v20, 4  ;;  %v3771_v31 = vadd.f32 %v3744_v44, %v3742_v62 }
 0x3e4   :  { %v5107_v11 = vpop.eup %5106  ;;  %v8615_v21 = vadd.f32 %v3682_v48, %v3681_v38  ;;  %v8617_v16 = vadd.f32 %v3689_v59, %v3688_v61  ;;  %v3750_v7 = vmul.f32 0.6931472, %v5105_v57  ;;  %v8620_v3 = vadd.f32 %v3696_v35, %v8598_v4 }
 0x3e5   :  { %v5109_v49 = vpop.eup %5108  ;;  %v3752_v52 = vmul.f32 0.6931472, %v5107_v11  ;;  %v3760_v1 = vrot.slane %v3759_v46, 2  ;;  %v3766_v17 = vadd.f32 %v3765_v25, %v3764_v20  ;;  %v3772_v54 = vrot.slane %v3771_v31, 4 }
 0x3e6   :  { %v5111_v43 = vpop.eup %5110  ;;  %v8622_v23 = vadd.f32 %v3703_v60, %v3702_v45  ;;  %v3754_v63 = vmul.f32 0.6931472, %v5109_v49  ;;  %v3778_v55 = vadd.f32 %v3748_v36, %v3746_v29  ;;  %v3670_v41 = vrot.slane %v8610_v6, 1 }
 0x3e7   :  { %v5113_v33 = vpop.eup %5112  ;;  %v3756_v58 = vmul.f32 0.6931472, %v5111_v43  ;;  %v3761_v38 = vadd.f32 %v3760_v1, %v3759_v46  ;;  %v3767_v48 = vrot.slane %v3766_v17, 2  ;;  %v3773_v61 = vadd.f32 %v3772_v54, %v3771_v31  ;;  %v10351_v54 = vld [vmem:[#allocation36_spill] sm:$0xff] }
 0x3e8   :  { %v5115_v59 = vpop.eup %5114  ;;  %v8626_v2 = vadd.f32 %v3710_v37, %v8600_v9  ;;  %v3779_v19 = vrot.slane %v3778_v55, 4  ;;  %v3785_v14 = vadd.f32 %v3752_v52, %v3750_v7  ;;  %v3834_v44 = vadd.f32 1.0, %v5113_v33 }
 0x3e9   :  { %v5117_v24 = vpop.eup %5116  ;;  %v3762_v4 = vrot.slane %v3761_v38, 1  ;;  %v3768_v35 = vadd.f32 %v3767_v48, %v3766_v17  ;;  %v3774_v45 = vrot.slane %v3773_v61, 2  ;;  %v3792_v12 = vadd.f32 %v3756_v58, %v3754_v63  ;;  %v10353_v48 = vld [vmem:[#allocation89_spill] sm:$0xff] }
 0x3ea   :  { %v5119_v60 = vpop.eup %5118  ;;  %v3780_v62 = vadd.f32 %v3779_v19, %v3778_v55  ;;  %v3786_v8 = vrot.slane %v3785_v14, 4  ;;  %v3836_v28 = vmul.f32 0.6931472, %v5115_v59  ;;  %v3838_v36 = vmul.f32 0.6931472, %v5117_v24  ;;  %v10355_v24 = vld [vmem:[#allocation24_spill] sm:$0xff] }
 0x3eb   :  { %v5121_v20 = vpop.eup %5120  ;;  %v3769_v30 = vrot.slane %v3768_v35, 1  ;;  %v3775_v29 = vadd.f32 %v3774_v45, %v3773_v61  ;;  %v3793_v57 = vrot.slane %v3792_v12, 4  ;;  %v3763_v9 = vadd.f32 %v3762_v4, %v3761_v38 }
 0x3ec   :  { %v5123_v46 = vpop.eup %5122  ;;  %v3781_v37 = vrot.slane %v3780_v62, 2  ;;  %v3787_v25 = vadd.f32 %v3786_v8, %v3785_v14  ;;  %v3840_v31 = vmul.f32 0.6931472, %v5119_v60  ;;  %v3842_v49 = vmul.f32 0.6931472, %v5121_v20 }
 0x3ed   :  { %v3776_v11 = vrot.slane %v3775_v29, 1  ;;  %v3794_v7 = vadd.f32 %v3793_v57, %v3792_v12  ;;  %v3844_v52 = vmul.f32 0.6931472, %v5123_v46  ;;  %5124 = vlog2.f32 %v3834_v44 }
 0x3ee   :  { %v3782_v1 = vadd.f32 %v3781_v37, %v3780_v62  ;;  %v3788_v17 = vrot.slane %v3787_v25, 2  ;;  %v10352_v43 = vmin.f32 %v10351_v54, 0.0  ;;  %v3770_v55 = vadd.f32 %v3769_v30, %v3768_v35  ;;  %v10357_v62 = vld [vmem:[#allocation29_spill] sm:$0xff] }
 0x3ef   :  { %v3777_v33 = vadd.f32 %v3776_v11, %v3775_v29  ;;  %v3795_v58 = vrot.slane %v3794_v7, 2  ;;  %v10354_v61 = vmin.f32 %v10353_v48, 0.0  ;;  %v3684_v38 = vrot.slane %v8615_v21, 1 }
 0x3f0   :  { %v3847_v63 = vsub.f32 %v10352_v43, %v3836_v28  ;;  %v3783_v19 = vrot.slane %v3782_v1, 1  ;;  %v3789_v14 = vadd.f32 %v3788_v17, %v3787_v25  ;;  %v10356_v4 = vmin.f32 %v10355_v24, 0.0  ;;  %v10359_v28 = vld [vmem:[#allocation90_spill] sm:$0xff] }
 0x3f1   :  { %v3848_v59 = vsub.f32 %v10354_v61, %v3838_v36  ;;  %v3691_v12 = vrot.slane %v8617_v16, 1  ;;  %v3796_v60 = vadd.f32 %v3795_v58, %v3794_v7  ;;  %v10358_v8 = vmin.f32 %v10357_v62, 0.0 }
 0x3f2   :  { %v3849_v45 = vsub.f32 %v10356_v4, %v3840_v31  ;;  %v10360_v35 = vmin.f32 %v10359_v28, 0.0  ;;  %v3784_v30 = vadd.f32 %v3783_v19, %v3782_v1  ;;  %v3790_v29 = vrot.slane %v3789_v14, 1 }
 0x3f3   :  { %v3850_v44 = vsub.f32 %v10358_v8, %v3842_v49  ;;  %v3853_v57 = vadd.f32 -2.5707963, %v3847_v63  ;;  %v3854_v36 = vadd.f32 -2.5707963, %v3848_v59  ;;  %v3797_v46 = vrot.slane %v3796_v60, 1 }
 0x3f4   :  { %v3851_v20 = vsub.f32 %v10360_v35, %v3844_v52  ;;  %v3859_v37 = vmul.f32 0.5, %v3763_v9  ;;  %v3860_v11 = vmul.f32 0.5, %v3770_v55  ;;  %v3861_v25 = vmul.f32 0.5, %v3777_v33 }
 0x3f5   :  { %v3698_v17 = vrot.slane %v8620_v3, 1  ;;  %v3791_v31 = vadd.f32 %v3790_v29, %v3789_v14  ;;  %v3855_v54 = vadd.f32 -2.5707963, %v3849_v45  ;;  %v3862_v43 = vmul.f32 0.5, %v3784_v30 }
 0x3f6   :  { %v3705_v7 = vrot.slane %v8622_v23, 1  ;;  %v3856_v58 = vadd.f32 -2.5707963, %v3850_v44  ;;  %v3865_v49 = vsub.f32 %v3853_v57, %v3859_v37  ;;  %v3866_v48 = vsub.f32 %v3854_v36, %v3860_v11 }
 0x3f7   :  { %v3798_v61 = vadd.f32 %v3797_v46, %v3796_v60  ;;  %v3857_v52 = vadd.f32 -2.5707963, %v3851_v20  ;;  %v3863_v1 = vmul.f32 0.5, %v3791_v31  ;;  %v3867_v19 = vsub.f32 %v3855_v54, %v3861_v25  ;;  %v5125_v59 = vpop.eup %5124 }
 0x3f8   :  { %v3677_v63 = vrot.slane %v8613_v51, 1  ;;  %v3712_v9 = vrot.slane %v8626_v2, 1  ;;  %v8647_v55 = vadd.f32 %v3717_v53, %v8603_v27  ;;  %v8649_v33 = vsub.f32 %v3856_v58, %v3862_v43 }
 0x3f9   :  { %v3671_v14 = vadd.f32 %v3670_v41, %v8610_v6  ;;  %v3685_v24 = vadd.f32 %v3684_v38, %v8615_v21  ;;  %v3692_v4 = vadd.f32 %v3691_v12, %v8617_v16  ;;  %v8656_v45 = vsub.f32 %v3857_v52, %v3863_v1  ;;  %v10361_v16 = vld [vmem:[#allocation38_spill] sm:$0xff] }
 0x3fa   :  { %v3699_v60 = vadd.f32 %v3698_v17, %v8620_v3  ;;  %v3846_v62 = vmul.f32 0.6931472, %v5125_v59  ;;  %v8660_v8 = vsub.f32 %v3865_v49, %v8536_v40  ;;  %v8663_v27 = vsub.f32 %v3866_v48, %v8538_v5 }
 0x3fb   :  { %v3706_v53 = vadd.f32 %v3705_v7, %v8622_v23  ;;  %v3864_v44 = vmul.f32 0.5, %v3798_v61  ;;  %v8667_v6 = vsub.f32 %v3867_v19, %v8540_v32  ;;  %v8670_v21 = vsub.f32 %v3865_v49, %v8548_v34 }
 0x3fc   :  { %v10362_v41 = vmin.f32 %v10361_v16, 0.0  ;;  %v8676_v3 = vsub.f32 %v8649_v33, %v8542_v56  ;;  %v8679_v40 = vsub.f32 %v3866_v48, %v8550_v42  ;;  %v8682_v5 = vsub.f32 %v3867_v19, %v8552_v0 }
 0x3fd   :  { %v8686_v32 = vsub.f32 %v8656_v45, %v8544_v39  ;;  %v8690_v34 = vsub.f32 %v8649_v33, %v8554_v26  ;;  %v8694_v23 = vsub.f32 %v8656_v45, %v8556_v13  ;;  %v8697_v56 = vsub.f32 %v3865_v49, %v8560_v47 }
 0x3fe   :  { %v3852_v38 = vsub.f32 %v10362_v41, %v3846_v62  ;;  %v8700_v12 = vsub.f32 %v3866_v48, %v8562_v50  ;;  %v3895_v0 = vsel %vm771_vm11, %v8660_v8, -inf  ;;  %v3896_v39 = vsel %vm771_vm11, %v8663_v27, -inf }
 0x3ff   :  { %v8707_v26 = vsub.f32 %v3867_v19, %v8564_v22  ;;  %v8711_v13 = vsub.f32 %v8649_v33, %v8595_v15  ;;  %v3897_v28 = vmax.f32 %v3895_v0, %v3896_v39  ;;  %v3906_v47 = vsel %vm771_vm11, %v8670_v21, -inf }
 0x400   :  { %v3858_v42 = vadd.f32 -2.5707963, %v3852_v38  ;;  %v8718_v50 = vsub.f32 %v8656_v45, %v3671_v14  ;;  %v3898_v20 = vsel %vm771_vm11, %v8667_v6, -inf  ;;  %v3907_v22 = vsel %vm771_vm11, %v8679_v40, -inf }
 0x401   :  { %v8724_v30 = vsub.f32 %v3865_v49, %v3685_v24  ;;  %v3899_v29 = vmax.f32 %v3897_v28, %v3898_v20  ;;  %v3908_v15 = vmax.f32 %v3906_v47, %v3907_v22  ;;  %v3917_v57 = vsel %vm771_vm11, %v8697_v56, -inf }
 0x402   :  { %v8715_v35 = vsub.f32 %v3858_v42, %v3864_v44  ;;  %v8732_v46 = vsub.f32 %v3866_v48, %v3692_v4  ;;  %v3900_v37 = vsel %vm771_vm11, %v8676_v3, -inf  ;;  %v3909_v11 = vsel %vm771_vm11, %v8682_v5, -inf }
 0x403   :  { %v8738_v25 = vsub.f32 %v3867_v19, %v3699_v60  ;;  %v3901_v17 = vmax.f32 %v3899_v29, %v3900_v37  ;;  %v3910_v31 = vmax.f32 %v3908_v15, %v3909_v11  ;;  %v3918_v54 = vsel %vm771_vm11, %v8700_v12, -inf }
 0x404   :  { %v8730_v36 = vsub.f32 %v8715_v35, %v8546_v10  ;;  %v3902_v43 = vsel %vm771_vm11, %v8686_v32, -inf  ;;  %v3911_v10 = vsel %vm771_vm11, %v8690_v34, -inf  ;;  %v3913_v7 = vsel %vm771_vm11, %v8694_v23, -inf }
 0x405   :  { %v3919_v58 = vmax.f32 %v3917_v57, %v3918_v54  ;;  %v8750_v49 = vsub.f32 %v8715_v35, %v8558_v18  ;;  %v3903_v48 = vmax.f32 %v3901_v17, %v3902_v43  ;;  %v3912_v61 = vmax.f32 %v3910_v31, %v3911_v10 }
 0x406   :  { %v3920_v52 = vsel %vm771_vm11, %v8707_v26, -inf  ;;  %v3904_v1 = vsel %vm771_vm11, %v8730_v36, -inf  ;;  %v3928_v59 = vsel %vm771_vm11, %v8724_v30, -inf  ;;  %v3929_v14 = vsel %vm771_vm11, %v8732_v46, -inf }
 0x407   :  { %v3921_v19 = vmax.f32 %v3919_v58, %v3920_v52  ;;  %v3905_v24 = vmax.f32 %v3903_v48, %v3904_v1  ;;  %v3914_v4 = vmax.f32 %v3912_v61, %v3913_v7  ;;  %v3922_v18 = vsel %vm771_vm11, %v8711_v13, -inf }
 0x408   :  { %v3930_v60 = vmax.f32 %v3928_v59, %v3929_v14  ;;  %v3678_v62 = vadd.f32 %v3677_v63, %v8613_v51  ;;  %v3719_v44 = vrot.slane %v8647_v55, 1  ;;  %v8767_v16 = vsub.f32 %v8649_v33, %v3706_v53 }
 0x409   :  { %v3923_v41 = vmax.f32 %v3921_v19, %v3922_v18  ;;  %v3915_v38 = vsel %vm771_vm11, %v8750_v49, -inf  ;;  %v3931_v42 = vsel %vm771_vm11, %v8738_v25, -inf  ;;  %v3939_v0 = vsub.f32 %v8660_v8, %v3905_v24 }
 0x40a   :  { %v3940_v39 = vsub.f32 %v8663_v27, %v3905_v24  ;;  %v8776_v28 = vsub.f32 %v8715_v35, %v3678_v62  ;;  %v3916_v51 = vmax.f32 %v3914_v4, %v3915_v38  ;;  %v3924_v63 = vsel %vm771_vm11, %v8718_v50, -inf }
 0x40b   :  { %v3932_v33 = vmax.f32 %v3930_v60, %v3931_v42  ;;  %v3713_v53 = vadd.f32 %v3712_v9, %v8626_v2  ;;  %v3925_v47 = vmax.f32 %v3923_v41, %v3924_v63  ;;  %v3720_v20 = vadd.f32 %v3719_v44, %v8647_v55 }
 0x40c   :  { %v3941_v22 = vsub.f32 %v8667_v6, %v3905_v24  ;;  %v3942_v8 = vsub.f32 %v8676_v3, %v3905_v24  ;;  %v3943_v27 = vsub.f32 %v8686_v32, %v3905_v24  ;;  %v3933_v15 = vsel %vm771_vm11, %v8767_v16, -inf }
 0x40d   :  { %v8788_v29 = vsub.f32 %v8656_v45, %v3713_v53  ;;  %v3963_v57 = vmul.f32 1.442695, %v3939_v0  ;;  %v3965_v37 = vmul.f32 1.442695, %v3940_v39  ;;  %v3926_v2 = vsel %vm771_vm11, %v8776_v28, -inf }
 0x40e   :  { %v3934_v9 = vmax.f32 %v3932_v33, %v3933_v15  ;;  %v3944_v55 = vsub.f32 %v8730_v36, %v3905_v24  ;;  %v3945_v6 = vsub.f32 %v8670_v21, %v3916_v51  ;;  %v3927_v11 = vmax.f32 %v3925_v47, %v3926_v2 }
 0x40f   :  { %v3946_v3 = vsub.f32 %v8679_v40, %v3916_v51  ;;  %v3947_v32 = vsub.f32 %v8682_v5, %v3916_v51  ;;  %5126 = vpow2.f32 %v3963_v57  ;;  %v3967_v45 = vmul.f32 1.442695, %v3941_v22 }
 0x410   :  { %5128 = vpow2.f32 %v3965_v37  ;;  %v3969_v17 = vmul.f32 1.442695, %v3942_v8  ;;  %v3971_v31 = vmul.f32 1.442695, %v3943_v27  ;;  %v8799_v54 = vsub.f32 %v8715_v35, %v3720_v20 }
 0x411   :  { %v3935_v43 = vsel %vm771_vm11, %v8788_v29, -inf  ;;  %v3948_v36 = vsub.f32 %v8690_v34, %v3916_v51  ;;  %v3949_v21 = vsub.f32 %v8694_v23, %v3916_v51  ;;  %5130 = vpow2.f32 %v3967_v45 }
 0x412   :  { %v3936_v10 = vmax.f32 %v3934_v9, %v3935_v43  ;;  %v3973_v40 = vmul.f32 1.442695, %v3944_v55  ;;  %v3950_v5 = vsub.f32 %v8750_v49, %v3916_v51  ;;  %5132 = vpow2.f32 %v3969_v17 }
 0x413   :  { %v3975_v7 = vmul.f32 1.442695, %v3945_v6  ;;  %v3977_v58 = vmul.f32 1.442695, %v3946_v3  ;;  %v3951_v48 = vsub.f32 %v8697_v56, %v3927_v11  ;;  %5134 = vpow2.f32 %v3971_v31 }
 0x414   :  { %v3979_v35 = vmul.f32 1.442695, %v3947_v32  ;;  %v3937_v61 = vsel %vm771_vm11, %v8799_v54, -inf  ;;  %v3952_v52 = vsub.f32 %v8700_v12, %v3927_v11  ;;  %5136 = vpow2.f32 %v3973_v40 }
 0x415   :  { %v3981_v34 = vmul.f32 1.442695, %v3948_v36  ;;  %v3938_v1 = vmax.f32 %v3936_v10, %v3937_v61  ;;  %v3953_v23 = vsub.f32 %v8707_v26, %v3927_v11  ;;  %5138 = vpow2.f32 %v3975_v7 }
 0x416   :  { %v3983_v19 = vmul.f32 1.442695, %v3949_v21  ;;  %v3954_v49 = vsub.f32 %v8711_v13, %v3927_v11  ;;  %5140 = vpow2.f32 %v3977_v58  ;;  %v3985_v59 = vmul.f32 1.442695, %v3950_v5 }
 0x417   :  { %v3955_v56 = vsub.f32 %v8718_v50, %v3927_v11  ;;  %5142 = vpow2.f32 %v3979_v35  ;;  %v3987_v14 = vmul.f32 1.442695, %v3951_v48  ;;  %v3956_v4 = vsub.f32 %v8776_v28, %v3927_v11 }
 0x418   :  { %5144 = vpow2.f32 %v3981_v34  ;;  %v3989_v12 = vmul.f32 1.442695, %v3952_v52  ;;  %v3957_v26 = vsub.f32 %v8724_v30, %v3938_v1  ;;  %v3991_v60 = vmul.f32 1.442695, %v3953_v23 }
 0x419   :  { %v8813_v24 = vpop.eup %5126  ;;  %5146 = vpow2.f32 %v3983_v19  ;;  %v3958_v62 = vsub.f32 %v8732_v46, %v3938_v1  ;;  %v3993_v50 = vmul.f32 1.442695, %v3954_v49  ;;  %v3959_v38 = vsub.f32 %v8738_v25, %v3938_v1 }
 0x41a   :  { %v8816_v18 = vpop.eup %5128  ;;  %v4011_v13 = vsel %vm771_vm11, %v8813_v24, 0.0  ;;  %5148 = vpow2.f32 %v3985_v59  ;;  %v3995_v42 = vmul.f32 1.442695, %v3955_v56  ;;  %v3960_v39 = vsub.f32 %v8767_v16, %v3938_v1 }
 0x41b   :  { %v4012_v44 = vsel %vm771_vm11, %v8816_v18, 0.0  ;;  %v8824_v41 = vpop.eup %5130  ;;  %5150 = vpow2.f32 %v3987_v14  ;;  %v3997_v28 = vmul.f32 1.442695, %v3956_v4  ;;  %v3961_v63 = vsub.f32 %v8788_v29, %v3938_v1 }
 0x41c   :  { %v4013_v0 = vadd.f32 %v4012_v44, %v4011_v13  ;;  %v8827_v30 = vpop.eup %5132  ;;  %5152 = vpow2.f32 %v3989_v12  ;;  %v4014_v46 = vsel %vm771_vm11, %v8824_v41, 0.0  ;;  %v3999_v33 = vmul.f32 1.442695, %v3957_v26 }
 0x41d   :  { %v8832_v51 = vpop.eup %5134  ;;  %5154 = vpow2.f32 %v3991_v60  ;;  %v3962_v47 = vsub.f32 %v8799_v54, %v3938_v1  ;;  %v4001_v20 = vmul.f32 1.442695, %v3958_v62  ;;  %v4016_v16 = vsel %vm771_vm11, %v8827_v30, 0.0 }
 0x41e   :  { %v4015_v53 = vadd.f32 %v4014_v46, %v4013_v0  ;;  %v8835_v25 = vpop.eup %5136  ;;  %5156 = vpow2.f32 %v3993_v50  ;;  %v4003_v8 = vmul.f32 1.442695, %v3959_v38  ;;  %v4005_v29 = vmul.f32 1.442695, %v3960_v39 }
 0x41f   :  { %v8840_v22 = vpop.eup %5138  ;;  %5158 = vpow2.f32 %v3995_v42  ;;  %v4018_v57 = vsel %vm771_vm11, %v8832_v51, 0.0  ;;  %v4007_v9 = vmul.f32 1.442695, %v3961_v63  ;;  %v4009_v3 = vmul.f32 1.442695, %v3962_v47 }
 0x420   :  { %v4017_v27 = vadd.f32 %v4016_v16, %v4015_v53  ;;  %v8842_v15 = vpop.eup %5140  ;;  %5160 = vpow2.f32 %v3997_v28  ;;  %v4022_v37 = vsel %vm771_vm11, %v8840_v22, 0.0  ;;  %v4020_v32 = vsel %vm771_vm11, %v8835_v25, 0.0 }
 0x421   :  { %v8848_v2 = vpop.eup %5142  ;;  %5162 = vpow2.f32 %v3999_v33  ;;  %v4023_v6 = vsel %vm771_vm11, %v8842_v15, 0.0 }
 0x422   :  { %v4019_v55 = vadd.f32 %v4018_v57, %v4017_v27  ;;  %v8852_v11 = vpop.eup %5144  ;;  %5164 = vpow2.f32 %v4001_v20  ;;  %v4024_v45 = vadd.f32 %v4023_v6, %v4022_v37  ;;  %v4025_v54 = vsel %vm771_vm11, %v8848_v2, 0.0 }
 0x423   :  { %v8856_v17 = vpop.eup %5146  ;;  %5166 = vpow2.f32 %v4003_v8  ;;  %v4027_v21 = vsel %vm771_vm11, %v8852_v11, 0.0 }
 0x424   :  { %v4021_v31 = vadd.f32 %v4020_v32, %v4019_v55  ;;  %v8860_v43 = vpop.eup %5148  ;;  %5168 = vpow2.f32 %v4005_v29  ;;  %v4026_v36 = vadd.f32 %v4025_v54, %v4024_v45  ;;  %v4029_v48 = vsel %vm771_vm11, %v8856_v17, 0.0 }
 0x425   :  { %v8862_v10 = vpop.eup %5150  ;;  %5170 = vpow2.f32 %v4007_v9  ;;  %v4031_v23 = vsel %vm771_vm11, %v8860_v43, 0.0 }
 0x426   :  { %v8866_v40 = vpop.eup %5152  ;;  %5172 = vpow2.f32 %v4009_v3  ;;  %v4028_v5 = vadd.f32 %v4027_v21, %v4026_v36  ;;  %v4033_v7 = vsel %vm771_vm11, %v8862_v10, 0.0  ;;  %v10363_v3 = vld [vmem:[#allocation30_spill] sm:$0xff] }
 0x427   :  { %v8870_v58 = vpop.eup %5154  ;;  %v4034_v35 = vsel %vm771_vm11, %v8866_v40, 0.0  ;;  %5174 = vrcp.f32 %v4021_v31  ;;  %v10368_v21 = vld [vmem:[#allocation34_spill] sm:$0xff] }
 0x428   :  { %v8876_v61 = vpop.eup %5156  ;;  %v4030_v52 = vadd.f32 %v4029_v48, %v4028_v5  ;;  %v4035_v34 = vadd.f32 %v4034_v35, %v4033_v7  ;;  %v4036_v19 = vsel %vm771_vm11, %v8870_v58, 0.0 }
 0x429   :  { %v8878_v1 = vpop.eup %5158  ;;  %v4038_v4 = vsel %vm771_vm11, %v8876_v61, 0.0 }
 0x42a   :  { %v8884_v49 = vpop.eup %5160  ;;  %v4032_v59 = vadd.f32 %v4031_v23, %v4030_v52  ;;  %v4037_v56 = vadd.f32 %v4036_v19, %v4035_v34  ;;  %v4040_v62 = vsel %vm771_vm11, %v8878_v1, 0.0  ;;  %v10369_v23 = vld [vmem:[#allocation71_spill] sm:$0xff] }
 0x42b   :  { %v8886_v14 = vpop.eup %5162  ;;  %v4042_v39 = vsel %vm771_vm11, %v8884_v49, 0.0 }
 0x42c   :  { %v8890_v12 = vpop.eup %5164  ;;  %v4039_v26 = vadd.f32 %v4038_v4, %v4037_v56  ;;  %v4044_v60 = vsel %vm771_vm11, %v8886_v14, 0.0  ;;  %5176 = vrcp.f32 %v4032_v59  ;;  %v10370_v59 = vld [vmem:[#allocation55_spill] sm:$0xff] }
 0x42d   :  { %v8894_v13 = vpop.eup %5166  ;;  %v4045_v50 = vsel %vm771_vm11, %v8890_v12, 0.0 }
 0x42e   :  { %v8900_v44 = vpop.eup %5168  ;;  %v4041_v38 = vadd.f32 %v4040_v62, %v4039_v26  ;;  %v4046_v42 = vadd.f32 %v4045_v50, %v4044_v60  ;;  %v4047_v28 = vsel %vm771_vm11, %v8894_v13, 0.0  ;;  %v10371_v26 = vld [vmem:[#allocation31_spill] sm:$0xff] }
 0x42f   :  { %v8902_v0 = vpop.eup %5170  ;;  %v4049_v47 = vsel %vm771_vm11, %v8900_v44, 0.0 }
 0x430   :  { %v8908_v46 = vpop.eup %5172  ;;  %v4043_v63 = vadd.f32 %v4042_v39, %v4041_v38  ;;  %v4048_v33 = vadd.f32 %v4047_v28, %v4046_v42  ;;  %v4051_v20 = vsel %vm771_vm11, %v8902_v0, 0.0 }
 0x431   :  { %v5175_v53 = vpop.eup %5174  ;;  %v4053_v16 = vsel %vm771_vm11, %v8908_v46, 0.0 }
 0x432   :  { %v4050_v8 = vadd.f32 %v4049_v47, %v4048_v33  ;;  %v4061_v27 = vmul.f32 %v5175_v53, %v8835_v25  ;;  %5178 = vrcp.f32 %v4043_v63  ;;  %v8918_v29 = vmul.f32 %v5175_v53, %v8813_v24  ;;  %v10364_v25 = vld [vmem:[#allocation39_spill] sm:$0xff] }
 0x433   :  { %v8921_v57 = vmul.f32 %v5175_v53, %v8816_v18  ;;  %v8924_v37 = vmul.f32 %v5175_v53, %v8824_v41  ;;  %v8927_v9 = vmul.f32 %v5175_v53, %v8827_v30  ;;  %v8930_v55 = vmul.f32 %v5175_v53, %v8832_v51 }
 0x434   :  { %v4052_v6 = vadd.f32 %v4051_v20, %v4050_v8  ;;  %v4088_v32 = vmul.f32 %v10363_v3, %v4061_v27  ;;  %v8934_v45 = vmul.f32 %v4061_v27, %v10364_v25  ;;  %v8938_v24 = vmul.f32 %v10363_v3, %v8918_v29  ;;  %v10376_v8 = vld [vmem:[#allocation72_spill] sm:$0xff] }
 0x435   :  { %v8942_v18 = vmul.f32 %v10363_v3, %v8921_v57  ;;  %v8946_v41 = vmul.f32 %v10363_v3, %v8924_v37  ;;  %v8950_v30 = vmul.f32 %v10363_v3, %v8927_v9  ;;  %v8954_v51 = vmul.f32 %v10363_v3, %v8930_v55 }
 0x436   :  { %10365 = vst [vmem:[#allocation53_spill] sm:$0xff] %v8938_v24  ;;  %v5177_v31 = vpop.eup %5176  ;;  %v4054_v54 = vadd.f32 %v4053_v16, %v4052_v6  ;;  %v4142_v36 = vsel %vm771_vm11, %v4088_v32, 0.0  ;;  %v4262_v5 = vrot.slane %v4088_v32, %v10368_v21  ;;  %v4107_v7 = vsel %vm771_vm11, %v8938_v24, 0.0  ;;  %v10377_v6 = vld [vmem:[#allocation10_spill] sm:$0xff] }
 0x437   :  { %10366 = vst [vmem:[#allocation154_spill] sm:$0xff] %v8942_v18  ;;  %10367 = vst [vmem:[#allocation94_spill] sm:$0xff] %v8946_v41  ;;  %v4068_v48 = vmul.f32 %v5177_v31, %v8860_v43  ;;  %v8962_v35 = vmul.f32 %v5177_v31, %v8840_v22  ;;  %v8965_v52 = vmul.f32 %v5177_v31, %v8842_v15  ;;  %v10372_v43 = vld [vmem:[#allocation40_spill] sm:$0xff]  ;;  %v4121_v20 = vsel %vm771_vm11, %v8946_v41, 0.0 }
 0x438   :  { %v8968_v34 = vmul.f32 %v5177_v31, %v8848_v2  ;;  %5180 = vrcp.f32 %v4054_v54  ;;  %v4345_v19 = vmul.f32 %v4262_v5, %v10369_v23  ;;  %v4346_v56 = vmul.f32 %v4262_v5, %v10370_v59  ;;  %v10388_v41 = vld [vmem:[#allocation84_spill] sm:$0xff] }
 0x439   :  { %v8973_v4 = vmul.f32 %v5177_v31, %v8852_v11  ;;  %v4094_v60 = vmul.f32 %v10371_v26, %v4068_v48  ;;  %v8977_v62 = vmul.f32 %v4068_v48, %v10372_v43  ;;  %v8980_v22 = vmul.f32 %v5177_v31, %v8856_v17  ;;  %v10379_v48 = vld [vmem:[#allocation41_spill] sm:$0xff] }
 0x43a   :  { %v8984_v15 = vmul.f32 %v10371_v26, %v8962_v35  ;;  %v8988_v2 = vmul.f32 %v10371_v26, %v8965_v52  ;;  %v8992_v11 = vmul.f32 %v10371_v26, %v8968_v34  ;;  %v4114_v17 = vsel %vm771_vm11, %v8942_v18, 0.0 }
 0x43b   :  { %v8996_v50 = vmul.f32 %v10371_v26, %v8973_v4  ;;  %v4143_v38 = vsel %vm771_vm11, %v4094_v60, 0.0  ;;  %v4286_v42 = vrot.slane %v4094_v60, %v10368_v21  ;;  %v9004_v39 = vmul.f32 %v10371_v26, %v8980_v22 }
 0x43c   :  { %10373 = vst [vmem:[#allocation102_spill] sm:$0xff] %v8984_v15  ;;  %10374 = vst [vmem:[#allocation155_spill] sm:$0xff] %v8988_v2  ;;  %v4108_v28 = vsel %vm771_vm11, %v8984_v15, 0.0  ;;  %v5179_v63 = vpop.eup %5178  ;;  %v4144_v33 = vadd.f32 %v4143_v38, %v4142_v36  ;;  %v4115_v47 = vsel %vm771_vm11, %v8988_v2, 0.0  ;;  %v10387_v2 = vld [vmem:[#allocation85_spill] sm:$0xff] }
 0x43d   :  { %10375 = vst [vmem:[#allocation54_spill] sm:$0xff] %v8992_v11  ;;  %v4109_v53 = vadd.f32 %v4108_v28, %v4107_v7  ;;  %v4075_v16 = vmul.f32 %v5179_v63, %v8884_v49  ;;  %v4357_v27 = vmul.f32 %v4286_v42, %v10376_v8  ;;  %v4358_v3 = vmul.f32 %v4286_v42, %v10377_v6  ;;  %v10378_v49 = vld [vmem:[#allocation33_spill] sm:$0xff] }
 0x43e   :  { %v9016_v32 = vmul.f32 %v5179_v63, %v8862_v10  ;;  %v9019_v31 = vmul.f32 %v5179_v63, %v8866_v40  ;;  %v9022_v54 = vmul.f32 %v5179_v63, %v8870_v58  ;;  %v9025_v36 = vmul.f32 %v5179_v63, %v8876_v61 }
 0x43f   :  { %v9028_v5 = vmul.f32 %v5179_v63, %v8878_v1  ;;  %v4100_v7 = vmul.f32 %v10378_v49, %v4075_v16  ;;  %v9032_v23 = vmul.f32 %v4075_v16, %v10379_v48  ;;  %v4413_v59 = vadd.f32 %v4357_v27, %v4345_v19  ;;  %v10382_v27 = vld [vmem:[#allocation23_spill] sm:$0xff] }
 0x440   :  { %v4416_v10 = vadd.f32 %v4358_v3, %v4346_v56  ;;  %v9036_v40 = vmul.f32 %v10378_v49, %v9016_v32  ;;  %v9040_v58 = vmul.f32 %v10378_v49, %v9019_v31  ;;  %v9044_v61 = vmul.f32 %v10378_v49, %v9022_v54  ;;  %v10383_v3 = vld [vmem:[#allocation81_spill] sm:$0xff] }
 0x441   :  { %v9048_v1 = vmul.f32 %v10378_v49, %v9025_v36  ;;  %v4145_v26 = vsel %vm771_vm11, %v4100_v7, 0.0  ;;  %v4310_v19 = vrot.slane %v4100_v7, %v10368_v21  ;;  %v9054_v56 = vmul.f32 %v10378_v49, %v9028_v5 }
 0x442   :  { %10380 = vst [vmem:[#allocation156_spill] sm:$0xff] %v9036_v40  ;;  %10381 = vst [vmem:[#allocation13_spill] sm:$0xff] %v9040_v58  ;;  %v4116_v60 = vadd.f32 %v4115_v47, %v4114_v17  ;;  %v5181_v38 = vpop.eup %5180  ;;  %v4146_v42 = vadd.f32 %v4145_v26, %v4144_v33  ;;  %v4110_v28 = vsel %vm771_vm11, %v9036_v40, 0.0  ;;  %v4117_v63 = vsel %vm771_vm11, %v9040_v58, 0.0 }
 0x443   :  { %v4122_v16 = vsel %vm771_vm11, %v8992_v11, 0.0  ;;  %v4082_v8 = vmul.f32 %v5181_v38, %v8908_v46  ;;  %v4369_v6 = vmul.f32 %v4310_v19, %v10382_v27  ;;  %v4370_v7 = vmul.f32 %v4310_v19, %v10383_v3  ;;  %v10384_v46 = vld [vmem:[#allocation37_spill] sm:$0xff]  ;;  %v10385_v27 = vld [vmem:[#allocation42_spill] sm:$0xff] }
 0x444   :  { %v9066_v49 = vmul.f32 %v5181_v38, %v8886_v14  ;;  %v9069_v17 = vmul.f32 %v5181_v38, %v8890_v12  ;;  %v9072_v33 = vmul.f32 %v5181_v38, %v8894_v13  ;;  %v9075_v47 = vmul.f32 %v5181_v38, %v8900_v44 }
 0x445   :  { %v9078_v26 = vmul.f32 %v5181_v38, %v8902_v0  ;;  %v4106_v58 = vmul.f32 %v10384_v46, %v4082_v8  ;;  %v4172_v40 = vmul.f32 %v4082_v8, %v10385_v27  ;;  %v4414_v19 = vadd.f32 %v4413_v59, %v4369_v6 }
 0x446   :  { %v4417_v3 = vadd.f32 %v4416_v10, %v4370_v7  ;;  %v9084_v14 = vmul.f32 %v10384_v46, %v9066_v49  ;;  %v9088_v12 = vmul.f32 %v10384_v46, %v9069_v17  ;;  %v9092_v13 = vmul.f32 %v10384_v46, %v9072_v33 }
 0x447   :  { %v9096_v44 = vmul.f32 %v10384_v46, %v9075_v47  ;;  %v4147_v0 = vsel %vm771_vm11, %v4106_v58, 0.0  ;;  %v9100_v59 = vsel %vm771_vm11, %v4172_v40, 0.0  ;;  %v4334_v10 = vrot.slane %v4106_v58, %v10368_v21  ;;  %v10389_v58 = vld [vmem:[#allocation43_spill] sm:$0xff] }
 0x448   :  { %10386 = vst [vmem:[#allocation157_spill] sm:$0xff] %v9100_v59  ;;  %v9105_v38 = vmul.f32 %v10384_v46, %v9078_v26  ;;  %v9107_v8 = vadd.f32 %v4147_v0, %v4146_v42  ;;  %v4111_v6 = vadd.f32 %v4110_v28, %v4109_v53  ;;  %v4112_v7 = vsel %vm771_vm11, %v9084_v14, 0.0 }
 0x449   :  { %v4118_v11 = vadd.f32 %v4117_v63, %v4116_v60  ;;  %v4381_v15 = vmul.f32 %v4334_v10, %v10387_v2  ;;  %v4382_v18 = vmul.f32 %v4334_v10, %v10388_v41  ;;  %v4119_v40 = vsel %vm771_vm11, %v9088_v12, 0.0 }
 0x44a   :  { %v4123_v24 = vadd.f32 %v4122_v16, %v4121_v20  ;;  %v4220_v59 = vsub.f32 %v10389_v58, %v9107_v8  ;;  %v4238_v46 = vadd.f32 1e-08, %v9107_v8  ;;  %v9118_v42 = vadd.f32 %v4112_v7, %v4111_v6 }
 0x44b   :  { %v9120_v53 = vadd.f32 %v4119_v40, %v4118_v11  ;;  %v4415_v28 = vadd.f32 %v4414_v19, %v4381_v15  ;;  %v4418_v0 = vadd.f32 %v4417_v3, %v4382_v18  ;;  %v4124_v2 = vsel %vm771_vm11, %v9044_v61, 0.0 }
 0x44c   :  { %v4126_v41 = vsel %vm771_vm11, %v9092_v13, 0.0  ;;  %v4442_v60 = vrot.slane %v4238_v46, %v10368_v21  ;;  %v4125_v20 = vadd.f32 %v4124_v2, %v4123_v24  ;;  %v4128_v63 = vsel %vm771_vm11, %v8950_v30, 0.0 }
 0x44d   :  { %v4129_v16 = vsel %vm771_vm11, %v8996_v50, 0.0  ;;  %v4131_v15 = vsel %vm771_vm11, %v9048_v1, 0.0  ;;  %v4133_v18 = vsel %vm771_vm11, %v9096_v44, 0.0  ;;  %v4135_v11 = vsel %vm771_vm11, %v8954_v51, 0.0 }
 0x44e   :  { %v4130_v10 = vadd.f32 %v4129_v16, %v4128_v63  ;;  %5182 = vrcp.f32 %v4442_v60  ;;  %v9137_v19 = vadd.f32 %v4126_v41, %v4125_v20  ;;  %v4136_v24 = vsel %vm771_vm11, %v9004_v39, 0.0 }
 0x44f   :  { %v4138_v3 = vsel %vm771_vm11, %v9054_v56, 0.0  ;;  %v4137_v7 = vadd.f32 %v4136_v24, %v4135_v11  ;;  %v4140_v40 = vsel %vm771_vm11, %v9105_v38, 0.0  ;;  %v4149_v46 = vmul.f32 %v8918_v29, %v10364_v25 }
 0x450   :  { %v4132_v6 = vadd.f32 %v4131_v15, %v4130_v10  ;;  %v4150_v2 = vmul.f32 %v8921_v57, %v10364_v25  ;;  %v4151_v41 = vmul.f32 %v8924_v37, %v10364_v25  ;;  %v4152_v60 = vmul.f32 %v8927_v9, %v10364_v25 }
 0x451   :  { %v4153_v20 = vmul.f32 %v8930_v55, %v10364_v25  ;;  %v4139_v16 = vadd.f32 %v4138_v3, %v4137_v7  ;;  %v4155_v10 = vmul.f32 %v8962_v35, %v10372_v43  ;;  %v4156_v29 = vmul.f32 %v8965_v52, %v10372_v43 }
 0x452   :  { %v9155_v63 = vadd.f32 %v4133_v18, %v4132_v6  ;;  %v4157_v57 = vmul.f32 %v8968_v34, %v10372_v43  ;;  %v4158_v37 = vmul.f32 %v8973_v4, %v10372_v43  ;;  %v4159_v9 = vmul.f32 %v8980_v22, %v10372_v43 }
 0x453   :  { %v4161_v55 = vmul.f32 %v9016_v32, %v10379_v48  ;;  %v9169_v25 = vadd.f32 %v4140_v40, %v4139_v16  ;;  %v4162_v35 = vmul.f32 %v9019_v31, %v10379_v48  ;;  %v4163_v52 = vmul.f32 %v9022_v54, %v10379_v48 }
 0x454   :  { %v4164_v34 = vmul.f32 %v9025_v36, %v10379_v48  ;;  %v4165_v4 = vmul.f32 %v9028_v5, %v10379_v48  ;;  %v4167_v43 = vmul.f32 %v9066_v49, %v10385_v27  ;;  %v4168_v22 = vmul.f32 %v9069_v17, %v10385_v27 }
 0x455   :  { %v4169_v32 = vmul.f32 %v9072_v33, %v10385_v27  ;;  %v4170_v31 = vmul.f32 %v9075_v47, %v10385_v27  ;;  %v4171_v54 = vmul.f32 %v9078_v26, %v10385_v27  ;;  %v4173_v36 = vsel %vm771_vm11, %v4149_v46, 0.0 }
 0x456   :  { %v4174_v15 = vsel %vm771_vm11, %v4155_v10, 0.0  ;;  %v4176_v48 = vsel %vm771_vm11, %v4161_v55, 0.0  ;;  %v4178_v49 = vsel %vm771_vm11, %v4167_v43, 0.0  ;;  %v4180_v17 = vsel %vm771_vm11, %v4150_v2, 0.0 }
 0x457   :  { %v4175_v5 = vadd.f32 %v4174_v15, %v4173_v36  ;;  %v4181_v18 = vsel %vm771_vm11, %v4156_v29, 0.0  ;;  %v4183_v33 = vsel %vm771_vm11, %v4162_v35, 0.0  ;;  %v4185_v47 = vsel %vm771_vm11, %v4168_v22, 0.0 }
 0x458   :  { %v4187_v11 = vsel %vm771_vm11, %v4151_v41, 0.0  ;;  %v5183_v26 = vpop.eup %5182  ;;  %v4182_v24 = vadd.f32 %v4181_v18, %v4180_v17  ;;  %v4188_v3 = vsel %vm771_vm11, %v4157_v57, 0.0  ;;  %v4190_v6 = vsel %vm771_vm11, %v4163_v52, 0.0 }
 0x459   :  { %v4177_v27 = vadd.f32 %v4176_v48, %v4175_v5  ;;  %v4459_v7 = vmul.f32 %v5183_v26, %v4415_v28  ;;  %v4460_v40 = vmul.f32 %v5183_v26, %v4418_v0  ;;  %v4189_v46 = vadd.f32 %v4188_v3, %v4187_v11  ;;  %v10392_v11 = vld [vmem:[#allocation48_spill] sm:$0xff]  ;;  %v10394_v3 = vld [vmem:[#allocation46_spill] sm:$0xff] }
 0x45a   :  { %v4192_v2 = vsel %vm771_vm11, %v4169_v32, 0.0  ;;  %v4184_v10 = vadd.f32 %v4183_v33, %v4182_v24  ;;  %v4194_v29 = vsel %vm771_vm11, %v4152_v60, 0.0  ;;  %v4195_v55 = vsel %vm771_vm11, %v4158_v37, 0.0  ;;  %v10391_v33 = vld [vmem:[#allocation44_spill] sm:$0xff] }
 0x45b   :  { %v4179_v16 = vadd.f32 %v4178_v49, %v4177_v27  ;;  %4477 = vst [vmem:[#allocation4 + $0x50] sm:$0xff] %v4459_v7  ;;  %4478 = vst [vmem:[#allocation4 + $0x58] sm:$0xff] %v4460_v40  ;;  %v4191_v41 = vadd.f32 %v4190_v6, %v4189_v46  ;;  %v4196_v35 = vadd.f32 %v4195_v55, %v4194_v29  ;;  %v4197_v43 = vsel %vm771_vm11, %v4164_v34, 0.0  ;;  %v10390_v49 = vld [vmem:[#allocation45_spill] sm:$0xff]  ;;  %v10393_v27 = vld [vmem:[#allocation47_spill] sm:$0xff] }
 0x45c   :  { %v4199_v57 = vsel %vm771_vm11, %v4170_v31, 0.0  ;;  %v4186_v52 = vadd.f32 %v4185_v47, %v4184_v10  ;;  %v4201_v28 = vsel %vm771_vm11, %v4153_v20, 0.0  ;;  %v4202_v0 = vsel %vm771_vm11, %v4159_v9, 0.0  ;;  %v10395_v7 = vld [vmem:[#allocation49_spill] sm:$0xff] }
 0x45d   :  { %v4204_v22 = vsel %vm771_vm11, %v4165_v4, 0.0  ;;  %v4193_v32 = vadd.f32 %v4192_v2, %v4191_v41  ;;  %v4198_v36 = vadd.f32 %v4197_v43, %v4196_v35  ;;  %v4203_v60 = vadd.f32 %v4202_v0, %v4201_v28  ;;  %v10396_v2 = vld [vmem:[#allocation157_spill] sm:$0xff] }
 0x45e   :  { %v4206_v37 = vsel %vm771_vm11, %v4171_v54, 0.0  ;;  %v4208_v15 = vsel %vm771_vm11, %v8934_v45, 0.0  ;;  %v4209_v34 = vsel %vm771_vm11, %v8977_v62, 0.0  ;;  %v4211_v31 = vsel %vm771_vm11, %v9032_v23, 0.0 }
 0x45f   :  { %v4215_v20 = vsub.f32 %v10389_v58, %v9118_v42  ;;  %v4200_v9 = vadd.f32 %v4199_v57, %v4198_v36  ;;  %v4205_v5 = vadd.f32 %v4204_v22, %v4203_v60  ;;  %v4210_v4 = vadd.f32 %v4209_v34, %v4208_v15 }
 0x460   :  { %v4216_v48 = vsub.f32 %v10389_v58, %v9120_v53  ;;  %v4217_v54 = vsub.f32 %v10389_v58, %v9137_v19  ;;  %v4218_v45 = vsub.f32 %v10389_v58, %v9155_v63  ;;  %v4219_v62 = vsub.f32 %v10389_v58, %v9169_v25 }
 0x461   :  { %v4221_v23 = vmul.f32 %v4215_v20, %v10390_v49  ;;  %v4207_v17 = vadd.f32 %v4206_v37, %v4205_v5  ;;  %v4212_v18 = vadd.f32 %v4211_v31, %v4210_v4  ;;  %v4226_v26 = vmul.f32 %v4220_v59, %v10392_v11 }
 0x462   :  { %v4222_v47 = vmul.f32 %v4216_v48, %v10391_v33  ;;  %v4223_v24 = vmul.f32 %v4217_v54, %v10393_v27  ;;  %v4224_v6 = vmul.f32 %v4218_v45, %v10394_v3  ;;  %v4225_v40 = vmul.f32 %v4219_v62, %v10395_v7 }
 0x463   :  { %v4227_v46 = vsub.f32 %v4179_v16, %v4221_v23  ;;  %v4214_v10 = vadd.f32 %v10396_v2, %v4212_v18 }
 0x464   :  { %v4228_v29 = vsub.f32 %v4186_v52, %v4222_v47  ;;  %v4229_v55 = vsub.f32 %v4193_v32, %v4223_v24  ;;  %v4230_v41 = vsub.f32 %v4200_v9, %v4224_v6  ;;  %v4231_v35 = vsub.f32 %v4207_v17, %v4225_v40 }
 0x465   :  { %4461 = vst [vmem:[#allocation2] sm:$0x1] %v4227_v46  ;;  %v4232_v43 = vsub.f32 %v4214_v10, %v4226_v26 }
 0x466   :  { %4462 = vst [vmem:[#allocation2 + $0x1] sm:$0x1] %v4228_v29  ;;  %4463 = vst [vmem:[#allocation2 + $0x2] sm:$0x1] %v4229_v55 }
 0x467   :  { %4464 = vst [vmem:[#allocation2 + $0x3] sm:$0x1] %v4230_v41  ;;  %4465 = vst [vmem:[#allocation2 + $0x4] sm:$0x1] %v4231_v35 }
 0x468   :  { %4466 = vst [vmem:[#allocation2 + $0x5] sm:$0x1] %v4232_v43 }
 0x469   :  { %5205 = shalt.err (!%p5202_p4)
}
 0x46a   :  { %s5206_s20 = scalar_lea.hbm %s9373_s7, 96 }
 0x46b   :  { %p5207_p5 = scmp.ne.s32.totalorder %s9373_s7, %s5206_s20  ;;  %p5210_p6 = scmp.lt.u32.totalorder %s5206_s20, %s9373_s7 }
 0x46d   :  { %p5212_p7 = pnand %p5210_p6, %p5207_p5 }
 0x46f   :  { %5215 = shalt.err (!%p5212_p7)
}
 0x470   :  { %s5248_s24 = smov 16   ;;  %s5249_s25 = smov 1   ;;  %v4233_v59 = vadd.f32 1e-08, %v9118_v42  ;;  %v4234_v8 = vadd.f32 1e-08, %v9120_v53  ;;  %v4254_v53 = vrot.slane %v8950_v30, %v10368_v21  ;;  %v4278_v34 = vrot.slane %v8996_v50, %v10368_v21 }
 0x471   :  { %4490 = dma.vmem_to_hbm [thread:$0]  %s4485_s16, 96, %s9373_s7, [#allocation3], %s5248_s24, %s5248_s24, %s5249_s25   ;;  %v9250_v58 = vadd.f32 1e-08, %v9137_v19  ;;  %v9253_v16 = vadd.f32 1e-08, %v9155_v63  ;;  %v4258_v19 = vrot.slane %v8954_v51, %v10368_v21  ;;  %v4282_v31 = vrot.slane %v9004_v39, %v10368_v21 }
 0x472   :  { %v9256_v57 = vadd.f32 1e-08, %v9169_v25  ;;  %v10397_v52 = vld [vmem:[#allocation53_spill] sm:$0xff]  ;;  %v10398_v0 = vld [vmem:[#allocation154_spill] sm:$0xff]  ;;  %v10401_v25 = vld [vmem:[#allocation155_spill] sm:$0xff]  ;;  %v4298_v5 = vrot.slane %v9044_v61, %v10368_v21  ;;  %v4302_v4 = vrot.slane %v9048_v1, %v10368_v21  ;;  %v4306_v48 = vrot.slane %v9054_v56, %v10368_v21  ;;  %s5250_s7 = smov [#allocation4]  }
 0x473   :  { %v4242_v28 = vrot.slane %v10397_v52, %v10368_v21  ;;  %v4246_v22 = vrot.slane %v10398_v0, %v10368_v21  ;;  %v10399_v32 = vld [vmem:[#allocation94_spill] sm:$0xff]  ;;  %v4270_v60 = vrot.slane %v10401_v25, %v10368_v21  ;;  %v10403_v30 = vld [vmem:[#allocation156_spill] sm:$0xff]  ;;  %v10404_v51 = vld [vmem:[#allocation13_spill] sm:$0xff]  ;;  %v4314_v50 = vrot.slane %v9084_v14, %v10368_v21  ;;  %s4496_s27 = sshll.u32 %s5250_s7, 4  ;;  %s4497_s27 = int_to_ptr.vmem [resolvable:$true] %s4496_s27 }
 0x474   :  { %v4250_v42 = vrot.slane %v10399_v32, %v10368_v21  ;;  %v10400_v63 = vld [vmem:[#allocation102_spill] sm:$0xff]  ;;  %v4290_v20 = vrot.slane %v10403_v30, %v10368_v21  ;;  %v4294_v9 = vrot.slane %v10404_v51, %v10368_v21  ;;  %v4318_v39 = vrot.slane %v9088_v12, %v10368_v21  ;;  %v10406_v56 = vld [vmem:[#allocation56_spill] sm:$0xff]  ;;  %v10407_v23 = vld [vmem:[#allocation77_spill] sm:$0xff]  ;;  %s5216_s28 = scalar_lea.vmem %s4497_s27, 1536  ;;  %p5221_p9 = scmp.lt.s32.totalorder %s4497_s27, %s4497_s27 }
 0x475   :  { %v4266_v36 = vrot.slane %v10400_v63, %v10368_v21  ;;  %v10402_v37 = vld [vmem:[#allocation54_spill] sm:$0xff]  ;;  %v4322_v54 = vrot.slane %v9092_v13, %v10368_v21  ;;  %v9296_v45 = vrot.slane %v9096_v44, %v10368_v21  ;;  %v9300_v61 = vrot.slane %v9105_v38, %v10368_v21  ;;  %v10408_v17 = vld [vmem:[#allocation69_spill] sm:$0xff]  ;;  %v10409_v12 = vld [vmem:[#allocation96_spill] sm:$0xff]  ;;  %p5217_p8 = scmp.ne.s32.totalorder %s4497_s27, %s5216_s28  ;;  %p5222_p10 = scmp.lt.s32.totalorder %s5216_s28, %s5216_s28 }
 0x476   :  { %v4274_v15 = vrot.slane %v10402_v37, %v10368_v21  ;;  %v10405_v1 = vld [vmem:[#allocation58_spill] sm:$0xff]  ;;  %v4336_v49 = vmul.f32 %v4242_v28, %v10406_v56  ;;  %v4337_v14 = vmul.f32 %v4246_v22, %v10407_v23  ;;  %v4338_v18 = vmul.f32 %v4246_v22, %v10408_v17  ;;  %v10410_v47 = vld [vmem:[#allocation93_spill] sm:$0xff]  ;;  %v10411_v11 = vld [vmem:[#allocation8_spill] sm:$0xff] }
 0x477   :  { %v4335_v62 = vmul.f32 %v4242_v28, %v10405_v1  ;;  %v4339_v33 = vmul.f32 %v4250_v42, %v10409_v12  ;;  %v4340_v13 = vmul.f32 %v4250_v42, %v10410_v47  ;;  %v4341_v26 = vmul.f32 %v4254_v53, %v10411_v11  ;;  %v10412_v44 = vld [vmem:[#allocation98_spill] sm:$0xff]  ;;  %v10413_v24 = vld [vmem:[#allocation12_spill] sm:$0xff]  ;;  %v10414_v38 = vld [vmem:[#allocation9_spill] sm:$0xff]  ;;  %p5223_p11 = por %p5222_p10, %p5221_p9 }
 0x478   :  { %v4342_v27 = vmul.f32 %v4254_v53, %v10412_v44  ;;  %v4343_v3 = vmul.f32 %v4258_v19, %v10413_v24  ;;  %v4344_v6 = vmul.f32 %v4258_v19, %v10414_v38  ;;  %v10415_v7 = vld [vmem:[#allocation59_spill] sm:$0xff]  ;;  %v10416_v46 = vld [vmem:[#allocation57_spill] sm:$0xff]  ;;  %v10417_v10 = vld [vmem:[#allocation78_spill] sm:$0xff]  ;;  %v4426_v23 = vrot.slane %v4234_v8, %v10368_v21 }
 0x479   :  { %v4347_v40 = vmul.f32 %v4266_v36, %v10415_v7  ;;  %v4348_v2 = vmul.f32 %v4266_v36, %v10416_v46  ;;  %v4349_v29 = vmul.f32 %v4270_v60, %v10417_v10  ;;  %v10418_v55 = vld [vmem:[#allocation70_spill] sm:$0xff]  ;;  %v10419_v35 = vld [vmem:[#allocation97_spill] sm:$0xff]  ;;  %v10420_v52 = vld [vmem:[#allocation95_spill] sm:$0xff]  ;;  %p5224_p12 = pnand %p5223_p11, %p5217_p8 }
 0x47a   :  { %v4350_v41 = vmul.f32 %v4270_v60, %v10418_v55  ;;  %v4351_v43 = vmul.f32 %v4274_v15, %v10419_v35  ;;  %v4352_v28 = vmul.f32 %v4274_v15, %v10420_v52  ;;  %v10421_v0 = vld [vmem:[#allocation50_spill] sm:$0xff]  ;;  %v10422_v32 = vld [vmem:[#allocation99_spill] sm:$0xff]  ;;  %v10423_v53 = vld [vmem:[#allocation52_spill] sm:$0xff]  ;;  %v4422_v60 = vrot.slane %v4233_v59, %v10368_v21 }
 0x47b   :  { %v4353_v22 = vmul.f32 %v4278_v34, %v10421_v0  ;;  %v4354_v42 = vmul.f32 %v4278_v34, %v10422_v32  ;;  %v4355_v63 = vmul.f32 %v4282_v31, %v10423_v53  ;;  %v10424_v25 = vld [vmem:[#allocation51_spill] sm:$0xff]  ;;  %v10425_v37 = vld [vmem:[#allocation66_spill] sm:$0xff]  ;;  %v10426_v51 = vld [vmem:[#allocation64_spill] sm:$0xff]  ;;  %v4430_v15 = vrot.slane %v9250_v58, %v10368_v21 }
 0x47c   :  { %v4356_v19 = vmul.f32 %v4282_v31, %v10424_v25  ;;  %v4359_v30 = vmul.f32 %v4290_v20, %v10425_v37  ;;  %v4360_v36 = vmul.f32 %v4290_v20, %v10426_v51  ;;  %v10427_v1 = vld [vmem:[#allocation68_spill] sm:$0xff]  ;;  %v10428_v17 = vld [vmem:[#allocation74_spill] sm:$0xff]  ;;  %v4434_v31 = vrot.slane %v9253_v16, %v10368_v21  ;;  %v10431_v24 = vld [vmem:[#allocation21_spill] sm:$0xff] }
 0x47d   :  { %v4361_v56 = vmul.f32 %v4294_v9, %v10427_v1  ;;  %v4362_v12 = vmul.f32 %v4294_v9, %v10428_v17  ;;  %v10429_v34 = vld [vmem:[#allocation22_spill] sm:$0xff]  ;;  %v4365_v20 = vmul.f32 %v4302_v4, %v10431_v24  ;;  %v10432_v38 = vld [vmem:[#allocation20_spill] sm:$0xff]  ;;  %v4438_v59 = vrot.slane %v9256_v57, %v10368_v21  ;;  %v10433_v8 = vld [vmem:[#allocation17_spill] sm:$0xff] }
 0x47e   :  { %v4363_v47 = vmul.f32 %v4298_v5, %v10429_v34  ;;  %v10430_v11 = vld [vmem:[#allocation14_spill] sm:$0xff]  ;;  %v4366_v7 = vmul.f32 %v4302_v4, %v10432_v38  ;;  %5184 = vrcp.f32 %v4422_v60  ;;  %v4367_v46 = vmul.f32 %v4306_v48, %v10433_v8  ;;  %v10434_v9 = vld [vmem:[#allocation73_spill] sm:$0xff]  ;;  %v10435_v52 = vld [vmem:[#allocation67_spill] sm:$0xff] }
 0x47f   :  { %v4364_v44 = vmul.f32 %v4298_v5, %v10430_v11  ;;  %v4383_v58 = vadd.f32 %v4347_v40, %v4335_v62  ;;  %v4386_v10 = vadd.f32 %v4348_v2, %v4336_v49  ;;  %5186 = vrcp.f32 %v4426_v23  ;;  %v10436_v4 = vld [vmem:[#allocation65_spill] sm:$0xff]  ;;  %v10437_v40 = vld [vmem:[#allocation88_spill] sm:$0xff] }
 0x480   :  { %v4368_v55 = vmul.f32 %v4306_v48, %v10434_v9  ;;  %v4389_v35 = vadd.f32 %v4349_v29, %v4337_v14  ;;  %v4392_v5 = vadd.f32 %v4350_v41, %v4338_v18  ;;  %5188 = vrcp.f32 %v4430_v15  ;;  %v10438_v48 = vld [vmem:[#allocation82_spill] sm:$0xff]  ;;  %v10439_v41 = vld [vmem:[#allocation60_spill] sm:$0xff] }
 0x481   :  { %v4371_v16 = vmul.f32 %v4314_v50, %v10435_v52  ;;  %v4395_v0 = vadd.f32 %v4351_v43, %v4339_v33  ;;  %v4398_v32 = vadd.f32 %v4352_v28, %v4340_v13  ;;  %5190 = vrcp.f32 %v4434_v31  ;;  %v10440_v33 = vld [vmem:[#allocation15_spill] sm:$0xff] }
 0x482   :  { %v4372_v53 = vmul.f32 %v4314_v50, %v10436_v4  ;;  %v4401_v25 = vadd.f32 %v4353_v22, %v4341_v26  ;;  %v4404_v21 = vadd.f32 %v4354_v42, %v4342_v27  ;;  %5192 = vrcp.f32 %v4438_v59  ;;  %v10441_v50 = vld [vmem:[#allocation11_spill] sm:$0xff]  ;;  %v10442_v27 = vld [vmem:[#allocation62_spill] sm:$0xff] }
 0x483   :  { %v4384_v57 = vadd.f32 %v4383_v58, %v4359_v30  ;;  %v4387_v37 = vadd.f32 %v4386_v10, %v4360_v36  ;;  %v4407_v62 = vadd.f32 %v4355_v63, %v4343_v3  ;;  %v4410_v49 = vadd.f32 %v4356_v19, %v4344_v6  ;;  %v10443_v36 = vld [vmem:[#allocation80_spill] sm:$0xff] }
 0x484   :  { %v4373_v2 = vmul.f32 %v4318_v39, %v10437_v40  ;;  %v4374_v14 = vmul.f32 %v4318_v39, %v10438_v48  ;;  %v4390_v18 = vadd.f32 %v4389_v35, %v4361_v56  ;;  %v4393_v29 = vadd.f32 %v4392_v5, %v4362_v12  ;;  %v10444_v56 = vld [vmem:[#allocation19_spill] sm:$0xff] }
 0x485   :  { %v4375_v51 = vmul.f32 %v4322_v54, %v10439_v41  ;;  %v4376_v13 = vmul.f32 %v4322_v54, %v10440_v33  ;;  %v4396_v43 = vadd.f32 %v4395_v0, %v4363_v47  ;;  %v4399_v28 = vadd.f32 %v4398_v32, %v4364_v44 }
 0x486   :  { %v4377_v26 = vmul.f32 %v9296_v45, %v10441_v50  ;;  %v4378_v22 = vmul.f32 %v9296_v45, %v10442_v27  ;;  %v4402_v3 = vadd.f32 %v4401_v25, %v4365_v20  ;;  %v4405_v6 = vadd.f32 %v4404_v21, %v4366_v7 }
 0x487   :  { %v4385_v42 = vadd.f32 %v4384_v57, %v4371_v16  ;;  %v4388_v63 = vadd.f32 %v4387_v37, %v4372_v53  ;;  %v4408_v19 = vadd.f32 %v4407_v62, %v4367_v46  ;;  %v4411_v39 = vadd.f32 %v4410_v49, %v4368_v55 }
 0x488   :  { %v5185_v30 = vpop.eup %5184  ;;  %v4379_v1 = vmul.f32 %v9300_v61, %v10443_v36  ;;  %v4380_v54 = vmul.f32 %v9300_v61, %v10444_v56  ;;  %v4391_v60 = vadd.f32 %v4390_v18, %v4373_v2  ;;  %v4394_v23 = vadd.f32 %v4393_v29, %v4374_v14 }
 0x489   :  { %v5187_v15 = vpop.eup %5186  ;;  %v4397_v17 = vadd.f32 %v4396_v43, %v4375_v51  ;;  %v4400_v12 = vadd.f32 %v4399_v28, %v4376_v13  ;;  %v4444_v34 = vmul.f32 %v5185_v30, %v4385_v42  ;;  %v4445_v45 = vmul.f32 %v5185_v30, %v4388_v63 }
 0x48a   :  { %v5189_v47 = vpop.eup %5188  ;;  %v4403_v11 = vadd.f32 %v4402_v3, %v4377_v26  ;;  %v4406_v44 = vadd.f32 %v4405_v6, %v4378_v22  ;;  %v4447_v31 = vmul.f32 %v5187_v15, %v4391_v60  ;;  %v4448_v24 = vmul.f32 %v5187_v15, %v4394_v23 }
 0x48b   :  { %v5191_v20 = vpop.eup %5190  ;;  %v4409_v38 = vadd.f32 %v4408_v19, %v4379_v1  ;;  %v4412_v7 = vadd.f32 %v4411_v39, %v4380_v54  ;;  %v4450_v59 = vmul.f32 %v5189_v47, %v4397_v17  ;;  %v4451_v8 = vmul.f32 %v5189_v47, %v4400_v12  ;;  %4467 = vst [vmem:[#allocation4] sm:$0xff] %v4444_v34 }
 0x48c   :  { %4468 = vst [vmem:[#allocation4 + $0x8] sm:$0xff] %v4445_v45  ;;  %v5193_v61 = vpop.eup %5192  ;;  %v4453_v46 = vmul.f32 %v5191_v20, %v4403_v11  ;;  %v4454_v58 = vmul.f32 %v5191_v20, %v4406_v44  ;;  %4469 = vst [vmem:[#allocation4 + $0x10] sm:$0xff] %v4447_v31 }
 0x48d   :  { %4470 = vst [vmem:[#allocation4 + $0x18] sm:$0xff] %v4448_v24  ;;  %v4456_v10 = vmul.f32 %v5193_v61, %v4409_v38  ;;  %v4457_v9 = vmul.f32 %v5193_v61, %v4412_v7  ;;  %4471 = vst [vmem:[#allocation4 + $0x20] sm:$0xff] %v4450_v59 }
 0x48e   :  { %4472 = vst [vmem:[#allocation4 + $0x28] sm:$0xff] %v4451_v8  ;;  %4473 = vst [vmem:[#allocation4 + $0x30] sm:$0xff] %v4453_v46 }
 0x48f   :  { %4474 = vst [vmem:[#allocation4 + $0x38] sm:$0xff] %v4454_v58  ;;  %4475 = vst [vmem:[#allocation4 + $0x40] sm:$0xff] %v4456_v10 }
 0x490   :  { %4476 = vst [vmem:[#allocation4 + $0x48] sm:$0xff] %v4457_v9 }
 0x491   :  { %5227 = shalt.err (!%p5224_p12)
}
 0x492   :  { %s5228_s30 = scalar_lea.hbm %s9374_s8, 1536 }
 0x493   :  { %p5229_p13 = scmp.ne.s32.totalorder %s9374_s8, %s5228_s30  ;;  %p5232_p0 = scmp.lt.u32.totalorder %s5228_s30, %s9374_s8 }
 0x495   :  { %p5234_p1 = pnand %p5232_p0, %p5229_p13 }
 0x497   :  { %5237 = shalt.err (!%p5234_p1)
}
 0x498   :  { %s5251_s11 = smov 128   ;;  %s5252_s12 = smov 8  }
 0x499   :  { %4502 = dma.vmem_to_hbm [thread:$0]  %s4497_s27, 1536, %s9374_s8, [#allocation5], %s5251_s11, %s5251_s11, %s5252_s12  }
 0x49a   :  { %5238 = dma.done.wait [#allocation3], 96  }
 0x49b   :  { %5239 = vsyncadd [#allocation3], 4294967200 }
 0x49c   :  { %5240 = dma.done.wait [#allocation5], 1536  }
 0x49d   :  { %5241 = vsyncadd [#allocation5], 4294965760 }
 0x49e   :  { %4509 = vsyncpa [#allocation3], 1 }
 0x49f   :  { %4510 = vsyncpa [#allocation5], 1 }

</bundles_post_ra>
